<compile_context>
chip_gen: v5e
topology: v5e:2x2
jax: 0.10.0
libtpu: 0.0.40
codegen_flags: <defaults>
</compile_context>

<pallas_src>
import numpy as np
import jax
import jax.numpy as jnp
from jax.experimental import pallas as pl
from jax.experimental.pallas import tpu as pltpu

# Static sizes implied by the module definition.
H_IN = W_IN = 14
H_OUT = W_OUT = 4
POOL_K, POOL_S = 5, 3
S_IN = H_IN * W_IN            # 196
S_OUT = H_OUT * W_OUT         # 16
CONV_OUT = 128
HIDDEN = 1024
FLAT = CONV_OUT * S_OUT       # 2048
LANE = 128


# --------------------------------------------------------------------------- #
# Kernel
# --------------------------------------------------------------------------- #
def _aux_kernel(x_ref,      # (BT, S_IN, C_in)      bf16  one batch tile
                mask_ref,   # (BT, HIDDEN)          f32   dropout scale (0. / 2.)
                p_ref,      # (S_OUT, S_IN)         bf16  avg-pool matrix (const)
                wct_ref,    # (C_in, 128)           bf16  1x1 conv weight^T
                bc_ref,     # (1, 128)              f32
                w1_ref,     # (S_OUT, 128, HIDDEN)  bf16  permuted fc1 weight
                b1_ref,     # (1, HIDDEN)           f32
                w2t_ref,    # (HIDDEN, C_out_pad)   bf16
                b2_ref,     # (1, C_out_pad)        f32
                out_ref):   # (BT, C_out_pad)       f32
    bt = x_ref.shape[0]
    c_in = x_ref.shape[2]

    xb = x_ref[...]                                              # (BT, 196, C_in)

    # ---- AvgPool2d(5, stride=3): batched matmul with a constant pool matrix.
    # (hoisted single broadcast; JAX does not CSE broadcast_in_dim in loops)
    pmat = jnp.broadcast_to(p_ref[...], (bt, S_OUT, S_IN))       # (BT, 16, 196)
    pooled = jnp.einsum("bos,bsc->boc", pmat, xb,
                        preferred_element_type=jnp.float32)      # (BT, 16, C_in)

    # ---- 1x1 conv (pointwise) + bias + ReLU ----
    pooled2 = pooled.astype(jnp.bfloat16).reshape(bt * S_OUT, c_in)
    conv = jnp.dot(pooled2, wct_ref[...],
                   preferred_element_type=jnp.float32)           # (BT*16, 128)
    conv = jnp.maximum(conv + bc_ref[...], 0.0)
    # Cast once so the 16 per-spatial slices below move bf16, not f32.
    conv_bf = conv.astype(jnp.bfloat16).reshape(bt, S_OUT, CONV_OUT)

    # ---- flatten + fc1 + ReLU ----
    # torch.flatten orders features as c*16 + s; fc1's weight was pre-permuted
    # so w1_ref[s, c, o] == W1[o, c*16 + s].  Accumulate over the 16 spatial
    # positions with (BT,128)@(128,1024) dots (same MXU work as one K=2048 dot,
    # without a sublane->lane reshape of the activation).
    h = jnp.zeros((bt, HIDDEN), jnp.float32)
    for s in range(S_OUT):                                       # static unroll
        h = h + jnp.dot(conv_bf[:, s, :], w1_ref[s],
                        preferred_element_type=jnp.float32)
    h = jnp.maximum(h + b1_ref[...], 0.0)

    # ---- dropout(p=0.5), training mode: precomputed keep-mask scaled by 2.0 ----
    # TODO(synk): generate in-kernel with pltpu.prng_random_bits on TPU-only builds.
    h = h * mask_ref[...]

    # ---- fc2 (output lane-padded to a multiple of 128 -> dense stores) ----
    out = jnp.dot(h.astype(jnp.bfloat16), w2t_ref[...],
                  preferred_element_type=jnp.float32)            # (BT, C_out_pad)
    out_ref[...] = out + b2_ref[...]


# --------------------------------------------------------------------------- #
# Helpers
# --------------------------------------------------------------------------- #
def _round_up(x, m):
    return (x + m - 1) // m * m


def _pool_matrix():
    """Constant (S_OUT, S_IN) matrix implementing AvgPool2d(5, stride=3)."""
    p = np.zeros((S_OUT, S_IN), np.float32)
    inv = 1.0 / (POOL_K * POOL_K)
    for oh in range(H_OUT):
        for ow in range(W_OUT):
            for kh in range(POOL_K):
                for kw in range(POOL_K):
                    hi = oh * POOL_S + kh
                    wi = ow * POOL_S + kw
                    p[oh * W_OUT + ow, hi * W_IN + wi] = inv
    return p


def _pick_batch_tile(batch, c_in):
    """Largest batch tile (multiple of 8, <=128) whose double-buffered bf16
    x tile stays under ~16 MiB -- sized so it also fits v7x's 64 MiB VMEM."""
    bt = min(128, _round_up(batch, 8))
    while bt > 8 and 2 * bt * S_IN * c_in * 2 > 16 * 1024 * 1024:
        bt //= 2
    return max(8, bt)


def _vmem_estimate(bt, c_in, c_out_pad):
    """Rough VMEM footprint (bytes) used to size vmem_limit_bytes."""
    bf2, f4 = 2, 4
    weights = (S_OUT * S_IN * bf2 + c_in * CONV_OUT * bf2 + CONV_OUT * f4
               + S_OUT * CONV_OUT * HIDDEN * bf2 + HIDDEN * f4
               + HIDDEN * c_out_pad * bf2 + c_out_pad * f4)
    streamed = 2 * (bt * S_IN * c_in * bf2          # x (double-buffered)
                    + bt * HIDDEN * f4              # dropout mask
                    + bt * c_out_pad * f4)          # output
    interm = (bt * S_OUT * S_IN * bf2               # broadcast pool matrix
              + bt * S_OUT * max(c_in, LANE) * (f4 + bf2)
              + bt * S_OUT * CONV_OUT * (f4 + bf2)
              + 2 * bt * HIDDEN * f4)
    return 2 * weights + streamed + interm          # weights x2 = safety margin


def _cost_estimate(b_pad, c_in, c_out_pad):
    flops = 2 * b_pad * (S_OUT * S_IN * c_in          # pooling matmul
                         + S_OUT * c_in * CONV_OUT    # 1x1 conv
                         + FLAT * HIDDEN              # fc1
                         + HIDDEN * c_out_pad)        # fc2
    bytes_accessed = (b_pad * S_IN * c_in * 2          # x (bf16)
                      + b_pad * HIDDEN * 4             # dropout scale
                      + S_OUT * S_IN * 2
                      + c_in * CONV_OUT * 2 + CONV_OUT * 4
                      + S_OUT * CONV_OUT * HIDDEN * 2 + HIDDEN * 4
                      + HIDDEN * c_out_pad * 2 + c_out_pad * 4
                      + b_pad * c_out_pad * 4)         # output
    return pl.CostEstimate(flops=flops, transcendentals=0,
                           bytes_accessed=bytes_accessed)


def _const_spec(shape):
    """BlockSpec for an input whose block never changes across the grid.
    Requests single buffering when the installed JAX supports it."""
    index_map = lambda t: (0,) * len(shape)
    try:
        return pl.BlockSpec(shape, index_map, pipeline_mode=pl.Buffered(1))
    except Exception:                                   # pragma: no cover
        return pl.BlockSpec(shape, index_map)


# --------------------------------------------------------------------------- #
# Wrapper
# --------------------------------------------------------------------------- #
def auxiliary_classifiers_forward(x_nchw, params, *, dropout_keep=None,
                                  rng_key=None, training=True):
    """Forward pass of `auxiliary_classifiers` (training-mode dropout by
    default, matching F.dropout's default).  `dropout_keep` may be a (B, 1024)
    boolean keep-mask; otherwise it is drawn from `rng_key`."""
    B, C_in, H, W = x_nchw.shape
    assert (H, W) == (H_IN, W_IN), "fc1=Linear(128*4*4,...) implies 14x14 input"

    wc, bc = params["conv_w"], params["conv_b"]
    w1, b1 = params["fc1_w"], params["fc1_b"]
    w2, b2 = params["fc2_w"], params["fc2_b"]
    C_out = w2.shape[0]
    C_out_pad = _round_up(C_out, LANE)

    BT = _pick_batch_tile(B, C_in)
    B_pad = _round_up(B, BT)

    # Glue: NCHW -> (B, H*W, C) bf16, zero-pad batch to a tile multiple.
    x = jnp.transpose(x_nchw, (0, 2, 3, 1)).reshape(B, S_IN, C_in)
    x = x.astype(jnp.bfloat16)
    if B_pad != B:
        x = jnp.pad(x, ((0, B_pad - B), (0, 0), (0, 0)))

    # Dropout scale tensor (0.0 dropped / 2.0 kept), built outside the kernel.
    if not training:
        scale = jnp.ones((B_pad, HIDDEN), jnp.float32)
    else:
        if dropout_keep is None:
            key = rng_key if rng_key is not None else jax.random.PRNGKey(0)
            dropout_keep = jax.random.bernoulli(key, 0.5, (B, HIDDEN))
        scale = dropout_keep.astype(jnp.float32) * 2.0
        if B_pad != B:
            scale = jnp.pad(scale, ((0, B_pad - B), (0, 0)))

    # Parameters: pre-permute / pad, cast matmul operands to bf16.
    p = jnp.asarray(_pool_matrix(), jnp.bfloat16)                       # (16, 196)
    wct = wc.reshape(CONV_OUT, C_in).T.astype(jnp.bfloat16)             # (C_in, 128)
    bc2 = bc.reshape(1, CONV_OUT).astype(jnp.float32)
    # w1_resh[s, c, o] = W1[o, c*S_OUT + s]   (matches torch.flatten order)
    w1_resh = jnp.transpose(w1.reshape(HIDDEN, CONV_OUT, S_OUT),
                            (2, 1, 0)).astype(jnp.bfloat16)             # (16,128,1024)
    b1_2 = b1.reshape(1, HIDDEN).astype(jnp.float32)
    w2t = jnp.zeros((HIDDEN, C_out_pad), jnp.bfloat16).at[:, :C_out].set(
        w2.T.astype(jnp.bfloat16))                                      # (1024, Cpad)
    b2_2 = jnp.zeros((1, C_out_pad), jnp.float32).at[0, :C_out].set(
        b2.astype(jnp.float32))

    grid = (B_pad // BT,)
    in_specs = [
        pl.BlockSpec((BT, S_IN, C_in), lambda t: (t, 0, 0)),   # x tile
        pl.BlockSpec((BT, HIDDEN), lambda t: (t, 0)),          # dropout scale
        _const_spec((S_OUT, S_IN)),                            # pool matrix
        _const_spec((C_in, CONV_OUT)),                         # conv weight^T
        _const_spec((1, CONV_OUT)),                            # conv bias
        _const_spec((S_OUT, CONV_OUT, HIDDEN)),                # fc1 weight (perm)
        _const_spec((1, HIDDEN)),                              # fc1 bias
        _const_spec((HIDDEN, C_out_pad)),                      # fc2 weight^T (pad)
        _const_spec((1, C_out_pad)),                           # fc2 bias (pad)
    ]
    out_specs = pl.BlockSpec((BT, C_out_pad), lambda t: (t, 0))

    vmem_limit = int(min(max(1.5 * _vmem_estimate(BT, C_in, C_out_pad),
                             32 * 1024 * 1024), 48 * 1024 * 1024))

    out = pl.pallas_call(
        _aux_kernel,
        out_shape=jax.ShapeDtypeStruct((B_pad, C_out_pad), jnp.float32),
        grid=grid,
        in_specs=in_specs,
        out_specs=out_specs,
        compiler_params=pltpu.CompilerParams(
            dimension_semantics=("parallel",),   # batch tiles are independent
            vmem_limit_bytes=vmem_limit,
        ),
        cost_estimate=_cost_estimate(B_pad, C_in, C_out_pad),
    )(x, scale, p, wct, bc2, w1_resh, b1_2, w2t, b2_2)

    return out[:B, :C_out]


# --------------------------------------------------------------------------- #
# Pure-JAX reference (mirrors the PyTorch module, f32)
# --------------------------------------------------------------------------- #
def _reference_forward(x_nchw, params, keep):
    B = x_nchw.shape[0]
    pooled = jax.lax.reduce_window(
        x_nchw, 0.0, jax.lax.add,
        window_dimensions=(1, 1, POOL_K, POOL_K),
        window_strides=(1, 1, POOL_S, POOL_S),
        padding="VALID") / float(POOL_K * POOL_K)
    wc = params["conv_w"].reshape(CONV_OUT, -1)
    conv = jnp.einsum("bchw,oc->bohw", pooled, wc) \
        + params["conv_b"][None, :, None, None]
    conv = jnp.maximum(conv, 0.0)
    flat = conv.reshape(B, FLAT)                      # torch.flatten order c*16+s
    h = jnp.maximum(flat @ params["fc1_w"].T + params["fc1_b"], 0.0)
    h = h * keep.astype(jnp.float32) * 2.0            # same dropout mask / scale
    return h @ params["fc2_w"].T + params["fc2_b"]


def init_params(key, in_channels, out_channels):
    """Deterministic init matching the PyTorch layer shapes (U(-k,k), k=1/sqrt(fan_in))."""
    ks = jax.random.split(key, 6)
    kc = 1.0 / np.sqrt(in_channels)
    k1 = 1.0 / np.sqrt(FLAT)
    k2 = 1.0 / np.sqrt(HIDDEN)
    u = lambda k, shape, b: jax.random.uniform(k, shape, jnp.float32, -b, b)
    return dict(
        conv_w=u(ks[0], (CONV_OUT, in_channels, 1, 1), kc),
        conv_b=u(ks[1], (CONV_OUT,), kc),
        fc1_w=u(ks[2], (HIDDEN, FLAT), k1),
        fc1_b=u(ks[3], (HIDDEN,), k1),
        fc2_w=u(ks[4], (out_channels, HIDDEN), k2),
        fc2_b=u(ks[5], (out_channels,), k2),
    )


if __name__ == "__main__":
    key = jax.random.PRNGKey(0)
    k1, k2, k3, k4, k5, k6 = jax.random.split(key, 6)

    # ---- Case 1: tiny shapes (single batch tile, grid = 1) -------------------
    B, C_in, C_out = 2, 4, 10
    x = jax.random.normal(k1, (B, C_in, H_IN, W_IN), jnp.float32)  # NCHW, 14x14
    params = init_params(k2, C_in, C_out)
    keep = jax.random.bernoulli(k3, 0.5, (B, HIDDEN))              # dropout keep-mask

    out = jax.block_until_ready(
        auxiliary_classifiers_forward(x, params, dropout_keep=keep))
    assert out.shape == (B, C_out), out.shape
    assert bool(jnp.all(jnp.isfinite(out)))
    ref = _reference_forward(x, params, keep)
    err1 = float(jnp.max(jnp.abs(out - ref)))
    assert bool(jnp.allclose(out, ref, atol=5e-2, rtol=5e-2)), err1

    # ---- Case 2: multi-tile grid (2 batch tiles of 128, "parallel" axis) -----
    B2, C_in2, C_out2 = 256, 8, 16
    x2 = jax.random.normal(k4, (B2, C_in2, H_IN, W_IN), jnp.float32)
    params2 = init_params(k5, C_in2, C_out2)
    keep2 = jax.random.bernoulli(k6, 0.5, (B2, HIDDEN))

    out2 = jax.block_until_ready(
        auxiliary_classifiers_forward(x2, params2, dropout_keep=keep2))
    assert out2.shape == (B2, C_out2), out2.shape
    assert bool(jnp.all(jnp.isfinite(out2)))
    ref2 = _reference_forward(x2, params2, keep2)
    err2 = float(jnp.max(jnp.abs(out2 - ref2)))
    assert bool(jnp.allclose(out2, ref2, atol=1e-1, rtol=1e-1)), err2

    print("KERNEL_OK")
</pallas_src>

<mosaic_0001>
module attributes {stable_mosaic.version = 11 : i64} {
  func.func @_aux_kernel(%arg0: i32, %arg1: memref<8x196x4xbf16, #tpu.memory_space<vmem>>, %arg2: memref<8x1024xf32, #tpu.memory_space<vmem>>, %arg3: memref<16x196xbf16, #tpu.memory_space<vmem>>, %arg4: memref<4x128xbf16, #tpu.memory_space<vmem>>, %arg5: memref<1x128xf32, #tpu.memory_space<vmem>>, %arg6: memref<16x128x1024xbf16, #tpu.memory_space<vmem>>, %arg7: memref<1x1024xf32, #tpu.memory_space<vmem>>, %arg8: memref<1024x128xbf16, #tpu.memory_space<vmem>>, %arg9: memref<1x128xf32, #tpu.memory_space<vmem>>, %arg10: memref<8x128xf32, #tpu.memory_space<vmem>>) attributes {dimension_semantics = [#tpu.dimension_semantics<parallel>], iteration_bounds = array<i64: 1>, scalar_prefetch = 0 : i64, scratch_operands = 0 : i64, tpu.core_type = #tpu.core_type<tc>, window_params = [{transform_indices = @transform_0, window_bounds = array<i64: 8, 196, 4>}, {transform_indices = @transform_1, window_bounds = array<i64: 8, 1024>}, {pipeline_mode = #tpu.pipeline_mode<synchronous>, transform_indices = @transform_2, window_bounds = array<i64: 16, 196>}, {pipeline_mode = #tpu.pipeline_mode<synchronous>, transform_indices = @transform_3, window_bounds = array<i64: 4, 128>}, {pipeline_mode = #tpu.pipeline_mode<synchronous>, transform_indices = @transform_4, window_bounds = array<i64: 1, 128>}, {pipeline_mode = #tpu.pipeline_mode<synchronous>, transform_indices = @transform_5, window_bounds = array<i64: 16, 128, 1024>}, {pipeline_mode = #tpu.pipeline_mode<synchronous>, transform_indices = @transform_6, window_bounds = array<i64: 1, 1024>}, {pipeline_mode = #tpu.pipeline_mode<synchronous>, transform_indices = @transform_7, window_bounds = array<i64: 1024, 128>}, {pipeline_mode = #tpu.pipeline_mode<synchronous>, transform_indices = @transform_8, window_bounds = array<i64: 1, 128>}, {transform_indices = @transform_9, window_bounds = array<i64: 8, 128>}]} {
    %c0 = arith.constant 0 : index
    %c0_0 = arith.constant 0 : index
    %c0_1 = arith.constant 0 : index
    %0 = vector.load %arg1[%c0, %c0_0, %c0_1] : memref<8x196x4xbf16, #tpu.memory_space<vmem>>, vector<8x196x4xbf16>
    %c0_2 = arith.constant 0 : index
    %c0_3 = arith.constant 0 : index
    %1 = vector.load %arg3[%c0_2, %c0_3] : memref<16x196xbf16, #tpu.memory_space<vmem>>, vector<16x196xbf16>
    %2 = vector.shape_cast %1 : vector<16x196xbf16> to vector<1x16x196xbf16>
    %3 = vector.broadcast %2 : vector<1x16x196xbf16> to vector<8x16x196xbf16>
    "tpu.trace_start"() <{level = 10 : i32, message = "bos,bsc->boc"}> : () -> ()
    %cst = arith.constant dense<0.000000e+00> : vector<8x16x4xf32>
    %4 = tpu.matmul %3, %0, %cst {dimension_numbers = #tpu.dot_dimension_numbers<[2], [1], [1], [2], [0, 0, 0, 1, 1, 2], [0], [0]>} : vector<8x16x196xbf16>, vector<8x196x4xbf16>, vector<8x16x4xf32> -> vector<8x16x4xf32>
    "tpu.trace_stop"() : () -> ()
    %5 = arith.truncf %4 : vector<8x16x4xf32> to vector<8x16x4xbf16>
    %6 = vector.shape_cast %5 : vector<8x16x4xbf16> to vector<128x4xbf16>
    %c0_4 = arith.constant 0 : index
    %c0_5 = arith.constant 0 : index
    %7 = vector.load %arg4[%c0_4, %c0_5] : memref<4x128xbf16, #tpu.memory_space<vmem>>, vector<4x128xbf16>
    %cst_6 = arith.constant dense<0.000000e+00> : vector<128x128xf32>
    %8 = tpu.matmul %6, %7, %cst_6 {dimension_numbers = #tpu.dot_dimension_numbers<[1], [0], [0], [1], [0, 0, 1, 1], [], []>} : vector<128x4xbf16>, vector<4x128xbf16>, vector<128x128xf32> -> vector<128x128xf32>
    %c0_7 = arith.constant 0 : index
    %c0_8 = arith.constant 0 : index
    %9 = vector.load %arg5[%c0_7, %c0_8] : memref<1x128xf32, #tpu.memory_space<vmem>>, vector<1x128xf32>
    %10 = vector.broadcast %9 : vector<1x128xf32> to vector<128x128xf32>
    %11 = arith.addf %8, %10 : vector<128x128xf32>
    %cst_9 = arith.constant 0.000000e+00 : f32
    %12 = vector.broadcast %cst_9 : f32 to vector<128x128xf32>
    %13 = arith.maximumf %11, %12 : vector<128x128xf32>
    %14 = arith.truncf %13 : vector<128x128xf32> to vector<128x128xbf16>
    %15 = vector.shape_cast %14 : vector<128x128xbf16> to vector<8x16x128xbf16>
    %cst_10 = arith.constant 0.000000e+00 : f32
    %16 = vector.broadcast %cst_10 : f32 to vector<8x1024xf32>
    %17 = vector.extract_strided_slice %15 {offsets = [0, 0, 0], sizes = [8, 1, 128], strides = [1, 1, 1]} : vector<8x16x128xbf16> to vector<8x1x128xbf16>
    %18 = vector.shape_cast %17 : vector<8x1x128xbf16> to vector<8x128xbf16>
    %c0_11 = arith.constant 0 : index
    %c0_12 = arith.constant 0 : index
    %c0_13 = arith.constant 0 : index
    %19 = vector.load %arg6[%c0_11, %c0_12, %c0_13] : memref<16x128x1024xbf16, #tpu.memory_space<vmem>>, vector<1x128x1024xbf16>
    %20 = vector.shape_cast %19 : vector<1x128x1024xbf16> to vector<128x1024xbf16>
    %cst_14 = arith.constant dense<0.000000e+00> : vector<8x1024xf32>
    %21 = tpu.matmul %18, %20, %cst_14 {dimension_numbers = #tpu.dot_dimension_numbers<[1], [0], [0], [1], [0, 0, 1, 1], [], []>} : vector<8x128xbf16>, vector<128x1024xbf16>, vector<8x1024xf32> -> vector<8x1024xf32>
    %22 = arith.addf %16, %21 : vector<8x1024xf32>
    %23 = vector.extract_strided_slice %15 {offsets = [0, 1, 0], sizes = [8, 1, 128], strides = [1, 1, 1]} : vector<8x16x128xbf16> to vector<8x1x128xbf16>
    %24 = vector.shape_cast %23 : vector<8x1x128xbf16> to vector<8x128xbf16>
    %c1 = arith.constant 1 : index
    %c0_15 = arith.constant 0 : index
    %c0_16 = arith.constant 0 : index
    %25 = vector.load %arg6[%c1, %c0_15, %c0_16] : memref<16x128x1024xbf16, #tpu.memory_space<vmem>>, vector<1x128x1024xbf16>
    %26 = vector.shape_cast %25 : vector<1x128x1024xbf16> to vector<128x1024xbf16>
    %cst_17 = arith.constant dense<0.000000e+00> : vector<8x1024xf32>
    %27 = tpu.matmul %24, %26, %cst_17 {dimension_numbers = #tpu.dot_dimension_numbers<[1], [0], [0], [1], [0, 0, 1, 1], [], []>} : vector<8x128xbf16>, vector<128x1024xbf16>, vector<8x1024xf32> -> vector<8x1024xf32>
    %28 = arith.addf %22, %27 : vector<8x1024xf32>
    %29 = vector.extract_strided_slice %15 {offsets = [0, 2, 0], sizes = [8, 1, 128], strides = [1, 1, 1]} : vector<8x16x128xbf16> to vector<8x1x128xbf16>
    %30 = vector.shape_cast %29 : vector<8x1x128xbf16> to vector<8x128xbf16>
    %c2 = arith.constant 2 : index
    %c0_18 = arith.constant 0 : index
    %c0_19 = arith.constant 0 : index
    %31 = vector.load %arg6[%c2, %c0_18, %c0_19] : memref<16x128x1024xbf16, #tpu.memory_space<vmem>>, vector<1x128x1024xbf16>
    %32 = vector.shape_cast %31 : vector<1x128x1024xbf16> to vector<128x1024xbf16>
    %cst_20 = arith.constant dense<0.000000e+00> : vector<8x1024xf32>
    %33 = tpu.matmul %30, %32, %cst_20 {dimension_numbers = #tpu.dot_dimension_numbers<[1], [0], [0], [1], [0, 0, 1, 1], [], []>} : vector<8x128xbf16>, vector<128x1024xbf16>, vector<8x1024xf32> -> vector<8x1024xf32>
    %34 = arith.addf %28, %33 : vector<8x1024xf32>
    %35 = vector.extract_strided_slice %15 {offsets = [0, 3, 0], sizes = [8, 1, 128], strides = [1, 1, 1]} : vector<8x16x128xbf16> to vector<8x1x128xbf16>
    %36 = vector.shape_cast %35 : vector<8x1x128xbf16> to vector<8x128xbf16>
    %c3 = arith.constant 3 : index
    %c0_21 = arith.constant 0 : index
    %c0_22 = arith.constant 0 : index
    %37 = vector.load %arg6[%c3, %c0_21, %c0_22] : memref<16x128x1024xbf16, #tpu.memory_space<vmem>>, vector<1x128x1024xbf16>
    %38 = vector.shape_cast %37 : vector<1x128x1024xbf16> to vector<128x1024xbf16>
    %cst_23 = arith.constant dense<0.000000e+00> : vector<8x1024xf32>
    %39 = tpu.matmul %36, %38, %cst_23 {dimension_numbers = #tpu.dot_dimension_numbers<[1], [0], [0], [1], [0, 0, 1, 1], [], []>} : vector<8x128xbf16>, vector<128x1024xbf16>, vector<8x1024xf32> -> vector<8x1024xf32>
    %40 = arith.addf %34, %39 : vector<8x1024xf32>
    %41 = vector.extract_strided_slice %15 {offsets = [0, 4, 0], sizes = [8, 1, 128], strides = [1, 1, 1]} : vector<8x16x128xbf16> to vector<8x1x128xbf16>
    %42 = vector.shape_cast %41 : vector<8x1x128xbf16> to vector<8x128xbf16>
    %c4 = arith.constant 4 : index
    %c0_24 = arith.constant 0 : index
    %c0_25 = arith.constant 0 : index
    %43 = vector.load %arg6[%c4, %c0_24, %c0_25] : memref<16x128x1024xbf16, #tpu.memory_space<vmem>>, vector<1x128x1024xbf16>
    %44 = vector.shape_cast %43 : vector<1x128x1024xbf16> to vector<128x1024xbf16>
    %cst_26 = arith.constant dense<0.000000e+00> : vector<8x1024xf32>
    %45 = tpu.matmul %42, %44, %cst_26 {dimension_numbers = #tpu.dot_dimension_numbers<[1], [0], [0], [1], [0, 0, 1, 1], [], []>} : vector<8x128xbf16>, vector<128x1024xbf16>, vector<8x1024xf32> -> vector<8x1024xf32>
    %46 = arith.addf %40, %45 : vector<8x1024xf32>
    %47 = vector.extract_strided_slice %15 {offsets = [0, 5, 0], sizes = [8, 1, 128], strides = [1, 1, 1]} : vector<8x16x128xbf16> to vector<8x1x128xbf16>
    %48 = vector.shape_cast %47 : vector<8x1x128xbf16> to vector<8x128xbf16>
    %c5 = arith.constant 5 : index
    %c0_27 = arith.constant 0 : index
    %c0_28 = arith.constant 0 : index
    %49 = vector.load %arg6[%c5, %c0_27, %c0_28] : memref<16x128x1024xbf16, #tpu.memory_space<vmem>>, vector<1x128x1024xbf16>
    %50 = vector.shape_cast %49 : vector<1x128x1024xbf16> to vector<128x1024xbf16>
    %cst_29 = arith.constant dense<0.000000e+00> : vector<8x1024xf32>
    %51 = tpu.matmul %48, %50, %cst_29 {dimension_numbers = #tpu.dot_dimension_numbers<[1], [0], [0], [1], [0, 0, 1, 1], [], []>} : vector<8x128xbf16>, vector<128x1024xbf16>, vector<8x1024xf32> -> vector<8x1024xf32>
    %52 = arith.addf %46, %51 : vector<8x1024xf32>
    %53 = vector.extract_strided_slice %15 {offsets = [0, 6, 0], sizes = [8, 1, 128], strides = [1, 1, 1]} : vector<8x16x128xbf16> to vector<8x1x128xbf16>
    %54 = vector.shape_cast %53 : vector<8x1x128xbf16> to vector<8x128xbf16>
    %c6 = arith.constant 6 : index
    %c0_30 = arith.constant 0 : index
    %c0_31 = arith.constant 0 : index
    %55 = vector.load %arg6[%c6, %c0_30, %c0_31] : memref<16x128x1024xbf16, #tpu.memory_space<vmem>>, vector<1x128x1024xbf16>
    %56 = vector.shape_cast %55 : vector<1x128x1024xbf16> to vector<128x1024xbf16>
    %cst_32 = arith.constant dense<0.000000e+00> : vector<8x1024xf32>
    %57 = tpu.matmul %54, %56, %cst_32 {dimension_numbers = #tpu.dot_dimension_numbers<[1], [0], [0], [1], [0, 0, 1, 1], [], []>} : vector<8x128xbf16>, vector<128x1024xbf16>, vector<8x1024xf32> -> vector<8x1024xf32>
    %58 = arith.addf %52, %57 : vector<8x1024xf32>
    %59 = vector.extract_strided_slice %15 {offsets = [0, 7, 0], sizes = [8, 1, 128], strides = [1, 1, 1]} : vector<8x16x128xbf16> to vector<8x1x128xbf16>
    %60 = vector.shape_cast %59 : vector<8x1x128xbf16> to vector<8x128xbf16>
    %c7 = arith.constant 7 : index
    %c0_33 = arith.constant 0 : index
    %c0_34 = arith.constant 0 : index
    %61 = vector.load %arg6[%c7, %c0_33, %c0_34] : memref<16x128x1024xbf16, #tpu.memory_space<vmem>>, vector<1x128x1024xbf16>
    %62 = vector.shape_cast %61 : vector<1x128x1024xbf16> to vector<128x1024xbf16>
    %cst_35 = arith.constant dense<0.000000e+00> : vector<8x1024xf32>
    %63 = tpu.matmul %60, %62, %cst_35 {dimension_numbers = #tpu.dot_dimension_numbers<[1], [0], [0], [1], [0, 0, 1, 1], [], []>} : vector<8x128xbf16>, vector<128x1024xbf16>, vector<8x1024xf32> -> vector<8x1024xf32>
    %64 = arith.addf %58, %63 : vector<8x1024xf32>
    %65 = vector.extract_strided_slice %15 {offsets = [0, 8, 0], sizes = [8, 1, 128], strides = [1, 1, 1]} : vector<8x16x128xbf16> to vector<8x1x128xbf16>
    %66 = vector.shape_cast %65 : vector<8x1x128xbf16> to vector<8x128xbf16>
    %c8 = arith.constant 8 : index
    %c0_36 = arith.constant 0 : index
    %c0_37 = arith.constant 0 : index
    %67 = vector.load %arg6[%c8, %c0_36, %c0_37] : memref<16x128x1024xbf16, #tpu.memory_space<vmem>>, vector<1x128x1024xbf16>
    %68 = vector.shape_cast %67 : vector<1x128x1024xbf16> to vector<128x1024xbf16>
    %cst_38 = arith.constant dense<0.000000e+00> : vector<8x1024xf32>
    %69 = tpu.matmul %66, %68, %cst_38 {dimension_numbers = #tpu.dot_dimension_numbers<[1], [0], [0], [1], [0, 0, 1, 1], [], []>} : vector<8x128xbf16>, vector<128x1024xbf16>, vector<8x1024xf32> -> vector<8x1024xf32>
    %70 = arith.addf %64, %69 : vector<8x1024xf32>
    %71 = vector.extract_strided_slice %15 {offsets = [0, 9, 0], sizes = [8, 1, 128], strides = [1, 1, 1]} : vector<8x16x128xbf16> to vector<8x1x128xbf16>
    %72 = vector.shape_cast %71 : vector<8x1x128xbf16> to vector<8x128xbf16>
    %c9 = arith.constant 9 : index
    %c0_39 = arith.constant 0 : index
    %c0_40 = arith.constant 0 : index
    %73 = vector.load %arg6[%c9, %c0_39, %c0_40] : memref<16x128x1024xbf16, #tpu.memory_space<vmem>>, vector<1x128x1024xbf16>
    %74 = vector.shape_cast %73 : vector<1x128x1024xbf16> to vector<128x1024xbf16>
    %cst_41 = arith.constant dense<0.000000e+00> : vector<8x1024xf32>
    %75 = tpu.matmul %72, %74, %cst_41 {dimension_numbers = #tpu.dot_dimension_numbers<[1], [0], [0], [1], [0, 0, 1, 1], [], []>} : vector<8x128xbf16>, vector<128x1024xbf16>, vector<8x1024xf32> -> vector<8x1024xf32>
    %76 = arith.addf %70, %75 : vector<8x1024xf32>
    %77 = vector.extract_strided_slice %15 {offsets = [0, 10, 0], sizes = [8, 1, 128], strides = [1, 1, 1]} : vector<8x16x128xbf16> to vector<8x1x128xbf16>
    %78 = vector.shape_cast %77 : vector<8x1x128xbf16> to vector<8x128xbf16>
    %c10 = arith.constant 10 : index
    %c0_42 = arith.constant 0 : index
    %c0_43 = arith.constant 0 : index
    %79 = vector.load %arg6[%c10, %c0_42, %c0_43] : memref<16x128x1024xbf16, #tpu.memory_space<vmem>>, vector<1x128x1024xbf16>
    %80 = vector.shape_cast %79 : vector<1x128x1024xbf16> to vector<128x1024xbf16>
    %cst_44 = arith.constant dense<0.000000e+00> : vector<8x1024xf32>
    %81 = tpu.matmul %78, %80, %cst_44 {dimension_numbers = #tpu.dot_dimension_numbers<[1], [0], [0], [1], [0, 0, 1, 1], [], []>} : vector<8x128xbf16>, vector<128x1024xbf16>, vector<8x1024xf32> -> vector<8x1024xf32>
    %82 = arith.addf %76, %81 : vector<8x1024xf32>
    %83 = vector.extract_strided_slice %15 {offsets = [0, 11, 0], sizes = [8, 1, 128], strides = [1, 1, 1]} : vector<8x16x128xbf16> to vector<8x1x128xbf16>
    %84 = vector.shape_cast %83 : vector<8x1x128xbf16> to vector<8x128xbf16>
    %c11 = arith.constant 11 : index
    %c0_45 = arith.constant 0 : index
    %c0_46 = arith.constant 0 : index
    %85 = vector.load %arg6[%c11, %c0_45, %c0_46] : memref<16x128x1024xbf16, #tpu.memory_space<vmem>>, vector<1x128x1024xbf16>
    %86 = vector.shape_cast %85 : vector<1x128x1024xbf16> to vector<128x1024xbf16>
    %cst_47 = arith.constant dense<0.000000e+00> : vector<8x1024xf32>
    %87 = tpu.matmul %84, %86, %cst_47 {dimension_numbers = #tpu.dot_dimension_numbers<[1], [0], [0], [1], [0, 0, 1, 1], [], []>} : vector<8x128xbf16>, vector<128x1024xbf16>, vector<8x1024xf32> -> vector<8x1024xf32>
    %88 = arith.addf %82, %87 : vector<8x1024xf32>
    %89 = vector.extract_strided_slice %15 {offsets = [0, 12, 0], sizes = [8, 1, 128], strides = [1, 1, 1]} : vector<8x16x128xbf16> to vector<8x1x128xbf16>
    %90 = vector.shape_cast %89 : vector<8x1x128xbf16> to vector<8x128xbf16>
    %c12 = arith.constant 12 : index
    %c0_48 = arith.constant 0 : index
    %c0_49 = arith.constant 0 : index
    %91 = vector.load %arg6[%c12, %c0_48, %c0_49] : memref<16x128x1024xbf16, #tpu.memory_space<vmem>>, vector<1x128x1024xbf16>
    %92 = vector.shape_cast %91 : vector<1x128x1024xbf16> to vector<128x1024xbf16>
    %cst_50 = arith.constant dense<0.000000e+00> : vector<8x1024xf32>
    %93 = tpu.matmul %90, %92, %cst_50 {dimension_numbers = #tpu.dot_dimension_numbers<[1], [0], [0], [1], [0, 0, 1, 1], [], []>} : vector<8x128xbf16>, vector<128x1024xbf16>, vector<8x1024xf32> -> vector<8x1024xf32>
    %94 = arith.addf %88, %93 : vector<8x1024xf32>
    %95 = vector.extract_strided_slice %15 {offsets = [0, 13, 0], sizes = [8, 1, 128], strides = [1, 1, 1]} : vector<8x16x128xbf16> to vector<8x1x128xbf16>
    %96 = vector.shape_cast %95 : vector<8x1x128xbf16> to vector<8x128xbf16>
    %c13 = arith.constant 13 : index
    %c0_51 = arith.constant 0 : index
    %c0_52 = arith.constant 0 : index
    %97 = vector.load %arg6[%c13, %c0_51, %c0_52] : memref<16x128x1024xbf16, #tpu.memory_space<vmem>>, vector<1x128x1024xbf16>
    %98 = vector.shape_cast %97 : vector<1x128x1024xbf16> to vector<128x1024xbf16>
    %cst_53 = arith.constant dense<0.000000e+00> : vector<8x1024xf32>
    %99 = tpu.matmul %96, %98, %cst_53 {dimension_numbers = #tpu.dot_dimension_numbers<[1], [0], [0], [1], [0, 0, 1, 1], [], []>} : vector<8x128xbf16>, vector<128x1024xbf16>, vector<8x1024xf32> -> vector<8x1024xf32>
    %100 = arith.addf %94, %99 : vector<8x1024xf32>
    %101 = vector.extract_strided_slice %15 {offsets = [0, 14, 0], sizes = [8, 1, 128], strides = [1, 1, 1]} : vector<8x16x128xbf16> to vector<8x1x128xbf16>
    %102 = vector.shape_cast %101 : vector<8x1x128xbf16> to vector<8x128xbf16>
    %c14 = arith.constant 14 : index
    %c0_54 = arith.constant 0 : index
    %c0_55 = arith.constant 0 : index
    %103 = vector.load %arg6[%c14, %c0_54, %c0_55] : memref<16x128x1024xbf16, #tpu.memory_space<vmem>>, vector<1x128x1024xbf16>
    %104 = vector.shape_cast %103 : vector<1x128x1024xbf16> to vector<128x1024xbf16>
    %cst_56 = arith.constant dense<0.000000e+00> : vector<8x1024xf32>
    %105 = tpu.matmul %102, %104, %cst_56 {dimension_numbers = #tpu.dot_dimension_numbers<[1], [0], [0], [1], [0, 0, 1, 1], [], []>} : vector<8x128xbf16>, vector<128x1024xbf16>, vector<8x1024xf32> -> vector<8x1024xf32>
    %106 = arith.addf %100, %105 : vector<8x1024xf32>
    %107 = vector.extract_strided_slice %15 {offsets = [0, 15, 0], sizes = [8, 1, 128], strides = [1, 1, 1]} : vector<8x16x128xbf16> to vector<8x1x128xbf16>
    %108 = vector.shape_cast %107 : vector<8x1x128xbf16> to vector<8x128xbf16>
    %c15 = arith.constant 15 : index
    %c0_57 = arith.constant 0 : index
    %c0_58 = arith.constant 0 : index
    %109 = vector.load %arg6[%c15, %c0_57, %c0_58] : memref<16x128x1024xbf16, #tpu.memory_space<vmem>>, vector<1x128x1024xbf16>
    %110 = vector.shape_cast %109 : vector<1x128x1024xbf16> to vector<128x1024xbf16>
    %cst_59 = arith.constant dense<0.000000e+00> : vector<8x1024xf32>
    %111 = tpu.matmul %108, %110, %cst_59 {dimension_numbers = #tpu.dot_dimension_numbers<[1], [0], [0], [1], [0, 0, 1, 1], [], []>} : vector<8x128xbf16>, vector<128x1024xbf16>, vector<8x1024xf32> -> vector<8x1024xf32>
    %112 = arith.addf %106, %111 : vector<8x1024xf32>
    %c0_60 = arith.constant 0 : index
    %c0_61 = arith.constant 0 : index
    %113 = vector.load %arg7[%c0_60, %c0_61] : memref<1x1024xf32, #tpu.memory_space<vmem>>, vector<1x1024xf32>
    %114 = vector.broadcast %113 : vector<1x1024xf32> to vector<8x1024xf32>
    %115 = arith.addf %112, %114 : vector<8x1024xf32>
    %cst_62 = arith.constant 0.000000e+00 : f32
    %116 = vector.broadcast %cst_62 : f32 to vector<8x1024xf32>
    %117 = arith.maximumf %115, %116 : vector<8x1024xf32>
    %c0_63 = arith.constant 0 : index
    %c0_64 = arith.constant 0 : index
    %118 = vector.load %arg2[%c0_63, %c0_64] : memref<8x1024xf32, #tpu.memory_space<vmem>>, vector<8x1024xf32>
    %119 = arith.mulf %117, %118 : vector<8x1024xf32>
    %120 = arith.truncf %119 : vector<8x1024xf32> to vector<8x1024xbf16>
    %c0_65 = arith.constant 0 : index
    %c0_66 = arith.constant 0 : index
    %121 = vector.load %arg8[%c0_65, %c0_66] : memref<1024x128xbf16, #tpu.memory_space<vmem>>, vector<1024x128xbf16>
    %cst_67 = arith.constant dense<0.000000e+00> : vector<8x128xf32>
    %122 = tpu.matmul %120, %121, %cst_67 {dimension_numbers = #tpu.dot_dimension_numbers<[1], [0], [0], [1], [0, 0, 1, 1], [], []>} : vector<8x1024xbf16>, vector<1024x128xbf16>, vector<8x128xf32> -> vector<8x128xf32>
    %c0_68 = arith.constant 0 : index
    %c0_69 = arith.constant 0 : index
    %123 = vector.load %arg9[%c0_68, %c0_69] : memref<1x128xf32, #tpu.memory_space<vmem>>, vector<1x128xf32>
    %124 = vector.broadcast %123 : vector<1x128xf32> to vector<8x128xf32>
    %125 = arith.addf %122, %124 : vector<8x128xf32>
    %c0_70 = arith.constant 0 : index
    %c0_71 = arith.constant 0 : index
    %126 = vector.load %arg10[%c0_70, %c0_71] : memref<8x128xf32, #tpu.memory_space<vmem>>, vector<8x128xf32>
    tpu.vector_store %arg10[%c0_70, %c0_71], %125 {strides = array<i32>} : memref<8x128xf32, #tpu.memory_space<vmem>>, vector<8x128xf32>,
    return
  }
  func.func @transform_0(%arg0: i32) -> (i32, i32, i32) {
    %c0_i32 = arith.constant 0 : i32
    %c0_i32_0 = arith.constant 0 : i32
    %c0_i32_1 = arith.constant 0 : i32
    return %arg0, %c0_i32, %c0_i32_0 : i32, i32, i32
  }
  func.func @transform_1(%arg0: i32) -> (i32, i32) {
    %c0_i32 = arith.constant 0 : i32
    %c0_i32_0 = arith.constant 0 : i32
    return %arg0, %c0_i32 : i32, i32
  }
  func.func @transform_2(%arg0: i32) -> (i32, i32) {
    %c0_i32 = arith.constant 0 : i32
    %c0_i32_0 = arith.constant 0 : i32
    %c0_i32_1 = arith.constant 0 : i32
    return %c0_i32, %c0_i32_0 : i32, i32
  }
  func.func @transform_3(%arg0: i32) -> (i32, i32) {
    %c0_i32 = arith.constant 0 : i32
    %c0_i32_0 = arith.constant 0 : i32
    %c0_i32_1 = arith.constant 0 : i32
    return %c0_i32, %c0_i32_0 : i32, i32
  }
  func.func @transform_4(%arg0: i32) -> (i32, i32) {
    %c0_i32 = arith.constant 0 : i32
    %c0_i32_0 = arith.constant 0 : i32
    %c0_i32_1 = arith.constant 0 : i32
    return %c0_i32, %c0_i32_0 : i32, i32
  }
  func.func @transform_5(%arg0: i32) -> (i32, i32, i32) {
    %c0_i32 = arith.constant 0 : i32
    %c0_i32_0 = arith.constant 0 : i32
    %c0_i32_1 = arith.constant 0 : i32
    %c0_i32_2 = arith.constant 0 : i32
    return %c0_i32, %c0_i32_0, %c0_i32_1 : i32, i32, i32
  }
  func.func @transform_6(%arg0: i32) -> (i32, i32) {
    %c0_i32 = arith.constant 0 : i32
    %c0_i32_0 = arith.constant 0 : i32
    %c0_i32_1 = arith.constant 0 : i32
    return %c0_i32, %c0_i32_0 : i32, i32
  }
  func.func @transform_7(%arg0: i32) -> (i32, i32) {
    %c0_i32 = arith.constant 0 : i32
    %c0_i32_0 = arith.constant 0 : i32
    %c0_i32_1 = arith.constant 0 : i32
    return %c0_i32, %c0_i32_0 : i32, i32
  }
  func.func @transform_8(%arg0: i32) -> (i32, i32) {
    %c0_i32 = arith.constant 0 : i32
    %c0_i32_0 = arith.constant 0 : i32
    %c0_i32_1 = arith.constant 0 : i32
    return %c0_i32, %c0_i32_0 : i32, i32
  }
  func.func @transform_9(%arg0: i32) -> (i32, i32) {
    %c0_i32 = arith.constant 0 : i32
    %c0_i32_0 = arith.constant 0 : i32
    return %arg0, %c0_i32 : i32, i32
  }
}

</mosaic_0001>

<bundles_post_ra>
// kernel: tpu_custom_call.1
= control target key start
LH: loop header
LB: loop body
LE: loop exit
PB: predicated region body
PF: predicated region fallthrough
CT: control target
= control target key end

     0   :  { %14 = vsyncpa [#allocation3], 0  ;;  %s18000_s0 = inlined_call_operand.vmem [shape: bf16[8,196,4], index: 0, kind: input, shape index: {}]   ;;  %s18001_s1 = inlined_call_operand.hbm [shape: f32[8,1024], index: 1, kind: input, shape index: {}]   ;;  %s18002_s2 = inlined_call_operand.hbm [shape: bf16[16,196], index: 2, kind: input, shape index: {}]   ;;  %s18003_s3 = inlined_call_operand.hbm [shape: bf16[4,128], index: 3, kind: input, shape index: {}]   ;;  %s18004_s4 = inlined_call_operand.hbm [shape: f32[1,128], index: 4, kind: input, shape index: {}]   ;;  %s18005_s5 = inlined_call_operand.hbm [shape: bf16[16,128,1024], index: 5, kind: input, shape index: {}]   ;;  %s18006_s6 = inlined_call_operand.hbm [shape: f32[1,1024], index: 6, kind: input, shape index: {}]   ;;  %s18007_s7 = inlined_call_operand.hbm [shape: bf16[1024,128], index: 7, kind: input, shape index: {}]   ;;  %s18008_s8 = inlined_call_operand.hbm [shape: f32[1,128], index: 8, kind: input, shape index: {}]   ;;  %s18009_s9 = inlined_call_operand.hbm [shape: f32[8,128], index: 9, kind: output, shape index: {}]  }
   0x1   :  { %15 = vsyncpa [#allocation6], 0 }
   0x2   :  { %16 = vsyncpa [#allocation9], 0 }
   0x3   :  { %17 = vsyncpa [#allocation12], 0 }
   0x4   :  { %18 = vsyncpa [#allocation15], 0  ;;  %s37_s11 = sshll.u32 %s18002_s2, 4  ;;  %s38_s11 = int_to_ptr.hbm [resolvable:$true] %s37_s11 }
   0x5   :  { %19 = vsyncpa [#allocation4], 0  ;;  %s16553_s12 = smov [#allocation5]   ;;  %s62_s16 = sshll.u32 %s18004_s4, 4  ;;  %s63_s16 = int_to_ptr.hbm [resolvable:$true] %s62_s16 }
   0x6   :  { %s39_s13 = sshll.u32 %s16553_s12, 4  ;;  %s16554_s17 = smov 128   ;;  %s40_s13 = int_to_ptr.vmem [resolvable:$true] %s39_s13 }
   0x7   :  { %s16555_s18 = smov 8   ;;  %s16556_s19 = smov [#allocation8]  }
   0x8   :  { %45 = dma.hbm_to_vmem [thread:$0]  %s38_s11, 256, %s40_s13, [#allocation6], %s16554_s17, %s16554_s17, %s16555_s18  }
   0x9   :  { %s64_s20 = sshll.u32 %s16556_s19, 4  ;;  %s86_s23 = sshll.u32 %s18006_s6, 4  ;;  %s65_s20 = int_to_ptr.vmem [resolvable:$true] %s64_s20  ;;  %s87_s23 = int_to_ptr.hbm [resolvable:$true] %s86_s23 }
   0xa   :  { %67 = dma.hbm_to_vmem [thread:$0]  %s63_s16, 16, %s65_s20, [#allocation9]  }
   0xb   :  { %s27_s25 = sshll.u32 %s18001_s1, 4  ;;  %s16557_s26 = smov [#allocation11]   ;;  %s28_s25 = int_to_ptr.hbm [resolvable:$true] %s27_s25 }
   0xc   :  { %s88_s27 = sshll.u32 %s16557_s26, 4  ;;  %s16558_s4 = smov [#allocation2]   ;;  %s89_s27 = int_to_ptr.vmem [resolvable:$true] %s88_s27 }
   0xd   :  { %91 = dma.hbm_to_vmem [thread:$0]  %s87_s23, 128, %s89_s27, [#allocation12]  }
   0xe   :  { %s29_s28 = sshll.u32 %s16558_s4, 4  ;;  %s51_s10 = sshll.u32 %s18003_s3, 4  ;;  %s30_s28 = int_to_ptr.vmem [resolvable:$true] %s29_s28  ;;  %s52_s10 = int_to_ptr.hbm [resolvable:$true] %s51_s10 }
   0xf   :  { %32 = dma.hbm_to_vmem [thread:$0]  %s28_s25, 1024, %s30_s28, [#allocation3]  }
  0x10   :  { %s72_s12 = sshll.u32 %s18005_s5, 4  ;;  %s16559_s13 = smov [#allocation7]   ;;  %s73_s12 = int_to_ptr.hbm [resolvable:$true] %s72_s12 }
  0x11   :  { %s53_s1 = sshll.u32 %s16559_s13, 4  ;;  %s16560_s14 = smov [#allocation10]   ;;  %s54_s1 = int_to_ptr.vmem [resolvable:$true] %s53_s1 }
  0x12   :  { %56 = dma.hbm_to_vmem [thread:$0]  %s52_s10, 32, %s54_s1, [#allocation6]  }
  0x13   :  { %s74_s15 = sshll.u32 %s16560_s14, 4  ;;  %s16561_s16 = smov 512   ;;  %s75_s15 = int_to_ptr.vmem [resolvable:$true] %s74_s15 }
  0x14   :  { %s16562_s17 = smov 32   ;;  %s96_s19 = sshll.u32 %s18007_s7, 4  ;;  %s97_s19 = int_to_ptr.hbm [resolvable:$true] %s96_s19 }
  0x15   :  { %80 = dma.hbm_to_vmem [thread:$0]  %s73_s12, 131072, %s75_s15, [#allocation9], %s16561_s16, %s16561_s16, %s16562_s17  }
  0x16   :  { %s16563_s20 = smov [#allocation13]   ;;  %s110_s23 = sshll.u32 %s18008_s8, 4  ;;  %s111_s23 = int_to_ptr.hbm [resolvable:$true] %s110_s23 }
  0x17   :  { %s98_s21 = sshll.u32 %s16563_s20, 4  ;;  %s16564_s2 = smov 64   ;;  %s99_s21 = int_to_ptr.vmem [resolvable:$true] %s98_s21 }
  0x18   :  { %s16565_s24 = smov 4   ;;  %s16566_s25 = smov [#allocation14]  }
  0x19   :  { %104 = dma.hbm_to_vmem [thread:$0]  %s97_s19, 8192, %s99_s21, [#allocation12], %s16564_s2, %s16564_s2, %s16565_s24  }
  0x1a   :  { %s112_s26 = sshll.u32 %s16566_s25, 4  ;;  %s113_s26 = int_to_ptr.vmem [resolvable:$true] %s112_s26 }
  0x1b   :  { %115 = dma.hbm_to_vmem [thread:$0]  %s111_s23, 16, %s113_s26, [#allocation15]  }
  0x1c   :  { %16541 = dma.done.wait [#allocation3], 1024  }
  0x1d   :  { %16542 = vsyncadd [#allocation3], 4294966272 }
  0x1e   :  { %16543 = dma.done.wait [#allocation6], 288  }
  0x1f   :  { %16544 = vsyncadd [#allocation6], 4294967008 }
  0x20   :  { %16545 = dma.done.wait [#allocation9], 131088  }
  0x21   :  { %16546 = vsyncadd [#allocation9], 4294836208 }
  0x22   :  { %16547 = dma.done.wait [#allocation12], 8320  }
  0x23   :  { %16548 = vsyncadd [#allocation12], 4294958976 }
  0x24   :  { %16549 = dma.done.wait [#allocation15], 16  }
  0x25   :  { %16550 = vsyncadd [#allocation15], 4294967280  ;;  %v15128_v0 = vld [vmem:[%s18000_s0 + $0x38] sm:$0xff]  ;;  %v173_v2 = vld [vmem:[%s18000_s0 + $0x60] sm:$0x3]  ;;  %vm439_vm0 = vcmask 1041408  }
  0x26   :  { %v15140_v1 = vld [vmem:[%s18000_s0 + $0x9c] sm:$0xff]  ;;  %443 = vmatpush.bf16.msra.mxu0 %v15128_v0  ;;  %v15127_v3 = vld [vmem:[%s18000_s0 + $0x30] sm:$0xff]  ;;  %v409_v4 = vunpack.c.l.b16 %v173_v2  ;;  %v15126_v8 = vld [vmem:[%s18000_s0 + $0x28] sm:$0xff]  ;;  %vm435_vm1 = vcmask 556032   ;;  %vm1274_vm2 = vcmask 31744   ;;  %vm1545_vm3 = vcmask 1041409  }
  0x27   :  { %549 = vmatpush.bf16.msra.mxu2 %v15140_v1  ;;  %v15139_v5 = vld [vmem:[%s18000_s0 + $0x94] sm:$0xff]  ;;  %v15138_v9 = vld [vmem:[%s18000_s0 + $0x8c] sm:$0xff]  ;;  %v223_v11 = vld [vmem:[%s18000_s0 + $0x128] sm:$0x3]  ;;  %vm1548_vm4 = vcmask 1042434   ;;  %vm1551_vm5 = vcmask 1043459  }
  0x28   :  { %v422_v6 = vpack.c.b16 %v409_v4, %v409_v4  ;;  %v15132_v10 = vld [vmem:[%s18000_s0 + $0x58] sm:$0xff]  ;;  %v15125_v12 = vld [vmem:[%s18000_s0 + $0x20] sm:$0xff]  ;;  %v626_v14 = vunpack.c.l.b16 %v223_v11  ;;  %v15131_v15 = vld [vmem:[%s18000_s0 + $0x50] sm:$0xff]  ;;  %vm1554_vm6 = vcmask 1044484   ;;  %vm1557_vm7 = vcmask 1045509   ;;  %s10331_s6 = sshll.u32 %s18009_s9, 4  ;;  %s10332_s6 = int_to_ptr.hbm [resolvable:$true] %s10331_s6 }
  0x29   :  { %v15137_v13 = vld [vmem:[%s18000_s0 + $0x84] sm:$0xff]  ;;  %v15124_v17 = vld [vmem:[%s18000_s0 + $0x18] sm:$0xff]  ;;  %v15123_v22 = vld [vmem:[%s18000_s0 + $0x10] sm:$0xff]  ;;  %vm1560_vm8 = vcmask 1046534   ;;  %vm1563_vm9 = vcmask 1047559  }
  0x2a   :  { %444 = vmatpush.bf16.msra.mxu0 %v15127_v3  ;;  %v441_v7 = vsel %vm439_vm0, %v422_v6, 0  ;;  %v639_v16 = vpack.c.b16 %v626_v14, %v626_v14  ;;  %v15136_v18 = vld [vmem:[%s18000_s0 + $0x7c] sm:$0xff]  ;;  %v15130_v20 = vld [vmem:[%s18000_s0 + $0x48] sm:$0xff]  ;;  %v198_v23 = vld [vmem:[%s18000_s0 + $0xc4] sm:$0x3] }
  0x2b   :  { %550 = vmatpush.bf16.msra.mxu2 %v15139_v5  ;;  %460 = vmatpush.bf16.msra.mxu1 %v441_v7  ;;  %v15156_v21 = vld [vmem:[%s18000_s0 + $0x120] sm:$0xff]  ;;  %v15135_v25 = vld [vmem:[%s18000_s0 + $0x74] sm:$0xff]  ;;  %v10349_v27 = vld [vmem:[#allocation5 + $0x8] sm:$0xf0]  ;;  %v520_v31 = vunpack.c.l.b16 %v198_v23 }
  0x2c   :  { %v653_v19 = vsel %vm439_vm0, %v639_v16, 0  ;;  %v15129_v24 = vld [vmem:[%s18000_s0 + $0x40] sm:$0xff]  ;;  %v15155_v28 = vld [vmem:[%s18000_s0 + $0x118] sm:$0xff]  ;;  %v248_v29 = vld [vmem:[%s18000_s0 + $0x18c] sm:$0x3] }
  0x2d   :  { %672 = vmatpush.bf16.msra.mxu3 %v653_v19  ;;  %v15217_v26 = vld [vmem:[#allocation5 + $0x4] sm:$0xf]  ;;  %v15122_v32 = vld [vmem:[%s18000_s0 + $0x8] sm:$0xff]  ;;  %v732_v34 = vunpack.c.l.b16 %v248_v29  ;;  %v15154_v36 = vld [vmem:[%s18000_s0 + $0x110] sm:$0xff]  ;;  %v533_v37 = vpack.c.b16 %v520_v31, %v520_v31 }
  0x2e   :  { %445 = vmatpush.bf16.msra.mxu0 %v15126_v8  ;;  %v15152_v30 = vld [vmem:[%s18000_s0 + $0x100] sm:$0xff]  ;;  %v16716_v33 = vor.u32 %v15217_v26, %v10349_v27  ;;  %v15134_v35 = vld [vmem:[%s18000_s0 + $0x6c] sm:$0xff]  ;;  %v15151_v38 = vld [vmem:[%s18000_s0 + $0xf8] sm:$0xff] }
  0x2f   :  { %551 = vmatpush.bf16.msra.mxu2 %v15138_v9  ;;  %461 = vmatpush.bf16.msra.mxu1 %v15132_v10  ;;  %v15121_v39 = vld [vmem:[%s18000_s0] sm:$0xff]  ;;  %v15218_v41 = vld [vmem:[#allocation5 + $0x4] sm:$0xf0]  ;;  %v745_v42 = vpack.c.b16 %v732_v34, %v732_v34  ;;  %v547_v44 = vsel %vm439_vm0, %v533_v37, 0  ;;  %v15150_v45 = vld [vmem:[%s18000_s0 + $0xf0] sm:$0xff] }
  0x30   :  { %v10347_v40 = vld [vmem:[#allocation5] sm:$0xf]  ;;  %v15133_v43 = vld [vmem:[%s18000_s0 + $0x64] sm:$0xff]  ;;  %v15143_v54 = vld [vmem:[%s18000_s0 + $0xb4] sm:$0xff] }
  0x31   :  { %673 = vmatpush.bf16.msra.mxu3 %v15156_v21  ;;  %v15153_v46 = vld [vmem:[%s18000_s0 + $0x108] sm:$0xff]  ;;  %v16742_v47 = vor.u32 %v15218_v41, %v10347_v40  ;;  %v759_v48 = vsel %vm439_vm0, %v745_v42, 0  ;;  %v15144_v50 = vld [vmem:[%s18000_s0 + $0xbc] sm:$0xff]  ;;  %v273_v59 = vld [vmem:[%s18000_s0 + $0x1f0] sm:$0x3] }
  0x32   :  { %446 = vmatpush.bf16.msra.mxu0 %v15125_v12  ;;  %v15176_v49 = vld [vmem:[%s18000_s0 + $0x1c8] sm:$0xff]  ;;  %v15175_v53 = vld [vmem:[%s18000_s0 + $0x1c0] sm:$0xff]  ;;  %v15174_v57 = vld [vmem:[%s18000_s0 + $0x1b8] sm:$0xff]  ;;  %v838_v63 = vunpack.c.l.b16 %v273_v59 }
  0x33   :  { %552 = vmatpush.bf16.msra.mxu2 %v15137_v13  ;;  %462 = vmatpush.bf16.msra.mxu1 %v15131_v15  ;;  %v15149_v51 = vld [vmem:[%s18000_s0 + $0xe8] sm:$0xff]  ;;  %v15148_v55 = vld [vmem:[%s18000_s0 + $0xe0] sm:$0xff]  ;;  %v15147_v60 = vld [vmem:[%s18000_s0 + $0xd8] sm:$0xff] }
  0x34   :  { %v15168_v52 = vld [vmem:[%s18000_s0 + $0x184] sm:$0xff]  ;;  %v15167_v56 = vld [vmem:[%s18000_s0 + $0x17c] sm:$0xff]  ;;  %v15142_v58 = vld [vmem:[%s18000_s0 + $0xac] sm:$0xff]  ;;  %v851_v5 = vpack.c.b16 %v838_v63, %v838_v63 }
  0x35   :  { %674 = vmatpush.bf16.msra.mxu3 %v15155_v28  ;;  %v15166_v61 = vld [vmem:[%s18000_s0 + $0x174] sm:$0xff]  ;;  %v15141_v0 = vld [vmem:[%s18000_s0 + $0xa4] sm:$0xff]  ;;  %v15165_v3 = vld [vmem:[%s18000_s0 + $0x16c] sm:$0xff] }
  0x36   :  { %447 = vmatpush.bf16.msra.mxu0 %v15124_v17  ;;  %v15173_v62 = vld [vmem:[%s18000_s0 + $0x1b0] sm:$0xff]  ;;  %v15164_v1 = vld [vmem:[%s18000_s0 + $0x164] sm:$0xff]  ;;  %v15163_v7 = vld [vmem:[%s18000_s0 + $0x15c] sm:$0xff]  ;;  %v865_v9 = vsel %vm439_vm0, %v851_v5, 0 }
  0x37   :  { %553 = vmatpush.bf16.msra.mxu2 %v15136_v18  ;;  %463 = vmatpush.bf16.msra.mxu1 %v15130_v20  ;;  %v15146_v2 = vld [vmem:[%s18000_s0 + $0xd0] sm:$0xff]  ;;  %v15172_v4 = vld [vmem:[%s18000_s0 + $0x1a8] sm:$0xff]  ;;  %v15171_v10 = vld [vmem:[%s18000_s0 + $0x1a0] sm:$0xff] }
  0x38   :  { %v15188_v6 = vld [vmem:[%s18000_s0 + $0x22c] sm:$0xff]  ;;  %v15187_v11 = vld [vmem:[%s18000_s0 + $0x224] sm:$0xff]  ;;  %v15162_v12 = vld [vmem:[%s18000_s0 + $0x154] sm:$0xff] }
  0x39   :  { %675 = vmatpush.bf16.msra.mxu3 %v15154_v36  ;;  %v15145_v8 = vld [vmem:[%s18000_s0 + $0xc8] sm:$0xff]  ;;  %v323_v14 = vld [vmem:[%s18000_s0 + $0x2b8] sm:$0x3]  ;;  %v15186_v17 = vld [vmem:[%s18000_s0 + $0x21c] sm:$0xff] }
  0x3a   :  { %448 = vmatpush.bf16.msra.mxu0 %v15123_v22  ;;  %v15180_v13 = vld [vmem:[%s18000_s0 + $0x1e8] sm:$0xff]  ;;  %v15170_v15 = vld [vmem:[%s18000_s0 + $0x198] sm:$0xff]  ;;  %v1050_v16 = vunpack.c.l.b16 %v323_v14  ;;  %v15179_v20 = vld [vmem:[%s18000_s0 + $0x1e0] sm:$0xff] }
  0x3b   :  { %554 = vmatpush.bf16.msra.mxu2 %v15135_v25  ;;  %464 = vmatpush.bf16.msra.mxu1 %v15129_v24  ;;  %v15161_v18 = vld [vmem:[%s18000_s0 + $0x14c] sm:$0xff]  ;;  %v15185_v22 = vld [vmem:[%s18000_s0 + $0x214] sm:$0xff]  ;;  %v15160_v23 = vld [vmem:[%s18000_s0 + $0x144] sm:$0xff] }
  0x3c   :  { %v1063_v19 = vpack.c.b16 %v1050_v16, %v1050_v16  ;;  %v15169_v21 = vld [vmem:[%s18000_s0 + $0x190] sm:$0xff]  ;;  %v15178_v25 = vld [vmem:[%s18000_s0 + $0x1d8] sm:$0xff]  ;;  %v15203_v36 = vld [vmem:[%s18000_s0 + $0x2a8] sm:$0xff] }
  0x3d   :  { %676 = vmatpush.bf16.msra.mxu3 %v15153_v46  ;;  %v15184_v26 = vld [vmem:[%s18000_s0 + $0x20c] sm:$0xff]  ;;  %v298_v27 = vld [vmem:[%s18000_s0 + $0x254] sm:$0x3]  ;;  %v15159_v29 = vld [vmem:[%s18000_s0 + $0x13c] sm:$0xff] }
  0x3e   :  { %449 = vmatpush.bf16.msra.mxu0 %v15122_v32  ;;  %10401 = vmatmul.msk.bf16.vlgmr.msra.gmra.mxu1 %vm435_vm1, %v16716_v33  ;;  %v1077_v24 = vsel %vm439_vm0, %v1063_v19, 0  ;;  %v15204_v28 = vld [vmem:[%s18000_s0 + $0x2b0] sm:$0xff]  ;;  %v944_v31 = vunpack.c.l.b16 %v298_v27  ;;  %v348_v34 = vld [vmem:[%s18000_s0 + $0x31c] sm:$0x3]  ;;  %v15199_v40 = vld [vmem:[%s18000_s0 + $0x288] sm:$0xff] }
  0x3f   :  { %655 = vmatpush.bf16.msrb.mxu1 %v15152_v30  ;;  %555 = vmatpush.bf16.msra.mxu2 %v15134_v35  ;;  %v15177_v30 = vld [vmem:[%s18000_s0 + $0x1d0] sm:$0xff]  ;;  %v15183_v35 = vld [vmem:[%s18000_s0 + $0x204] sm:$0xff]  ;;  %v15182_v41 = vld [vmem:[%s18000_s0 + $0x1fc] sm:$0xff] }
  0x40   :  { %10499 = vmatmul.msk.bf16.vlgmr.msra.gmra.mxu3 %vm435_vm1, %v16716_v33  ;;  %v15200_v32 = vld [vmem:[%s18000_s0 + $0x290] sm:$0xff]  ;;  %v15202_v42 = vld [vmem:[%s18000_s0 + $0x2a0] sm:$0xff] }
  0x41   :  { %867 = vmatpush.bf16.msrb.mxu3 %v15176_v49  ;;  %v15158_v37 = vld [vmem:[%s18000_s0 + $0x134] sm:$0xff]  ;;  %v15198_v46 = vld [vmem:[%s18000_s0 + $0x280] sm:$0xff]  ;;  %v15207_v5 = vld [vmem:[%s18000_s0 + $0x2cc] sm:$0xff] }
  0x42   :  { %450 = vmatpush.bf16.msra.mxu0 %v15121_v39  ;;  %v957_v39 = vpack.c.b16 %v944_v31, %v944_v31  ;;  %v15201_v49 = vld [vmem:[%s18000_s0 + $0x298] sm:$0xff]  ;;  %v15214_v59 = vld [vmem:[%s18000_s0 + $0x304] sm:$0xff] }
  0x43   :  { %656 = vmatpush.bf16.msrb.mxu1 %v15151_v38  ;;  %556 = vmatpush.bf16.msra.mxu2 %v15133_v43  ;;  %v1156_v38 = vunpack.c.l.b16 %v348_v34  ;;  %v15157_v43 = vld [vmem:[%s18000_s0 + $0x12c] sm:$0xff]  ;;  %v15213_v63 = vld [vmem:[%s18000_s0 + $0x2fc] sm:$0xff] }
  0x45   :  { %451 = vmatmul.bf16.vlgmr.msra.gmra.mxu0 %v16742_v47  ;;  %868 = vmatpush.bf16.msrb.mxu3 %v15175_v53  ;;  %v15216_v53 = vld [vmem:[%s18000_s0 + $0x314] sm:$0xff] }
  0x46   :  { %566 = vmatpush.bf16.msrb.mxu0 %v547_v44  ;;  %557 = vmatmul.bf16.vlgmr.msra.gmra.mxu2 %v16742_v47  ;;  %v1169_v44 = vpack.c.b16 %v1156_v38, %v1156_v38 }
  0x47   :  { %657 = vmatpush.bf16.msrb.mxu1 %v15150_v45  ;;  %778 = vmatpush.bf16.msrb.mxu2 %v759_v48  ;;  %v971_v45 = vsel %vm439_vm0, %v957_v39, 0  ;;  %v15181_v48 = vld [vmem:[%s18000_s0 + $0x1f4] sm:$0xff] }
  0x49   :  { %869 = vmatpush.bf16.msrb.mxu3 %v15174_v57  ;;  %v15190_v57 = vld [vmem:[%s18000_s0 + $0x23c] sm:$0xff] }
  0x4a   :  { %567 = vmatpush.bf16.msrb.mxu0 %v15144_v50  ;;  %v15192_v50 = vld [vmem:[%s18000_s0 + $0x24c] sm:$0xff] }
  0x4b   :  { %658 = vmatpush.bf16.msrb.mxu1 %v15149_v51  ;;  %779 = vmatpush.bf16.msrb.mxu2 %v15168_v52  ;;  %v1183_v51 = vsel %vm439_vm0, %v1169_v44, 0  ;;  %v15197_v52 = vld [vmem:[%s18000_s0 + $0x278] sm:$0xff] }
  0x4d   :  { %870 = vmatpush.bf16.msrb.mxu3 %v15173_v62  ;;  %v15194_v62 = vld [vmem:[%s18000_s0 + $0x260] sm:$0xff] }
  0x4e   :  { %568 = vmatpush.bf16.msrb.mxu0 %v15143_v54  ;;  %v15191_v54 = vld [vmem:[%s18000_s0 + $0x244] sm:$0xff] }
  0x4f   :  { %659 = vmatpush.bf16.msrb.mxu1 %v15148_v55  ;;  %780 = vmatpush.bf16.msrb.mxu2 %v15167_v56  ;;  %v15196_v55 = vld [vmem:[%s18000_s0 + $0x270] sm:$0xff] }
  0x50   :  { %v15215_v56 = vld [vmem:[%s18000_s0 + $0x30c] sm:$0xff] }
  0x51   :  { %871 = vmatpush.bf16.msrb.mxu3 %v15172_v4  ;;  %v15208_v4 = vld [vmem:[%s18000_s0 + $0x2d4] sm:$0xff] }
  0x52   :  { %569 = vmatpush.bf16.msrb.mxu0 %v15142_v58  ;;  %v15195_v58 = vld [vmem:[%s18000_s0 + $0x268] sm:$0xff] }
  0x53   :  { %660 = vmatpush.bf16.msrb.mxu1 %v15147_v60  ;;  %781 = vmatpush.bf16.msrb.mxu2 %v15166_v61  ;;  %v15189_v60 = vld [vmem:[%s18000_s0 + $0x234] sm:$0xff] }
  0x54   :  { %v15212_v61 = vld [vmem:[%s18000_s0 + $0x2f4] sm:$0xff] }
  0x55   :  { %872 = vmatpush.bf16.msrb.mxu3 %v15171_v10 }
  0x56   :  { %570 = vmatpush.bf16.msrb.mxu0 %v15141_v0  ;;  %v15211_v0 = vld [vmem:[%s18000_s0 + $0x2ec] sm:$0xff] }
  0x57   :  { %661 = vmatpush.bf16.msrb.mxu1 %v15146_v2  ;;  %782 = vmatpush.bf16.msrb.mxu2 %v15165_v3  ;;  %v15210_v2 = vld [vmem:[%s18000_s0 + $0x2e4] sm:$0xff]  ;;  %v15209_v3 = vld [vmem:[%s18000_s0 + $0x2dc] sm:$0xff] }
  0x59   :  { %10450 = vmatmul.msk.bf16.vlgmr.msrb.gmra.mxu0 %vm435_vm1, %v16716_v33  ;;  %873 = vmatpush.bf16.msrb.mxu3 %v15170_v15 }
  0x5a   :  { %761 = vmatpush.bf16.msra.mxu0 %v15164_v1  ;;  %10548 = vmatmul.msk.bf16.vlgmr.msrb.gmra.mxu2 %vm435_vm1, %v16716_v33  ;;  %v15193_v1 = vld [vmem:[%s18000_s0 + $0x258] sm:$0xff] }
  0x5b   :  { %973 = vmatpush.bf16.msra.mxu2 %v15188_v6  ;;  %662 = vmatpush.bf16.msrb.mxu1 %v15145_v8  ;;  %v15205_v6 = vld [vmem:[%s18000_s0 + $0x2bc] sm:$0xff] }
  0x5d   :  { %874 = vmatpush.bf16.msrb.mxu3 %v15169_v21 }
  0x5e   :  { %762 = vmatpush.bf16.msra.mxu0 %v15163_v7  ;;  %663 = vmatmul.bf16.vlgmr.msrb.gmra.mxu1 %v16742_v47  ;;  %v1229_v7 = vld [vmem:[#allocation7] sm:$0x3] }
  0x5f   :  { %884 = vmatpush.bf16.msra.mxu1 %v865_v9  ;;  %974 = vmatpush.bf16.msra.mxu2 %v15187_v11  ;;  %v1300_v8 = vsel %vm439_vm0, %v1229_v7, 0 }
  0x60   :  { %875 = vmatmul.bf16.vlgmr.msrb.gmra.mxu3 %v16742_v47 }
  0x61   :  { %1096 = vmatpush.bf16.msra.mxu3 %v1077_v24 }
  0x62   :  { %763 = vmatpush.bf16.msra.mxu0 %v15162_v12 }
  0x63   :  { %885 = vmatpush.bf16.msra.mxu1 %v15180_v13  ;;  %975 = vmatpush.bf16.msra.mxu2 %v15186_v17 }
  0x65   :  { %1097 = vmatpush.bf16.msra.mxu3 %v15204_v28 }
  0x66   :  { %764 = vmatpush.bf16.msra.mxu0 %v15161_v18 }
  0x67   :  { %886 = vmatpush.bf16.msra.mxu1 %v15179_v20  ;;  %976 = vmatpush.bf16.msra.mxu2 %v15185_v22 }
  0x69   :  { %1098 = vmatpush.bf16.msra.mxu3 %v15203_v36 }
  0x6a   :  { %765 = vmatpush.bf16.msra.mxu0 %v15160_v23 }
  0x6b   :  { %887 = vmatpush.bf16.msra.mxu1 %v15178_v25  ;;  %977 = vmatpush.bf16.msra.mxu2 %v15184_v26 }
  0x6d   :  { %1099 = vmatpush.bf16.msra.mxu3 %v15202_v42 }
  0x6e   :  { %766 = vmatpush.bf16.msra.mxu0 %v15159_v29 }
  0x6f   :  { %888 = vmatpush.bf16.msra.mxu1 %v15177_v30  ;;  %978 = vmatpush.bf16.msra.mxu2 %v15183_v35 }
  0x71   :  { %1100 = vmatpush.bf16.msra.mxu3 %v15201_v49 }
  0x72   :  { %767 = vmatpush.bf16.msra.mxu0 %v15158_v37  ;;  %10597 = vmatmul.msk.bf16.vlgmr.msra.gmra.mxu1 %vm435_vm1, %v16716_v33 }
  0x73   :  { %1079 = vmatpush.bf16.msrb.mxu1 %v15200_v32  ;;  %979 = vmatpush.bf16.msra.mxu2 %v15182_v41 }
  0x74   :  { %10695 = vmatmul.msk.bf16.vlgmr.msra.gmra.mxu3 %vm435_vm1, %v16716_v33 }
  0x75   :  { %1309 = vmatpush.bf16.msrb.mxu3 %v1300_v8 }
  0x76   :  { %768 = vmatpush.bf16.msra.mxu0 %v15157_v43 }
  0x77   :  { %1080 = vmatpush.bf16.msrb.mxu1 %v15199_v40  ;;  %980 = vmatpush.bf16.msra.mxu2 %v15181_v48 }
  0x79   :  { %769 = vmatmul.bf16.vlgmr.msra.gmra.mxu0 %v16742_v47 }
  0x7a   :  { %990 = vmatpush.bf16.msrb.mxu0 %v971_v45  ;;  %981 = vmatmul.bf16.vlgmr.msra.gmra.mxu2 %v16742_v47 }
  0x7b   :  { %1081 = vmatpush.bf16.msrb.mxu1 %v15198_v46  ;;  %1202 = vmatpush.bf16.msrb.mxu2 %v1183_v51 }
  0x7e   :  { %991 = vmatpush.bf16.msrb.mxu0 %v15192_v50 }
  0x7f   :  { %1082 = vmatpush.bf16.msrb.mxu1 %v15197_v52  ;;  %1203 = vmatpush.bf16.msrb.mxu2 %v15216_v53 }
  0x82   :  { %992 = vmatpush.bf16.msrb.mxu0 %v15191_v54 }
  0x83   :  { %1083 = vmatpush.bf16.msrb.mxu1 %v15196_v55  ;;  %1204 = vmatpush.bf16.msrb.mxu2 %v15215_v56 }
  0x86   :  { %993 = vmatpush.bf16.msrb.mxu0 %v15190_v57 }
  0x87   :  { %1084 = vmatpush.bf16.msrb.mxu1 %v15195_v58  ;;  %1205 = vmatpush.bf16.msrb.mxu2 %v15214_v59 }
  0x8a   :  { %994 = vmatpush.bf16.msrb.mxu0 %v15189_v60 }
  0x8b   :  { %1085 = vmatpush.bf16.msrb.mxu1 %v15194_v62  ;;  %1206 = vmatpush.bf16.msrb.mxu2 %v15213_v63 }
  0x8d   :  { %10646 = vmatmul.msk.bf16.vlgmr.msrb.gmra.mxu0 %vm435_vm1, %v16716_v33 }
  0x8e   :  { %1185 = vmatpush.bf16.msra.mxu0 %v15212_v61  ;;  %10744 = vmatmul.msk.bf16.vlgmr.msrb.gmra.mxu2 %vm435_vm1, %v16716_v33  ;;  %v15206_v33 = vld [vmem:[%s18000_s0 + $0x2c4] sm:$0xff]  ;;  %s16567_s0 = smov [#allocation16]  }
  0x8f   :  { %1086 = vmatpush.bf16.msrb.mxu1 %v15193_v1  ;;  %s10329_s29 = sshll.u32 %s16567_s0, 4  ;;  %s10330_s29 = int_to_ptr.vmem [resolvable:$true] %s10329_s29 }
  0x92   :  { %1186 = vmatpush.bf16.msra.mxu0 %v15211_v0  ;;  %1087 = vmatmul.bf16.vlgmr.msrb.gmra.mxu1 %v16742_v47 }
  0x96   :  { %1187 = vmatpush.bf16.msra.mxu0 %v15210_v2 }
  0x9a   :  { %1188 = vmatpush.bf16.msra.mxu0 %v15209_v3 }
  0x9e   :  { %1189 = vmatpush.bf16.msra.mxu0 %v15208_v4 }
  0xa2   :  { %1190 = vmatpush.bf16.msra.mxu0 %v15207_v5 }
  0xa6   :  { %1191 = vmatpush.bf16.msra.mxu0 %v15206_v33 }
  0xaa   :  { %1192 = vmatpush.bf16.msra.mxu0 %v15205_v6 }
  0xad   :  { %1193 = vmatmul.bf16.vlgmr.msra.gmra.mxu0 %v16742_v47 }
  0xbb   :  { %v466_v9 = vpop.f32.mrf.mxu1 }
  0xc2   :  { %v452_v10 = vpop.f32.mrf.mxu0 }
  0xc3   :  { %v467_v11 = vadd.f32 %v466_v9, %v452_v10  ;;  %v468_v12 = vpop.f32.mrf.mxu1  ;;  %v678_v23 = vpop.f32.mrf.mxu3 }
  0xc5   :  { %v1213_v14 = vpack.c.bf16 %v467_v11, %v467_v11 }
  0xc7   :  { %v1250_v17 = vunpack.c.l.b16 %v1213_v14 }
  0xc9   :  { %v558_v20 = vpop.f32.mrf.mxu2 }
  0xca   :  { %v454_v13 = vpop.f32.mrf.mxu0 }
  0xcb   :  { %v469_v15 = vadd.f32 %v468_v12, %v454_v13  ;;  %v680_v34 = vpop.f32.mrf.mxu3 }
  0xcd   :  { %v1214_v16 = vpack.c.bf16 %v469_v15, %v469_v15 }
  0xcf   :  { %v1251_v18 = vunpack.c.l.b16 %v1214_v16 }
  0xd1   :  { %v1266_v19 = vpack.c.b16 %v1251_v18, %v1250_v17  ;;  %v560_v24 = vpop.f32.mrf.mxu2 }
  0xd3   :  { %10745 = vmatmul.msk.bf16.vlgmr.msrb.gmra.mxu3 %vm1274_vm2, %v1266_v19 }
  0xd6   :  { %v572_v21 = vpop.f32.mrf.mxu0 }
  0xd7   :  { %v573_v47 = vadd.f32 %v572_v21, %v558_v20 }
  0xd9   :  { %v1215_v26 = vpack.c.bf16 %v573_v47, %v573_v47 }
  0xdb   :  { %v664_v22 = vpop.f32.mrf.mxu1  ;;  %v1252_v29 = vunpack.c.l.b16 %v1215_v26 }
  0xdc   :  { %v679_v35 = vadd.f32 %v678_v23, %v664_v22 }
  0xdd   :  { %v784_v41 = vpop.f32.mrf.mxu2 }
  0xde   :  { %v574_v25 = vpop.f32.mrf.mxu0  ;;  %v1217_v37 = vpack.c.bf16 %v679_v35, %v679_v35 }
  0xdf   :  { %v575_v27 = vadd.f32 %v574_v25, %v560_v24 }
  0xe0   :  { %v1254_v39 = vunpack.c.l.b16 %v1217_v37 }
  0xe1   :  { %v1216_v28 = vpack.c.bf16 %v575_v27, %v575_v27 }
  0xe3   :  { %v1253_v30 = vunpack.c.l.b16 %v1216_v28  ;;  %v666_v32 = vpop.f32.mrf.mxu1  ;;  %v876_v49 = vpop.f32.mrf.mxu3 }
  0xe4   :  { %v681_v36 = vadd.f32 %v680_v34, %v666_v32  ;;  %v16999_v34 = vld [vmem:[#allocation8] ss:$0 sm:$0xff] }
  0xe5   :  { %v1267_v31 = vpack.c.b16 %v1253_v30, %v1252_v29  ;;  %v786_v45 = vpop.f32.mrf.mxu2 }
  0xe6   :  { %v1218_v38 = vpack.c.bf16 %v681_v36, %v681_v36 }
  0xe7   :  { %10746 = vmatmul.msk.bf16.gmra.mxu3 %vm1274_vm2, %v1267_v31 }
  0xe8   :  { %v1255_v40 = vunpack.c.l.b16 %v1218_v38 }
  0xea   :  { %v1268_v43 = vpack.c.b16 %v1255_v40, %v1254_v39 }
  0xeb   :  { %v878_v56 = vpop.f32.mrf.mxu3 }
  0xef   :  { %v890_v50 = vpop.f32.mrf.mxu1 }
  0xf0   :  { %v891_v58 = vadd.f32 %v890_v50, %v876_v49 }
  0xf2   :  { %v1221_v62 = vpack.c.bf16 %v891_v58, %v891_v58 }
  0xf4   :  { %v1258_v0 = vunpack.c.l.b16 %v1221_v62 }
  0xf6   :  { %v770_v42 = vpop.f32.mrf.mxu0 }
  0xf7   :  { %10747 = vmatmul.msk.bf16.gmra.mxu3 %vm1274_vm2, %v1268_v43  ;;  %v785_v44 = vadd.f32 %v784_v41, %v770_v42  ;;  %v892_v57 = vpop.f32.mrf.mxu1  ;;  %v1102_v7 = vpop.f32.mrf.mxu3 }
  0xf8   :  { %v893_v59 = vadd.f32 %v892_v57, %v878_v56 }
  0xf9   :  { %v1219_v52 = vpack.c.bf16 %v785_v44, %v785_v44 }
  0xfa   :  { %v1222_v63 = vpack.c.bf16 %v893_v59, %v893_v59 }
  0xfb   :  { %v1256_v54 = vunpack.c.l.b16 %v1219_v52 }
  0xfc   :  { %v1259_v1 = vunpack.c.l.b16 %v1222_v63 }
  0xfd   :  { %v982_v60 = vpop.f32.mrf.mxu2 }
  0xfe   :  { %v772_v46 = vpop.f32.mrf.mxu0  ;;  %v1270_v2 = vpack.c.b16 %v1259_v1, %v1258_v0 }
  0xff   :  { %v787_v48 = vadd.f32 %v786_v45, %v772_v46  ;;  %v1104_v14 = vpop.f32.mrf.mxu3 }
 0x101   :  { %v1220_v51 = vpack.c.bf16 %v787_v48, %v787_v48 }
 0x103   :  { %v1257_v53 = vunpack.c.l.b16 %v1220_v51 }
 0x105   :  { %v1269_v55 = vpack.c.b16 %v1257_v53, %v1256_v54  ;;  %v984_v3 = vpop.f32.mrf.mxu2 }
 0x107   :  { %10748 = vmatmul.msk.bf16.gmra.mxu3 %vm1274_vm2, %v1269_v55 }
 0x10a   :  { %v996_v61 = vpop.f32.mrf.mxu0 }
 0x10b   :  { %v997_v5 = vadd.f32 %v996_v61, %v982_v60 }
 0x10d   :  { %v1223_v8 = vpack.c.bf16 %v997_v5, %v997_v5 }
 0x10f   :  { %v1088_v6 = vpop.f32.mrf.mxu1  ;;  %v1260_v10 = vunpack.c.l.b16 %v1223_v8 }
 0x110   :  { %v1103_v15 = vadd.f32 %v1102_v7, %v1088_v6 }
 0x111   :  { %v1208_v18 = vpop.f32.mrf.mxu2 }
 0x112   :  { %v998_v4 = vpop.f32.mrf.mxu0  ;;  %v1225_v19 = vpack.c.bf16 %v1103_v15, %v1103_v15 }
 0x113   :  { %v999_v33 = vadd.f32 %v998_v4, %v984_v3 }
 0x114   :  { %v1262_v21 = vunpack.c.l.b16 %v1225_v19 }
 0x115   :  { %v1224_v9 = vpack.c.bf16 %v999_v33, %v999_v33 }
 0x117   :  { %10749 = vmatmul.msk.bf16.gmra.mxu3 %vm1274_vm2, %v1270_v2  ;;  %v1261_v11 = vunpack.c.l.b16 %v1224_v9  ;;  %v1090_v13 = vpop.f32.mrf.mxu1 }
 0x118   :  { %v1105_v16 = vadd.f32 %v1104_v14, %v1090_v13 }
 0x119   :  { %v1271_v12 = vpack.c.b16 %v1261_v11, %v1260_v10  ;;  %v1210_v24 = vpop.f32.mrf.mxu2 }
 0x11a   :  { %v1226_v20 = vpack.c.bf16 %v1105_v16, %v1105_v16 }
 0x11c   :  { %v1263_v47 = vunpack.c.l.b16 %v1226_v20 }
 0x11e   :  { %v1272_v22 = vpack.c.b16 %v1263_v47, %v1262_v21 }
 0x127   :  { %10750 = vmatmul.msk.bf16.gmra.mxu3 %vm1274_vm2, %v1271_v12 }
 0x12a   :  { %v1194_v17 = vpop.f32.mrf.mxu0 }
 0x12b   :  { %v1209_v25 = vadd.f32 %v1208_v18, %v1194_v17 }
 0x12d   :  { %v1227_v27 = vpack.c.bf16 %v1209_v25, %v1209_v25 }
 0x12f   :  { %v1264_v29 = vunpack.c.l.b16 %v1227_v27 }
 0x132   :  { %v1196_v23 = vpop.f32.mrf.mxu0 }
 0x133   :  { %v1211_v26 = vadd.f32 %v1210_v24, %v1196_v23 }
 0x135   :  { %v1228_v28 = vpack.c.bf16 %v1211_v26, %v1211_v26 }
 0x137   :  { %10751 = vmatmul.msk.bf16.gmra.mxu3 %vm1274_vm2, %v1272_v22  ;;  %v1265_v30 = vunpack.c.l.b16 %v1228_v28 }
 0x139   :  { %v1273_v31 = vpack.c.b16 %v1265_v30, %v1264_v29 }
 0x147   :  { %10752 = vmatmul.msk.bf16.gmra.mxu3 %vm1274_vm2, %v1273_v31 }
 0x156   :  { %v1311_v32 = vpop.f32.mrf.mxu3 }
 0x157   :  { %v1312_v35 = vadd.f32 %v16999_v34, %v1311_v32 }
 0x159   :  { %v1351_v37 = vmax.f32 %v1312_v35, 0.0  ;;  %v10987_v35 = vld [vmem:[#allocation10 + $0x3c0] sm:$0xf] }
 0x15b   :  { %v1367_v38 = vpack.c.bf16 %v1351_v37, %v1351_v37  ;;  %v15339_v37 = vld [vmem:[#allocation10 + $0x3c4] sm:$0xf] }
 0x15d   :  { %v1520_v41 = vunpack.c.l.b16 %v1367_v38 }
 0x15e   :  { %v1313_v36 = vpop.f32.mrf.mxu3 }
 0x15f   :  { %v1314_v39 = vadd.f32 %v16999_v34, %v1313_v36  ;;  %v10753_v45 = vunpack.i.l.s16 %v1520_v41  ;;  %v15343_v36 = vld [vmem:[#allocation10 + $0x3dc] sm:$0xf0] }
 0x161   :  { %v1352_v43 = vmax.f32 %v1314_v39, 0.0  ;;  %v1544_v51 = vrot.slane %v10753_v45, 1  ;;  %v2496_v52 = vrot.slane %v10753_v45, 2  ;;  %v3009_v54 = vrot.slane %v10753_v45, 3 }
 0x162   :  { %v3522_v55 = vrot.slane %v10753_v45, 4  ;;  %v4035_v58 = vrot.slane %v10753_v45, 5  ;;  %v4548_v59 = vrot.slane %v10753_v45, 6  ;;  %v5061_v60 = vrot.slane %v10753_v45, 7 }
 0x163   :  { %v1368_v46 = vpack.c.bf16 %v1352_v43, %v1352_v43  ;;  %v10995_v43 = vld [vmem:[#allocation10 + $0x3c8] sm:$0xf] }
 0x165   :  { %v5582_v56 = vunpack.c.l.b16 %v1368_v46 }
 0x167   :  { %v17008_v33 = vunpack.i.l.s16 %v5582_v56  ;;  %v10955_v56 = vld [vmem:[#allocation10 + $0x380] sm:$0xf] }
 0x169   :  { %v6632_v17 = vrot.slane %v17008_v33, 2  ;;  %v7145_v19 = vrot.slane %v17008_v33, 3  ;;  %v7658_v20 = vrot.slane %v17008_v33, 4  ;;  %v8171_v21 = vrot.slane %v17008_v33, 5 }
 0x16a   :  { %v1316_v40 = vpop.f32.mrf.mxu3  ;;  %v8684_v22 = vrot.slane %v17008_v33, 6  ;;  %v9197_v23 = vrot.slane %v17008_v33, 7 }
 0x16b   :  { %v1317_v42 = vadd.f32 %v16999_v34, %v1316_v40 }
 0x16d   :  { %v1353_v44 = vmax.f32 %v1317_v42, 0.0  ;;  %v10989_v42 = vld [vmem:[#allocation10 + $0x3e0] sm:$0xf0] }
 0x16f   :  { %v1369_v48 = vpack.c.bf16 %v1353_v44, %v1353_v44  ;;  %v15344_v44 = vld [vmem:[#allocation10 + $0x3e4] sm:$0xf0] }
 0x171   :  { %v1521_v49 = vunpack.c.l.b16 %v1369_v48  ;;  %v10988_v48 = vor.u32 %v15343_v36, %v10987_v35  ;;  %v15328_v36 = vld [vmem:[#allocation10 + $0x364] sm:$0xf0] }
 0x172   :  { %v1318_v50 = vpop.f32.mrf.mxu3 }
 0x173   :  { %v1319_v53 = vadd.f32 %v16999_v34, %v1318_v50  ;;  %v10754_v57 = vunpack.i.l.s16 %v1521_v49  ;;  %v10992_v49 = vor.u32 %v15339_v37, %v10989_v42  ;;  %v10996_v50 = vor.u32 %v15344_v44, %v10995_v43  ;;  %1887 = vmatpush.bf16.msra.mxu1 %v10988_v48  ;;  %v15260_v37 = vld [vmem:[#allocation10 + $0x14c] sm:$0xf]  ;;  %v10891_v48 = vld [vmem:[#allocation10 + $0x300] sm:$0xf] }
 0x174   :  { %v11189_v44 = vld [vmem:[#allocation10 + $0x168] sm:$0xf0] }
 0x175   :  { %v1354_v61 = vmax.f32 %v1319_v53, 0.0  ;;  %v17006_v62 = vsel %vm1545_vm3, %v10754_v57, %v1544_v51  ;;  %v1991_v63 = vrot.slane %v10754_v57, 7  ;;  %v2497_v0 = vrot.slane %v10754_v57, 1  ;;  %v15276_v51 = vld [vmem:[#allocation10 + $0x1cc] sm:$0xf]  ;;  %1900 = vmatpush.bf16.msra.mxu2 %v10992_v49  ;;  %1913 = vmatpush.bf16.msrb.mxu0 %v10996_v50 }
 0x176   :  { %v3010_v1 = vrot.slane %v10754_v57, 2  ;;  %v3523_v2 = vrot.slane %v10754_v57, 3  ;;  %v4036_v3 = vrot.slane %v10754_v57, 4  ;;  %v4549_v4 = vrot.slane %v10754_v57, 5  ;;  %v15319_v49 = vld [vmem:[#allocation10 + $0x31c] sm:$0xf0] }
 0x177   :  { %v5062_v5 = vrot.slane %v10754_v57, 6  ;;  %v17011_v6 = vsel %vm1545_vm3, %v1991_v63, %v10753_v45  ;;  %v1370_v7 = vpack.c.bf16 %v1354_v61, %v1354_v61  ;;  %v2498_v8 = vsel %vm1545_vm3, %v2497_v0, %v2496_v52  ;;  %v11253_v52 = vld [vmem:[#allocation10 + $0x1e8] sm:$0xf0]  ;;  %v15335_v57 = vld [vmem:[#allocation10 + $0x39c] sm:$0xf0] }
 0x178   :  { %v17015_v9 = vsel %vm1545_vm3, %v3523_v2, %v3522_v55  ;;  %v17018_v10 = vsel %vm1545_vm3, %v4036_v3, %v4035_v58  ;;  %v17021_v11 = vsel %vm1545_vm3, %v4549_v4, %v4548_v59  ;;  %v17027_v15 = vsel %vm1545_vm3, %v3010_v1, %v3009_v54  ;;  %v15331_v61 = vld [vmem:[#allocation10 + $0x384] sm:$0xf]  ;;  %v10963_v0 = vld [vmem:[#allocation10 + $0x388] sm:$0xf] }
 0x179   :  { %v17024_v12 = vsel %vm1545_vm3, %v5062_v5, %v5061_v60  ;;  %v5583_v13 = vunpack.c.l.b16 %v1370_v7  ;;  %v11256_v54 = vor.u32 %v15276_v51, %v11253_v52  ;;  %v10956_v60 = vor.u32 %v15335_v57, %v10955_v56  ;;  %v10957_v63 = vld [vmem:[#allocation10 + $0x3a0] sm:$0xf0]  ;;  %v15336_v5 = vld [vmem:[#allocation10 + $0x3a4] sm:$0xf0] }
 0x17a   :  { %v1321_v14 = vpop.f32.mrf.mxu3  ;;  %v10964_v35 = vor.u32 %v15336_v5, %v10963_v0  ;;  %v11192_v52 = vor.u32 %v15260_v37, %v11189_v44  ;;  %v10899_v56 = vld [vmem:[#allocation10 + $0x308] sm:$0xf]  ;;  %v15303_v37 = vld [vmem:[#allocation10 + $0x29c] sm:$0xf0] }
 0x17b   :  { %v1322_v16 = vadd.f32 %v16999_v34, %v1321_v14  ;;  %v17031_v18 = vunpack.i.l.s16 %v5583_v13  ;;  %2366 = vmatpush.bf16.msra.mxu3 %v11256_v54  ;;  %1888 = vmatpush.bf16.msra.mxu1 %v10956_v60  ;;  %v15315_v54 = vld [vmem:[#allocation10 + $0x304] sm:$0xf] }
 0x17c   :  { %1914 = vmatpush.bf16.msrb.mxu0 %v10964_v35  ;;  %v11125_v35 = vld [vmem:[#allocation10 + $0xe8] sm:$0xf0] }
 0x17d   :  { %v1355_v47 = vmax.f32 %v1322_v16, 0.0  ;;  %v6633_v24 = vrot.slane %v17031_v18, 1  ;;  %v7146_v25 = vrot.slane %v17031_v18, 2  ;;  %v7659_v26 = vrot.slane %v17031_v18, 3 }
 0x17e   :  { %v8172_v27 = vrot.slane %v17031_v18, 4  ;;  %v8685_v28 = vrot.slane %v17031_v18, 5  ;;  %v9198_v29 = vrot.slane %v17031_v18, 6  ;;  %v5606_v58 = vrot.slane %v17031_v18, 7 }
 0x17f   :  { %v1371_v30 = vpack.c.bf16 %v1355_v47, %v1355_v47  ;;  %v17045_v31 = vsel %vm1545_vm3, %v6633_v24, %v6632_v17  ;;  %v17048_v32 = vsel %vm1545_vm3, %v7146_v25, %v7145_v19  ;;  %v17051_v38 = vsel %vm1545_vm3, %v7659_v26, %v7658_v20  ;;  %v15268_v17 = vld [vmem:[#allocation10 + $0x18c] sm:$0xf]  ;;  %v10925_v26 = vld [vmem:[#allocation10 + $0x360] sm:$0xf0] }
 0x180   :  { %v17054_v39 = vsel %vm1545_vm3, %v8172_v27, %v8171_v21  ;;  %v17057_v40 = vsel %vm1545_vm3, %v8685_v28, %v8684_v22  ;;  %v17060_v41 = vsel %vm1545_vm3, %v9198_v29, %v9197_v23  ;;  %v11221_v47 = vld [vmem:[#allocation10 + $0x1a8] sm:$0xf0]  ;;  %v10923_v22 = vld [vmem:[#allocation10 + $0x340] sm:$0xf]  ;;  %v6119_v24 = vrot.slane %v17008_v33, 1 }
 0x181   :  { %v1522_v45 = vunpack.c.l.b16 %v1371_v30  ;;  %v15327_v23 = vld [vmem:[#allocation10 + $0x35c] sm:$0xf0]  ;;  %v10960_v30 = vor.u32 %v15331_v61, %v10957_v63  ;;  %v11224_v42 = vor.u32 %v15268_v17, %v11221_v47  ;;  %v15307_v47 = vld [vmem:[#allocation10 + $0x2c4] sm:$0xf] }
 0x182   :  { %v1323_v46 = vpop.f32.mrf.mxu3  ;;  %v10924_v43 = vor.u32 %v15327_v23, %v10923_v22  ;;  %v10861_v22 = vld [vmem:[#allocation10 + $0x2e0] sm:$0xf0] }
 0x183   :  { %v1324_v53 = vadd.f32 %v16999_v34, %v1323_v46  ;;  %v10755_v55 = vunpack.i.l.s16 %v1522_v45  ;;  %v6120_v45 = vsel %vm1545_vm3, %v17031_v18, %v6119_v24  ;;  %1901 = vmatpush.bf16.msra.mxu2 %v10960_v30  ;;  %2367 = vmatpush.bf16.msra.mxu3 %v11224_v42  ;;  %v15244_v30 = vld [vmem:[#allocation10 + $0xcc] sm:$0xf] }
 0x184   :  { %1889 = vmatpush.bf16.msra.mxu1 %v10924_v43  ;;  %v15299_v43 = vld [vmem:[#allocation10 + $0x284] sm:$0xf] }
 0x185   :  { %v1356_v59 = vmax.f32 %v1324_v53, 0.0  ;;  %v1547_v1 = vrot.slane %v10755_v55, 7  ;;  %v1993_v2 = vrot.slane %v10755_v55, 6  ;;  %v17065_v3 = vsel %vm1548_vm4, %v10755_v55, %v2498_v8 }
 0x186   :  { %v3012_v4 = vrot.slane %v10755_v55, 1  ;;  %v3525_v7 = vrot.slane %v10755_v55, 2  ;;  %v4038_v13 = vrot.slane %v10755_v55, 3  ;;  %v4551_v14 = vrot.slane %v10755_v55, 4 }
 0x187   :  { %v5064_v16 = vrot.slane %v10755_v55, 5  ;;  %v17069_v19 = vsel %vm1548_vm4, %v1547_v1, %v17006_v62  ;;  %v17073_v20 = vsel %vm1548_vm4, %v1993_v2, %v17011_v6  ;;  %v1372_v21 = vpack.c.bf16 %v1356_v59, %v1356_v59  ;;  %v10893_v55 = vld [vmem:[#allocation10 + $0x320] sm:$0xf0]  ;;  %v15320_v59 = vld [vmem:[#allocation10 + $0x324] sm:$0xf0]  ;;  %2368 = vmatpush.bf16.msra.mxu3 %v11192_v52 }
 0x188   :  { %v17077_v8 = vsel %vm1548_vm4, %v3012_v4, %v17027_v15  ;;  %v17082_v25 = vsel %vm1548_vm4, %v4038_v13, %v17018_v10  ;;  %v17086_v62 = vsel %vm1548_vm4, %v4551_v14, %v17021_v11  ;;  %v15323_v15 = vld [vmem:[#allocation10 + $0x344] sm:$0xf]  ;;  %v17094_v29 = vsel %vm1548_vm4, %v3525_v7, %v17015_v9  ;;  %v10931_v10 = vld [vmem:[#allocation10 + $0x348] sm:$0xf]  ;;  %v15252_v1 = vld [vmem:[#allocation10 + $0x10c] sm:$0xf] }
 0x189   :  { %v17090_v6 = vsel %vm1548_vm4, %v5064_v16, %v17024_v12  ;;  %v5584_v27 = vunpack.c.l.b16 %v1372_v21  ;;  %v5607_v12 = vsel %vm1545_vm3, %v5606_v58, %v17008_v33  ;;  %v10928_v9 = vor.u32 %v15323_v15, %v10925_v26  ;;  %v10859_v13 = vld [vmem:[#allocation10 + $0x2c0] sm:$0xf] }
 0x18a   :  { %v1326_v28 = vpop.f32.mrf.mxu3  ;;  %v10932_v51 = vor.u32 %v15328_v36, %v10931_v10  ;;  %v10892_v53 = vor.u32 %v15319_v49, %v10891_v48  ;;  %v15311_v14 = vld [vmem:[#allocation10 + $0x2dc] sm:$0xf0]  ;;  %v10900_v15 = vor.u32 %v15320_v59, %v10899_v56  ;;  %v10864_v10 = vor.u32 %v15307_v47, %v10861_v22  ;;  %v15304_v48 = vld [vmem:[#allocation10 + $0x2a4] sm:$0xf0]  ;;  %v15291_v59 = vld [vmem:[#allocation10 + $0x244] sm:$0xf] }
 0x18b   :  { %v1327_v11 = vadd.f32 %v16999_v34, %v1326_v28  ;;  %v12811_v46 = vunpack.i.l.s16 %v5584_v27  ;;  %1902 = vmatpush.bf16.msra.mxu2 %v10928_v9  ;;  %v15312_v27 = vld [vmem:[#allocation10 + $0x2e4] sm:$0xf0]  ;;  %v10860_v28 = vor.u32 %v15311_v14, %v10859_v13  ;;  %v10827_v36 = vld [vmem:[#allocation10 + $0x280] sm:$0xf]  ;;  %v11061_v47 = vld [vmem:[#allocation10 + $0x68] sm:$0xf0] }
 0x18c   :  { %1915 = vmatpush.bf16.msrb.mxu0 %v10932_v51  ;;  %1890 = vmatpush.bf16.msra.mxu1 %v10892_v53  ;;  %v10835_v9 = vld [vmem:[#allocation10 + $0x288] sm:$0xf]  ;;  %v15236_v53 = vld [vmem:[#allocation10 + $0x8c] sm:$0xf]  ;;  %v15295_v56 = vld [vmem:[#allocation10 + $0x25c] sm:$0xf0] }
 0x18d   :  { %v1357_v50 = vmax.f32 %v1327_v11, 0.0  ;;  %v5608_v57 = vrot.slane %v12811_v46, 6  ;;  %v6121_v33 = vrot.slane %v12811_v46, 7  ;;  %v17103_v18 = vsel %vm1548_vm4, %v12811_v46, %v17045_v31  ;;  %v11157_v31 = vld [vmem:[#allocation10 + $0x128] sm:$0xf0] }
 0x18e   :  { %v7148_v58 = vrot.slane %v12811_v46, 1  ;;  %v7661_v60 = vrot.slane %v12811_v46, 2  ;;  %v8174_v61 = vrot.slane %v12811_v46, 3  ;;  %v8687_v63 = vrot.slane %v12811_v46, 4 }
 0x18f   :  { %v9200_v0 = vrot.slane %v12811_v46, 5  ;;  %v17106_v2 = vsel %vm1548_vm4, %v5608_v57, %v5607_v12  ;;  %v17109_v4 = vsel %vm1548_vm4, %v6121_v33, %v6120_v45  ;;  %v1373_v5 = vpack.c.bf16 %v1357_v50, %v1357_v50  ;;  %v10829_v46 = vld [vmem:[#allocation10 + $0x2a0] sm:$0xf0] }
 0x190   :  { %v17113_v7 = vsel %vm1548_vm4, %v7148_v58, %v17048_v32  ;;  %v17117_v16 = vsel %vm1548_vm4, %v8174_v61, %v17054_v39  ;;  %v17121_v17 = vsel %vm1548_vm4, %v8687_v63, %v17057_v40  ;;  %v17129_v32 = vsel %vm1548_vm4, %v7661_v60, %v17051_v38  ;;  %v10867_v40 = vld [vmem:[#allocation10 + $0x2c8] sm:$0xf]  ;;  %1916 = vmatpush.bf16.msrb.mxu0 %v10900_v15  ;;  %v10797_v60 = vld [vmem:[#allocation10 + $0x260] sm:$0xf0] }
 0x191   :  { %v17125_v21 = vsel %vm1548_vm4, %v9200_v0, %v17060_v41  ;;  %v1523_v23 = vunpack.c.l.b16 %v1373_v5  ;;  %v10896_v39 = vor.u32 %v15315_v54, %v10893_v55  ;;  %v11160_v26 = vor.u32 %v15252_v1, %v11157_v31  ;;  %1891 = vmatpush.bf16.msra.mxu1 %v10860_v28  ;;  %v10795_v55 = vld [vmem:[#allocation10 + $0x240] sm:$0xf]  ;;  %v10803_v5 = vld [vmem:[#allocation10 + $0x248] sm:$0xf]  ;;  %v15228_v31 = vld [vmem:[#allocation10 + $0x4c] sm:$0xf] }
 0x192   :  { %v1328_v24 = vpop.f32.mrf.mxu3  ;;  %v10868_v42 = vor.u32 %v15312_v27, %v10867_v40  ;;  %v11128_v12 = vor.u32 %v15244_v30, %v11125_v35  ;;  %v10828_v45 = vor.u32 %v15303_v37, %v10827_v36  ;;  %v10836_v1 = vor.u32 %v15304_v48, %v10835_v9  ;;  %v15283_v27 = vld [vmem:[#allocation10 + $0x204] sm:$0xf]  ;;  %v10771_v28 = vld [vmem:[#allocation10 + $0x208] sm:$0xf] }
 0x193   :  { %v1329_v41 = vadd.f32 %v16999_v34, %v1328_v24  ;;  %v17132_v38 = vunpack.i.l.s16 %v1523_v23  ;;  %1903 = vmatpush.bf16.msra.mxu2 %v10896_v39  ;;  %2369 = vmatpush.bf16.msra.mxu3 %v11160_v26  ;;  %v10796_v14 = vor.u32 %v15295_v56, %v10795_v55  ;;  %v10800_v23 = vor.u32 %v15291_v59, %v10797_v60  ;;  %v10763_v24 = vld [vmem:[#allocation10 + $0x200] sm:$0xf]  ;;  %v15288_v37 = vld [vmem:[#allocation10 + $0x224] sm:$0xf0]  ;;  %v11005_v60 = vld [vmem:[#allocation10 + $0x3f0] sm:$0xf0] }
 0x194   :  { %1917 = vmatpush.bf16.msrb.mxu0 %v10868_v42  ;;  %v15287_v39 = vld [vmem:[#allocation10 + $0x21c] sm:$0xf0]  ;;  %v11064_v26 = vor.u32 %v15228_v31, %v11061_v47  ;;  %v10772_v59 = vor.u32 %v15288_v37, %v10771_v28  ;;  %v10971_v31 = vld [vmem:[#allocation10 + $0x390] sm:$0xf]  ;;  %v15333_v47 = vld [vmem:[#allocation10 + $0x394] sm:$0xf] }
 0x195   :  { %v1358_v11 = vmax.f32 %v1329_v41, 0.0  ;;  %v17137_v44 = vsel %vm1551_vm5, %v17132_v38, %v17077_v8  ;;  %v3527_v49 = vrot.slane %v17132_v38, 1  ;;  %v4040_v50 = vrot.slane %v17132_v38, 2  ;;  %v11093_v8 = vld [vmem:[#allocation10 + $0xa8] sm:$0xf0]  ;;  %1892 = vmatpush.bf16.msra.mxu1 %v10828_v45 }
 0x196   :  { %v4553_v51 = vrot.slane %v17132_v38, 3  ;;  %v5066_v52 = vrot.slane %v17132_v38, 4  ;;  %v10764_v40 = vor.u32 %v15287_v39, %v10763_v24  ;;  %v10765_v41 = vld [vmem:[#allocation10 + $0x220] sm:$0xf0]  ;;  %v15220_v45 = vld [vmem:[#allocation10 + $0xc] sm:$0xf] }
 0x197   :  { %v1374_v54 = vpack.c.bf16 %v1358_v11, %v1358_v11  ;;  %1904 = vmatpush.bf16.msra.mxu2 %v10864_v10  ;;  %v17153_v58 = vsel %vm1551_vm5, %v3527_v49, %v17094_v29  ;;  %v17157_v0 = vsel %vm1551_vm5, %v4040_v50, %v17082_v25  ;;  %2370 = vmatpush.bf16.msra.mxu3 %v11128_v12  ;;  %v11029_v49 = vld [vmem:[#allocation10 + $0x28] sm:$0xf0]  ;;  %v15270_v39 = vld [vmem:[#allocation10 + $0x19c] sm:$0xf] }
 0x198   :  { %v17145_v57 = vsel %vm1551_vm5, %v4553_v51, %v17086_v62  ;;  %v17149_v33 = vsel %vm1551_vm5, %v5066_v52, %v17090_v6  ;;  %v10832_v62 = vor.u32 %v15299_v43, %v10829_v46  ;;  %v15296_v6 = vld [vmem:[#allocation10 + $0x264] sm:$0xf0]  ;;  %v11096_v29 = vor.u32 %v15236_v53, %v11093_v8  ;;  %1918 = vmatpush.bf16.msrb.mxu0 %v10836_v1  ;;  %v15340_v50 = vld [vmem:[#allocation10 + $0x3cc] sm:$0xf]  ;;  %v11003_v53 = vld [vmem:[#allocation10 + $0x3d0] sm:$0xf] }
 0x199   :  { %v5585_v61 = vunpack.c.l.b16 %v1374_v54  ;;  %v10804_v15 = vor.u32 %v15296_v6, %v10803_v5  ;;  %1893 = vmatpush.bf16.msra.mxu1 %v10796_v14  ;;  %v10997_v51 = vld [vmem:[#allocation10 + $0x3e8] sm:$0xf0]  ;;  %v15345_v54 = vld [vmem:[#allocation10 + $0x3ec] sm:$0xf0]  ;;  %v15341_v8 = vld [vmem:[#allocation10 + $0x3d4] sm:$0xf] }
 0x19a   :  { %v1331_v63 = vpop.f32.mrf.mxu3  ;;  %v11004_v1 = vor.u32 %v15345_v54, %v11003_v53  ;;  %v15332_v5 = vld [vmem:[#allocation10 + $0x38c] sm:$0xf]  ;;  %v15337_v14 = vld [vmem:[#allocation10 + $0x3ac] sm:$0xf0] }
 0x19b   :  { %v1332_v13 = vadd.f32 %v16999_v34, %v1331_v63  ;;  %v12812_v22 = vunpack.i.l.s16 %v5585_v61  ;;  %1905 = vmatpush.bf16.msra.mxu2 %v10832_v62  ;;  %2371 = vmatpush.bf16.msra.mxu3 %v11096_v29  ;;  %v15278_v61 = vld [vmem:[#allocation10 + $0x1dc] sm:$0xf]  ;;  %v11000_v62 = vor.u32 %v15340_v50, %v10997_v51  ;;  %v10965_v6 = vld [vmem:[#allocation10 + $0x3a8] sm:$0xf0] }
 0x19c   :  { %1919 = vmatpush.bf16.msrb.mxu0 %v10804_v15  ;;  %v11269_v63 = vld [vmem:[#allocation10 + $0x1f8] sm:$0xf0]  ;;  %v10968_v24 = vor.u32 %v15332_v5, %v10965_v6 }
 0x19d   :  { %v1359_v25 = vmax.f32 %v1332_v13, 0.0  ;;  %v5610_v30 = vrot.slane %v12812_v22, 5  ;;  %v6123_v35 = vrot.slane %v12812_v22, 6  ;;  %v6636_v10 = vrot.slane %v12812_v22, 7  ;;  %1894 = vmatpush.bf16.msra.mxu1 %v10764_v40  ;;  %v11205_v50 = vld [vmem:[#allocation10 + $0x178] sm:$0xf0] }
 0x19e   :  { %v17162_v36 = vsel %vm1551_vm5, %v12812_v22, %v17113_v7  ;;  %v7663_v11 = vrot.slane %v12812_v22, 1  ;;  %v8176_v42 = vrot.slane %v12812_v22, 2  ;;  %v8689_v43 = vrot.slane %v12812_v22, 3  ;;  %v15254_v5 = vld [vmem:[#allocation10 + $0x11c] sm:$0xf] }
 0x19f   :  { %v9202_v12 = vrot.slane %v12812_v22, 4  ;;  %v17166_v46 = vsel %vm1551_vm5, %v5610_v30, %v17106_v2  ;;  %v17170_v9 = vsel %vm1551_vm5, %v6123_v35, %v17109_v4  ;;  %v17174_v7 = vsel %vm1551_vm5, %v6636_v10, %v17103_v18  ;;  %1906 = vmatpush.bf16.msra.mxu2 %v10800_v23  ;;  %2372 = vmatpush.bf16.msra.mxu3 %v11064_v26  ;;  %v10973_v22 = vld [vmem:[#allocation10 + $0x3b0] sm:$0xf0]  ;;  %v10933_v10 = vld [vmem:[#allocation10 + $0x368] sm:$0xf0] }
 0x1a0   :  { %v1375_v48 = vpack.c.bf16 %v1359_v25, %v1359_v25  ;;  %v17178_v52 = vsel %vm1551_vm5, %v8689_v43, %v17121_v17  ;;  %v17186_v4 = vsel %vm1551_vm5, %v7663_v11, %v17129_v32  ;;  %v17190_v18 = vsel %vm1551_vm5, %v8176_v42, %v17117_v16  ;;  %1920 = vmatpush.bf16.msrb.mxu0 %v10772_v59  ;;  %v11237_v25 = vld [vmem:[#allocation10 + $0x1b8] sm:$0xf0]  ;;  %v10939_v42 = vld [vmem:[#allocation10 + $0x350] sm:$0xf] }
 0x1a1   :  { %v17182_v2 = vsel %vm1551_vm5, %v9202_v12, %v17125_v21  ;;  %v10768_v17 = vor.u32 %v15283_v27, %v10765_v41  ;;  %v11032_v21 = vor.u32 %v15220_v45, %v11029_v49  ;;  %v11008_v16 = vor.u32 %v15341_v8, %v11005_v60  ;;  %1926 = vmatpush.bf16.msrb.mxu1 %v11000_v62  ;;  %v15324_v27 = vld [vmem:[#allocation10 + $0x34c] sm:$0xf]  ;;  %v15329_v43 = vld [vmem:[#allocation10 + $0x36c] sm:$0xf0]  ;;  %v15325_v12 = vld [vmem:[#allocation10 + $0x354] sm:$0xf] }
 0x1a2   :  { %v1524_v55 = vunpack.c.l.b16 %v1375_v48  ;;  %v1333_v56 = vpop.f32.mrf.mxu3  ;;  %v11272_v29 = vor.u32 %v15278_v61, %v11269_v63  ;;  %v10972_v26 = vor.u32 %v15337_v14, %v10971_v31  ;;  %v10976_v40 = vor.u32 %v15333_v47, %v10973_v22  ;;  %v10941_v48 = vld [vmem:[#allocation10 + $0x370] sm:$0xf0]  ;;  %v15262_v49 = vld [vmem:[#allocation10 + $0x15c] sm:$0xf]  ;;  %v15321_v60 = vld [vmem:[#allocation10 + $0x32c] sm:$0xf0] }
 0x1a3   :  { %v1334_v32 = vadd.f32 %v16999_v34, %v1333_v56  ;;  %1907 = vmatpush.bf16.msra.mxu2 %v10768_v17  ;;  %2373 = vmatpush.bf16.msra.mxu3 %v11032_v21  ;;  %v11240_v11 = vor.u32 %v15270_v39, %v11237_v25  ;;  %v10940_v54 = vor.u32 %v15329_v43, %v10939_v42  ;;  %v10901_v56 = vld [vmem:[#allocation10 + $0x328] sm:$0xf0]  ;;  %v10907_v17 = vld [vmem:[#allocation10 + $0x310] sm:$0xf]  ;;  %v15317_v61 = vld [vmem:[#allocation10 + $0x314] sm:$0xf] }
 0x1a4   :  { %v17193_v13 = vunpack.i.l.s16 %v1524_v55  ;;  %1952 = vmatpush.bf16.msra.mxu0 %v11008_v16  ;;  %v10944_v8 = vor.u32 %v15325_v12, %v10941_v48  ;;  %v15316_v55 = vld [vmem:[#allocation10 + $0x30c] sm:$0xf]  ;;  %v11208_v21 = vor.u32 %v15262_v49, %v11205_v50  ;;  %v10909_v63 = vld [vmem:[#allocation10 + $0x330] sm:$0xf0]  ;;  %v10908_v16 = vor.u32 %v15321_v60, %v10907_v17  ;;  %v11173_v6 = vld [vmem:[#allocation10 + $0x138] sm:$0xf0] }
 0x1a5   :  { %v1360_v23 = vmax.f32 %v1334_v32, 0.0  ;;  %1927 = vmatpush.bf16.msrb.mxu1 %v10968_v24  ;;  %v15308_v14 = vld [vmem:[#allocation10 + $0x2cc] sm:$0xf]  ;;  %v10875_v25 = vld [vmem:[#allocation10 + $0x2d0] sm:$0xf] }
 0x1a6   :  { %v3015_v15 = vrot.slane %v17193_v13, 7  ;;  %v17199_v41 = vsel %vm1554_vm6, %v17193_v13, %v17153_v58  ;;  %v4042_v28 = vrot.slane %v17193_v13, 1  ;;  %v4555_v30 = vrot.slane %v17193_v13, 2  ;;  %v10869_v47 = vld [vmem:[#allocation10 + $0x2e8] sm:$0xf0] }
 0x1a7   :  { %1939 = vmatpush.bf16.msrb.mxu2 %v11004_v1  ;;  %v5068_v35 = vrot.slane %v17193_v13, 3  ;;  %2418 = vmatpush.bf16.msrb.mxu3 %v11272_v29  ;;  %v1376_v37 = vpack.c.bf16 %v1360_v23, %v1360_v23  ;;  %v10936_v58 = vor.u32 %v15324_v27, %v10933_v10  ;;  %v10904_v1 = vor.u32 %v15316_v55, %v10901_v56  ;;  %v15309_v10 = vld [vmem:[#allocation10 + $0x2d4] sm:$0xf]  ;;  %v11141_v42 = vld [vmem:[#allocation10 + $0xf8] sm:$0xf0] }
 0x1a8   :  { %v17206_v45 = vsel %vm1554_vm6, %v4042_v28, %v17157_v0  ;;  %v17210_v59 = vsel %vm1554_vm6, %v3015_v15, %v17137_v44  ;;  %1953 = vmatpush.bf16.msra.mxu0 %v10976_v40  ;;  %v17215_v32 = vsel %vm1554_vm6, %v4555_v30, %v17145_v57  ;;  %v10912_v44 = vor.u32 %v15317_v61, %v10909_v63  ;;  %v15313_v28 = vld [vmem:[#allocation10 + $0x2ec] sm:$0xf0]  ;;  %v15300_v43 = vld [vmem:[#allocation10 + $0x28c] sm:$0xf]  ;;  %v10845_v56 = vld [vmem:[#allocation10 + $0x2b0] sm:$0xf0] }
 0x1a9   :  { %v5586_v51 = vunpack.c.l.b16 %v1376_v37  ;;  %1928 = vmatpush.bf16.msrb.mxu1 %v10936_v58  ;;  %v11176_v29 = vor.u32 %v15254_v5, %v11173_v6  ;;  %v17219_v22 = vsel %vm1554_vm6, %v5068_v35, %v17149_v33  ;;  %v10877_v33 = vld [vmem:[#allocation10 + $0x2f0] sm:$0xf0]  ;;  %v15246_v35 = vld [vmem:[#allocation10 + $0xdc] sm:$0xf]  ;;  %v10837_v12 = vld [vmem:[#allocation10 + $0x2a8] sm:$0xf0]  ;;  %v10876_v50 = vor.u32 %v15313_v28, %v10875_v25 }
 0x1aa   :  { %v1336_v53 = vpop.f32.mrf.mxu3  ;;  %v11109_v17 = vld [vmem:[#allocation10 + $0xb8] sm:$0xf0]  ;;  %v10840_v61 = vor.u32 %v15300_v43, %v10837_v12  ;;  %v15292_v63 = vld [vmem:[#allocation10 + $0x24c] sm:$0xf] }
 0x1ab   :  { %1940 = vmatpush.bf16.msrb.mxu2 %v10972_v26  ;;  %v1337_v0 = vadd.f32 %v16999_v34, %v1336_v53  ;;  %2419 = vmatpush.bf16.msrb.mxu3 %v11240_v11  ;;  %v12813_v62 = vunpack.i.l.s16 %v5586_v51  ;;  %v10880_v51 = vor.u32 %v15309_v10, %v10877_v33  ;;  %v15305_v53 = vld [vmem:[#allocation10 + $0x2ac] sm:$0xf0]  ;;  %v10805_v6 = vld [vmem:[#allocation10 + $0x268] sm:$0xf0]  ;;  %v11077_v25 = vld [vmem:[#allocation10 + $0x78] sm:$0xf0] }
 0x1ac   :  { %1954 = vmatpush.bf16.msra.mxu0 %v10944_v8  ;;  %v10779_v33 = vld [vmem:[#allocation10 + $0x210] sm:$0xf] }
 0x1ad   :  { %v1361_v31 = vmax.f32 %v1337_v0, 0.0  ;;  %v5612_v23 = vrot.slane %v12813_v62, 4  ;;  %v6125_v24 = vrot.slane %v12813_v62, 5  ;;  %v6638_v39 = vrot.slane %v12813_v62, 6  ;;  %1929 = vmatpush.bf16.msrb.mxu1 %v10904_v1 }
 0x1ae   :  { %v7151_v57 = vrot.slane %v12813_v62, 7  ;;  %v17223_v15 = vsel %vm1554_vm6, %v12813_v62, %v17186_v4  ;;  %v8178_v26 = vrot.slane %v12813_v62, 1  ;;  %v8691_v40 = vrot.slane %v12813_v62, 2 }
 0x1af   :  { %1941 = vmatpush.bf16.msrb.mxu2 %v10940_v54  ;;  %v9204_v27 = vrot.slane %v12813_v62, 3  ;;  %2420 = vmatpush.bf16.msrb.mxu3 %v11208_v21  ;;  %v1377_v30 = vpack.c.bf16 %v1361_v31, %v1361_v31  ;;  %v17227_v37 = vsel %vm1554_vm6, %v5612_v23, %v17166_v46  ;;  %v10872_v4 = vor.u32 %v15308_v14, %v10869_v47  ;;  %v15301_v54 = vld [vmem:[#allocation10 + $0x294] sm:$0xf]  ;;  %v15297_v14 = vld [vmem:[#allocation10 + $0x26c] sm:$0xf0] }
 0x1b0   :  { %v17231_v11 = vsel %vm1554_vm6, %v8178_v26, %v17190_v18  ;;  %v17235_v58 = vsel %vm1554_vm6, %v6125_v24, %v17170_v9  ;;  %v17239_v48 = vsel %vm1554_vm6, %v6638_v39, %v17174_v7  ;;  %v10843_v18 = vld [vmem:[#allocation10 + $0x290] sm:$0xf]  ;;  %v17243_v8 = vsel %vm1554_vm6, %v7151_v57, %v17162_v36  ;;  %1955 = vmatpush.bf16.msra.mxu0 %v10912_v44  ;;  %v15238_v7 = vld [vmem:[#allocation10 + $0x9c] sm:$0xf]  ;;  %v15293_v23 = vld [vmem:[#allocation10 + $0x254] sm:$0xf] }
 0x1b1   :  { %v1525_v49 = vunpack.c.l.b16 %v1377_v30  ;;  %v11144_v9 = vor.u32 %v15246_v35, %v11141_v42  ;;  %v17248_v0 = vsel %vm1554_vm6, %v8691_v40, %v17178_v52  ;;  %v17254_v60 = vsel %vm1554_vm6, %v9204_v27, %v17182_v2  ;;  %1930 = vmatpush.bf16.msrb.mxu1 %v10872_v4  ;;  %v10811_v52 = vld [vmem:[#allocation10 + $0x250] sm:$0xf]  ;;  %v10813_v24 = vld [vmem:[#allocation10 + $0x270] sm:$0xf0]  ;;  %v15230_v39 = vld [vmem:[#allocation10 + $0x5c] sm:$0xf] }
 0x1b2   :  { %v1338_v46 = vpop.f32.mrf.mxu3  ;;  %v10844_v1 = vor.u32 %v15305_v53, %v10843_v18  ;;  %v11112_v5 = vor.u32 %v15238_v7, %v11109_v17  ;;  %v10808_v57 = vor.u32 %v15292_v63, %v10805_v6  ;;  %v15284_v26 = vld [vmem:[#allocation10 + $0x20c] sm:$0xf]  ;;  %v10812_v30 = vor.u32 %v15297_v14, %v10811_v52  ;;  %v15289_v35 = vld [vmem:[#allocation10 + $0x22c] sm:$0xf0]  ;;  %v15285_v4 = vld [vmem:[#allocation10 + $0x214] sm:$0xf] }
 0x1b3   :  { %1942 = vmatpush.bf16.msrb.mxu2 %v10908_v16  ;;  %v1339_v55 = vadd.f32 %v16999_v34, %v1338_v46  ;;  %2421 = vmatpush.bf16.msrb.mxu3 %v11176_v29  ;;  %v17250_v21 = vunpack.i.l.s16 %v1525_v49  ;;  %v10848_v16 = vor.u32 %v15301_v54, %v10845_v56  ;;  %v10773_v40 = vld [vmem:[#allocation10 + $0x228] sm:$0xf0]  ;;  %v10816_v10 = vor.u32 %v15293_v23, %v10813_v24  ;;  %v10781_v49 = vld [vmem:[#allocation10 + $0x230] sm:$0xf0]  ;;  %v11045_v18 = vld [vmem:[#allocation10 + $0x38] sm:$0xf0] }
 0x1b4   :  { %1956 = vmatpush.bf16.msra.mxu0 %v10880_v51  ;;  %v11080_v12 = vor.u32 %v15230_v39, %v11077_v25  ;;  %v15222_v51 = vld [vmem:[#allocation10 + $0x1c] sm:$0xf]  ;;  %v10780_v54 = vor.u32 %v15289_v35, %v10779_v33  ;;  %v1550_v33 = vrot.slane %v17132_v38, 6 }
 0x1b5   :  { %v1362_v36 = vmax.f32 %v1339_v55, 0.0  ;;  %v3017_v62 = vrot.slane %v17250_v21, 6  ;;  %v3530_v31 = vrot.slane %v17250_v21, 7  ;;  %v17261_v44 = vsel %vm1557_vm7, %v17250_v21, %v17206_v45  ;;  %1931 = vmatpush.bf16.msrb.mxu1 %v10840_v61 }
 0x1b6   :  { %v4557_v2 = vrot.slane %v17250_v21, 1  ;;  %v5070_v29 = vrot.slane %v17250_v21, 2  ;;  %v10784_v55 = vor.u32 %v15285_v4, %v10781_v49  ;;  %v11048_v63 = vor.u32 %v15222_v51, %v11045_v18 }
 0x1b7   :  { %1943 = vmatpush.bf16.msrb.mxu2 %v10876_v50  ;;  %2422 = vmatpush.bf16.msrb.mxu3 %v11144_v9  ;;  %v1378_v47 = vpack.c.bf16 %v1362_v36, %v1362_v36  ;;  %v17267_v45 = vsel %vm1557_vm7, %v3017_v62, %v17210_v59  ;;  %v3531_v42 = vsel %vm1557_vm7, %v3530_v31, %v17199_v41  ;;  %v1553_v49 = vrot.slane %v17193_v13, 5 }
 0x1b8   :  { %1957 = vmatpush.bf16.msra.mxu0 %v10848_v16  ;;  %v4558_v59 = vsel %vm1557_vm7, %v4557_v2, %v17215_v32  ;;  %v10776_v50 = vor.u32 %v15284_v26, %v10773_v40  ;;  %v5071_v41 = vsel %vm1557_vm7, %v5070_v29, %v17219_v22  ;;  %v1556_v51 = vrot.slane %v17250_v21, 4 }
 0x1b9   :  { %v5587_v27 = vunpack.c.l.b16 %v1378_v47  ;;  %1932 = vmatpush.bf16.msrb.mxu1 %v10808_v57 }
 0x1ba   :  { %v1341_v28 = vpop.f32.mrf.mxu3 }
 0x1bb   :  { %1944 = vmatpush.bf16.msrb.mxu2 %v10844_v1  ;;  %v1342_v43 = vadd.f32 %v16999_v34, %v1341_v28  ;;  %2423 = vmatpush.bf16.msrb.mxu3 %v11112_v5  ;;  %v12814_v46 = vunpack.i.l.s16 %v5587_v27 }
 0x1bc   :  { %1958 = vmatpush.bf16.msra.mxu0 %v10816_v10 }
 0x1bd   :  { %v1363_v53 = vmax.f32 %v1342_v43, 0.0  ;;  %v5614_v9 = vrot.slane %v12814_v46, 3  ;;  %v6127_v56 = vrot.slane %v12814_v46, 4  ;;  %v6640_v7 = vrot.slane %v12814_v46, 5  ;;  %1933 = vmatpush.bf16.msrb.mxu1 %v10776_v50 }
 0x1be   :  { %v7153_v17 = vrot.slane %v12814_v46, 6  ;;  %v7666_v36 = vrot.slane %v12814_v46, 7  ;;  %v8180_v32 = vsel %vm1557_vm7, %v12814_v46, %v17231_v11  ;;  %v8693_v61 = vrot.slane %v12814_v46, 1 }
 0x1bf   :  { %1945 = vmatpush.bf16.msrb.mxu2 %v10812_v30  ;;  %2424 = vmatpush.bf16.msrb.mxu3 %v11080_v12  ;;  %v9206_v62 = vrot.slane %v12814_v46, 2  ;;  %v1379_v1 = vpack.c.bf16 %v1363_v53, %v1363_v53  ;;  %v5615_v16 = vsel %vm1557_vm7, %v5614_v9, %v17227_v37  ;;  %v6128_v22 = vsel %vm1557_vm7, %v6127_v56, %v17235_v58 }
 0x1c0   :  { %v6641_v5 = vsel %vm1557_vm7, %v6640_v7, %v17239_v48  ;;  %v7154_v6 = vsel %vm1557_vm7, %v7153_v17, %v17243_v8  ;;  %v7667_v31 = vsel %vm1557_vm7, %v7666_v36, %v17223_v15  ;;  %1959 = vmatpush.bf16.msra.mxu0 %v10784_v55  ;;  %v8694_v37 = vsel %vm1557_vm7, %v8693_v61, %v17248_v0  ;;  %v16324_v61 = vld [vmem:[#allocation8] ss:$0 sm:$0xff] }
 0x1c1   :  { %v1526_v11 = vunpack.c.l.b16 %v1379_v1  ;;  %v9207_v48 = vsel %vm1557_vm7, %v9206_v62, %v17254_v60  ;;  %v1552_v55 = vsel %vm1551_vm5, %v1550_v33, %v17069_v19 }
 0x1c2   :  { %v1343_v52 = vpop.f32.mrf.mxu3  ;;  %v1555_v1 = vsel %vm1554_vm6, %v1553_v49, %v1552_v55  ;;  %v11211_v49 = vld [vmem:[#allocation10 + $0x180] sm:$0xf] }
 0x1c3   :  { %1946 = vmatpush.bf16.msrb.mxu2 %v10780_v54  ;;  %v1344_v2 = vadd.f32 %v16999_v34, %v1343_v52  ;;  %2425 = vmatpush.bf16.msrb.mxu3 %v11048_v63  ;;  %v17291_v58 = vunpack.i.l.s16 %v1526_v11  ;;  %v1558_v11 = vsel %vm1557_vm7, %v1556_v51, %v1555_v1  ;;  %v11013_v52 = vld [vmem:[#allocation10 + $0x3f8] sm:$0xf0] }
 0x1c5   :  { %v1364_v29 = vmax.f32 %v1344_v2, 0.0  ;;  %v3019_v8 = vrot.slane %v17291_v58, 5  ;;  %v3532_v14 = vrot.slane %v17291_v58, 6  ;;  %v4045_v47 = vrot.slane %v17291_v58, 7 }
 0x1c6   :  { %v5072_v23 = vrot.slane %v17291_v58, 1  ;;  %v17313_v40 = vsel %vm1560_vm8, %v17291_v58, %v4558_v59  ;;  %v1997_v59 = vrot.slane %v17193_v13, 4  ;;  %v1559_v17 = vrot.slane %v17291_v58, 3 }
 0x1c7   :  { %v1380_v15 = vpack.c.bf16 %v1364_v29, %v1364_v29  ;;  %v17301_v0 = vsel %vm1560_vm8, %v3019_v8, %v17267_v45  ;;  %v17304_v57 = vsel %vm1560_vm8, %v3532_v14, %v3531_v42  ;;  %v17308_v60 = vsel %vm1560_vm8, %v4045_v47, %v17261_v44  ;;  %v15279_v29 = vld [vmem:[#allocation10 + $0x1dc] sm:$0xf0] }
 0x1c8   :  { %v17316_v27 = vsel %vm1560_vm8, %v5072_v23, %v5071_v41  ;;  %v1995_v42 = vrot.slane %v17132_v38, 5  ;;  %v1999_v41 = vrot.slane %v17250_v21, 3  ;;  %v2001_v36 = vrot.slane %v17291_v58, 2 }
 0x1c9   :  { %v5588_v24 = vunpack.c.l.b16 %v1380_v15  ;;  %v1561_v47 = vsel %vm1560_vm8, %v1559_v17, %v1558_v11  ;;  %v11179_v11 = vld [vmem:[#allocation10 + $0x140] sm:$0xf] }
 0x1ca   :  { %v1346_v39 = vpop.f32.mrf.mxu3 }
 0x1cb   :  { %v12815_v25 = vunpack.i.l.s16 %v5588_v24  ;;  %v1347_v26 = vadd.f32 %v16999_v34, %v1346_v39 }
 0x1cd   :  { %v5616_v28 = vrot.slane %v12815_v25, 2  ;;  %v6129_v45 = vrot.slane %v12815_v25, 3  ;;  %v6642_v30 = vrot.slane %v12815_v25, 4  ;;  %v7155_v10 = vrot.slane %v12815_v25, 5 }
 0x1ce   :  { %v7668_v35 = vrot.slane %v12815_v25, 6  ;;  %v8181_v4 = vrot.slane %v12815_v25, 7  ;;  %v1365_v44 = vmax.f32 %v1347_v26, 0.0  ;;  %v9208_v43 = vrot.slane %v12815_v25, 1  ;;  %v15404_v26 = vld [vmem:[#allocation10 + $0x5cc] sm:$0xf] }
 0x1cf   :  { %v17321_v34 = vsel %vm1560_vm8, %v5616_v28, %v5615_v16  ;;  %v17324_v12 = vsel %vm1560_vm8, %v6129_v45, %v6128_v22  ;;  %v17329_v50 = vsel %vm1560_vm8, %v6642_v30, %v6641_v5  ;;  %v17333_v18 = vsel %vm1560_vm8, %v7155_v10, %v7154_v6  ;;  %v11011_v16 = vld [vmem:[#allocation10 + $0x3d8] sm:$0xf]  ;;  %v15342_v5 = vld [vmem:[#allocation10 + $0x3dc] sm:$0xf]  ;;  %v11509_v28 = vld [vmem:[#allocation10 + $0x5e8] sm:$0xf0] }
 0x1d0   :  { %v1381_v46 = vpack.c.bf16 %v1365_v44, %v1365_v44  ;;  %v17336_v53 = vsel %vm1560_vm8, %v7668_v35, %v7667_v31  ;;  %v17339_v54 = vsel %vm1560_vm8, %v8181_v4, %v8180_v32  ;;  %v17345_v7 = vsel %vm1560_vm8, %v12815_v25, %v8694_v37  ;;  %v15346_v22 = vld [vmem:[#allocation10 + $0x3f4] sm:$0xf0]  ;;  %v11243_v31 = vld [vmem:[#allocation10 + $0x1c0] sm:$0xf]  ;;  %v15334_v44 = vld [vmem:[#allocation10 + $0x39c] sm:$0xf] }
 0x1d1   :  { %v17350_v62 = vsel %vm1560_vm8, %v9208_v43, %v9207_v48  ;;  %v1996_v32 = vsel %vm1551_vm5, %v1995_v42, %v17073_v20  ;;  %v11012_v39 = vor.u32 %v15346_v22, %v11011_v16  ;;  %v11016_v10 = vor.u32 %v15342_v5, %v11013_v52  ;;  %v10979_v35 = vld [vmem:[#allocation10 + $0x398] sm:$0xf]  ;;  %v10981_v43 = vld [vmem:[#allocation10 + $0x3b8] sm:$0xf0]  ;;  %v15263_v52 = vld [vmem:[#allocation10 + $0x15c] sm:$0xf0] }
 0x1d2   :  { %v1527_v9 = vunpack.c.l.b16 %v1381_v46  ;;  %v1348_v56 = vpop.f32.mrf.mxu3  ;;  %v1998_v2 = vsel %vm1554_vm6, %v1997_v59, %v1996_v32  ;;  %v11244_v33 = vor.u32 %v15279_v29, %v11243_v31  ;;  %v15338_v4 = vld [vmem:[#allocation10 + $0x3b4] sm:$0xf0]  ;;  %v15271_v59 = vld [vmem:[#allocation10 + $0x19c] sm:$0xf0]  ;;  %v10984_v32 = vor.u32 %v15334_v44, %v10981_v43  ;;  %v15326_v16 = vld [vmem:[#allocation10 + $0x35c] sm:$0xf] }
 0x1d3   :  { %v1349_v63 = vadd.f32 %v16324_v61, %v1348_v56  ;;  %v2000_v8 = vsel %vm1557_vm7, %v1999_v41, %v1998_v2  ;;  %v11512_v41 = vor.u32 %v15404_v26, %v11509_v28  ;;  %v11477_v56 = vld [vmem:[#allocation10 + $0x5a8] sm:$0xf0]  ;;  %v10947_v61 = vld [vmem:[#allocation10 + $0x358] sm:$0xf]  ;;  %v11212_v1 = vor.u32 %v15271_v59, %v11211_v49  ;;  %v10949_v22 = vld [vmem:[#allocation10 + $0x378] sm:$0xf0] }
 0x1d4   :  { %v17354_v19 = vunpack.i.l.s16 %v1527_v9  ;;  %v2002_v15 = vsel %vm1560_vm8, %v2001_v36, %v2000_v8  ;;  %v15396_v9 = vld [vmem:[#allocation10 + $0x58c] sm:$0xf]  ;;  %v10980_v36 = vor.u32 %v15338_v4, %v10979_v35 }
 0x1d5   :  { %v1366_v6 = vmax.f32 %v1349_v63, 0.0  ;;  %v11480_v2 = vor.u32 %v15396_v9, %v11477_v56  ;;  %v11445_v8 = vld [vmem:[#allocation10 + $0x568] sm:$0xf0]  ;;  %v15310_v9 = vld [vmem:[#allocation10 + $0x2dc] sm:$0xf] }
 0x1d6   :  { %v1562_v37 = vrot.slane %v17354_v19, 2  ;;  %v2003_v48 = vrot.slane %v17354_v19, 1  ;;  %v3021_v20 = vrot.slane %v17354_v19, 4  ;;  %v3534_v23 = vrot.slane %v17354_v19, 5  ;;  %v15380_v4 = vld [vmem:[#allocation10 + $0x50c] sm:$0xf] }
 0x1d7   :  { %v1382_v14 = vpack.c.bf16 %v1366_v6, %v1366_v6  ;;  %v4047_v51 = vrot.slane %v17354_v19, 6  ;;  %v4560_v17 = vrot.slane %v17354_v19, 7  ;;  %v11413_v44 = vld [vmem:[#allocation10 + $0x528] sm:$0xf0]  ;;  %v10885_v56 = vld [vmem:[#allocation10 + $0x2f8] sm:$0xf0] }
 0x1d8   :  { %v1564_v24 = vsel %vm1563_vm9, %v1562_v37, %v1561_v47  ;;  %v2004_v25 = vsel %vm1563_vm9, %v2003_v48, %v2002_v15  ;;  %v17374_v46 = vsel %vm1563_vm9, %v3021_v20, %v17301_v0  ;;  %v15330_v0 = vld [vmem:[#allocation10 + $0x374] sm:$0xf0]  ;;  %v17385_v63 = vsel %vm1563_vm9, %v3534_v23, %v17304_v57  ;;  %v15388_v37 = vld [vmem:[#allocation10 + $0x54c] sm:$0xf] }
 0x1d9   :  { %v5589_v45 = vunpack.c.l.b16 %v1382_v14  ;;  %v17368_v30 = vpack.c.b16 %v1564_v24, %v1564_v24  ;;  %v17370_v42 = vpack.c.b16 %v2004_v25, %v2004_v25  ;;  %v10948_v57 = vor.u32 %v15330_v0, %v10947_v61  ;;  %v10915_v14 = vld [vmem:[#allocation10 + $0x318] sm:$0xf]  ;;  %v10917_v25 = vld [vmem:[#allocation10 + $0x338] sm:$0xf0]  ;;  %v15372_v61 = vld [vmem:[#allocation10 + $0x4cc] sm:$0xf] }
 0x1da   :  { %v17393_v48 = vsel %vm1563_vm9, %v4047_v51, %v17308_v60  ;;  %v17399_v47 = vsel %vm1563_vm9, %v4560_v17, %v17313_v40  ;;  %v17404_v15 = vsel %vm1563_vm9, %v17354_v19, %v17316_v27  ;;  %v10952_v60 = vor.u32 %v15326_v16, %v10949_v22  ;;  %v15322_v24 = vld [vmem:[#allocation10 + $0x334] sm:$0xf0]  ;;  %v11381_v0 = vld [vmem:[#allocation10 + $0x4e8] sm:$0xf0] }
 0x1db   :  { %v17377_v55 = vunpack.i.l.s16 %v5589_v45  ;;  %1895 = vmatmul.bf16.vlgmr.msra.gmra.mxu1 %v17368_v30  ;;  %1908 = vmatmul.bf16.vlgmr.msra.gmra.mxu2 %v17368_v30  ;;  %v11180_v23 = vor.u32 %v15263_v52, %v11179_v11  ;;  %v11147_v45 = vld [vmem:[#allocation10 + $0x100] sm:$0xf]  ;;  %v10916_v35 = vor.u32 %v15322_v24, %v10915_v14  ;;  %v10883_v51 = vld [vmem:[#allocation10 + $0x2d8] sm:$0xf]  ;;  %v11416_v17 = vor.u32 %v15380_v4, %v11413_v44  ;;  %v15286_v4 = vld [vmem:[#allocation10 + $0x21c] sm:$0xf] }
 0x1dc   :  { %1921 = vmatmul.bf16.vlgmr.msrb.gmra.mxu0 %v17368_v30  ;;  %1965 = vmatpush.bf16.msra.mxu1 %v11012_v39  ;;  %v15318_v39 = vld [vmem:[#allocation10 + $0x31c] sm:$0xf]  ;;  %v10851_v16 = vld [vmem:[#allocation10 + $0x298] sm:$0xf]  ;;  %v11384_v11 = vor.u32 %v15372_v61, %v11381_v0  ;;  %v11083_v52 = vld [vmem:[#allocation10 + $0x80] sm:$0xf] }
 0x1dd   :  { %1978 = vmatpush.bf16.msra.mxu2 %v11016_v10  ;;  %2327 = vmatpush.bf16.msrb.mxu0 %v11244_v33  ;;  %v5618_v5 = vrot.slane %v17377_v55, 1  ;;  %v6131_v6 = vrot.slane %v17377_v55, 2  ;;  %v6644_v31 = vrot.slane %v17377_v55, 3  ;;  %v7157_v20 = vrot.slane %v17377_v55, 4  ;;  %v15255_v10 = vld [vmem:[#allocation10 + $0x11c] sm:$0xf0] }
 0x1de   :  { %2374 = vmatmul.bf16.vlgmr.msra.gmra.mxu3 %v17370_v42  ;;  %v7670_v29 = vrot.slane %v17377_v55, 5  ;;  %v8183_v26 = vrot.slane %v17377_v55, 6  ;;  %v8696_v28 = vrot.slane %v17377_v55, 7  ;;  %v11448_v33 = vor.u32 %v15388_v37, %v11445_v8  ;;  %v10819_v8 = vld [vmem:[#allocation10 + $0x258] sm:$0xf] }
 0x1df   :  { %2871 = vmatpush.bf16.msra.mxu3 %v11512_v41  ;;  %v17410_v40 = vsel %vm1563_vm9, %v5618_v5, %v17321_v34  ;;  %v17414_v27 = vsel %vm1563_vm9, %v6131_v6, %v17324_v12  ;;  %v17418_v43 = vsel %vm1563_vm9, %v6644_v31, %v17329_v50  ;;  %v17422_v49 = vsel %vm1563_vm9, %v7157_v20, %v17333_v18  ;;  %v15314_v41 = vld [vmem:[#allocation10 + $0x2f4] sm:$0xf0]  ;;  %v15302_v5 = vld [vmem:[#allocation10 + $0x29c] sm:$0xf]  ;;  %v15239_v31 = vld [vmem:[#allocation10 + $0x9c] sm:$0xf0] }
 0x1e0   :  { %1966 = vmatpush.bf16.msra.mxu1 %v10980_v36  ;;  %v17426_v34 = vsel %vm1563_vm9, %v7670_v29, %v17336_v53  ;;  %v10920_v12 = vor.u32 %v15318_v39, %v10917_v25  ;;  %v11148_v59 = vor.u32 %v15255_v10, %v11147_v45  ;;  %v17430_v50 = vsel %vm1563_vm9, %v8183_v26, %v17339_v54  ;;  %v11115_v53 = vld [vmem:[#allocation10 + $0xc0] sm:$0xf]  ;;  %v10853_v6 = vld [vmem:[#allocation10 + $0x2b8] sm:$0xf0]  ;;  %v15356_v26 = vld [vmem:[#allocation10 + $0x44c] sm:$0xf] }
 0x1e1   :  { %1979 = vmatpush.bf16.msra.mxu2 %v10984_v32  ;;  %2328 = vmatpush.bf16.msrb.mxu0 %v11212_v1  ;;  %v17434_v18 = vsel %vm1563_vm9, %v8696_v28, %v17345_v7  ;;  %v15247_v36 = vld [vmem:[#allocation10 + $0xdc] sm:$0xf0]  ;;  %v17439_v32 = vsel %vm1563_vm9, %v17377_v55, %v17350_v62  ;;  %v10884_v54 = vor.u32 %v15314_v41, %v10883_v51  ;;  %v15306_v7 = vld [vmem:[#allocation10 + $0x2b4] sm:$0xf0]  ;;  %v15364_v62 = vld [vmem:[#allocation10 + $0x48c] sm:$0xf] }
 0x1e2   :  { %v10888_v1 = vor.u32 %v15310_v9, %v10885_v56  ;;  %v11116_v22 = vor.u32 %v15247_v36, %v11115_v53  ;;  %v11349_v55 = vld [vmem:[#allocation10 + $0x4a8] sm:$0xf0]  ;;  %v2504_v37 = vrot.slane %v17250_v21, 5  ;;  %v10852_v20 = vor.u32 %v15306_v7, %v10851_v16  ;;  %v11051_v39 = vld [vmem:[#allocation10 + $0x40] sm:$0xf] }
 0x1e3   :  { %2872 = vmatpush.bf16.msra.mxu3 %v11480_v2  ;;  %v2500_v2 = vrot.slane %v17132_v38, 7  ;;  %v10856_v29 = vor.u32 %v15302_v5, %v10853_v6  ;;  %v11084_v14 = vor.u32 %v15239_v31, %v11083_v52  ;;  %v15298_v38 = vld [vmem:[#allocation10 + $0x274] sm:$0xf0]  ;;  %v11352_v24 = vor.u32 %v15364_v62, %v11349_v55  ;;  %v15231_v25 = vld [vmem:[#allocation10 + $0x5c] sm:$0xf0] }
 0x1e4   :  { %1967 = vmatpush.bf16.msra.mxu1 %v10948_v57  ;;  %v2502_v57 = vrot.slane %v17193_v13, 6  ;;  %v2506_v13 = vrot.slane %v17291_v58, 4  ;;  %v2508_v21 = vrot.slane %v17354_v19, 3  ;;  %v11317_v28 = vld [vmem:[#allocation10 + $0x468] sm:$0xf0]  ;;  %v10820_v10 = vor.u32 %v15298_v38, %v10819_v8 }
 0x1e5   :  { %1980 = vmatpush.bf16.msra.mxu2 %v10952_v60  ;;  %2329 = vmatpush.bf16.msrb.mxu0 %v11180_v23  ;;  %v15294_v60 = vld [vmem:[#allocation10 + $0x25c] sm:$0xf]  ;;  %v10787_v45 = vld [vmem:[#allocation10 + $0x218] sm:$0xf]  ;;  %v15223_v51 = vld [vmem:[#allocation10 + $0x1c] sm:$0xf0]  ;;  %v11320_v9 = vor.u32 %v15356_v26, %v11317_v28  ;;  %v2501_v61 = vsel %vm1551_vm5, %v2500_v2, %v17065_v3 }
 0x1e6   :  { %v10821_v23 = vld [vmem:[#allocation10 + $0x278] sm:$0xf0]  ;;  %v15348_v41 = vld [vmem:[#allocation10 + $0x40c] sm:$0xf]  ;;  %v15275_v58 = vld [vmem:[#allocation10 + $0x1c4] sm:$0xf]  ;;  %v2503_v6 = vsel %vm1554_vm6, %v2502_v57, %v2501_v61 }
 0x1e7   :  { %2873 = vmatpush.bf16.msra.mxu3 %v11448_v33  ;;  %v10824_v33 = vor.u32 %v15294_v60, %v10821_v23  ;;  %v10789_v44 = vld [vmem:[#allocation10 + $0x238] sm:$0xf0]  ;;  %v11285_v56 = vld [vmem:[#allocation10 + $0x428] sm:$0xf0]  ;;  %v11251_v19 = vld [vmem:[#allocation10 + $0x1c8] sm:$0xf]  ;;  %v2505_v31 = vsel %vm1557_vm7, %v2504_v37, %v2503_v6 }
 0x1e8   :  { %1968 = vmatpush.bf16.msra.mxu1 %v10916_v35  ;;  %v15290_v35 = vld [vmem:[#allocation10 + $0x234] sm:$0xf0]  ;;  %v15280_v53 = vld [vmem:[#allocation10 + $0x1e4] sm:$0xf0]  ;;  %v11259_v36 = vld [vmem:[#allocation10 + $0x1d0] sm:$0xf] }
 0x1e9   :  { %1981 = vmatpush.bf16.msra.mxu2 %v10920_v12  ;;  %2330 = vmatpush.bf16.msrb.mxu0 %v11148_v59  ;;  %v11052_v12 = vor.u32 %v15231_v25, %v11051_v39  ;;  %v11019_v59 = vld [vmem:[#allocation10] sm:$0xf]  ;;  %v10788_v0 = vor.u32 %v15290_v35, %v10787_v45  ;;  %v15406_v16 = vld [vmem:[#allocation10 + $0x5dc] sm:$0xf]  ;;  %v11252_v52 = vor.u32 %v15280_v53, %v11251_v19  ;;  %v15267_v62 = vld [vmem:[#allocation10 + $0x184] sm:$0xf] }
 0x1ea   :  { %v11020_v7 = vor.u32 %v15223_v51, %v11019_v59  ;;  %v11213_v55 = vld [vmem:[#allocation10 + $0x1a0] sm:$0xf0]  ;;  %v15272_v8 = vld [vmem:[#allocation10 + $0x1a4] sm:$0xf0]  ;;  %v15273_v60 = vld [vmem:[#allocation10 + $0x1ac] sm:$0xf0] }
 0x1eb   :  { %2874 = vmatpush.bf16.msra.mxu3 %v11416_v17  ;;  %1934 = vmatmul.bf16.vlgmr.msrb.gmra.mxu1 %v17368_v30  ;;  %v11245_v17 = vld [vmem:[#allocation10 + $0x1e0] sm:$0xf0]  ;;  %v15398_v57 = vld [vmem:[#allocation10 + $0x59c] sm:$0xf]  ;;  %v11216_v37 = vor.u32 %v15267_v62, %v11213_v55  ;;  %v11187_v45 = vld [vmem:[#allocation10 + $0x148] sm:$0xf] }
 0x1ec   :  { %1947 = vmatmul.bf16.vlgmr.msrb.gmra.mxu2 %v17368_v30  ;;  %1960 = vmatmul.bf16.vlgmr.msra.gmra.mxu0 %v17368_v30  ;;  %v11248_v5 = vor.u32 %v15275_v58, %v11245_v17  ;;  %v11493_v23 = vld [vmem:[#allocation10 + $0x5b8] sm:$0xf0]  ;;  %v15259_v39 = vld [vmem:[#allocation10 + $0x144] sm:$0xf]  ;;  %v15256_v58 = vld [vmem:[#allocation10 + $0x124] sm:$0xf0] }
 0x1ed   :  { %1969 = vmatpush.bf16.msra.mxu1 %v10884_v54  ;;  %1982 = vmatpush.bf16.msra.mxu2 %v10888_v1  ;;  %v10792_v54 = vor.u32 %v15286_v4, %v10789_v44  ;;  %v15281_v1 = vld [vmem:[#allocation10 + $0x1ec] sm:$0xf0]  ;;  %v11181_v25 = vld [vmem:[#allocation10 + $0x160] sm:$0xf0]  ;;  %v11496_v28 = vor.u32 %v15398_v57, %v11493_v23  ;;  %v15390_v35 = vld [vmem:[#allocation10 + $0x55c] sm:$0xf] }
 0x1ee   :  { %2331 = vmatpush.bf16.msrb.mxu0 %v11116_v22  ;;  %2426 = vmatmul.bf16.vlgmr.msrb.gmra.mxu3 %v17370_v42  ;;  %v11525_v22 = vld [vmem:[#allocation10 + $0x5f8] sm:$0xf0]  ;;  %v11260_v3 = vor.u32 %v15281_v1, %v11259_v36  ;;  %v11184_v44 = vor.u32 %v15259_v39, %v11181_v25  ;;  %v15251_v59 = vld [vmem:[#allocation10 + $0x104] sm:$0xf]  ;;  %v15257_v17 = vld [vmem:[#allocation10 + $0x12c] sm:$0xf0] }
 0x1ef   :  { %2875 = vmatpush.bf16.msra.mxu3 %v11384_v11  ;;  %v11288_v11 = vor.u32 %v15348_v41, %v11285_v56  ;;  %v11528_v2 = vor.u32 %v15406_v16, %v11525_v22  ;;  %v11461_v4 = vld [vmem:[#allocation10 + $0x578] sm:$0xf0]  ;;  %v11149_v51 = vld [vmem:[#allocation10 + $0x120] sm:$0xf0]  ;;  %v11155_v56 = vld [vmem:[#allocation10 + $0x108] sm:$0xf] }
 0x1f0   :  { %v15382_v19 = vld [vmem:[#allocation10 + $0x51c] sm:$0xf]  ;;  %v11152_v36 = vor.u32 %v15251_v59, %v11149_v51  ;;  %v11156_v61 = vor.u32 %v15256_v58, %v11155_v56  ;;  %v11123_v22 = vld [vmem:[#allocation10 + $0xc8] sm:$0xf]  ;;  %v15249_v6 = vld [vmem:[#allocation10 + $0xec] sm:$0xf0] }
 0x1f1   :  { %1970 = vmatpush.bf16.msra.mxu1 %v10852_v20  ;;  %1983 = vmatpush.bf16.msra.mxu2 %v10856_v29  ;;  %v2507_v20 = vsel %vm1560_vm8, %v2506_v13, %v2505_v31  ;;  %v11219_v29 = vld [vmem:[#allocation10 + $0x188] sm:$0xf]  ;;  %v11429_v53 = vld [vmem:[#allocation10 + $0x538] sm:$0xf0]  ;;  %v15235_v55 = vld [vmem:[#allocation10 + $0x84] sm:$0xf] }
 0x1f2   :  { %2332 = vmatpush.bf16.msrb.mxu0 %v11084_v14  ;;  %v11227_v14 = vld [vmem:[#allocation10 + $0x190] sm:$0xf]  ;;  %v2509_v38 = vsel %vm1563_vm9, %v2508_v21, %v2507_v20  ;;  %v11432_v16 = vor.u32 %v15382_v19, %v11429_v53  ;;  %v11365_v57 = vld [vmem:[#allocation10 + $0x4b8] sm:$0xf0]  ;;  %v11053_v39 = vld [vmem:[#allocation10 + $0x60] sm:$0xf0] }
 0x1f3   :  { %2876 = vmatpush.bf16.msra.mxu3 %v11352_v24  ;;  %v11220_v24 = vor.u32 %v15272_v8, %v11219_v29  ;;  %v17456_v26 = vpack.c.b16 %v2509_v38, %v2509_v38  ;;  %v11228_v13 = vor.u32 %v15273_v60, %v11227_v14  ;;  %v11195_v21 = vld [vmem:[#allocation10 + $0x150] sm:$0xf]  ;;  %v11091_v29 = vld [vmem:[#allocation10 + $0x88] sm:$0xf]  ;;  %v15366_v60 = vld [vmem:[#allocation10 + $0x49c] sm:$0xf] }
 0x1f4   :  { %v15240_v8 = vld [vmem:[#allocation10 + $0xa4] sm:$0xf0]  ;;  %v11099_v14 = vld [vmem:[#allocation10 + $0x90] sm:$0xf]  ;;  %v11021_v59 = vld [vmem:[#allocation10 + $0x20] sm:$0xf0] }
 0x1f5   :  { %1971 = vmatpush.bf16.msra.mxu1 %v10820_v10  ;;  %1984 = vmatpush.bf16.msra.mxu2 %v10824_v33  ;;  %v15264_v10 = vld [vmem:[#allocation10 + $0x164] sm:$0xf0]  ;;  %v15265_v33 = vld [vmem:[#allocation10 + $0x16c] sm:$0xf0]  ;;  %v11301_v19 = vld [vmem:[#allocation10 + $0x438] sm:$0xf0] }
 0x1f6   :  { %2333 = vmatpush.bf16.msrb.mxu0 %v11052_v12  ;;  %v11188_v12 = vor.u32 %v15264_v10, %v11187_v45  ;;  %v11196_v41 = vor.u32 %v15265_v33, %v11195_v21  ;;  %v15241_v38 = vld [vmem:[#allocation10 + $0xac] sm:$0xf0]  ;;  %v15232_v45 = vld [vmem:[#allocation10 + $0x64] sm:$0xf0]  ;;  %v15358_v33 = vld [vmem:[#allocation10 + $0x45c] sm:$0xf] }
 0x1f7   :  { %2877 = vmatpush.bf16.msra.mxu3 %v11320_v9  ;;  %v11464_v9 = vor.u32 %v15390_v35, %v11461_v4  ;;  %v11100_v25 = vor.u32 %v15241_v38, %v11099_v14  ;;  %v11067_v10 = vld [vmem:[#allocation10 + $0x50] sm:$0xf]  ;;  %v11333_v35 = vld [vmem:[#allocation10 + $0x478] sm:$0xf0]  ;;  %v15219_v4 = vld [vmem:[#allocation10 + $0x4] sm:$0xf] }
 0x1f8   :  { %v15233_v21 = vld [vmem:[#allocation10 + $0x6c] sm:$0xf0]  ;;  %v11027_v51 = vld [vmem:[#allocation10 + $0x8] sm:$0xf]  ;;  %v11336_v56 = vor.u32 %v15358_v33, %v11333_v35  ;;  %v15277_v53 = vld [vmem:[#allocation10 + $0x1d4] sm:$0xf] }
 0x1f9   :  { %1972 = vmatpush.bf16.msra.mxu1 %v10788_v0  ;;  %1985 = vmatpush.bf16.msra.mxu2 %v10792_v54  ;;  %v15243_v0 = vld [vmem:[#allocation10 + $0xc4] sm:$0xf]  ;;  %v11035_v58 = vld [vmem:[#allocation10 + $0x10] sm:$0xf]  ;;  %v15399_v14 = vld [vmem:[#allocation10 + $0x59c] sm:$0xf0] }
 0x1fa   :  { %2334 = vmatpush.bf16.msrb.mxu0 %v11020_v7  ;;  %v11117_v54 = vld [vmem:[#allocation10 + $0xe0] sm:$0xf0]  ;;  %v15248_v7 = vld [vmem:[#allocation10 + $0xe4] sm:$0xf0]  ;;  %v15460_v38 = vld [vmem:[#allocation10 + $0x78c] sm:$0xf] }
 0x1fb   :  { %2878 = vmatpush.bf16.msra.mxu3 %v11288_v11  ;;  %v15374_v11 = vld [vmem:[#allocation10 + $0x4dc] sm:$0xf]  ;;  %v11120_v31 = vor.u32 %v15243_v0, %v11117_v54  ;;  %v11124_v62 = vor.u32 %v15248_v7, %v11123_v22  ;;  %v15282_v0 = vld [vmem:[#allocation10 + $0x1f4] sm:$0xf0]  ;;  %v11499_v54 = vld [vmem:[#allocation10 + $0x5c0] sm:$0xf] }
 0x1fc   :  { %1973 = vmatmul.bf16.vlgmr.msra.gmra.mxu1 %v17368_v30  ;;  %1986 = vmatmul.bf16.vlgmr.msra.gmra.mxu2 %v17368_v30  ;;  %v11163_v30 = vld [vmem:[#allocation10 + $0x110] sm:$0xf]  ;;  %v15407_v22 = vld [vmem:[#allocation10 + $0x5dc] sm:$0xf0]  ;;  %v15468_v7 = vld [vmem:[#allocation10 + $0x7cc] sm:$0xf] }
 0x1fd   :  { %2340 = vmatpush.bf16.msrb.mxu1 %v11248_v5  ;;  %2353 = vmatpush.bf16.msrb.mxu2 %v11252_v52  ;;  %v11164_v1 = vor.u32 %v15257_v17, %v11163_v30  ;;  %v11131_v5 = vld [vmem:[#allocation10 + $0xd0] sm:$0xf]  ;;  %v11397_v52 = vld [vmem:[#allocation10 + $0x4f8] sm:$0xf0]  ;;  %v11701_v33 = vld [vmem:[#allocation10 + $0x768] sm:$0xf0] }
 0x1fe   :  { %2379 = vmatpush.bf16.msra.mxu0 %v11260_v3  ;;  %2879 = vmatmul.bf16.vlgmr.msra.gmra.mxu3 %v17456_v26  ;;  %v11085_v3 = vld [vmem:[#allocation10 + $0xa0] sm:$0xf0]  ;;  %v11400_v20 = vor.u32 %v15374_v11, %v11397_v52  ;;  %v15225_v30 = vld [vmem:[#allocation10 + $0x2c] sm:$0xf0]  ;;  %v15350_v17 = vld [vmem:[#allocation10 + $0x41c] sm:$0xf] }
 0x1ff   :  { %2923 = vmatpush.bf16.msrb.mxu3 %v11528_v2  ;;  %2335 = vmatmul.bf16.vlgmr.msrb.gmra.mxu0 %v17370_v42  ;;  %v11132_v2 = vor.u32 %v15249_v6, %v11131_v5  ;;  %v11088_v23 = vor.u32 %v15235_v55, %v11085_v3  ;;  %v11765_v5 = vld [vmem:[#allocation10 + $0x7e8] sm:$0xf0]  ;;  %v11036_v6 = vor.u32 %v15225_v30, %v11035_v58  ;;  %v11229_v55 = vld [vmem:[#allocation10 + $0x1b0] sm:$0xf0]  ;;  %v15383_v58 = vld [vmem:[#allocation10 + $0x51c] sm:$0xf0] }
 0x200   :  { %v11304_v11 = vor.u32 %v15350_v17, %v11301_v19  ;;  %v11500_v3 = vor.u32 %v15407_v22, %v11499_v54  ;;  %v15444_v30 = vld [vmem:[#allocation10 + $0x70c] sm:$0xf]  ;;  %v11371_v22 = vld [vmem:[#allocation10 + $0x4c0] sm:$0xf] }
 0x201   :  { %2341 = vmatpush.bf16.msrb.mxu1 %v11216_v37  ;;  %2354 = vmatpush.bf16.msrb.mxu2 %v11220_v24  ;;  %v11092_v37 = vor.u32 %v15240_v8, %v11091_v29  ;;  %v15227_v24 = vld [vmem:[#allocation10 + $0x44] sm:$0xf]  ;;  %v15274_v29 = vld [vmem:[#allocation10 + $0x1b4] sm:$0xf0]  ;;  %v11467_v8 = vld [vmem:[#allocation10 + $0x580] sm:$0xf] }
 0x202   :  { %2380 = vmatpush.bf16.msra.mxu0 %v11228_v13  ;;  %v11368_v13 = vor.u32 %v15366_v60, %v11365_v57  ;;  %v11733_v60 = vld [vmem:[#allocation10 + $0x7a8] sm:$0xf0] }
 0x203   :  { %2924 = vmatpush.bf16.msrb.mxu3 %v11496_v28  ;;  %v11059_v28 = vld [vmem:[#allocation10 + $0x48] sm:$0xf]  ;;  %v11669_v17 = vld [vmem:[#allocation10 + $0x728] sm:$0xf0] }
 0x204   :  { %v11672_v54 = vor.u32 %v15444_v30, %v11669_v17  ;;  %v11541_v30 = vld [vmem:[#allocation10 + $0x628] sm:$0xf0]  ;;  %v15403_v17 = vld [vmem:[#allocation10 + $0x5c4] sm:$0xf] }
 0x205   :  { %2342 = vmatpush.bf16.msrb.mxu1 %v11184_v44  ;;  %2355 = vmatpush.bf16.msrb.mxu2 %v11188_v12  ;;  %v11056_v44 = vor.u32 %v15227_v24, %v11053_v39  ;;  %v11060_v12 = vor.u32 %v15232_v45, %v11059_v28  ;;  %v11197_v24 = vld [vmem:[#allocation10 + $0x170] sm:$0xf0]  ;;  %v11468_v39 = vor.u32 %v15399_v14, %v11467_v8  ;;  %v15266_v28 = vld [vmem:[#allocation10 + $0x174] sm:$0xf0]  ;;  %v11435_v45 = vld [vmem:[#allocation10 + $0x540] sm:$0xf] }
 0x206   :  { %2381 = vmatpush.bf16.msra.mxu0 %v11196_v41  ;;  %v15224_v41 = vld [vmem:[#allocation10 + $0x24] sm:$0xf0]  ;;  %v15367_v8 = vld [vmem:[#allocation10 + $0x49c] sm:$0xf0]  ;;  %v15428_v14 = vld [vmem:[#allocation10 + $0x68c] sm:$0xf] }
 0x207   :  { %2925 = vmatpush.bf16.msrb.mxu3 %v11464_v9  ;;  %v11068_v9 = vor.u32 %v15233_v21, %v11067_v10  ;;  %v15391_v10 = vld [vmem:[#allocation10 + $0x55c] sm:$0xf0]  ;;  %v15452_v21 = vld [vmem:[#allocation10 + $0x74c] sm:$0xf] }
 0x209   :  { %2343 = vmatpush.bf16.msrb.mxu1 %v11152_v36  ;;  %2356 = vmatpush.bf16.msrb.mxu2 %v11156_v61  ;;  %v11261_v36 = vld [vmem:[#allocation10 + $0x1f0] sm:$0xf0]  ;;  %v11267_v61 = vld [vmem:[#allocation10 + $0x1d8] sm:$0xf] }
 0x20a   :  { %2382 = vmatpush.bf16.msra.mxu0 %v11164_v1  ;;  %v11024_v1 = vor.u32 %v15219_v4, %v11021_v59  ;;  %v11264_v52 = vor.u32 %v15277_v53, %v11261_v36  ;;  %v11436_v59 = vor.u32 %v15391_v10, %v11435_v45  ;;  %v15245_v36 = vld [vmem:[#allocation10 + $0xd4] sm:$0xf]  ;;  %v15359_v45 = vld [vmem:[#allocation10 + $0x45c] sm:$0xf0]  ;;  %v15420_v10 = vld [vmem:[#allocation10 + $0x64c] sm:$0xf] }
 0x20b   :  { %2926 = vmatpush.bf16.msrb.mxu3 %v11432_v16  ;;  %v11028_v16 = vor.u32 %v15224_v41, %v11027_v51  ;;  %v11704_v51 = vor.u32 %v15452_v21, %v11701_v33  ;;  %v11171_v41 = vld [vmem:[#allocation10 + $0x118] sm:$0xf]  ;;  %v11573_v21 = vld [vmem:[#allocation10 + $0x668] sm:$0xf0]  ;;  %v15221_v33 = vld [vmem:[#allocation10 + $0x14] sm:$0xf] }
 0x20d   :  { %2344 = vmatpush.bf16.msrb.mxu1 %v11120_v31  ;;  %2357 = vmatpush.bf16.msrb.mxu2 %v11124_v62  ;;  %v11268_v31 = vor.u32 %v15282_v0, %v11267_v61  ;;  %v15269_v62 = vld [vmem:[#allocation10 + $0x194] sm:$0xf] }
 0x20e   :  { %2383 = vmatpush.bf16.msra.mxu0 %v11132_v2  ;;  %v11768_v2 = vor.u32 %v15468_v7, %v11765_v5  ;;  %v11232_v57 = vor.u32 %v15269_v62, %v11229_v55  ;;  %v11133_v61 = vld [vmem:[#allocation10 + $0xf0] sm:$0xf0]  ;;  %v15375_v7 = vld [vmem:[#allocation10 + $0x4dc] sm:$0xf0]  ;;  %v15436_v5 = vld [vmem:[#allocation10 + $0x6cc] sm:$0xf] }
 0x20f   :  { %2927 = vmatpush.bf16.msrb.mxu3 %v11400_v20  ;;  %v11235_v20 = vld [vmem:[#allocation10 + $0x198] sm:$0xf]  ;;  %v11101_v62 = vld [vmem:[#allocation10 + $0xb0] sm:$0xf0]  ;;  %v11372_v55 = vor.u32 %v15375_v7, %v11371_v22  ;;  %v11781_v22 = vld [vmem:[#allocation10 + $0x7f8] sm:$0xf0] }
 0x211   :  { %2345 = vmatpush.bf16.msrb.mxu1 %v11088_v23  ;;  %2358 = vmatpush.bf16.msrb.mxu2 %v11092_v37  ;;  %v11236_v23 = vor.u32 %v15274_v29, %v11235_v20  ;;  %v15261_v37 = vld [vmem:[#allocation10 + $0x154] sm:$0xf]  ;;  %v15242_v20 = vld [vmem:[#allocation10 + $0xb4] sm:$0xf0]  ;;  %v11339_v29 = vld [vmem:[#allocation10 + $0x480] sm:$0xf] }
 0x212   :  { %2384 = vmatpush.bf16.msra.mxu0 %v11100_v25  ;;  %v11736_v25 = vor.u32 %v15460_v38, %v11733_v60  ;;  %v11200_v35 = vor.u32 %v15261_v37, %v11197_v24  ;;  %v11605_v38 = vld [vmem:[#allocation10 + $0x6a8] sm:$0xf0]  ;;  %v11069_v37 = vld [vmem:[#allocation10 + $0x70] sm:$0xf0]  ;;  %v11340_v24 = vor.u32 %v15367_v8, %v11339_v29  ;;  %v15401_v29 = vld [vmem:[#allocation10 + $0x5ac] sm:$0xf0] }
 0x213   :  { %2928 = vmatpush.bf16.msrb.mxu3 %v11368_v13  ;;  %v11203_v13 = vld [vmem:[#allocation10 + $0x158] sm:$0xf]  ;;  %v15462_v8 = vld [vmem:[#allocation10 + $0x79c] sm:$0xf] }
 0x214   :  { %v11204_v4 = vor.u32 %v15266_v28, %v11203_v13  ;;  %v15234_v13 = vld [vmem:[#allocation10 + $0x74] sm:$0xf0]  ;;  %v11307_v28 = vld [vmem:[#allocation10 + $0x440] sm:$0xf] }
 0x215   :  { %2346 = vmatpush.bf16.msrb.mxu1 %v11056_v44  ;;  %2359 = vmatpush.bf16.msrb.mxu2 %v11060_v12  ;;  %v15253_v44 = vld [vmem:[#allocation10 + $0x114] sm:$0xf] }
 0x216   :  { %2385 = vmatpush.bf16.msra.mxu0 %v11068_v9  ;;  %v11165_v12 = vld [vmem:[#allocation10 + $0x130] sm:$0xf0]  ;;  %v15258_v9 = vld [vmem:[#allocation10 + $0x134] sm:$0xf0] }
 0x217   :  { %2929 = vmatpush.bf16.msrb.mxu3 %v11336_v56  ;;  %v11403_v56 = vld [vmem:[#allocation10 + $0x500] sm:$0xf]  ;;  %v11168_v19 = vor.u32 %v15253_v44, %v11165_v12  ;;  %v11172_v53 = vor.u32 %v15258_v9, %v11171_v41  ;;  %v11037_v44 = vld [vmem:[#allocation10 + $0x30] sm:$0xf0]  ;;  %v11043_v12 = vld [vmem:[#allocation10 + $0x18] sm:$0xf]  ;;  %v11576_v41 = vor.u32 %v15420_v10, %v11573_v21 }
 0x218   :  { %v11404_v0 = vor.u32 %v15383_v58, %v11403_v56  ;;  %v11275_v9 = vld [vmem:[#allocation10 + $0x400] sm:$0xf]  ;;  %v15412_v58 = vld [vmem:[#allocation10 + $0x60c] sm:$0xf]  ;;  %v15454_v10 = vld [vmem:[#allocation10 + $0x75c] sm:$0xf] }
 0x219   :  { %2347 = vmatpush.bf16.msrb.mxu1 %v11024_v1  ;;  %2360 = vmatpush.bf16.msrb.mxu2 %v11028_v16  ;;  %v11139_v1 = vld [vmem:[#allocation10 + $0xd8] sm:$0xf]  ;;  %v15351_v56 = vld [vmem:[#allocation10 + $0x41c] sm:$0xf0]  ;;  %v11717_v21 = vld [vmem:[#allocation10 + $0x778] sm:$0xf0] }
 0x21a   :  { %2386 = vmatpush.bf16.msra.mxu0 %v11036_v6  ;;  %v15250_v16 = vld [vmem:[#allocation10 + $0xf4] sm:$0xf0]  ;;  %v11637_v6 = vld [vmem:[#allocation10 + $0x6e8] sm:$0xf0]  ;;  %v11276_v7 = vor.u32 %v15351_v56, %v11275_v9  ;;  %v15446_v9 = vld [vmem:[#allocation10 + $0x71c] sm:$0xf] }
 0x21b   :  { %2930 = vmatpush.bf16.msrb.mxu3 %v11304_v11  ;;  %v11136_v11 = vor.u32 %v15245_v36, %v11133_v61  ;;  %v15408_v36 = vld [vmem:[#allocation10 + $0x5e4] sm:$0xf0]  ;;  %v11515_v61 = vld [vmem:[#allocation10 + $0x5d0] sm:$0xf]  ;;  %v11685_v56 = vld [vmem:[#allocation10 + $0x738] sm:$0xf0] }
 0x21c   :  { %2348 = vmatmul.bf16.vlgmr.msrb.gmra.mxu1 %v17370_v42  ;;  %2361 = vmatmul.bf16.vlgmr.msrb.gmra.mxu2 %v17370_v42 }
 0x21d   :  { %2392 = vmatpush.bf16.msra.mxu1 %v11264_v52  ;;  %2405 = vmatpush.bf16.msra.mxu2 %v11268_v31  ;;  %v11140_v52 = vor.u32 %v15250_v16, %v11139_v1  ;;  %v15237_v31 = vld [vmem:[#allocation10 + $0x94] sm:$0xf]  ;;  %v15409_v1 = vld [vmem:[#allocation10 + $0x5ec] sm:$0xf0]  ;;  %v15470_v16 = vld [vmem:[#allocation10 + $0x7dc] sm:$0xf] }
 0x21e   :  { %2832 = vmatpush.bf16.msrb.mxu0 %v11500_v3  ;;  %2931 = vmatmul.bf16.vlgmr.msrb.gmra.mxu3 %v17456_v26  ;;  %v11640_v3 = vor.u32 %v15436_v5, %v11637_v6  ;;  %v11104_v60 = vor.u32 %v15237_v31, %v11101_v62  ;;  %v11544_v5 = vor.u32 %v15412_v58, %v11541_v30  ;;  %v11469_v31 = vld [vmem:[#allocation10 + $0x5a0] sm:$0xf0] }
 0x21f   :  { %3384 = vmatpush.bf16.msra.mxu3 %v11768_v2  ;;  %2387 = vmatmul.bf16.vlgmr.msra.gmra.mxu0 %v17370_v42  ;;  %v11107_v2 = vld [vmem:[#allocation10 + $0x98] sm:$0xf]  ;;  %v11516_v62 = vor.u32 %v15409_v1, %v11515_v61  ;;  %v11379_v61 = vld [vmem:[#allocation10 + $0x4c8] sm:$0xf]  ;;  %v15377_v1 = vld [vmem:[#allocation10 + $0x4ec] sm:$0xf0] }
 0x221   :  { %2393 = vmatpush.bf16.msra.mxu1 %v11232_v57  ;;  %2406 = vmatpush.bf16.msra.mxu2 %v11236_v23  ;;  %v11108_v57 = vor.u32 %v15242_v20, %v11107_v2  ;;  %v15229_v23 = vld [vmem:[#allocation10 + $0x54] sm:$0xf]  ;;  %v15400_v2 = vld [vmem:[#allocation10 + $0x5a4] sm:$0xf0]  ;;  %v11483_v20 = vld [vmem:[#allocation10 + $0x590] sm:$0xf] }
 0x222   :  { %2833 = vmatpush.bf16.msrb.mxu0 %v11468_v39  ;;  %v11608_v39 = vor.u32 %v15428_v14, %v11605_v38  ;;  %v11749_v14 = vld [vmem:[#allocation10 + $0x7b8] sm:$0xf0] }
 0x223   :  { %3385 = vmatpush.bf16.msra.mxu3 %v11736_v25  ;;  %v11075_v25 = vld [vmem:[#allocation10 + $0x58] sm:$0xf] }
 0x225   :  { %2394 = vmatpush.bf16.msra.mxu1 %v11200_v35  ;;  %2407 = vmatpush.bf16.msra.mxu2 %v11204_v4  ;;  %v11072_v35 = vor.u32 %v15229_v23, %v11069_v37  ;;  %v11076_v4 = vor.u32 %v15234_v13, %v11075_v25  ;;  %v11437_v23 = vld [vmem:[#allocation10 + $0x560] sm:$0xf0]  ;;  %v17468_v37 = vpack.c.b16 %v17374_v46, %v17374_v46  ;;  %v11443_v25 = vld [vmem:[#allocation10 + $0x548] sm:$0xf] }
 0x226   :  { %2834 = vmatpush.bf16.msrb.mxu0 %v11436_v59  ;;  %v15226_v59 = vld [vmem:[#allocation10 + $0x34] sm:$0xf0]  ;;  %v15392_v13 = vld [vmem:[#allocation10 + $0x564] sm:$0xf0] }
 0x227   :  { %3386 = vmatpush.bf16.msra.mxu3 %v11704_v51  ;;  %v11308_v51 = vor.u32 %v15359_v45, %v11307_v28  ;;  %v11451_v28 = vld [vmem:[#allocation10 + $0x550] sm:$0xf] }
 0x228   :  { %v15393_v45 = vld [vmem:[#allocation10 + $0x56c] sm:$0xf0] }
 0x229   :  { %2395 = vmatpush.bf16.msra.mxu1 %v11168_v19  ;;  %2408 = vmatpush.bf16.msra.mxu2 %v11172_v53  ;;  %v11501_v19 = vld [vmem:[#allocation10 + $0x5e0] sm:$0xf0]  ;;  %v11507_v53 = vld [vmem:[#allocation10 + $0x5c8] sm:$0xf] }
 0x22a   :  { %2835 = vmatpush.bf16.msrb.mxu0 %v11404_v0  ;;  %v11040_v0 = vor.u32 %v15221_v33, %v11037_v44  ;;  %v11504_v6 = vor.u32 %v15403_v17, %v11501_v19  ;;  %v11444_v33 = vor.u32 %v15392_v13, %v11443_v25  ;;  %v11452_v44 = vor.u32 %v15393_v45, %v11451_v28  ;;  %v15371_v17 = vld [vmem:[#allocation10 + $0x4c4] sm:$0xf]  ;;  %v11323_v25 = vld [vmem:[#allocation10 + $0x450] sm:$0xf]  ;;  %v15422_v28 = vld [vmem:[#allocation10 + $0x65c] sm:$0xf] }
 0x22b   :  { %3387 = vmatpush.bf16.msra.mxu3 %v11672_v54  ;;  %v11044_v54 = vor.u32 %v15226_v59, %v11043_v12  ;;  %v11720_v12 = vor.u32 %v15454_v10, %v11717_v21  ;;  %v11411_v59 = vld [vmem:[#allocation10 + $0x508] sm:$0xf]  ;;  %v11373_v19 = vld [vmem:[#allocation10 + $0x4e0] sm:$0xf0]  ;;  %v15361_v13 = vld [vmem:[#allocation10 + $0x46c] sm:$0xf0] }
 0x22c   :  { %v11589_v45 = vld [vmem:[#allocation10 + $0x678] sm:$0xf0]  ;;  %v15347_v10 = vld [vmem:[#allocation10 + $0x404] sm:$0xf] }
 0x22d   :  { %2396 = vmatpush.bf16.msra.mxu1 %v11136_v11  ;;  %2409 = vmatpush.bf16.msra.mxu2 %v11140_v52  ;;  %v11508_v11 = vor.u32 %v15408_v36, %v11507_v53  ;;  %v15395_v52 = vld [vmem:[#allocation10 + $0x584] sm:$0xf]  ;;  %v11688_v36 = vor.u32 %v15446_v9, %v11685_v56  ;;  %v15405_v9 = vld [vmem:[#allocation10 + $0x5d4] sm:$0xf] }
 0x22e   :  { %2836 = vmatpush.bf16.msrb.mxu0 %v11372_v55  ;;  %v11784_v55 = vor.u32 %v15470_v16, %v11781_v22  ;;  %v11472_v38 = vor.u32 %v15395_v52, %v11469_v31  ;;  %v15438_v16 = vld [vmem:[#allocation10 + $0x6dc] sm:$0xf]  ;;  %v11517_v56 = vld [vmem:[#allocation10 + $0x5f0] sm:$0xf0] }
 0x22f   :  { %3388 = vmatpush.bf16.msra.mxu3 %v11640_v3  ;;  %v11475_v3 = vld [vmem:[#allocation10 + $0x588] sm:$0xf]  ;;  %v11653_v22 = vld [vmem:[#allocation10 + $0x6f8] sm:$0xf0] }
 0x230   :  { %v11656_v31 = vor.u32 %v15438_v16, %v11653_v22  ;;  %v11520_v16 = vor.u32 %v15405_v9, %v11517_v56 }
 0x231   :  { %2397 = vmatpush.bf16.msra.mxu1 %v11104_v60  ;;  %2410 = vmatpush.bf16.msra.mxu2 %v11108_v57  ;;  %v11476_v60 = vor.u32 %v15400_v2, %v11475_v3  ;;  %v15387_v57 = vld [vmem:[#allocation10 + $0x544] sm:$0xf]  ;;  %v11355_v3 = vld [vmem:[#allocation10 + $0x490] sm:$0xf] }
 0x232   :  { %2837 = vmatpush.bf16.msrb.mxu0 %v11340_v24  ;;  %v11484_v24 = vor.u32 %v15401_v29, %v11483_v20  ;;  %v11440_v46 = vor.u32 %v15387_v57, %v11437_v23  ;;  %v15369_v2 = vld [vmem:[#allocation10 + $0x4ac] sm:$0xf0]  ;;  %v15430_v20 = vld [vmem:[#allocation10 + $0x69c] sm:$0xf] }
 0x233   :  { %3389 = vmatpush.bf16.msra.mxu3 %v11608_v39  ;;  %v11752_v39 = vor.u32 %v15462_v8, %v11749_v14  ;;  %v11621_v29 = vld [vmem:[#allocation10 + $0x6b8] sm:$0xf0]  ;;  %v11356_v57 = vor.u32 %v15369_v2, %v11355_v3  ;;  %v15524_v3 = vld [vmem:[#allocation10 + $0x98c] sm:$0xf] }
 0x234   :  { %v11624_v23 = vor.u32 %v15430_v20, %v11621_v29  ;;  %v11989_v2 = vld [vmem:[#allocation10 + $0x9a8] sm:$0xf0] }
 0x235   :  { %2398 = vmatpush.bf16.msra.mxu1 %v11072_v35  ;;  %2411 = vmatpush.bf16.msra.mxu2 %v11076_v4  ;;  %v15379_v35 = vld [vmem:[#allocation10 + $0x504] sm:$0xf] }
 0x236   :  { %2838 = vmatpush.bf16.msrb.mxu0 %v11308_v51  ;;  %v11405_v4 = vld [vmem:[#allocation10 + $0x520] sm:$0xf0]  ;;  %v15384_v51 = vld [vmem:[#allocation10 + $0x524] sm:$0xf0] }
 0x237   :  { %3390 = vmatpush.bf16.msra.mxu3 %v11576_v41  ;;  %v15385_v41 = vld [vmem:[#allocation10 + $0x52c] sm:$0xf0]  ;;  %v11408_v58 = vor.u32 %v15379_v35, %v11405_v4  ;;  %v11412_v30 = vor.u32 %v15384_v51, %v11411_v59  ;;  %v11283_v35 = vld [vmem:[#allocation10 + $0x408] sm:$0xf] }
 0x238   :  { %v15352_v4 = vld [vmem:[#allocation10 + $0x424] sm:$0xf0]  ;;  %v11291_v59 = vld [vmem:[#allocation10 + $0x410] sm:$0xf] }
 0x239   :  { %2399 = vmatpush.bf16.msra.mxu1 %v11040_v0  ;;  %2412 = vmatpush.bf16.msra.mxu2 %v11044_v54  ;;  %v15376_v0 = vld [vmem:[#allocation10 + $0x4e4] sm:$0xf0]  ;;  %v11387_v54 = vld [vmem:[#allocation10 + $0x4d0] sm:$0xf] }
 0x23a   :  { %2839 = vmatpush.bf16.msrb.mxu0 %v11276_v7  ;;  %v11376_v7 = vor.u32 %v15371_v17, %v11373_v19  ;;  %v11388_v52 = vor.u32 %v15377_v1, %v11387_v54  ;;  %v15353_v51 = vld [vmem:[#allocation10 + $0x42c] sm:$0xf0]  ;;  %v11755_v17 = vld [vmem:[#allocation10 + $0x7c0] sm:$0xf] }
 0x23b   :  { %3391 = vmatpush.bf16.msra.mxu3 %v11544_v5  ;;  %v11380_v5 = vor.u32 %v15376_v0, %v11379_v61  ;;  %v15532_v61 = vld [vmem:[#allocation10 + $0x9cc] sm:$0xf]  ;;  %v11292_v54 = vor.u32 %v15353_v51, %v11291_v59  ;;  %v11659_v59 = vld [vmem:[#allocation10 + $0x700] sm:$0xf] }
 0x23c   :  { %2400 = vmatmul.bf16.vlgmr.msra.gmra.mxu1 %v17370_v42  ;;  %2413 = vmatmul.bf16.vlgmr.msra.gmra.mxu2 %v17370_v42  ;;  %v11419_v42 = vld [vmem:[#allocation10 + $0x510] sm:$0xf]  ;;  %v12021_v0 = vld [vmem:[#allocation10 + $0x9e8] sm:$0xf0]  ;;  %v15447_v51 = vld [vmem:[#allocation10 + $0x71c] sm:$0xf0] }
 0x23d   :  { %2845 = vmatpush.bf16.msrb.mxu1 %v11504_v6  ;;  %2858 = vmatpush.bf16.msrb.mxu2 %v11508_v11  ;;  %v11420_v53 = vor.u32 %v15385_v41, %v11419_v42  ;;  %v15363_v6 = vld [vmem:[#allocation10 + $0x484] sm:$0xf]  ;;  %v15414_v42 = vld [vmem:[#allocation10 + $0x61c] sm:$0xf] }
 0x23e   :  { %2884 = vmatpush.bf16.msra.mxu0 %v11516_v62  ;;  %3392 = vmatmul.bf16.vlgmr.msra.gmra.mxu3 %v17468_v37  ;;  %v11341_v11 = vld [vmem:[#allocation10 + $0x4a0] sm:$0xf0]  ;;  %v11347_v62 = vld [vmem:[#allocation10 + $0x488] sm:$0xf]  ;;  %v11557_v41 = vld [vmem:[#allocation10 + $0x638] sm:$0xf0] }
 0x23f   :  { %3436 = vmatpush.bf16.msrb.mxu3 %v11784_v55  ;;  %2840 = vmatmul.bf16.vlgmr.msrb.gmra.mxu0 %v17456_v26  ;;  %v15368_v55 = vld [vmem:[#allocation10 + $0x4a4] sm:$0xf0]  ;;  %v11344_v8 = vor.u32 %v15363_v6, %v11341_v11  ;;  %v11560_v1 = vor.u32 %v15414_v42, %v11557_v41  ;;  %v12024_v11 = vor.u32 %v15532_v61, %v12021_v0  ;;  %v15508_v42 = vld [vmem:[#allocation10 + $0x90c] sm:$0xf]  ;;  %v15378_v61 = vld [vmem:[#allocation10 + $0x4f4] sm:$0xf0] }
 0x240   :  { %v11348_v14 = vor.u32 %v15368_v55, %v11347_v62  ;;  %v11723_v62 = vld [vmem:[#allocation10 + $0x780] sm:$0xf]  ;;  %v11925_v41 = vld [vmem:[#allocation10 + $0x928] sm:$0xf0] }
 0x241   :  { %2846 = vmatpush.bf16.msrb.mxu1 %v11472_v38  ;;  %2859 = vmatpush.bf16.msrb.mxu2 %v11476_v60  ;;  %v15355_v38 = vld [vmem:[#allocation10 + $0x444] sm:$0xf]  ;;  %v15463_v55 = vld [vmem:[#allocation10 + $0x79c] sm:$0xf0] }
 0x242   :  { %2885 = vmatpush.bf16.msra.mxu0 %v11484_v24  ;;  %v11309_v60 = vld [vmem:[#allocation10 + $0x460] sm:$0xf0]  ;;  %v11315_v24 = vld [vmem:[#allocation10 + $0x448] sm:$0xf]  ;;  %v11627_v0 = vld [vmem:[#allocation10 + $0x6c0] sm:$0xf] }
 0x243   :  { %3437 = vmatpush.bf16.msrb.mxu3 %v11752_v39  ;;  %v15360_v39 = vld [vmem:[#allocation10 + $0x464] sm:$0xf0]  ;;  %v11312_v21 = vor.u32 %v15355_v38, %v11309_v60  ;;  %v11724_v38 = vor.u32 %v15463_v55, %v11723_v62  ;;  %v11992_v60 = vor.u32 %v15524_v3, %v11989_v2  ;;  %v11363_v3 = vld [vmem:[#allocation10 + $0x498] sm:$0xf] }
 0x244   :  { %v15370_v2 = vld [vmem:[#allocation10 + $0x4b4] sm:$0xf0] }
 0x245   :  { %2847 = vmatpush.bf16.msrb.mxu1 %v11440_v46  ;;  %2860 = vmatpush.bf16.msrb.mxu2 %v11444_v33  ;;  %v11316_v46 = vor.u32 %v15360_v39, %v11315_v24  ;;  %v11277_v33 = vld [vmem:[#allocation10 + $0x420] sm:$0xf0]  ;;  %v11691_v24 = vld [vmem:[#allocation10 + $0x740] sm:$0xf] }
 0x246   :  { %2886 = vmatpush.bf16.msra.mxu0 %v11452_v44  ;;  %v11324_v44 = vor.u32 %v15361_v13, %v11323_v25  ;;  %v11280_v19 = vor.u32 %v15347_v10, %v11277_v33  ;;  %v15455_v39 = vld [vmem:[#allocation10 + $0x75c] sm:$0xf0]  ;;  %v15516_v25 = vld [vmem:[#allocation10 + $0x94c] sm:$0xf]  ;;  %v11421_v33 = vld [vmem:[#allocation10 + $0x530] sm:$0xf0] }
 0x247   :  { %3438 = vmatpush.bf16.msrb.mxu3 %v11720_v12  ;;  %v11592_v12 = vor.u32 %v15422_v28, %v11589_v45  ;;  %v11957_v13 = vld [vmem:[#allocation10 + $0x968] sm:$0xf0] }
 0x249   :  { %2848 = vmatpush.bf16.msrb.mxu1 %v11408_v58  ;;  %2861 = vmatpush.bf16.msrb.mxu2 %v11412_v30  ;;  %v11523_v58 = vld [vmem:[#allocation10 + $0x5d8] sm:$0xf] }
 0x24a   :  { %2887 = vmatpush.bf16.msra.mxu0 %v11420_v53  ;;  %v15410_v30 = vld [vmem:[#allocation10 + $0x5f4] sm:$0xf0]  ;;  %v11284_v53 = vor.u32 %v15352_v4, %v11283_v35  ;;  %v11692_v35 = vor.u32 %v15455_v39, %v11691_v24  ;;  %v11960_v4 = vor.u32 %v15516_v25, %v11957_v13 }
 0x24b   :  { %3439 = vmatpush.bf16.msrb.mxu3 %v11688_v36  ;;  %v15471_v36 = vld [vmem:[#allocation10 + $0x7dc] sm:$0xf0]  ;;  %v11524_v22 = vor.u32 %v15410_v30, %v11523_v58  ;;  %v15373_v58 = vld [vmem:[#allocation10 + $0x4d4] sm:$0xf]  ;;  %v11331_v13 = vld [vmem:[#allocation10 + $0x458] sm:$0xf] }
 0x24c   :  { %v11756_v6 = vor.u32 %v15471_v36, %v11755_v17  ;;  %v11389_v30 = vld [vmem:[#allocation10 + $0x4f0] sm:$0xf0]  ;;  %v11660_v17 = vor.u32 %v15447_v51, %v11659_v59  ;;  %v11395_v36 = vld [vmem:[#allocation10 + $0x4d8] sm:$0xf] }
 0x24d   :  { %2849 = vmatpush.bf16.msrb.mxu1 %v11376_v7  ;;  %2862 = vmatpush.bf16.msrb.mxu2 %v11380_v5  ;;  %v15397_v7 = vld [vmem:[#allocation10 + $0x594] sm:$0xf] }
 0x24e   :  { %2888 = vmatpush.bf16.msra.mxu0 %v11388_v52  ;;  %v11485_v5 = vld [vmem:[#allocation10 + $0x5b0] sm:$0xf0]  ;;  %v11491_v52 = vld [vmem:[#allocation10 + $0x598] sm:$0xf] }
 0x24f   :  { %3440 = vmatpush.bf16.msrb.mxu3 %v11656_v31  ;;  %v15402_v31 = vld [vmem:[#allocation10 + $0x5b4] sm:$0xf0]  ;;  %v11488_v20 = vor.u32 %v15397_v7, %v11485_v5  ;;  %v11392_v5 = vor.u32 %v15373_v58, %v11389_v30 }
 0x250   :  { %v11492_v29 = vor.u32 %v15402_v31, %v11491_v52  ;;  %v15365_v52 = vld [vmem:[#allocation10 + $0x494] sm:$0xf]  ;;  %v15354_v58 = vld [vmem:[#allocation10 + $0x434] sm:$0xf0] }
 0x251   :  { %2850 = vmatpush.bf16.msrb.mxu1 %v11344_v8  ;;  %2863 = vmatpush.bf16.msrb.mxu2 %v11348_v14  ;;  %v15389_v8 = vld [vmem:[#allocation10 + $0x554] sm:$0xf] }
 0x252   :  { %2889 = vmatpush.bf16.msra.mxu0 %v11356_v57  ;;  %v11453_v14 = vld [vmem:[#allocation10 + $0x570] sm:$0xf0]  ;;  %v11459_v57 = vld [vmem:[#allocation10 + $0x558] sm:$0xf] }
 0x253   :  { %3441 = vmatpush.bf16.msrb.mxu3 %v11624_v23  ;;  %v15394_v23 = vld [vmem:[#allocation10 + $0x574] sm:$0xf0]  ;;  %v11456_v45 = vor.u32 %v15389_v8, %v11453_v14  ;;  %v11357_v31 = vld [vmem:[#allocation10 + $0x4b0] sm:$0xf0]  ;;  %v15492_v8 = vld [vmem:[#allocation10 + $0x88c] sm:$0xf] }
 0x254   :  { %v11460_v10 = vor.u32 %v15394_v23, %v11459_v57  ;;  %v11861_v14 = vld [vmem:[#allocation10 + $0x8a8] sm:$0xf0]  ;;  %v15357_v57 = vld [vmem:[#allocation10 + $0x454] sm:$0xf] }
 0x255   :  { %2851 = vmatpush.bf16.msrb.mxu1 %v11312_v21  ;;  %2864 = vmatpush.bf16.msrb.mxu2 %v11316_v46  ;;  %v15381_v46 = vld [vmem:[#allocation10 + $0x514] sm:$0xf]  ;;  %v11864_v39 = vor.u32 %v15492_v8, %v11861_v14  ;;  %v11725_v8 = vld [vmem:[#allocation10 + $0x7a0] sm:$0xf0] }
 0x256   :  { %2890 = vmatpush.bf16.msra.mxu0 %v11324_v44  ;;  %v11427_v44 = vld [vmem:[#allocation10 + $0x518] sm:$0xf]  ;;  %v11424_v9 = vor.u32 %v15381_v46, %v11421_v33  ;;  %v11325_v23 = vld [vmem:[#allocation10 + $0x470] sm:$0xf0]  ;;  %v15423_v46 = vld [vmem:[#allocation10 + $0x65c] sm:$0xf0] }
 0x257   :  { %3442 = vmatpush.bf16.msrb.mxu3 %v11592_v12  ;;  %v15386_v12 = vld [vmem:[#allocation10 + $0x534] sm:$0xf0]  ;;  %v15484_v33 = vld [vmem:[#allocation10 + $0x84c] sm:$0xf]  ;;  %v11328_v59 = vor.u32 %v15357_v57, %v11325_v23  ;;  %v11731_v57 = vld [vmem:[#allocation10 + $0x788] sm:$0xf] }
 0x258   :  { %v17478_v28 = vpop.f32.mrf.mxu1  ;;  %v11428_v56 = vor.u32 %v15386_v12, %v11427_v44  ;;  %v15349_v44 = vld [vmem:[#allocation10 + $0x414] sm:$0xf]  ;;  %v15464_v23 = vld [vmem:[#allocation10 + $0x7a4] sm:$0xf0] }
 0x259   :  { %2852 = vmatpush.bf16.msrb.mxu1 %v11280_v19  ;;  %2865 = vmatpush.bf16.msrb.mxu2 %v11284_v53  ;;  %v17480_v21 = vpop.f32.mrf.mxu0  ;;  %v11928_v19 = vor.u32 %v15508_v42, %v11925_v41 }
 0x25a   :  { %2891 = vmatpush.bf16.msra.mxu0 %v11292_v54  ;;  %v15439_v54 = vld [vmem:[#allocation10 + $0x6dc] sm:$0xf0] }
 0x25b   :  { %3443 = vmatpush.bf16.msrb.mxu3 %v11560_v1  ;;  %v15500_v1 = vld [vmem:[#allocation10 + $0x8cc] sm:$0xf]  ;;  %v11628_v62 = vor.u32 %v15439_v54, %v11627_v0  ;;  %v15467_v54 = vld [vmem:[#allocation10 + $0x7c4] sm:$0xf] }
 0x25c   :  { %2853 = vmatmul.bf16.vlgmr.msrb.gmra.mxu1 %v17456_v26  ;;  %2866 = vmatmul.bf16.vlgmr.msrb.gmra.mxu2 %v17456_v26  ;;  %v11797_v0 = vld [vmem:[#allocation10 + $0x828] sm:$0xf0] }
 0x25d   :  { %2897 = vmatpush.bf16.msra.mxu1 %v11520_v16  ;;  %2910 = vmatpush.bf16.msra.mxu2 %v11524_v22  ;;  %v11893_v16 = vld [vmem:[#allocation10 + $0x8e8] sm:$0xf0] }
 0x25e   :  { %3345 = vmatpush.bf16.msrb.mxu0 %v11756_v6  ;;  %3444 = vmatmul.bf16.vlgmr.msrb.gmra.mxu3 %v17468_v37  ;;  %v17482_v53 = vpop.f32.mrf.mxu2  ;;  %v11396_v6 = vor.u32 %v15378_v61, %v11395_v36  ;;  %v11896_v55 = vor.u32 %v15500_v1, %v11893_v16  ;;  %v15415_v36 = vld [vmem:[#allocation10 + $0x61c] sm:$0xf0]  ;;  %v15476_v61 = vld [vmem:[#allocation10 + $0x80c] sm:$0xf]  ;;  %v11757_v1 = vld [vmem:[#allocation10 + $0x7e0] sm:$0xf0] }
 0x25f   :  { %3897 = vmatpush.bf16.msra.mxu3 %v12024_v11  ;;  %2892 = vmatmul.bf16.vlgmr.msra.gmra.mxu0 %v17456_v26  ;;  %v11763_v16 = vld [vmem:[#allocation10 + $0x7c8] sm:$0xf] }
 0x260   :  { %v1898_v22 = vpop.f32.mrf.mxu1 }
 0x261   :  { %2898 = vmatpush.bf16.msra.mxu1 %v11488_v20  ;;  %2911 = vmatpush.bf16.msra.mxu2 %v11492_v29  ;;  %v2375_v7 = vpop.f32.mrf.mxu3  ;;  %v1924_v11 = vpop.f32.mrf.mxu0  ;;  %v11595_v20 = vld [vmem:[#allocation10 + $0x680] sm:$0xf]  ;;  %v15472_v22 = vld [vmem:[#allocation10 + $0x7e4] sm:$0xf0] }
 0x262   :  { %3346 = vmatpush.bf16.msrb.mxu0 %v11724_v38  ;;  %v15431_v29 = vld [vmem:[#allocation10 + $0x69c] sm:$0xf0]  ;;  %v11360_v38 = vor.u32 %v15365_v52, %v11357_v31  ;;  %v15473_v11 = vld [vmem:[#allocation10 + $0x7ec] sm:$0xf0]  ;;  %v15534_v52 = vld [vmem:[#allocation10 + $0x9dc] sm:$0xf] }
 0x263   :  { %3898 = vmatpush.bf16.msra.mxu3 %v11992_v60  ;;  %v11364_v60 = vor.u32 %v15370_v2, %v11363_v3  ;;  %v11596_v24 = vor.u32 %v15431_v29, %v11595_v20  ;;  %v12037_v31 = vld [vmem:[#allocation10 + $0x9f8] sm:$0xf0]  ;;  %v11760_v3 = vor.u32 %v15467_v54, %v11757_v1  ;;  %v11764_v2 = vor.u32 %v15472_v22, %v11763_v16  ;;  %v15459_v29 = vld [vmem:[#allocation10 + $0x784] sm:$0xf]  ;;  %v11667_v16 = vld [vmem:[#allocation10 + $0x708] sm:$0xf] }
 0x264   :  { %v11675_v22 = vld [vmem:[#allocation10 + $0x710] sm:$0xf] }
 0x265   :  { %2899 = vmatpush.bf16.msra.mxu1 %v11456_v45  ;;  %2912 = vmatpush.bf16.msra.mxu2 %v11460_v10  ;;  %v15362_v45 = vld [vmem:[#allocation10 + $0x474] sm:$0xf0]  ;;  %v11563_v10 = vld [vmem:[#allocation10 + $0x640] sm:$0xf] }
 0x266   :  { %3347 = vmatpush.bf16.msrb.mxu0 %v11692_v35  ;;  %v1911_v25 = vpop.f32.mrf.mxu2  ;;  %v11829_v35 = vld [vmem:[#allocation10 + $0x868] sm:$0xf0]  ;;  %v11332_v51 = vor.u32 %v15362_v45, %v11331_v13  ;;  %v11564_v30 = vor.u32 %v15423_v46, %v11563_v10  ;;  %v15465_v13 = vld [vmem:[#allocation10 + $0x7ac] sm:$0xf0]  ;;  %v15526_v45 = vld [vmem:[#allocation10 + $0x99c] sm:$0xf]  ;;  %v11728_v46 = vor.u32 %v15459_v29, %v11725_v8 }
 0x267   :  { %3899 = vmatpush.bf16.msra.mxu3 %v11960_v4  ;;  %v12005_v10 = vld [vmem:[#allocation10 + $0x9b8] sm:$0xf0] }
 0x268   :  { %v1935_v4 = vpop.f32.mrf.mxu1 }
 0x269   :  { %2900 = vmatpush.bf16.msra.mxu1 %v11424_v9  ;;  %2913 = vmatpush.bf16.msra.mxu2 %v11428_v56  ;;  %v2377_v12 = vpop.f32.mrf.mxu3  ;;  %v17484_v42 = vadd.f32 %v2375_v7, %v1935_v4  ;;  %v17486_v41 = vpop.f32.mrf.mxu0  ;;  %v11293_v9 = vld [vmem:[#allocation10 + $0x430] sm:$0xf0]  ;;  %v11299_v56 = vld [vmem:[#allocation10 + $0x418] sm:$0xf]  ;;  %v11693_v4 = vld [vmem:[#allocation10 + $0x760] sm:$0xf0] }
 0x26a   :  { %3348 = vmatpush.bf16.msrb.mxu0 %v11660_v17  ;;  %v11832_v17 = vor.u32 %v15484_v33, %v11829_v35  ;;  %v11296_v7 = vor.u32 %v15349_v44, %v11293_v9  ;;  %v11732_v33 = vor.u32 %v15464_v23, %v11731_v57  ;;  %v15451_v35 = vld [vmem:[#allocation10 + $0x744] sm:$0xf]  ;;  %v17494_v44 = vpack.c.b16 %v17385_v63, %v17385_v63  ;;  %v15456_v9 = vld [vmem:[#allocation10 + $0x764] sm:$0xf0]  ;;  %v11643_v57 = vld [vmem:[#allocation10 + $0x6d0] sm:$0xf] }
 0x26b   :  { %3900 = vmatpush.bf16.msra.mxu3 %v11928_v19  ;;  %v11531_v19 = vld [vmem:[#allocation10 + $0x600] sm:$0xf]  ;;  %v11696_v63 = vor.u32 %v15451_v35, %v11693_v4  ;;  %v15441_v23 = vld [vmem:[#allocation10 + $0x6ec] sm:$0xf0]  ;;  %v11603_v4 = vld [vmem:[#allocation10 + $0x688] sm:$0xf] }
 0x26d   :  { %2901 = vmatpush.bf16.msra.mxu1 %v11392_v5  ;;  %2914 = vmatpush.bf16.msra.mxu2 %v11396_v6  ;;  %v11771_v5 = vld [vmem:[#allocation10 + $0x7d0] sm:$0xf]  ;;  %v11300_v6 = vor.u32 %v15354_v58, %v11299_v56 }
 0x26e   :  { %3349 = vmatpush.bf16.msrb.mxu0 %v11628_v62  ;;  %v11532_v62 = vor.u32 %v15415_v36, %v11531_v19  ;;  %v11772_v14 = vor.u32 %v15473_v11, %v11771_v5  ;;  %v11707_v56 = vld [vmem:[#allocation10 + $0x750] sm:$0xf]  ;;  %v11941_v11 = vld [vmem:[#allocation10 + $0x938] sm:$0xf0] }
 0x26f   :  { %3901 = vmatpush.bf16.msra.mxu3 %v11896_v55  ;;  %v11800_v55 = vor.u32 %v15476_v61, %v11797_v0  ;;  %v17488_v20 = vpop.f32.mrf.mxu2  ;;  %v15457_v58 = vld [vmem:[#allocation10 + $0x76c] sm:$0xf0]  ;;  %v15443_v61 = vld [vmem:[#allocation10 + $0x704] sm:$0xf] }
 0x270   :  { %v11661_v0 = vld [vmem:[#allocation10 + $0x720] sm:$0xf0]  ;;  %v11708_v54 = vor.u32 %v15457_v58, %v11707_v56  ;;  %v15433_v56 = vld [vmem:[#allocation10 + $0x6ac] sm:$0xf0]  ;;  %v15494_v58 = vld [vmem:[#allocation10 + $0x89c] sm:$0xf] }
 0x271   :  { %2902 = vmatpush.bf16.msra.mxu1 %v11360_v38  ;;  %2915 = vmatpush.bf16.msra.mxu2 %v11364_v60  ;;  %v12040_v38 = vor.u32 %v15534_v52, %v12037_v31  ;;  %v1937_v60 = vpop.f32.mrf.mxu1  ;;  %v1963_v25 = vpop.f32.mrf.mxu0 }
 0x272   :  { %3350 = vmatpush.bf16.msrb.mxu0 %v11596_v24  ;;  %v11739_v24 = vld [vmem:[#allocation10 + $0x790] sm:$0xf]  ;;  %v15440_v60 = vld [vmem:[#allocation10 + $0x6e4] sm:$0xf0]  ;;  %v11909_v25 = vld [vmem:[#allocation10 + $0x8f8] sm:$0xf0] }
 0x273   :  { %3902 = vmatpush.bf16.msra.mxu3 %v11864_v39  ;;  %v17490_v39 = vpop.f32.mrf.mxu3  ;;  %v11740_v12 = vor.u32 %v15465_v13, %v11739_v24  ;;  %v15502_v24 = vld [vmem:[#allocation10 + $0x8dc] sm:$0xf] }
 0x274   :  { %v11912_v35 = vor.u32 %v15502_v24, %v11909_v25  ;;  %v11813_v24 = vld [vmem:[#allocation10 + $0x838] sm:$0xf0]  ;;  %v15469_v25 = vld [vmem:[#allocation10 + $0x7d4] sm:$0xf] }
 0x275   :  { %2903 = vmatpush.bf16.msra.mxu1 %v11328_v59  ;;  %2916 = vmatpush.bf16.msra.mxu2 %v11332_v51  ;;  %v12008_v59 = vor.u32 %v15526_v45, %v12005_v10  ;;  %v11699_v51 = vld [vmem:[#allocation10 + $0x748] sm:$0xf]  ;;  %v15427_v10 = vld [vmem:[#allocation10 + $0x684] sm:$0xf] }
 0x276   :  { %3351 = vmatpush.bf16.msrb.mxu0 %v11564_v30  ;;  %v15518_v30 = vld [vmem:[#allocation10 + $0x95c] sm:$0xf]  ;;  %v11700_v19 = vor.u32 %v15456_v9, %v11699_v51 }
 0x277   :  { %3903 = vmatpush.bf16.msra.mxu3 %v11832_v17  ;;  %v11973_v17 = vld [vmem:[#allocation10 + $0x978] sm:$0xf0]  ;;  %v1950_v36 = vpop.f32.mrf.mxu2 }
 0x278   :  { %v11976_v1 = vor.u32 %v15518_v30, %v11973_v17  ;;  %v11877_v30 = vld [vmem:[#allocation10 + $0x8b8] sm:$0xf0] }
 0x279   :  { %2904 = vmatpush.bf16.msra.mxu1 %v11296_v7  ;;  %2917 = vmatpush.bf16.msra.mxu2 %v11300_v6  ;;  %v15449_v7 = vld [vmem:[#allocation10 + $0x72c] sm:$0xf0]  ;;  %v15510_v6 = vld [vmem:[#allocation10 + $0x91c] sm:$0xf]  ;;  %v17500_v52 = vpop.f32.mrf.mxu1 }
 0x27a   :  { %3352 = vmatpush.bf16.msrb.mxu0 %v11532_v62  ;;  %v11664_v62 = vor.u32 %v15443_v61, %v11661_v0  ;;  %v11676_v8 = vor.u32 %v15449_v7, %v11675_v22  ;;  %v15419_v0 = vld [vmem:[#allocation10 + $0x644] sm:$0xf]  ;;  %v11579_v22 = vld [vmem:[#allocation10 + $0x650] sm:$0xf]  ;;  %v15486_v7 = vld [vmem:[#allocation10 + $0x85c] sm:$0xf] }
 0x27b   :  { %3904 = vmatpush.bf16.msra.mxu3 %v11800_v55  ;;  %v2429_v5 = vpop.f32.mrf.mxu3 }
 0x27c   :  { %2905 = vmatmul.bf16.vlgmr.msra.gmra.mxu1 %v17456_v26  ;;  %2918 = vmatmul.bf16.vlgmr.msra.gmra.mxu2 %v17456_v26  ;;  %v15448_v26 = vld [vmem:[#allocation10 + $0x724] sm:$0xf0]  ;;  %v2336_v31 = vpop.f32.mrf.mxu0  ;;  %v15425_v5 = vld [vmem:[#allocation10 + $0x66c] sm:$0xf0] }
 0x27d   :  { %3358 = vmatpush.bf16.msrb.mxu1 %v11760_v3  ;;  %3371 = vmatpush.bf16.msrb.mxu2 %v11764_v2  ;;  %v11668_v55 = vor.u32 %v15448_v26, %v11667_v16  ;;  %v15435_v3 = vld [vmem:[#allocation10 + $0x6c4] sm:$0xf]  ;;  %v17503_v29 = vadd.f32 %v2336_v31, %v17478_v28  ;;  %v11571_v16 = vld [vmem:[#allocation10 + $0x648] sm:$0xf] }
 0x27e   :  { %3397 = vmatpush.bf16.msra.mxu0 %v11772_v14  ;;  %3905 = vmatmul.bf16.vlgmr.msra.gmra.mxu3 %v17494_v44  ;;  %v11629_v2 = vld [vmem:[#allocation10 + $0x6e0] sm:$0xf0]  ;;  %v11944_v14 = vor.u32 %v15510_v6, %v11941_v11  ;;  %v15424_v26 = vld [vmem:[#allocation10 + $0x664] sm:$0xf0]  ;;  %v11845_v6 = vld [vmem:[#allocation10 + $0x878] sm:$0xf0] }
 0x27f   :  { %3949 = vmatpush.bf16.msrb.mxu3 %v12040_v38  ;;  %3353 = vmatmul.bf16.vlgmr.msrb.gmra.mxu0 %v17468_v37  ;;  %v11635_v38 = vld [vmem:[#allocation10 + $0x6c8] sm:$0xf]  ;;  %v11632_v13 = vor.u32 %v15435_v3, %v11629_v2  ;;  %v1987_v28 = vpop.f32.mrf.mxu2  ;;  %v11572_v31 = vor.u32 %v15424_v26, %v11571_v16  ;;  %v11580_v2 = vor.u32 %v15425_v5, %v11579_v22  ;;  %v12245_v16 = vld [vmem:[#allocation10 + $0xba8] sm:$0xf0]  ;;  %v15453_v5 = vld [vmem:[#allocation10 + $0x754] sm:$0xf] }
 0x280   :  { %v11636_v45 = vor.u32 %v15440_v60, %v11635_v38  ;;  %v17506_v51 = vadd.f32 %v17490_v39, %v1987_v28  ;;  %v11880_v39 = vor.u32 %v15494_v58, %v11877_v30  ;;  %v15416_v3 = vld [vmem:[#allocation10 + $0x624] sm:$0xf0]  ;;  %v11547_v38 = vld [vmem:[#allocation10 + $0x610] sm:$0xf]  ;;  %v15535_v28 = vld [vmem:[#allocation10 + $0x9dc] sm:$0xf0] }
 0x281   :  { %3359 = vmatpush.bf16.msrb.mxu1 %v11728_v46  ;;  %3372 = vmatpush.bf16.msrb.mxu2 %v11732_v33  ;;  %v11597_v46 = vld [vmem:[#allocation10 + $0x6a0] sm:$0xf0]  ;;  %v11644_v33 = vor.u32 %v15441_v23, %v11643_v57  ;;  %v15417_v60 = vld [vmem:[#allocation10 + $0x62c] sm:$0xf0]  ;;  %v15478_v57 = vld [vmem:[#allocation10 + $0x81c] sm:$0xf] }
 0x282   :  { %3398 = vmatpush.bf16.msra.mxu0 %v11740_v12  ;;  %v15432_v12 = vld [vmem:[#allocation10 + $0x6a4] sm:$0xf0]  ;;  %v11600_v36 = vor.u32 %v15427_v10, %v11597_v46  ;;  %v15474_v10 = vld [vmem:[#allocation10 + $0x7f4] sm:$0xf0]  ;;  %v12011_v46 = vld [vmem:[#allocation10 + $0x9c0] sm:$0xf] }
 0x283   :  { %3950 = vmatpush.bf16.msrb.mxu3 %v12008_v59  ;;  %v11611_v59 = vld [vmem:[#allocation10 + $0x690] sm:$0xf]  ;;  %v2880_v9 = vpop.f32.mrf.mxu3  ;;  %v11604_v61 = vor.u32 %v15432_v12, %v11603_v4  ;;  %v15596_v4 = vld [vmem:[#allocation10 + $0xbcc] sm:$0xf]  ;;  %v15461_v30 = vld [vmem:[#allocation10 + $0x794] sm:$0xf] }
 0x284   :  { %v17509_v17 = vadd.f32 %v2880_v9, %v17484_v42  ;;  %v15411_v42 = vld [vmem:[#allocation10 + $0x604] sm:$0xf]  ;;  %v12277_v12 = vld [vmem:[#allocation10 + $0xbe8] sm:$0xf0]  ;;  %v11816_v9 = vor.u32 %v15478_v57, %v11813_v24  ;;  %v11683_v24 = vld [vmem:[#allocation10 + $0x718] sm:$0xf] }
 0x285   :  { %3360 = vmatpush.bf16.msrb.mxu1 %v11696_v63  ;;  %3373 = vmatpush.bf16.msrb.mxu2 %v11700_v19  ;;  %v1976_v63 = vpop.f32.mrf.mxu1  ;;  %v2338_v19 = vpop.f32.mrf.mxu0 }
 0x286   :  { %3399 = vmatpush.bf16.msra.mxu0 %v11708_v54  ;;  %v11565_v54 = vld [vmem:[#allocation10 + $0x660] sm:$0xf0]  ;;  %v11741_v63 = vld [vmem:[#allocation10 + $0x7b0] sm:$0xf0]  ;;  %v12012_v19 = vor.u32 %v15535_v28, %v12011_v46  ;;  %v12181_v46 = vld [vmem:[#allocation10 + $0xb28] sm:$0xf0] }
 0x287   :  { %3951 = vmatpush.bf16.msrb.mxu3 %v11976_v1  ;;  %v11612_v1 = vor.u32 %v15433_v56, %v11611_v59  ;;  %v11568_v11 = vor.u32 %v15419_v0, %v11565_v54  ;;  %v11548_v59 = vor.u32 %v15417_v60, %v11547_v38  ;;  %v15466_v0 = vld [vmem:[#allocation10 + $0x7b4] sm:$0xf0]  ;;  %v11979_v54 = vld [vmem:[#allocation10 + $0x980] sm:$0xf]  ;;  %v11744_v26 = vor.u32 %v15461_v30, %v11741_v63  ;;  %v15445_v38 = vld [vmem:[#allocation10 + $0x714] sm:$0xf] }
 0x288   :  { %v11677_v60 = vld [vmem:[#allocation10 + $0x730] sm:$0xf0]  ;;  %v11651_v63 = vld [vmem:[#allocation10 + $0x6d8] sm:$0xf] }
 0x289   :  { %3361 = vmatpush.bf16.msrb.mxu1 %v11664_v62  ;;  %3374 = vmatpush.bf16.msrb.mxu2 %v11668_v55  ;;  %v11533_v62 = vld [vmem:[#allocation10 + $0x620] sm:$0xf0]  ;;  %v11539_v55 = vld [vmem:[#allocation10 + $0x608] sm:$0xf] }
 0x28a   :  { %3400 = vmatpush.bf16.msra.mxu0 %v11676_v8  ;;  %v11848_v8 = vor.u32 %v15486_v7, %v11845_v6  ;;  %v11709_v7 = vld [vmem:[#allocation10 + $0x770] sm:$0xf0] }
 0x28b   :  { %3952 = vmatpush.bf16.msrb.mxu3 %v11944_v14  ;;  %v1989_v14 = vpop.f32.mrf.mxu2  ;;  %v2882_v23 = vpop.f32.mrf.mxu3 }
 0x28d   :  { %3362 = vmatpush.bf16.msrb.mxu1 %v11632_v13  ;;  %3375 = vmatpush.bf16.msrb.mxu2 %v11636_v45  ;;  %v11773_v13 = vld [vmem:[#allocation10 + $0x7f0] sm:$0xf0]  ;;  %v11779_v45 = vld [vmem:[#allocation10 + $0x7d8] sm:$0xf] }
 0x28e   :  { %3401 = vmatpush.bf16.msra.mxu0 %v11644_v33  ;;  %v11536_v33 = vor.u32 %v15411_v42, %v11533_v62  ;;  %v11776_v56 = vor.u32 %v15469_v25, %v11773_v13  ;;  %v11780_v58 = vor.u32 %v15474_v10, %v11779_v45  ;;  %v11947_v62 = vld [vmem:[#allocation10 + $0x940] sm:$0xf]  ;;  %v15450_v25 = vld [vmem:[#allocation10 + $0x734] sm:$0xf0]  ;;  %v15572_v10 = vld [vmem:[#allocation10 + $0xb0c] sm:$0xf] }
 0x28f   :  { %3953 = vmatpush.bf16.msrb.mxu3 %v11912_v35  ;;  %v11540_v35 = vor.u32 %v15416_v3, %v11539_v55  ;;  %v15519_v55 = vld [vmem:[#allocation10 + $0x95c] sm:$0xf0]  ;;  %v15580_v3 = vld [vmem:[#allocation10 + $0xb4c] sm:$0xf]  ;;  %v12184_v30 = vor.u32 %v15572_v10, %v12181_v46 }
 0x290   :  { %v11948_v57 = vor.u32 %v15519_v55, %v11947_v62  ;;  %v11915_v13 = vld [vmem:[#allocation10 + $0x900] sm:$0xf]  ;;  %v15556_v62 = vld [vmem:[#allocation10 + $0xa8c] sm:$0xf] }
 0x291   :  { %3363 = vmatpush.bf16.msrb.mxu1 %v11600_v36  ;;  %3376 = vmatpush.bf16.msrb.mxu2 %v11604_v61  ;;  %v12280_v36 = vor.u32 %v15596_v4, %v12277_v12  ;;  %v11747_v61 = vld [vmem:[#allocation10 + $0x798] sm:$0xf]  ;;  %v15511_v45 = vld [vmem:[#allocation10 + $0x91c] sm:$0xf0]  ;;  %v11680_v4 = vor.u32 %v15445_v38, %v11677_v60  ;;  %v11684_v12 = vor.u32 %v15450_v25, %v11683_v24  ;;  %v12117_v55 = vld [vmem:[#allocation10 + $0xaa8] sm:$0xf0] }
 0x292   :  { %3402 = vmatpush.bf16.msra.mxu0 %v11612_v1  ;;  %v15527_v1 = vld [vmem:[#allocation10 + $0x99c] sm:$0xf0]  ;;  %v11748_v22 = vor.u32 %v15466_v0, %v11747_v61  ;;  %v15564_v0 = vld [vmem:[#allocation10 + $0xacc] sm:$0xf]  ;;  %v15421_v60 = vld [vmem:[#allocation10 + $0x654] sm:$0xf] }
 0x293   :  { %3954 = vmatpush.bf16.msrb.mxu3 %v11880_v39  ;;  %v15588_v39 = vld [vmem:[#allocation10 + $0xb8c] sm:$0xf]  ;;  %v11980_v6 = vor.u32 %v15527_v1, %v11979_v54  ;;  %v15503_v61 = vld [vmem:[#allocation10 + $0x8dc] sm:$0xf0]  ;;  %v11587_v24 = vld [vmem:[#allocation10 + $0x658] sm:$0xf] }
 0x294   :  { %v12248_v42 = vor.u32 %v15588_v39, %v12245_v16  ;;  %v12149_v54 = vld [vmem:[#allocation10 + $0xae8] sm:$0xf0]  ;;  %v15429_v39 = vld [vmem:[#allocation10 + $0x694] sm:$0xf]  ;;  %v15426_v25 = vld [vmem:[#allocation10 + $0x674] sm:$0xf0] }
 0x295   :  { %3364 = vmatpush.bf16.msrb.mxu1 %v11568_v11  ;;  %3377 = vmatpush.bf16.msrb.mxu2 %v11572_v31  ;;  %v11715_v11 = vld [vmem:[#allocation10 + $0x758] sm:$0xf]  ;;  %v11613_v16 = vld [vmem:[#allocation10 + $0x6b0] sm:$0xf0]  ;;  %v15548_v10 = vld [vmem:[#allocation10 + $0xa4c] sm:$0xf] }
 0x296   :  { %3403 = vmatpush.bf16.msra.mxu0 %v11580_v2  ;;  %v15458_v31 = vld [vmem:[#allocation10 + $0x774] sm:$0xf0]  ;;  %v12213_v2 = vld [vmem:[#allocation10 + $0xb68] sm:$0xf0] }
 0x297   :  { %3955 = vmatpush.bf16.msrb.mxu3 %v11848_v8  ;;  %v11712_v8 = vor.u32 %v15453_v5, %v11709_v7  ;;  %v11716_v14 = vor.u32 %v15458_v31, %v11715_v11  ;;  %v12216_v23 = vor.u32 %v15580_v3, %v12213_v2  ;;  %v11619_v5 = vld [vmem:[#allocation10 + $0x698] sm:$0xf]  ;;  %v15495_v31 = vld [vmem:[#allocation10 + $0x89c] sm:$0xf0]  ;;  %v12085_v46 = vld [vmem:[#allocation10 + $0xa68] sm:$0xf0] }
 0x298   :  { %v15434_v7 = vld [vmem:[#allocation10 + $0x6b4] sm:$0xf0] }
 0x299   :  { %3365 = vmatpush.bf16.msrb.mxu1 %v11536_v33  ;;  %3378 = vmatpush.bf16.msrb.mxu2 %v11540_v35  ;;  %v2349_v33 = vpop.f32.mrf.mxu1  ;;  %v11620_v38 = vor.u32 %v15434_v7, %v11619_v5  ;;  %v15598_v5 = vld [vmem:[#allocation10 + $0xbdc] sm:$0xf] }
 0x29a   :  { %3404 = vmatpush.bf16.msra.mxu0 %v11548_v59  ;;  %v17516_v35 = vadd.f32 %v2349_v33, %v17482_v53  ;;  %v15437_v59 = vld [vmem:[#allocation10 + $0x6d4] sm:$0xf]  ;;  %v12293_v7 = vld [vmem:[#allocation10 + $0xbf8] sm:$0xf0] }
 0x29b   :  { %3956 = vmatpush.bf16.msrb.mxu3 %v11816_v9  ;;  %v11645_v9 = vld [vmem:[#allocation10 + $0x6f0] sm:$0xf0] }
 0x29c   :  { %3366 = vmatmul.bf16.vlgmr.msrb.gmra.mxu1 %v17468_v37  ;;  %3379 = vmatmul.bf16.vlgmr.msrb.gmra.mxu2 %v17468_v37  ;;  %v2388_v28 = vpop.f32.mrf.mxu0  ;;  %v11648_v53 = vor.u32 %v15437_v59, %v11645_v9  ;;  %v15418_v59 = vld [vmem:[#allocation10 + $0x634] sm:$0xf0] }
 0x29d   :  { %3410 = vmatpush.bf16.msra.mxu1 %v11776_v56  ;;  %3423 = vmatpush.bf16.msra.mxu2 %v11780_v58  ;;  %v17519_v56 = vadd.f32 %v2388_v28, %v17488_v20  ;;  %v11916_v58 = vor.u32 %v15511_v45, %v11915_v13  ;;  %v11819_v13 = vld [vmem:[#allocation10 + $0x840] sm:$0xf]  ;;  %v11588_v28 = vor.u32 %v15426_v25, %v11587_v24  ;;  %v12261_v24 = vld [vmem:[#allocation10 + $0xbb8] sm:$0xf0] }
 0x29e   :  { %3858 = vmatpush.bf16.msrb.mxu0 %v12012_v19  ;;  %3957 = vmatmul.bf16.vlgmr.msrb.gmra.mxu3 %v17494_v44  ;;  %v15442_v19 = vld [vmem:[#allocation10 + $0x6f4] sm:$0xf0]  ;;  %v15487_v45 = vld [vmem:[#allocation10 + $0x85c] sm:$0xf0] }
 0x29f   :  { %4410 = vmatpush.bf16.msra.mxu3 %v12280_v36  ;;  %3405 = vmatmul.bf16.vlgmr.msra.gmra.mxu0 %v17468_v37  ;;  %v11883_v36 = vld [vmem:[#allocation10 + $0x8c0] sm:$0xf]  ;;  %v11652_v1 = vor.u32 %v15442_v19, %v11651_v63  ;;  %v2362_v20 = vpop.f32.mrf.mxu2  ;;  %v11820_v9 = vor.u32 %v15487_v45, %v11819_v13  ;;  %v15515_v45 = vld [vmem:[#allocation10 + $0x944] sm:$0xf] }
 0x2a0   :  { %v11787_v63 = vld [vmem:[#allocation10 + $0x800] sm:$0xf] }
 0x2a1   :  { %3411 = vmatpush.bf16.msra.mxu1 %v11744_v26  ;;  %3424 = vmatpush.bf16.msra.mxu2 %v11748_v22  ;;  %v11884_v26 = vor.u32 %v15503_v61, %v11883_v36  ;;  %v12152_v22 = vor.u32 %v15564_v0, %v12149_v54  ;;  %v2932_v11 = vpop.f32.mrf.mxu3  ;;  %v2351_v2 = vpop.f32.mrf.mxu1  ;;  %v15479_v19 = vld [vmem:[#allocation10 + $0x81c] sm:$0xf0]  ;;  %v15540_v36 = vld [vmem:[#allocation10 + $0xa0c] sm:$0xf]  ;;  %v15531_v54 = vld [vmem:[#allocation10 + $0x9c4] sm:$0xf] }
 0x2a2   :  { %3859 = vmatpush.bf16.msrb.mxu0 %v11980_v6  ;;  %v11851_v6 = vld [vmem:[#allocation10 + $0x880] sm:$0xf]  ;;  %v17525_v3 = vadd.f32 %v2932_v11, %v17506_v51  ;;  %v15413_v51 = vld [vmem:[#allocation10 + $0x614] sm:$0xf]  ;;  %v12053_v0 = vld [vmem:[#allocation10 + $0xa28] sm:$0xf0] }
 0x2a3   :  { %4411 = vmatpush.bf16.msra.mxu3 %v12248_v42  ;;  %v17522_v42 = vadd.f32 %v2362_v20, %v17480_v21  ;;  %v12120_v21 = vor.u32 %v15556_v62, %v12117_v55  ;;  %v15537_v20 = vld [vmem:[#allocation10 + $0x9ec] sm:$0xf0]  ;;  %v12056_v11 = vor.u32 %v15540_v36, %v12053_v0  ;;  %v15523_v55 = vld [vmem:[#allocation10 + $0x984] sm:$0xf]  ;;  %v11923_v0 = vld [vmem:[#allocation10 + $0x908] sm:$0xf] }
 0x2a4   :  { %v11981_v2 = vld [vmem:[#allocation10 + $0x9a0] sm:$0xf0] }
 0x2a5   :  { %3412 = vmatpush.bf16.msra.mxu1 %v11712_v8  ;;  %3425 = vmatpush.bf16.msra.mxu2 %v11716_v14  ;;  %v2390_v8 = vpop.f32.mrf.mxu0  ;;  %v11616_v14 = vor.u32 %v15429_v39, %v11613_v16  ;;  %v15536_v39 = vld [vmem:[#allocation10 + $0x9e4] sm:$0xf0]  ;;  %v12027_v16 = vld [vmem:[#allocation10 + $0x9d0] sm:$0xf]  ;;  %v11984_v25 = vor.u32 %v15523_v55, %v11981_v2 }
 0x2a6   :  { %3860 = vmatpush.bf16.msrb.mxu0 %v11948_v57  ;;  %v11581_v57 = vld [vmem:[#allocation10 + $0x670] sm:$0xf0]  ;;  %v12028_v8 = vor.u32 %v15537_v20, %v12027_v16  ;;  %v15504_v55 = vld [vmem:[#allocation10 + $0x8e4] sm:$0xf0]  ;;  %v11899_v2 = vld [vmem:[#allocation10 + $0x8d0] sm:$0xf] }
 0x2a7   :  { %4412 = vmatpush.bf16.msra.mxu3 %v12216_v23  ;;  %v11852_v23 = vor.u32 %v15495_v31, %v11851_v6  ;;  %v11584_v33 = vor.u32 %v15421_v60, %v11581_v57  ;;  %v11788_v6 = vor.u32 %v15479_v19, %v11787_v63  ;;  %v15528_v60 = vld [vmem:[#allocation10 + $0x9a4] sm:$0xf0]  ;;  %v11995_v57 = vld [vmem:[#allocation10 + $0x990] sm:$0xf]  ;;  %v15507_v63 = vld [vmem:[#allocation10 + $0x904] sm:$0xf] }
 0x2a8   :  { %v11917_v19 = vld [vmem:[#allocation10 + $0x920] sm:$0xf0] }
 0x2a9   :  { %3413 = vmatpush.bf16.msra.mxu1 %v11680_v4  ;;  %3426 = vmatpush.bf16.msra.mxu2 %v11684_v12  ;;  %v11549_v4 = vld [vmem:[#allocation10 + $0x630] sm:$0xf0]  ;;  %v11555_v12 = vld [vmem:[#allocation10 + $0x618] sm:$0xf]  ;;  %v2934_v61 = vpop.f32.mrf.mxu3 }
 0x2aa   :  { %3861 = vmatpush.bf16.msrb.mxu0 %v11916_v58  ;;  %v12088_v58 = vor.u32 %v15548_v10, %v12085_v46  ;;  %v11949_v10 = vld [vmem:[#allocation10 + $0x960] sm:$0xf0]  ;;  %v17529_v46 = vpack.c.b16 %v17393_v48, %v17393_v48 }
 0x2ab   :  { %4413 = vmatpush.bf16.msra.mxu3 %v12184_v30  ;;  %v2364_v30 = vpop.f32.mrf.mxu2  ;;  %v11952_v48 = vor.u32 %v15515_v45, %v11949_v10  ;;  %v15496_v45 = vld [vmem:[#allocation10 + $0x8a4] sm:$0xf0]  ;;  %v11867_v10 = vld [vmem:[#allocation10 + $0x890] sm:$0xf] }
 0x2ad   :  { %3414 = vmatpush.bf16.msra.mxu1 %v11648_v53  ;;  %3427 = vmatpush.bf16.msra.mxu2 %v11652_v1  ;;  %v12013_v53 = vld [vmem:[#allocation10 + $0x9e0] sm:$0xf0]  ;;  %v12019_v1 = vld [vmem:[#allocation10 + $0x9c8] sm:$0xf] }
 0x2ae   :  { %3862 = vmatpush.bf16.msrb.mxu0 %v11884_v26  ;;  %v11552_v26 = vor.u32 %v15413_v51, %v11549_v4  ;;  %v12016_v31 = vor.u32 %v15531_v54, %v12013_v53  ;;  %v12020_v62 = vor.u32 %v15536_v39, %v12019_v1  ;;  %v15520_v4 = vld [vmem:[#allocation10 + $0x964] sm:$0xf0]  ;;  %v15513_v53 = vld [vmem:[#allocation10 + $0x92c] sm:$0xf0]  ;;  %v15574_v1 = vld [vmem:[#allocation10 + $0xb1c] sm:$0xf] }
 0x2af   :  { %4414 = vmatpush.bf16.msra.mxu3 %v12152_v22  ;;  %v11556_v22 = vor.u32 %v15418_v59, %v11555_v12  ;;  %v11963_v12 = vld [vmem:[#allocation10 + $0x950] sm:$0xf]  ;;  %v15512_v54 = vld [vmem:[#allocation10 + $0x924] sm:$0xf0]  ;;  %v12197_v39 = vld [vmem:[#allocation10 + $0xb38] sm:$0xf0] }
 0x2b0   :  { %v15521_v59 = vld [vmem:[#allocation10 + $0x96c] sm:$0xf0]  ;;  %v11924_v20 = vor.u32 %v15512_v54, %v11923_v0  ;;  %v15488_v0 = vld [vmem:[#allocation10 + $0x864] sm:$0xf0] }
 0x2b1   :  { %3415 = vmatpush.bf16.msra.mxu1 %v11616_v14  ;;  %3428 = vmatpush.bf16.msra.mxu2 %v11620_v38  ;;  %v12296_v14 = vor.u32 %v15598_v5, %v12293_v7  ;;  %v11987_v38 = vld [vmem:[#allocation10 + $0x988] sm:$0xf]  ;;  %v11964_v36 = vor.u32 %v15521_v59, %v11963_v12  ;;  %v15499_v5 = vld [vmem:[#allocation10 + $0x8c4] sm:$0xf]  ;;  %v12133_v12 = vld [vmem:[#allocation10 + $0xab8] sm:$0xf0] }
 0x2b2   :  { %3863 = vmatpush.bf16.msrb.mxu0 %v11852_v23  ;;  %v15529_v23 = vld [vmem:[#allocation10 + $0x9ac] sm:$0xf0]  ;;  %v11988_v13 = vor.u32 %v15528_v60, %v11987_v38  ;;  %v11885_v7 = vld [vmem:[#allocation10 + $0x8e0] sm:$0xf0]  ;;  %v12165_v38 = vld [vmem:[#allocation10 + $0xaf8] sm:$0xf0] }
 0x2b3   :  { %4415 = vmatpush.bf16.msra.mxu3 %v12120_v21  ;;  %v15590_v21 = vld [vmem:[#allocation10 + $0xb9c] sm:$0xf]  ;;  %v11996_v51 = vor.u32 %v15529_v23, %v11995_v57  ;;  %v11888_v60 = vor.u32 %v15499_v5, %v11885_v7  ;;  %v15491_v23 = vld [vmem:[#allocation10 + $0x884] sm:$0xf]  ;;  %v11835_v54 = vld [vmem:[#allocation10 + $0x850] sm:$0xf] }
 0x2b4   :  { %v15480_v5 = vld [vmem:[#allocation10 + $0x824] sm:$0xf0] }
 0x2b5   :  { %3416 = vmatpush.bf16.msra.mxu1 %v11584_v33  ;;  %3429 = vmatpush.bf16.msra.mxu2 %v11588_v28  ;;  %v12264_v33 = vor.u32 %v15590_v21, %v12261_v24  ;;  %v11955_v28 = vld [vmem:[#allocation10 + $0x948] sm:$0xf]  ;;  %v11853_v21 = vld [vmem:[#allocation10 + $0x8a0] sm:$0xf0] }
 0x2b6   :  { %3864 = vmatpush.bf16.msrb.mxu0 %v11820_v9  ;;  %v15582_v9 = vld [vmem:[#allocation10 + $0xb5c] sm:$0xf]  ;;  %v11956_v30 = vor.u32 %v15520_v4, %v11955_v28  ;;  %v15497_v28 = vld [vmem:[#allocation10 + $0x8ac] sm:$0xf0] }
 0x2b7   :  { %4416 = vmatpush.bf16.msra.mxu3 %v12088_v58  ;;  %v12229_v58 = vld [vmem:[#allocation10 + $0xb78] sm:$0xf0] }
 0x2b8   :  { %v12232_v61 = vor.u32 %v15582_v9, %v12229_v58  ;;  %v15558_v4 = vld [vmem:[#allocation10 + $0xa9c] sm:$0xf] }
 0x2b9   :  { %3417 = vmatpush.bf16.msra.mxu1 %v11552_v26  ;;  %3430 = vmatpush.bf16.msra.mxu2 %v11556_v22  ;;  %v17535_v16 = vpop.f32.mrf.mxu1  ;;  %v11920_v22 = vor.u32 %v15507_v63, %v11917_v19  ;;  %v15483_v63 = vld [vmem:[#allocation10 + $0x844] sm:$0xf] }
 0x2ba   :  { %3865 = vmatpush.bf16.msrb.mxu0 %v11788_v6  ;;  %v11821_v19 = vld [vmem:[#allocation10 + $0x860] sm:$0xf0] }
 0x2bb   :  { %4417 = vmatpush.bf16.msra.mxu3 %v12056_v11 }
 0x2bc   :  { %3418 = vmatmul.bf16.vlgmr.msra.gmra.mxu1 %v17468_v37  ;;  %3431 = vmatmul.bf16.vlgmr.msra.gmra.mxu2 %v17468_v37  ;;  %v11931_v37 = vld [vmem:[#allocation10 + $0x910] sm:$0xf]  ;;  %v2841_v26 = vpop.f32.mrf.mxu0 }
 0x2bd   :  { %3871 = vmatpush.bf16.msrb.mxu1 %v12016_v31  ;;  %3884 = vmatpush.bf16.msrb.mxu2 %v12020_v62  ;;  %v17538_v6 = vadd.f32 %v2841_v26, %v17503_v29  ;;  %v11932_v11 = vor.u32 %v15513_v53, %v11931_v37  ;;  %v12200_v31 = vor.u32 %v15574_v1, %v12197_v39  ;;  %v11891_v62 = vld [vmem:[#allocation10 + $0x8c8] sm:$0xf]  ;;  %v15489_v37 = vld [vmem:[#allocation10 + $0x86c] sm:$0xf0]  ;;  %v15550_v53 = vld [vmem:[#allocation10 + $0xa5c] sm:$0xf] }
 0x2be   :  { %3910 = vmatpush.bf16.msra.mxu0 %v12028_v8  ;;  %4418 = vmatmul.bf16.vlgmr.msra.gmra.mxu3 %v17529_v46  ;;  %v15505_v8 = vld [vmem:[#allocation10 + $0x8ec] sm:$0xf0]  ;;  %v11892_v57 = vor.u32 %v15504_v55, %v11891_v62  ;;  %v12101_v1 = vld [vmem:[#allocation10 + $0xa78] sm:$0xf0]  ;;  %v11824_v39 = vor.u32 %v15483_v63, %v11821_v19  ;;  %v11836_v7 = vor.u32 %v15489_v37, %v11835_v54  ;;  %v15530_v63 = vld [vmem:[#allocation10 + $0x9b4] sm:$0xf0] }
 0x2bf   :  { %4462 = vmatpush.bf16.msrb.mxu3 %v12296_v14  ;;  %3866 = vmatmul.bf16.vlgmr.msrb.gmra.mxu0 %v17494_v44  ;;  %v15566_v14 = vld [vmem:[#allocation10 + $0xadc] sm:$0xf]  ;;  %v11900_v24 = vor.u32 %v15505_v8, %v11899_v2  ;;  %v2414_v29 = vpop.f32.mrf.mxu2  ;;  %v11803_v62 = vld [vmem:[#allocation10 + $0x810] sm:$0xf]  ;;  %v12235_v19 = vld [vmem:[#allocation10 + $0xb80] sm:$0xf] }
 0x2c0   :  { %v15481_v55 = vld [vmem:[#allocation10 + $0x82c] sm:$0xf0]  ;;  %v15542_v2 = vld [vmem:[#allocation10 + $0xa1c] sm:$0xf]  ;;  %v15517_v37 = vld [vmem:[#allocation10 + $0x954] sm:$0xf] }
 0x2c1   :  { %3872 = vmatpush.bf16.msrb.mxu1 %v11984_v25  ;;  %3885 = vmatpush.bf16.msrb.mxu2 %v11988_v13  ;;  %v12168_v25 = vor.u32 %v15566_v14, %v12165_v38  ;;  %v11859_v13 = vld [vmem:[#allocation10 + $0x888] sm:$0xf]  ;;  %v2403_v9 = vpop.f32.mrf.mxu1  ;;  %v12069_v14 = vld [vmem:[#allocation10 + $0xa38] sm:$0xf0]  ;;  %v15533_v38 = vld [vmem:[#allocation10 + $0x9d4] sm:$0xf] }
 0x2c2   :  { %3911 = vmatpush.bf16.msra.mxu0 %v11996_v51  ;;  %v17541_v51 = vadd.f32 %v2414_v29, %v17500_v52  ;;  %v12136_v52 = vor.u32 %v15558_v4, %v12133_v12  ;;  %v15599_v29 = vld [vmem:[#allocation10 + $0xbdc] sm:$0xf0]  ;;  %v15525_v12 = vld [vmem:[#allocation10 + $0x994] sm:$0xf] }
 0x2c3   :  { %4463 = vmatpush.bf16.msrb.mxu3 %v12264_v33  ;;  %v3393_v33 = vpop.f32.mrf.mxu3  ;;  %v11997_v9 = vld [vmem:[#allocation10 + $0x9b0] sm:$0xf0] }
 0x2c4   :  { %v17544_v59 = vadd.f32 %v3393_v33, %v17509_v17  ;;  %v2843_v58 = vpop.f32.mrf.mxu0  ;;  %v15475_v17 = vld [vmem:[#allocation10 + $0x804] sm:$0xf]  ;;  %v12072_v33 = vor.u32 %v15542_v2, %v12069_v14  ;;  %v11939_v14 = vld [vmem:[#allocation10 + $0x918] sm:$0xf] }
 0x2c5   :  { %3873 = vmatpush.bf16.msrb.mxu1 %v11952_v48  ;;  %3886 = vmatpush.bf16.msrb.mxu2 %v11956_v30  ;;  %v11856_v48 = vor.u32 %v15491_v23, %v11853_v21  ;;  %v11860_v30 = vor.u32 %v15496_v45, %v11859_v13  ;;  %v15538_v23 = vld [vmem:[#allocation10 + $0x9f4] sm:$0xf0]  ;;  %v12267_v21 = vld [vmem:[#allocation10 + $0xbc0] sm:$0xf]  ;;  %v15660_v13 = vld [vmem:[#allocation10 + $0xdcc] sm:$0xf] }
 0x2c6   :  { %3912 = vmatpush.bf16.msra.mxu0 %v11964_v36  ;;  %v11868_v36 = vor.u32 %v15497_v28, %v11867_v10  ;;  %v12533_v45 = vld [vmem:[#allocation10 + $0xde8] sm:$0xf0]  ;;  %v11804_v10 = vor.u32 %v15481_v55, %v11803_v62  ;;  %v12268_v58 = vor.u32 %v15599_v29, %v12267_v21  ;;  %v15509_v62 = vld [vmem:[#allocation10 + $0x914] sm:$0xf] }
 0x2c7   :  { %4464 = vmatpush.bf16.msrb.mxu3 %v12232_v61  ;;  %v11827_v61 = vld [vmem:[#allocation10 + $0x848] sm:$0xf]  ;;  %v11933_v55 = vld [vmem:[#allocation10 + $0x930] sm:$0xf0]  ;;  %v12437_v21 = vld [vmem:[#allocation10 + $0xd28] sm:$0xf0] }
 0x2c8   :  { %v11828_v26 = vor.u32 %v15488_v0, %v11827_v61  ;;  %v12501_v61 = vld [vmem:[#allocation10 + $0xda8] sm:$0xf0]  ;;  %v12000_v0 = vor.u32 %v15525_v12, %v11997_v9  ;;  %v11907_v9 = vld [vmem:[#allocation10 + $0x8d8] sm:$0xf] }
 0x2c9   :  { %3874 = vmatpush.bf16.msrb.mxu1 %v11920_v22  ;;  %3887 = vmatpush.bf16.msrb.mxu2 %v11924_v20  ;;  %v11789_v22 = vld [vmem:[#allocation10 + $0x820] sm:$0xf0]  ;;  %v11795_v20 = vld [vmem:[#allocation10 + $0x808] sm:$0xf] }
 0x2ca   :  { %3913 = vmatpush.bf16.msra.mxu0 %v11932_v11  ;;  %v12104_v11 = vor.u32 %v15550_v53, %v12101_v1  ;;  %v11965_v53 = vld [vmem:[#allocation10 + $0x970] sm:$0xf0] }
 0x2cb   :  { %4465 = vmatpush.bf16.msrb.mxu3 %v12200_v31  ;;  %v2416_v31 = vpop.f32.mrf.mxu2  ;;  %v3395_v8 = vpop.f32.mrf.mxu3 }
 0x2cd   :  { %3875 = vmatpush.bf16.msrb.mxu1 %v11888_v60  ;;  %3888 = vmatpush.bf16.msrb.mxu2 %v11892_v57  ;;  %v12029_v60 = vld [vmem:[#allocation10 + $0x9f0] sm:$0xf0]  ;;  %v12035_v57 = vld [vmem:[#allocation10 + $0x9d8] sm:$0xf] }
 0x2ce   :  { %3914 = vmatpush.bf16.msra.mxu0 %v11900_v24  ;;  %v11792_v24 = vor.u32 %v15475_v17, %v11789_v22  ;;  %v12032_v28 = vor.u32 %v15533_v38, %v12029_v60  ;;  %v12036_v4 = vor.u32 %v15538_v23, %v12035_v57  ;;  %v12203_v22 = vld [vmem:[#allocation10 + $0xb40] sm:$0xf]  ;;  %v15514_v38 = vld [vmem:[#allocation10 + $0x934] sm:$0xf0]  ;;  %v15636_v23 = vld [vmem:[#allocation10 + $0xd0c] sm:$0xf] }
 0x2cf   :  { %4466 = vmatpush.bf16.msrb.mxu3 %v12168_v25  ;;  %v11796_v25 = vor.u32 %v15480_v5, %v11795_v20  ;;  %v15583_v20 = vld [vmem:[#allocation10 + $0xb5c] sm:$0xf0]  ;;  %v15644_v5 = vld [vmem:[#allocation10 + $0xd4c] sm:$0xf]  ;;  %v12440_v12 = vor.u32 %v15636_v23, %v12437_v21 }
 0x2d0   :  { %v12204_v2 = vor.u32 %v15583_v20, %v12203_v22  ;;  %v12171_v60 = vld [vmem:[#allocation10 + $0xb00] sm:$0xf]  ;;  %v15620_v22 = vld [vmem:[#allocation10 + $0xc8c] sm:$0xf] }
 0x2d1   :  { %3876 = vmatpush.bf16.msrb.mxu1 %v11856_v48  ;;  %3889 = vmatpush.bf16.msrb.mxu2 %v11860_v30  ;;  %v12536_v48 = vor.u32 %v15660_v13, %v12533_v45  ;;  %v12003_v30 = vld [vmem:[#allocation10 + $0x998] sm:$0xf]  ;;  %v15575_v57 = vld [vmem:[#allocation10 + $0xb1c] sm:$0xf0]  ;;  %v11936_v13 = vor.u32 %v15509_v62, %v11933_v55  ;;  %v11940_v45 = vor.u32 %v15514_v38, %v11939_v14  ;;  %v12373_v20 = vld [vmem:[#allocation10 + $0xca8] sm:$0xf0] }
 0x2d2   :  { %3915 = vmatpush.bf16.msra.mxu0 %v11868_v36  ;;  %v15591_v36 = vld [vmem:[#allocation10 + $0xb9c] sm:$0xf0]  ;;  %v12004_v54 = vor.u32 %v15530_v63, %v12003_v30  ;;  %v15628_v63 = vld [vmem:[#allocation10 + $0xccc] sm:$0xf]  ;;  %v15485_v55 = vld [vmem:[#allocation10 + $0x854] sm:$0xf] }
 0x2d3   :  { %4467 = vmatpush.bf16.msrb.mxu3 %v12136_v52  ;;  %v15652_v52 = vld [vmem:[#allocation10 + $0xd8c] sm:$0xf]  ;;  %v12236_v1 = vor.u32 %v15591_v36, %v12235_v19  ;;  %v15567_v30 = vld [vmem:[#allocation10 + $0xadc] sm:$0xf0]  ;;  %v11843_v14 = vld [vmem:[#allocation10 + $0x858] sm:$0xf] }
 0x2d4   :  { %v12504_v17 = vor.u32 %v15652_v52, %v12501_v61  ;;  %v12405_v19 = vld [vmem:[#allocation10 + $0xce8] sm:$0xf0]  ;;  %v15493_v52 = vld [vmem:[#allocation10 + $0x894] sm:$0xf]  ;;  %v15490_v38 = vld [vmem:[#allocation10 + $0x874] sm:$0xf0] }
 0x2d5   :  { %3877 = vmatpush.bf16.msrb.mxu1 %v11824_v39  ;;  %3890 = vmatpush.bf16.msrb.mxu2 %v11828_v26  ;;  %v11971_v39 = vld [vmem:[#allocation10 + $0x958] sm:$0xf]  ;;  %v11869_v61 = vld [vmem:[#allocation10 + $0x8b0] sm:$0xf0]  ;;  %v15612_v23 = vld [vmem:[#allocation10 + $0xc4c] sm:$0xf] }
 0x2d6   :  { %3916 = vmatpush.bf16.msra.mxu0 %v11836_v7  ;;  %v15522_v26 = vld [vmem:[#allocation10 + $0x974] sm:$0xf0]  ;;  %v12469_v7 = vld [vmem:[#allocation10 + $0xd68] sm:$0xf0] }
 0x2d7   :  { %4468 = vmatpush.bf16.msrb.mxu3 %v12104_v11  ;;  %v11968_v11 = vor.u32 %v15517_v37, %v11965_v53  ;;  %v11972_v31 = vor.u32 %v15522_v26, %v11971_v39  ;;  %v12472_v8 = vor.u32 %v15644_v5, %v12469_v7  ;;  %v11875_v37 = vld [vmem:[#allocation10 + $0x898] sm:$0xf]  ;;  %v15559_v26 = vld [vmem:[#allocation10 + $0xa9c] sm:$0xf0]  ;;  %v12341_v21 = vld [vmem:[#allocation10 + $0xc68] sm:$0xf0] }
 0x2d8   :  { %v15498_v53 = vld [vmem:[#allocation10 + $0x8b4] sm:$0xf0] }
 0x2d9   :  { %3878 = vmatpush.bf16.msrb.mxu1 %v11792_v24  ;;  %3891 = vmatpush.bf16.msrb.mxu2 %v11796_v25  ;;  %v2854_v24 = vpop.f32.mrf.mxu1  ;;  %v11876_v62 = vor.u32 %v15498_v53, %v11875_v37  ;;  %v15662_v37 = vld [vmem:[#allocation10 + $0xddc] sm:$0xf] }
 0x2da   :  { %3917 = vmatpush.bf16.msra.mxu0 %v11804_v10  ;;  %v17551_v25 = vadd.f32 %v2854_v24, %v17516_v35  ;;  %v15501_v10 = vld [vmem:[#allocation10 + $0x8d4] sm:$0xf]  ;;  %v12549_v53 = vld [vmem:[#allocation10 + $0xdf8] sm:$0xf0] }
 0x2db   :  { %4469 = vmatpush.bf16.msrb.mxu3 %v12072_v33  ;;  %v11901_v33 = vld [vmem:[#allocation10 + $0x8f0] sm:$0xf0] }
 0x2dc   :  { %3879 = vmatmul.bf16.vlgmr.msrb.gmra.mxu1 %v17494_v44  ;;  %3892 = vmatmul.bf16.vlgmr.msrb.gmra.mxu2 %v17494_v44  ;;  %v2893_v29 = vpop.f32.mrf.mxu0  ;;  %v11904_v35 = vor.u32 %v15501_v10, %v11901_v33  ;;  %v15482_v10 = vld [vmem:[#allocation10 + $0x834] sm:$0xf0] }
 0x2dd   :  { %3923 = vmatpush.bf16.msra.mxu1 %v12032_v28  ;;  %3936 = vmatpush.bf16.msra.mxu2 %v12036_v4  ;;  %v17554_v28 = vadd.f32 %v2893_v29, %v17519_v56  ;;  %v12172_v4 = vor.u32 %v15575_v57, %v12171_v60  ;;  %v12075_v60 = vld [vmem:[#allocation10 + $0xa40] sm:$0xf]  ;;  %v11844_v29 = vor.u32 %v15490_v38, %v11843_v14  ;;  %v12517_v14 = vld [vmem:[#allocation10 + $0xdb8] sm:$0xf0] }
 0x2de   :  { %4371 = vmatpush.bf16.msrb.mxu0 %v12268_v58  ;;  %4470 = vmatmul.bf16.vlgmr.msrb.gmra.mxu3 %v17529_v46  ;;  %v15506_v58 = vld [vmem:[#allocation10 + $0x8f4] sm:$0xf0]  ;;  %v15551_v57 = vld [vmem:[#allocation10 + $0xa5c] sm:$0xf0] }
 0x2df   :  { %4923 = vmatpush.bf16.msra.mxu3 %v12536_v48  ;;  %3918 = vmatmul.bf16.vlgmr.msra.gmra.mxu0 %v17494_v44  ;;  %v12139_v48 = vld [vmem:[#allocation10 + $0xac0] sm:$0xf]  ;;  %v11908_v36 = vor.u32 %v15506_v58, %v11907_v9  ;;  %v2867_v56 = vpop.f32.mrf.mxu2  ;;  %v12076_v33 = vor.u32 %v15551_v57, %v12075_v60  ;;  %v15579_v57 = vld [vmem:[#allocation10 + $0xb44] sm:$0xf] }
 0x2e0   :  { %v12043_v9 = vld [vmem:[#allocation10 + $0xa00] sm:$0xf] }
 0x2e1   :  { %3924 = vmatpush.bf16.msra.mxu1 %v12000_v0  ;;  %3937 = vmatpush.bf16.msra.mxu2 %v12004_v54  ;;  %v12140_v0 = vor.u32 %v15567_v30, %v12139_v48  ;;  %v12408_v54 = vor.u32 %v15628_v63, %v12405_v19  ;;  %v3445_v39 = vpop.f32.mrf.mxu3  ;;  %v2856_v7 = vpop.f32.mrf.mxu1  ;;  %v15543_v58 = vld [vmem:[#allocation10 + $0xa1c] sm:$0xf0]  ;;  %v15604_v48 = vld [vmem:[#allocation10 + $0xc0c] sm:$0xf]  ;;  %v15595_v19 = vld [vmem:[#allocation10 + $0xbc4] sm:$0xf] }
 0x2e2   :  { %4372 = vmatpush.bf16.msrb.mxu0 %v12236_v1  ;;  %v12107_v1 = vld [vmem:[#allocation10 + $0xa80] sm:$0xf]  ;;  %v17560_v5 = vadd.f32 %v3445_v39, %v17525_v3  ;;  %v15477_v3 = vld [vmem:[#allocation10 + $0x814] sm:$0xf]  ;;  %v12309_v63 = vld [vmem:[#allocation10 + $0xc28] sm:$0xf0] }
 0x2e3   :  { %4924 = vmatpush.bf16.msra.mxu3 %v12504_v17  ;;  %v17557_v17 = vadd.f32 %v2867_v56, %v17522_v42  ;;  %v12376_v42 = vor.u32 %v15620_v22, %v12373_v20  ;;  %v15601_v56 = vld [vmem:[#allocation10 + $0xbec] sm:$0xf0]  ;;  %v12312_v39 = vor.u32 %v15604_v48, %v12309_v63  ;;  %v15587_v20 = vld [vmem:[#allocation10 + $0xb84] sm:$0xf]  ;;  %v12179_v63 = vld [vmem:[#allocation10 + $0xb08] sm:$0xf] }
 0x2e4   :  { %v12237_v7 = vld [vmem:[#allocation10 + $0xba0] sm:$0xf0] }
 0x2e5   :  { %3925 = vmatpush.bf16.msra.mxu1 %v11968_v11  ;;  %3938 = vmatpush.bf16.msra.mxu2 %v11972_v31  ;;  %v2895_v11 = vpop.f32.mrf.mxu0  ;;  %v11872_v31 = vor.u32 %v15493_v52, %v11869_v61  ;;  %v15600_v52 = vld [vmem:[#allocation10 + $0xbe4] sm:$0xf0]  ;;  %v12283_v61 = vld [vmem:[#allocation10 + $0xbd0] sm:$0xf]  ;;  %v12240_v38 = vor.u32 %v15587_v20, %v12237_v7 }
 0x2e6   :  { %4373 = vmatpush.bf16.msrb.mxu0 %v12204_v2  ;;  %v11837_v2 = vld [vmem:[#allocation10 + $0x870] sm:$0xf0]  ;;  %v12284_v11 = vor.u32 %v15601_v56, %v12283_v61  ;;  %v12453_v61 = vld [vmem:[#allocation10 + $0xd38] sm:$0xf0]  ;;  %v15568_v20 = vld [vmem:[#allocation10 + $0xae4] sm:$0xf0] }
 0x2e7   :  { %4925 = vmatpush.bf16.msra.mxu3 %v12472_v8  ;;  %v12108_v8 = vor.u32 %v15559_v26, %v12107_v1  ;;  %v11840_v24 = vor.u32 %v15485_v55, %v11837_v2  ;;  %v12044_v1 = vor.u32 %v15543_v58, %v12043_v9  ;;  %v15592_v55 = vld [vmem:[#allocation10 + $0xba4] sm:$0xf0]  ;;  %v12251_v2 = vld [vmem:[#allocation10 + $0xb90] sm:$0xf]  ;;  %v15571_v9 = vld [vmem:[#allocation10 + $0xb04] sm:$0xf] }
 0x2e8   :  { %v12173_v58 = vld [vmem:[#allocation10 + $0xb20] sm:$0xf0]  ;;  %v12155_v7 = vld [vmem:[#allocation10 + $0xad0] sm:$0xf] }
 0x2e9   :  { %3926 = vmatpush.bf16.msra.mxu1 %v11936_v13  ;;  %3939 = vmatpush.bf16.msra.mxu2 %v11940_v45  ;;  %v11805_v13 = vld [vmem:[#allocation10 + $0x830] sm:$0xf0]  ;;  %v11811_v45 = vld [vmem:[#allocation10 + $0x818] sm:$0xf]  ;;  %v3447_v30 = vpop.f32.mrf.mxu3 }
 0x2ea   :  { %4374 = vmatpush.bf16.msrb.mxu0 %v12172_v4  ;;  %v12344_v4 = vor.u32 %v15612_v23, %v12341_v21  ;;  %v12205_v23 = vld [vmem:[#allocation10 + $0xb60] sm:$0xf0]  ;;  %v17564_v21 = vpack.c.b16 %v17399_v47, %v17399_v47 }
 0x2eb   :  { %4926 = vmatpush.bf16.msra.mxu3 %v12440_v12  ;;  %v2869_v12 = vpop.f32.mrf.mxu2  ;;  %v12208_v47 = vor.u32 %v15579_v57, %v12205_v23  ;;  %v15560_v57 = vld [vmem:[#allocation10 + $0xaa4] sm:$0xf0]  ;;  %v12123_v23 = vld [vmem:[#allocation10 + $0xa90] sm:$0xf] }
 0x2ed   :  { %3927 = vmatpush.bf16.msra.mxu1 %v11904_v35  ;;  %3940 = vmatpush.bf16.msra.mxu2 %v11908_v36  ;;  %v12269_v35 = vld [vmem:[#allocation10 + $0xbe0] sm:$0xf0]  ;;  %v12275_v36 = vld [vmem:[#allocation10 + $0xbc8] sm:$0xf] }
 0x2ee   :  { %4375 = vmatpush.bf16.msrb.mxu0 %v12140_v0  ;;  %v11808_v0 = vor.u32 %v15477_v3, %v11805_v13  ;;  %v12272_v26 = vor.u32 %v15595_v19, %v12269_v35  ;;  %v12276_v22 = vor.u32 %v15600_v52, %v12275_v36  ;;  %v15584_v13 = vld [vmem:[#allocation10 + $0xb64] sm:$0xf0]  ;;  %v2402_v35 = vadd.f32 %v17535_v16, %v17486_v41  ;;  %v15577_v36 = vld [vmem:[#allocation10 + $0xb2c] sm:$0xf0]  ;;  %v15638_v52 = vld [vmem:[#allocation10 + $0xd1c] sm:$0xf] }
 0x2ef   :  { %4927 = vmatpush.bf16.msra.mxu3 %v12408_v54  ;;  %v11812_v54 = vor.u32 %v15482_v10, %v11811_v45  ;;  %v12219_v45 = vld [vmem:[#allocation10 + $0xb50] sm:$0xf]  ;;  %v15576_v19 = vld [vmem:[#allocation10 + $0xb24] sm:$0xf0]  ;;  %v12456_v41 = vor.u32 %v15638_v52, %v12453_v61 }
 0x2f0   :  { %v15585_v10 = vld [vmem:[#allocation10 + $0xb6c] sm:$0xf0]  ;;  %v12147_v16 = vld [vmem:[#allocation10 + $0xac8] sm:$0xf] }
 0x2f1   :  { %3928 = vmatpush.bf16.msra.mxu1 %v11872_v31  ;;  %3941 = vmatpush.bf16.msra.mxu2 %v11876_v62  ;;  %v12552_v31 = vor.u32 %v15662_v37, %v12549_v53  ;;  %v12243_v62 = vld [vmem:[#allocation10 + $0xb88] sm:$0xf]  ;;  %v12220_v48 = vor.u32 %v15585_v10, %v12219_v45  ;;  %v12176_v37 = vor.u32 %v15571_v9, %v12173_v58  ;;  %v12389_v45 = vld [vmem:[#allocation10 + $0xcb8] sm:$0xf0]  ;;  %v15547_v9 = vld [vmem:[#allocation10 + $0xa44] sm:$0xf] }
 0x2f2   :  { %4376 = vmatpush.bf16.msrb.mxu0 %v12108_v8  ;;  %v15593_v8 = vld [vmem:[#allocation10 + $0xbac] sm:$0xf0]  ;;  %v12244_v60 = vor.u32 %v15592_v55, %v12243_v62  ;;  %v12180_v53 = vor.u32 %v15576_v19, %v12179_v63  ;;  %v12421_v62 = vld [vmem:[#allocation10 + $0xcf8] sm:$0xf0]  ;;  %v12077_v58 = vld [vmem:[#allocation10 + $0xa60] sm:$0xf0] }
 0x2f3   :  { %4928 = vmatpush.bf16.msra.mxu3 %v12376_v42  ;;  %v15654_v42 = vld [vmem:[#allocation10 + $0xd9c] sm:$0xf]  ;;  %v12252_v3 = vor.u32 %v15593_v8, %v12251_v2  ;;  %v12148_v2 = vor.u32 %v15568_v20, %v12147_v16  ;;  %v15555_v8 = vld [vmem:[#allocation10 + $0xa84] sm:$0xf]  ;;  %v15552_v63 = vld [vmem:[#allocation10 + $0xa64] sm:$0xf0]  ;;  %v12080_v52 = vor.u32 %v15547_v9, %v12077_v58 }
 0x2f4   :  { %v12091_v19 = vld [vmem:[#allocation10 + $0xa50] sm:$0xf]  ;;  %v15606_v16 = vld [vmem:[#allocation10 + $0xc1c] sm:$0xf]  ;;  %v15655_v9 = vld [vmem:[#allocation10 + $0xd9c] sm:$0xf0] }
 0x2f5   :  { %3929 = vmatpush.bf16.msra.mxu1 %v11840_v24  ;;  %3942 = vmatpush.bf16.msra.mxu2 %v11844_v29  ;;  %v12520_v24 = vor.u32 %v15654_v42, %v12517_v14  ;;  %v12211_v29 = vld [vmem:[#allocation10 + $0xb48] sm:$0xf]  ;;  %v12109_v42 = vld [vmem:[#allocation10 + $0xaa0] sm:$0xf0]  ;;  %v15716_v58 = vld [vmem:[#allocation10 + $0xf8c] sm:$0xf] }
 0x2f6   :  { %4377 = vmatpush.bf16.msrb.mxu0 %v12076_v33  ;;  %v15646_v33 = vld [vmem:[#allocation10 + $0xd5c] sm:$0xf]  ;;  %v12212_v12 = vor.u32 %v15584_v13, %v12211_v29  ;;  %v15561_v29 = vld [vmem:[#allocation10 + $0xaac] sm:$0xf0] }
 0x2f7   :  { %4929 = vmatpush.bf16.msra.mxu3 %v12344_v4  ;;  %v12485_v4 = vld [vmem:[#allocation10 + $0xd78] sm:$0xf0] }
 0x2f8   :  { %v12488_v30 = vor.u32 %v15646_v33, %v12485_v4  ;;  %v15622_v13 = vld [vmem:[#allocation10 + $0xc9c] sm:$0xf] }
 0x2f9   :  { %3930 = vmatpush.bf16.msra.mxu1 %v11808_v0  ;;  %3943 = vmatpush.bf16.msra.mxu2 %v11812_v54  ;;  %v2906_v0 = vpop.f32.mrf.mxu1 }
 0x2fa   :  { %4378 = vmatpush.bf16.msrb.mxu0 %v12044_v1  ;;  %v17572_v54 = vadd.f32 %v2906_v0, %v2402_v35  ;;  %v15563_v1 = vld [vmem:[#allocation10 + $0xac4] sm:$0xf]  ;;  %v15614_v35 = vld [vmem:[#allocation10 + $0xc5c] sm:$0xf] }
 0x2fb   :  { %4930 = vmatpush.bf16.msra.mxu3 %v12312_v39  ;;  %v12141_v39 = vld [vmem:[#allocation10 + $0xae0] sm:$0xf0] }
 0x2fc   :  { %3931 = vmatmul.bf16.vlgmr.msra.gmra.mxu1 %v17494_v44  ;;  %3944 = vmatmul.bf16.vlgmr.msra.gmra.mxu2 %v17494_v44  ;;  %v12187_v44 = vld [vmem:[#allocation10 + $0xb10] sm:$0xf]  ;;  %v3354_v56 = vpop.f32.mrf.mxu0  ;;  %v12144_v55 = vor.u32 %v15563_v1, %v12141_v39  ;;  %v12045_v0 = vld [vmem:[#allocation10 + $0xa20] sm:$0xf0] }
 0x2fd   :  { %4384 = vmatpush.bf16.msrb.mxu1 %v12272_v26  ;;  %4397 = vmatpush.bf16.msrb.mxu2 %v12276_v22  ;;  %v17575_v26 = vadd.f32 %v3354_v56, %v17538_v6  ;;  %v12188_v22 = vor.u32 %v15577_v36, %v12187_v44  ;;  %v15553_v44 = vld [vmem:[#allocation10 + $0xa6c] sm:$0xf0]  ;;  %v12357_v36 = vld [vmem:[#allocation10 + $0xc78] sm:$0xf0]  ;;  %v12051_v56 = vld [vmem:[#allocation10 + $0xa08] sm:$0xf] }
 0x2fe   :  { %4423 = vmatpush.bf16.msra.mxu0 %v12284_v11  ;;  %4931 = vmatmul.bf16.vlgmr.msra.gmra.mxu3 %v17564_v21  ;;  %v15569_v11 = vld [vmem:[#allocation10 + $0xaec] sm:$0xf0]  ;;  %v12360_v1 = vor.u32 %v15614_v35, %v12357_v36  ;;  %v12227_v36 = vld [vmem:[#allocation10 + $0xb58] sm:$0xf] }
 0x2ff   :  { %4975 = vmatpush.bf16.msrb.mxu3 %v12552_v31  ;;  %4379 = vmatmul.bf16.vlgmr.msrb.gmra.mxu0 %v17529_v46  ;;  %v15630_v31 = vld [vmem:[#allocation10 + $0xcdc] sm:$0xf]  ;;  %v12156_v14 = vor.u32 %v15569_v11, %v12155_v7  ;;  %v2919_v6 = vpop.f32.mrf.mxu2  ;;  %v15597_v11 = vld [vmem:[#allocation10 + $0xbd4] sm:$0xf] }
 0x300   :  { %v12325_v7 = vld [vmem:[#allocation10 + $0xc38] sm:$0xf0] }
 0x301   :  { %4385 = vmatpush.bf16.msrb.mxu1 %v12240_v38  ;;  %4398 = vmatpush.bf16.msrb.mxu2 %v12244_v60  ;;  %v12424_v38 = vor.u32 %v15630_v31, %v12421_v62  ;;  %v12115_v60 = vld [vmem:[#allocation10 + $0xa88] sm:$0xf]  ;;  %v2908_v33 = vpop.f32.mrf.mxu1  ;;  %v12285_v31 = vld [vmem:[#allocation10 + $0xbf0] sm:$0xf0]  ;;  %v12291_v62 = vld [vmem:[#allocation10 + $0xbd8] sm:$0xf] }
 0x302   :  { %4424 = vmatpush.bf16.msra.mxu0 %v12252_v3  ;;  %v17578_v3 = vadd.f32 %v2919_v6, %v17541_v51  ;;  %v12392_v51 = vor.u32 %v15622_v13, %v12389_v45  ;;  %v12789_v6 = vld [vmem:[#allocation10 + $0xfe8] sm:$0xf0]  ;;  %v12253_v13 = vld [vmem:[#allocation10 + $0xbb0] sm:$0xf0] }
 0x303   :  { %4976 = vmatpush.bf16.msrb.mxu3 %v12520_v24  ;;  %v3906_v24 = vpop.f32.mrf.mxu3 }
 0x304   :  { %v17581_v10 = vadd.f32 %v3906_v24, %v17544_v59  ;;  %v3356_v4 = vpop.f32.mrf.mxu0  ;;  %v15539_v59 = vld [vmem:[#allocation10 + $0xa04] sm:$0xf] }
 0x305   :  { %4386 = vmatpush.bf16.msrb.mxu1 %v12208_v47  ;;  %4399 = vmatpush.bf16.msrb.mxu2 %v12212_v12  ;;  %v12112_v47 = vor.u32 %v15555_v8, %v12109_v42  ;;  %v12116_v12 = vor.u32 %v15560_v57, %v12115_v60  ;;  %v12048_v8 = vor.u32 %v15539_v59, %v12045_v0  ;;  %v12259_v4 = vld [vmem:[#allocation10 + $0xb98] sm:$0xf]  ;;  %v15708_v0 = vld [vmem:[#allocation10 + $0xf4c] sm:$0xf] }
 0x306   :  { %4425 = vmatpush.bf16.msra.mxu0 %v12220_v48  ;;  %v12124_v48 = vor.u32 %v15561_v29, %v12123_v23  ;;  %v12328_v57 = vor.u32 %v15606_v16, %v12325_v7  ;;  %v12288_v23 = vor.u32 %v15597_v11, %v12285_v31  ;;  %v15589_v29 = vld [vmem:[#allocation10 + $0xb94] sm:$0xf]  ;;  %v15586_v59 = vld [vmem:[#allocation10 + $0xb74] sm:$0xf0]  ;;  %v12427_v7 = vld [vmem:[#allocation10 + $0xd00] sm:$0xf] }
 0x307   :  { %4977 = vmatpush.bf16.msrb.mxu3 %v12488_v30  ;;  %v12083_v30 = vld [vmem:[#allocation10 + $0xa48] sm:$0xf]  ;;  %v2921_v39 = vpop.f32.mrf.mxu2  ;;  %v12195_v16 = vld [vmem:[#allocation10 + $0xb18] sm:$0xf]  ;;  %v15639_v11 = vld [vmem:[#allocation10 + $0xd1c] sm:$0xf0] }
 0x308   :  { %v12084_v61 = vor.u32 %v15552_v63, %v12083_v30  ;;  %v15581_v63 = vld [vmem:[#allocation10 + $0xb54] sm:$0xf]  ;;  %v15700_v31 = vld [vmem:[#allocation10 + $0xf0c] sm:$0xf] }
 0x309   :  { %4387 = vmatpush.bf16.msrb.mxu1 %v12176_v37  ;;  %4400 = vmatpush.bf16.msrb.mxu2 %v12180_v53  ;;  %v15544_v37 = vld [vmem:[#allocation10 + $0xa24] sm:$0xf0]  ;;  %v12092_v53 = vor.u32 %v15553_v44, %v12091_v19  ;;  %v12221_v19 = vld [vmem:[#allocation10 + $0xb70] sm:$0xf0] }
 0x30a   :  { %4426 = vmatpush.bf16.msra.mxu0 %v12188_v22  ;;  %v12059_v22 = vld [vmem:[#allocation10 + $0xa10] sm:$0xf]  ;;  %v12052_v42 = vor.u32 %v15544_v37, %v12051_v56  ;;  %v12725_v56 = vld [vmem:[#allocation10 + $0xf68] sm:$0xf0]  ;;  %v12224_v37 = vor.u32 %v15581_v63, %v12221_v19  ;;  %v12189_v39 = vld [vmem:[#allocation10 + $0xb30] sm:$0xf0] }
 0x30b   :  { %4978 = vmatpush.bf16.msrb.mxu3 %v12456_v41  ;;  %v15545_v41 = vld [vmem:[#allocation10 + $0xa2c] sm:$0xf0]  ;;  %v3908_v20 = vpop.f32.mrf.mxu3  ;;  %v12363_v63 = vld [vmem:[#allocation10 + $0xc80] sm:$0xf] }
 0x30c   :  { %v12060_v60 = vor.u32 %v15545_v41, %v12059_v22  ;;  %v12728_v41 = vor.u32 %v15708_v0, %v12725_v56  ;;  %v15578_v20 = vld [vmem:[#allocation10 + $0xb34] sm:$0xf0] }
 0x30d   :  { %4388 = vmatpush.bf16.msrb.mxu1 %v12144_v55  ;;  %4401 = vmatpush.bf16.msrb.mxu2 %v12148_v2  ;;  %v15602_v55 = vld [vmem:[#allocation10 + $0xbf4] sm:$0xf0]  ;;  %v12523_v2 = vld [vmem:[#allocation10 + $0xdc0] sm:$0xf] }
 0x30e   :  { %4427 = vmatpush.bf16.msra.mxu0 %v12156_v14  ;;  %v15663_v14 = vld [vmem:[#allocation10 + $0xddc] sm:$0xf0]  ;;  %v12292_v24 = vor.u32 %v15602_v55, %v12291_v62  ;;  %v12693_v62 = vld [vmem:[#allocation10 + $0xf28] sm:$0xf0] }
 0x30f   :  { %4979 = vmatpush.bf16.msrb.mxu3 %v12424_v38  ;;  %v15724_v38 = vld [vmem:[#allocation10 + $0xfcc] sm:$0xf]  ;;  %v12524_v45 = vor.u32 %v15663_v14, %v12523_v2  ;;  %v12196_v14 = vor.u32 %v15578_v20, %v12195_v16  ;;  %v12331_v16 = vld [vmem:[#allocation10 + $0xc40] sm:$0xf] }
 0x310   :  { %v12792_v33 = vor.u32 %v15724_v38, %v12789_v6  ;;  %v15565_v38 = vld [vmem:[#allocation10 + $0xad4] sm:$0xf]  ;;  %v15615_v20 = vld [vmem:[#allocation10 + $0xc5c] sm:$0xf0] }
 0x311   :  { %4389 = vmatpush.bf16.msrb.mxu1 %v12112_v47  ;;  %4402 = vmatpush.bf16.msrb.mxu2 %v12116_v12  ;;  %v15594_v47 = vld [vmem:[#allocation10 + $0xbb4] sm:$0xf0]  ;;  %v12491_v12 = vld [vmem:[#allocation10 + $0xd80] sm:$0xf]  ;;  %v12157_v6 = vld [vmem:[#allocation10 + $0xaf0] sm:$0xf0] }
 0x312   :  { %4428 = vmatpush.bf16.msra.mxu0 %v12124_v48  ;;  %v12757_v48 = vld [vmem:[#allocation10 + $0xfa8] sm:$0xf0]  ;;  %v12260_v30 = vor.u32 %v15594_v47, %v12259_v4  ;;  %v12492_v44 = vor.u32 %v15655_v9, %v12491_v12  ;;  %v15557_v12 = vld [vmem:[#allocation10 + $0xa94] sm:$0xf] }
 0x313   :  { %4980 = vmatpush.bf16.msrb.mxu3 %v12392_v51  ;;  %v12256_v51 = vor.u32 %v15589_v29, %v12253_v13  ;;  %v12760_v35 = vor.u32 %v15716_v58, %v12757_v48  ;;  %v15570_v29 = vld [vmem:[#allocation10 + $0xaf4] sm:$0xf0]  ;;  %v12395_v13 = vld [vmem:[#allocation10 + $0xcc0] sm:$0xf]  ;;  %v12661_v4 = vld [vmem:[#allocation10 + $0xee8] sm:$0xf0] }
 0x314   :  { %v12125_v9 = vld [vmem:[#allocation10 + $0xab0] sm:$0xf0] }
 0x315   :  { %4390 = vmatpush.bf16.msrb.mxu1 %v12080_v52  ;;  %4403 = vmatpush.bf16.msrb.mxu2 %v12084_v61  ;;  %v12459_v52 = vld [vmem:[#allocation10 + $0xd40] sm:$0xf]  ;;  %v12128_v56 = vor.u32 %v15557_v12, %v12125_v9 }
 0x316   :  { %4429 = vmatpush.bf16.msra.mxu0 %v12092_v53  ;;  %v15647_v61 = vld [vmem:[#allocation10 + $0xd5c] sm:$0xf0]  ;;  %v12228_v53 = vor.u32 %v15586_v59, %v12227_v36  ;;  %v15684_v36 = vld [vmem:[#allocation10 + $0xe8c] sm:$0xf] }
 0x317   :  { %4981 = vmatpush.bf16.msrb.mxu3 %v12360_v1  ;;  %v15573_v1 = vld [vmem:[#allocation10 + $0xb14] sm:$0xf]  ;;  %v12460_v22 = vor.u32 %v15647_v61, %v12459_v52  ;;  %v12629_v59 = vld [vmem:[#allocation10 + $0xea8] sm:$0xf0] }
 0x319   :  { %4391 = vmatpush.bf16.msrb.mxu1 %v12048_v8  ;;  %4404 = vmatpush.bf16.msrb.mxu2 %v12052_v42  ;;  %v3367_v55 = vpop.f32.mrf.mxu1  ;;  %v12192_v42 = vor.u32 %v15573_v1, %v12189_v39  ;;  %v12093_v1 = vld [vmem:[#allocation10 + $0xa70] sm:$0xf0] }
 0x31a   :  { %4430 = vmatpush.bf16.msra.mxu0 %v12060_v60  ;;  %v17588_v2 = vadd.f32 %v3367_v55, %v17551_v25  ;;  %v12160_v25 = vor.u32 %v15565_v38, %v12157_v6  ;;  %v12061_v55 = vld [vmem:[#allocation10 + $0xa30] sm:$0xf0] }
 0x31b   :  { %4982 = vmatpush.bf16.msrb.mxu3 %v12328_v57  ;;  %v12428_v57 = vor.u32 %v15639_v11, %v12427_v7  ;;  %v15676_v7 = vld [vmem:[#allocation10 + $0xe4c] sm:$0xf] }
 0x31c   :  { %4392 = vmatmul.bf16.vlgmr.msrb.gmra.mxu1 %v17529_v46  ;;  %4405 = vmatmul.bf16.vlgmr.msrb.gmra.mxu2 %v17529_v46  ;;  %v3406_v8 = vpop.f32.mrf.mxu0  ;;  %v12597_v11 = vld [vmem:[#allocation10 + $0xe68] sm:$0xf0] }
 0x31d   :  { %4436 = vmatpush.bf16.msra.mxu1 %v12288_v23  ;;  %4449 = vmatpush.bf16.msra.mxu2 %v12292_v24  ;;  %v17591_v60 = vadd.f32 %v3406_v8, %v17554_v28  ;;  %v12696_v23 = vor.u32 %v15700_v31, %v12693_v62  ;;  %v12163_v24 = vld [vmem:[#allocation10 + $0xad8] sm:$0xf]  ;;  %v12600_v38 = vor.u32 %v15676_v7, %v12597_v11 }
 0x31e   :  { %4884 = vmatpush.bf16.msrb.mxu0 %v12524_v45  ;;  %4983 = vmatmul.bf16.vlgmr.msrb.gmra.mxu3 %v17564_v21  ;;  %v15631_v45 = vld [vmem:[#allocation10 + $0xcdc] sm:$0xf0]  ;;  %v12164_v47 = vor.u32 %v15570_v29, %v12163_v24  ;;  %v12067_v8 = vld [vmem:[#allocation10 + $0xa18] sm:$0xf]  ;;  %v15668_v24 = vld [vmem:[#allocation10 + $0xe0c] sm:$0xf] }
 0x31f   :  { %5436 = vmatpush.bf16.msra.mxu3 %v12792_v33  ;;  %4431 = vmatmul.bf16.vlgmr.msra.gmra.mxu0 %v17529_v46  ;;  %v15692_v33 = vld [vmem:[#allocation10 + $0xecc] sm:$0xf]  ;;  %v12396_v58 = vor.u32 %v15631_v45, %v12395_v13  ;;  %v3380_v28 = vpop.f32.mrf.mxu2  ;;  %v15659_v45 = vld [vmem:[#allocation10 + $0xdc4] sm:$0xf] }
 0x320   :  { %v12664_v48 = vor.u32 %v15692_v33, %v12661_v4  ;;  %v17594_v19 = vadd.f32 %v3380_v28, %v17557_v17  ;;  %v12632_v17 = vor.u32 %v15684_v36, %v12629_v59  ;;  %v12565_v13 = vld [vmem:[#allocation10 + $0xe28] sm:$0xf0]  ;;  %v12525_v33 = vld [vmem:[#allocation10 + $0xde0] sm:$0xf0]  ;;  %v12531_v4 = vld [vmem:[#allocation10 + $0xdc8] sm:$0xf] }
 0x321   :  { %4437 = vmatpush.bf16.msra.mxu1 %v12256_v51  ;;  %4450 = vmatpush.bf16.msra.mxu2 %v12260_v30  ;;  %v12131_v51 = vld [vmem:[#allocation10 + $0xa98] sm:$0xf]  ;;  %v3369_v61 = vpop.f32.mrf.mxu1  ;;  %v12805_v28 = vld [vmem:[#allocation10 + $0xff8] sm:$0xf0]  ;;  %v12493_v36 = vld [vmem:[#allocation10 + $0xda0] sm:$0xf0] }
 0x322   :  { %4885 = vmatpush.bf16.msrb.mxu0 %v12492_v44  ;;  %v15562_v30 = vld [vmem:[#allocation10 + $0xab4] sm:$0xf0]  ;;  %v3958_v44 = vpop.f32.mrf.mxu3 }
 0x323   :  { %5437 = vmatpush.bf16.msra.mxu3 %v12760_v35  ;;  %v15623_v35 = vld [vmem:[#allocation10 + $0xc9c] sm:$0xf0]  ;;  %v17597_v52 = vadd.f32 %v3958_v44, %v17560_v5  ;;  %v15541_v5 = vld [vmem:[#allocation10 + $0xa14] sm:$0xf] }
 0x324   :  { %v3408_v0 = vpop.f32.mrf.mxu0  ;;  %v12364_v39 = vor.u32 %v15623_v35, %v12363_v63  ;;  %v12064_v12 = vor.u32 %v15541_v5, %v12061_v55  ;;  %v12528_v63 = vor.u32 %v15659_v45, %v12525_v33  ;;  %v15651_v35 = vld [vmem:[#allocation10 + $0xd84] sm:$0xf]  ;;  %v12467_v5 = vld [vmem:[#allocation10 + $0xd48] sm:$0xf]  ;;  %v15649_v55 = vld [vmem:[#allocation10 + $0xd6c] sm:$0xf0] }
 0x325   :  { %4438 = vmatpush.bf16.msra.mxu1 %v12224_v37  ;;  %4451 = vmatpush.bf16.msra.mxu2 %v12228_v53  ;;  %v12132_v37 = vor.u32 %v15562_v30, %v12131_v51  ;;  %v15549_v53 = vld [vmem:[#allocation10 + $0xa54] sm:$0xf]  ;;  %v12568_v30 = vor.u32 %v15668_v24, %v12565_v13  ;;  %v12499_v0 = vld [vmem:[#allocation10 + $0xd88] sm:$0xf]  ;;  %v15641_v13 = vld [vmem:[#allocation10 + $0xd2c] sm:$0xf0] }
 0x326   :  { %4886 = vmatpush.bf16.msrb.mxu0 %v12460_v22  ;;  %v12099_v22 = vld [vmem:[#allocation10 + $0xa58] sm:$0xf]  ;;  %v12096_v31 = vor.u32 %v15549_v53, %v12093_v1  ;;  %v15657_v53 = vld [vmem:[#allocation10 + $0xdac] sm:$0xf0]  ;;  %v15718_v1 = vld [vmem:[#allocation10 + $0xf9c] sm:$0xf] }
 0x327   :  { %5438 = vmatpush.bf16.msra.mxu3 %v12728_v41  ;;  %v15554_v41 = vld [vmem:[#allocation10 + $0xa74] sm:$0xf0]  ;;  %v3382_v6 = vpop.f32.mrf.mxu2  ;;  %v12435_v24 = vld [vmem:[#allocation10 + $0xd08] sm:$0xf]  ;;  %v15702_v45 = vld [vmem:[#allocation10 + $0xf1c] sm:$0xf] }
 0x328   :  { %v12100_v62 = vor.u32 %v15554_v41, %v12099_v22  ;;  %v15643_v41 = vld [vmem:[#allocation10 + $0xd44] sm:$0xf]  ;;  %v12709_v33 = vld [vmem:[#allocation10 + $0xf38] sm:$0xf0] }
 0x329   :  { %4439 = vmatpush.bf16.msra.mxu1 %v12192_v42  ;;  %4452 = vmatpush.bf16.msra.mxu2 %v12196_v14  ;;  %v15546_v42 = vld [vmem:[#allocation10 + $0xa34] sm:$0xf0]  ;;  %v12332_v14 = vor.u32 %v15615_v20, %v12331_v16  ;;  %v12461_v16 = vld [vmem:[#allocation10 + $0xd60] sm:$0xf0]  ;;  %v17601_v20 = vpack.c.b16 %v17404_v15, %v17404_v15 }
 0x32a   :  { %4887 = vmatpush.bf16.msrb.mxu0 %v12428_v57  ;;  %v12299_v57 = vld [vmem:[#allocation10 + $0xc00] sm:$0xf]  ;;  %v3960_v29 = vpop.f32.mrf.mxu3  ;;  %v12068_v9 = vor.u32 %v15546_v42, %v12067_v8  ;;  %v15710_v8 = vld [vmem:[#allocation10 + $0xf5c] sm:$0xf]  ;;  %v12464_v15 = vor.u32 %v15643_v41, %v12461_v16  ;;  %v12429_v6 = vld [vmem:[#allocation10 + $0xd20] sm:$0xf0] }
 0x32b   :  { %5439 = vmatpush.bf16.msra.mxu3 %v12696_v23  ;;  %v15607_v23 = vld [vmem:[#allocation10 + $0xc1c] sm:$0xf0]  ;;  %v12741_v42 = vld [vmem:[#allocation10 + $0xf78] sm:$0xf0]  ;;  %v15640_v29 = vld [vmem:[#allocation10 + $0xd24] sm:$0xf0] }
 0x32c   :  { %v12300_v51 = vor.u32 %v15607_v23, %v12299_v57  ;;  %v12744_v23 = vor.u32 %v15710_v8, %v12741_v42 }
 0x32d   :  { %4440 = vmatpush.bf16.msra.mxu1 %v12160_v25  ;;  %4453 = vmatpush.bf16.msra.mxu2 %v12164_v47  ;;  %v15664_v25 = vld [vmem:[#allocation10 + $0xde4] sm:$0xf0]  ;;  %v12539_v47 = vld [vmem:[#allocation10 + $0xdd0] sm:$0xf] }
 0x32e   :  { %4888 = vmatpush.bf16.msrb.mxu0 %v12396_v58  ;;  %v15665_v58 = vld [vmem:[#allocation10 + $0xdec] sm:$0xf0]  ;;  %v12532_v44 = vor.u32 %v15664_v25, %v12531_v4 }
 0x32f   :  { %5440 = vmatpush.bf16.msra.mxu3 %v12664_v48  ;;  %v15726_v48 = vld [vmem:[#allocation10 + $0xfdc] sm:$0xf]  ;;  %v12540_v59 = vor.u32 %v15665_v58, %v12539_v47  ;;  %v15627_v58 = vld [vmem:[#allocation10 + $0xcc4] sm:$0xf] }
 0x330   :  { %v12808_v61 = vor.u32 %v15726_v48, %v12805_v28  ;;  %v12397_v48 = vld [vmem:[#allocation10 + $0xce0] sm:$0xf0] }
 0x331   :  { %4441 = vmatpush.bf16.msra.mxu1 %v12128_v56  ;;  %4454 = vmatpush.bf16.msra.mxu2 %v12132_v37  ;;  %v15656_v56 = vld [vmem:[#allocation10 + $0xda4] sm:$0xf0]  ;;  %v12507_v37 = vld [vmem:[#allocation10 + $0xd90] sm:$0xf] }
 0x332   :  { %4889 = vmatpush.bf16.msrb.mxu0 %v12364_v39  ;;  %v12773_v39 = vld [vmem:[#allocation10 + $0xfb8] sm:$0xf0]  ;;  %v12500_v22 = vor.u32 %v15656_v56, %v12499_v0  ;;  %v12508_v7 = vor.u32 %v15657_v53, %v12507_v37  ;;  %v15619_v56 = vld [vmem:[#allocation10 + $0xc84] sm:$0xf] }
 0x333   :  { %5441 = vmatpush.bf16.msra.mxu3 %v12632_v17  ;;  %v12496_v17 = vor.u32 %v15651_v35, %v12493_v36  ;;  %v12776_v11 = vor.u32 %v15718_v1, %v12773_v39  ;;  %v12411_v35 = vld [vmem:[#allocation10 + $0xcd0] sm:$0xf]  ;;  %v12365_v37 = vld [vmem:[#allocation10 + $0xca0] sm:$0xf0]  ;;  %v12371_v39 = vld [vmem:[#allocation10 + $0xc88] sm:$0xf] }
 0x334   :  { %v15633_v36 = vld [vmem:[#allocation10 + $0xcec] sm:$0xf0]  ;;  %v12368_v8 = vor.u32 %v15619_v56, %v12365_v37  ;;  %v15727_v37 = vld [vmem:[#allocation10 + $0xfdc] sm:$0xf0] }
 0x335   :  { %4442 = vmatpush.bf16.msra.mxu1 %v12096_v31  ;;  %4455 = vmatpush.bf16.msra.mxu2 %v12100_v62  ;;  %v15648_v31 = vld [vmem:[#allocation10 + $0xd64] sm:$0xf0]  ;;  %v12475_v62 = vld [vmem:[#allocation10 + $0xd50] sm:$0xf]  ;;  %v12412_v53 = vor.u32 %v15633_v36, %v12411_v35  ;;  %v15661_v35 = vld [vmem:[#allocation10 + $0xdd4] sm:$0xf] }
 0x336   :  { %4890 = vmatpush.bf16.msrb.mxu0 %v12332_v14  ;;  %v12468_v14 = vor.u32 %v15648_v31, %v12467_v5  ;;  %v12476_v57 = vor.u32 %v15649_v55, %v12475_v62  ;;  %v12645_v5 = vld [vmem:[#allocation10 + $0xeb8] sm:$0xf0]  ;;  %v12541_v36 = vld [vmem:[#allocation10 + $0xdf0] sm:$0xf0] }
 0x337   :  { %5442 = vmatpush.bf16.msra.mxu3 %v12600_v38  ;;  %v15635_v38 = vld [vmem:[#allocation10 + $0xd04] sm:$0xf] }
 0x339   :  { %4443 = vmatpush.bf16.msra.mxu1 %v12064_v12  ;;  %4456 = vmatpush.bf16.msra.mxu2 %v12068_v9  ;;  %v3419_v4 = vpop.f32.mrf.mxu1  ;;  %v12432_v12 = vor.u32 %v15635_v38, %v12429_v6  ;;  %v12436_v9 = vor.u32 %v15640_v29, %v12435_v24  ;;  %v12339_v6 = vld [vmem:[#allocation10 + $0xc48] sm:$0xf]  ;;  %v15617_v24 = vld [vmem:[#allocation10 + $0xc6c] sm:$0xf0]  ;;  %v15678_v29 = vld [vmem:[#allocation10 + $0xe5c] sm:$0xf] }
 0x33a   :  { %4891 = vmatpush.bf16.msrb.mxu0 %v12300_v51  ;;  %v17608_v25 = vadd.f32 %v3419_v4, %v17572_v54  ;;  %v12400_v54 = vor.u32 %v15627_v58, %v12397_v48  ;;  %v12307_v4 = vld [vmem:[#allocation10 + $0xc08] sm:$0xf]  ;;  %v12315_v48 = vld [vmem:[#allocation10 + $0xc10] sm:$0xf] }
 0x33b   :  { %5443 = vmatpush.bf16.msra.mxu3 %v12568_v30  ;;  %v12712_v30 = vor.u32 %v15702_v45, %v12709_v33  ;;  %v12301_v33 = vld [vmem:[#allocation10 + $0xc20] sm:$0xf0] }
 0x33c   :  { %4444 = vmatmul.bf16.vlgmr.msra.gmra.mxu1 %v17529_v46  ;;  %4457 = vmatmul.bf16.vlgmr.msra.gmra.mxu2 %v17529_v46  ;;  %v12443_v46 = vld [vmem:[#allocation10 + $0xd10] sm:$0xf]  ;;  %v3867_v47 = vpop.f32.mrf.mxu0 }
 0x33d   :  { %4897 = vmatpush.bf16.msrb.mxu1 %v12528_v63  ;;  %4910 = vmatpush.bf16.msrb.mxu2 %v12532_v44  ;;  %v17611_v28 = vadd.f32 %v3867_v47, %v17575_v26  ;;  %v12444_v51 = vor.u32 %v15641_v13, %v12443_v46  ;;  %v12403_v63 = vld [vmem:[#allocation10 + $0xcc8] sm:$0xf]  ;;  %v12613_v46 = vld [vmem:[#allocation10 + $0xe78] sm:$0xf0] }
 0x33e   :  { %4936 = vmatpush.bf16.msra.mxu0 %v12540_v59  ;;  %5444 = vmatmul.bf16.vlgmr.msra.gmra.mxu3 %v17601_v20  ;;  %v15632_v44 = vld [vmem:[#allocation10 + $0xce4] sm:$0xf0]  ;;  %v15694_v59 = vld [vmem:[#allocation10 + $0xedc] sm:$0xf] }
 0x33f   :  { %5488 = vmatpush.bf16.msrb.mxu3 %v12808_v61  ;;  %4892 = vmatmul.bf16.vlgmr.msrb.gmra.mxu0 %v17564_v21  ;;  %v12677_v61 = vld [vmem:[#allocation10 + $0xef8] sm:$0xf0]  ;;  %v12404_v0 = vor.u32 %v15632_v44, %v12403_v63  ;;  %v3432_v26 = vpop.f32.mrf.mxu2  ;;  %v15608_v47 = vld [vmem:[#allocation10 + $0xc24] sm:$0xf0] }
 0x340   :  { %v12680_v1 = vor.u32 %v15694_v59, %v12677_v61  ;;  %v17614_v41 = vadd.f32 %v3432_v26, %v17578_v3  ;;  %v12581_v44 = vld [vmem:[#allocation10 + $0xe38] sm:$0xf0]  ;;  %v12547_v59 = vld [vmem:[#allocation10 + $0xdd8] sm:$0xf]  ;;  %v12308_v56 = vor.u32 %v15608_v47, %v12307_v4 }
 0x341   :  { %4898 = vmatpush.bf16.msrb.mxu1 %v12496_v17  ;;  %4911 = vmatpush.bf16.msrb.mxu2 %v12500_v22  ;;  %v15624_v17 = vld [vmem:[#allocation10 + $0xca4] sm:$0xf0]  ;;  %v12379_v22 = vld [vmem:[#allocation10 + $0xc90] sm:$0xf]  ;;  %v4419_v16 = vpop.f32.mrf.mxu3  ;;  %v3421_v62 = vpop.f32.mrf.mxu1  ;;  %v15666_v61 = vld [vmem:[#allocation10 + $0xdf4] sm:$0xf0] }
 0x342   :  { %4937 = vmatpush.bf16.msra.mxu0 %v12508_v7  ;;  %v15625_v7 = vld [vmem:[#allocation10 + $0xcac] sm:$0xf0]  ;;  %v17617_v31 = vadd.f32 %v4419_v16, %v17581_v10  ;;  %v12372_v42 = vor.u32 %v15624_v17, %v12371_v39  ;;  %v15603_v10 = vld [vmem:[#allocation10 + $0xc04] sm:$0xf]  ;;  %v12544_v17 = vor.u32 %v15661_v35, %v12541_v36  ;;  %v15653_v16 = vld [vmem:[#allocation10 + $0xd94] sm:$0xf] }
 0x343   :  { %5489 = vmatpush.bf16.msrb.mxu3 %v12776_v11  ;;  %v15686_v11 = vld [vmem:[#allocation10 + $0xe9c] sm:$0xf]  ;;  %v12380_v38 = vor.u32 %v15625_v7, %v12379_v22  ;;  %v12548_v22 = vor.u32 %v15666_v61, %v12547_v59  ;;  %v12509_v7 = vld [vmem:[#allocation10 + $0xdb0] sm:$0xf0]  ;;  %v12515_v62 = vld [vmem:[#allocation10 + $0xd98] sm:$0xf] }
 0x344   :  { %v3869_v55 = vpop.f32.mrf.mxu0  ;;  %v12648_v3 = vor.u32 %v15686_v11, %v12645_v5  ;;  %v15764_v35 = vld [vmem:[#allocation10 + $0x110c] sm:$0xf] }
 0x345   :  { %4899 = vmatpush.bf16.msrb.mxu1 %v12464_v15  ;;  %4912 = vmatpush.bf16.msrb.mxu2 %v12468_v14  ;;  %v15611_v15 = vld [vmem:[#allocation10 + $0xc44] sm:$0xf]  ;;  %v15658_v55 = vld [vmem:[#allocation10 + $0xdb4] sm:$0xf0]  ;;  %v12957_v36 = vld [vmem:[#allocation10 + $0x1128] sm:$0xf0] }
 0x346   :  { %4938 = vmatpush.bf16.msra.mxu0 %v12476_v57  ;;  %v12333_v14 = vld [vmem:[#allocation10 + $0xc60] sm:$0xf0]  ;;  %v15616_v57 = vld [vmem:[#allocation10 + $0xc64] sm:$0xf0] }
 0x347   :  { %5490 = vmatpush.bf16.msrb.mxu3 %v12744_v23  ;;  %v12347_v23 = vld [vmem:[#allocation10 + $0xc50] sm:$0xf]  ;;  %v12336_v13 = vor.u32 %v15611_v15, %v12333_v14  ;;  %v12340_v45 = vor.u32 %v15616_v57, %v12339_v6  ;;  %v3434_v58 = vpop.f32.mrf.mxu2  ;;  %v15780_v15 = vld [vmem:[#allocation10 + $0x118c] sm:$0xf]  ;;  %v15645_v6 = vld [vmem:[#allocation10 + $0xd54] sm:$0xf] }
 0x348   :  { %v13021_v14 = vld [vmem:[#allocation10 + $0x11a8] sm:$0xf0]  ;;  %v12477_v57 = vld [vmem:[#allocation10 + $0xd70] sm:$0xf0] }
 0x349   :  { %4900 = vmatpush.bf16.msrb.mxu1 %v12432_v12  ;;  %4913 = vmatpush.bf16.msrb.mxu2 %v12436_v9  ;;  %v12348_v12 = vor.u32 %v15617_v24, %v12347_v23  ;;  %v12616_v9 = vor.u32 %v15678_v29, %v12613_v46  ;;  %v4421_v63 = vpop.f32.mrf.mxu3  ;;  %v13024_v24 = vor.u32 %v15780_v15, %v13021_v14  ;;  %v12483_v29 = vld [vmem:[#allocation10 + $0xd58] sm:$0xf] }
 0x34a   :  { %4939 = vmatpush.bf16.msra.mxu0 %v12444_v51  ;;  %v15609_v51 = vld [vmem:[#allocation10 + $0xc2c] sm:$0xf0]  ;;  %v15650_v46 = vld [vmem:[#allocation10 + $0xd74] sm:$0xf0]  ;;  %v12480_v4 = vor.u32 %v15645_v6, %v12477_v57  ;;  %v12683_v63 = vld [vmem:[#allocation10 + $0xf00] sm:$0xf] }
 0x34b   :  { %5491 = vmatpush.bf16.msrb.mxu3 %v12712_v30  ;;  %v15670_v30 = vld [vmem:[#allocation10 + $0xe1c] sm:$0xf]  ;;  %v12316_v26 = vor.u32 %v15609_v51, %v12315_v48  ;;  %v12484_v47 = vor.u32 %v15650_v46, %v12483_v29  ;;  %v12451_v51 = vld [vmem:[#allocation10 + $0xd18] sm:$0xf]  ;;  %v12893_v29 = vld [vmem:[#allocation10 + $0x10a8] sm:$0xf0] }
 0x34c   :  { %v12584_v39 = vor.u32 %v15670_v30, %v12581_v44  ;;  %v15642_v30 = vld [vmem:[#allocation10 + $0xd34] sm:$0xf0]  ;;  %v15703_v44 = vld [vmem:[#allocation10 + $0xf1c] sm:$0xf0] }
 0x34d   :  { %4901 = vmatpush.bf16.msrb.mxu1 %v12400_v54  ;;  %4914 = vmatpush.bf16.msrb.mxu2 %v12404_v0  ;;  %v12779_v54 = vld [vmem:[#allocation10 + $0xfc0] sm:$0xf]  ;;  %v12304_v0 = vor.u32 %v15603_v10, %v12301_v33  ;;  %v12989_v33 = vld [vmem:[#allocation10 + $0x1168] sm:$0xf0]  ;;  %v12387_v14 = vld [vmem:[#allocation10 + $0xc98] sm:$0xf] }
 0x34e   :  { %4940 = vmatpush.bf16.msra.mxu0 %v12412_v53  ;;  %v15788_v53 = vld [vmem:[#allocation10 + $0x11cc] sm:$0xf]  ;;  %v12780_v11 = vor.u32 %v15727_v37, %v12779_v54  ;;  %v12715_v10 = vld [vmem:[#allocation10 + $0xf40] sm:$0xf]  ;;  %v15629_v37 = vld [vmem:[#allocation10 + $0xcd4] sm:$0xf] }
 0x34f   :  { %5492 = vmatpush.bf16.msrb.mxu3 %v12680_v1  ;;  %v13053_v1 = vld [vmem:[#allocation10 + $0x11e8] sm:$0xf0] }
 0x350   :  { %v13056_v5 = vor.u32 %v15788_v53, %v13053_v1  ;;  %v12413_v53 = vld [vmem:[#allocation10 + $0xcf0] sm:$0xf0] }
 0x351   :  { %4902 = vmatpush.bf16.msrb.mxu1 %v12368_v8  ;;  %4915 = vmatpush.bf16.msrb.mxu2 %v12372_v42  ;;  %v12747_v8 = vld [vmem:[#allocation10 + $0xf80] sm:$0xf] }
 0x352   :  { %4941 = vmatpush.bf16.msra.mxu0 %v12380_v38  ;;  %v15719_v42 = vld [vmem:[#allocation10 + $0xf9c] sm:$0xf0]  ;;  %v12512_v38 = vor.u32 %v15653_v16, %v12509_v7 }
 0x353   :  { %5493 = vmatpush.bf16.msrb.mxu3 %v12648_v3  ;;  %v12516_v3 = vor.u32 %v15658_v55, %v12515_v62  ;;  %v12748_v23 = vor.u32 %v15719_v42, %v12747_v8  ;;  %v12651_v16 = vld [vmem:[#allocation10 + $0xec0] sm:$0xf]  ;;  %v15621_v55 = vld [vmem:[#allocation10 + $0xc94] sm:$0xf] }
 0x354   :  { %v15695_v7 = vld [vmem:[#allocation10 + $0xedc] sm:$0xf0]  ;;  %v12381_v8 = vld [vmem:[#allocation10 + $0xcb0] sm:$0xf0] }
 0x355   :  { %4903 = vmatpush.bf16.msrb.mxu1 %v12336_v13  ;;  %4916 = vmatpush.bf16.msrb.mxu2 %v12340_v45  ;;  %v15711_v13 = vld [vmem:[#allocation10 + $0xf5c] sm:$0xf0]  ;;  %v15772_v45 = vld [vmem:[#allocation10 + $0x114c] sm:$0xf]  ;;  %v12652_v42 = vor.u32 %v15695_v7, %v12651_v16  ;;  %v15723_v16 = vld [vmem:[#allocation10 + $0xfc4] sm:$0xf] }
 0x356   :  { %4942 = vmatpush.bf16.msra.mxu0 %v12348_v12  ;;  %v15637_v12 = vld [vmem:[#allocation10 + $0xd14] sm:$0xf]  ;;  %v12716_v58 = vor.u32 %v15711_v13, %v12715_v10  ;;  %v12992_v48 = vor.u32 %v15772_v45, %v12989_v33  ;;  %v12384_v45 = vor.u32 %v15621_v55, %v12381_v8  ;;  %v12781_v7 = vld [vmem:[#allocation10 + $0xfe0] sm:$0xf0]  ;;  %v15729_v8 = vld [vmem:[#allocation10 + $0xfec] sm:$0xf0] }
 0x357   :  { %5494 = vmatpush.bf16.msrb.mxu3 %v12616_v9  ;;  %v12445_v9 = vld [vmem:[#allocation10 + $0xd30] sm:$0xf0] }
 0x359   :  { %4904 = vmatpush.bf16.msrb.mxu1 %v12304_v0  ;;  %4917 = vmatpush.bf16.msrb.mxu2 %v12308_v56  ;;  %v3880_v59 = vpop.f32.mrf.mxu1  ;;  %v12448_v0 = vor.u32 %v15637_v12, %v12445_v9  ;;  %v12452_v56 = vor.u32 %v15642_v30, %v12451_v51  ;;  %v12355_v9 = vld [vmem:[#allocation10 + $0xc58] sm:$0xf]  ;;  %v15679_v51 = vld [vmem:[#allocation10 + $0xe5c] sm:$0xf0]  ;;  %v15740_v30 = vld [vmem:[#allocation10 + $0x104c] sm:$0xf] }
 0x35a   :  { %4943 = vmatpush.bf16.msra.mxu0 %v12316_v26  ;;  %v17624_v61 = vadd.f32 %v3880_v59, %v17588_v2  ;;  %v12684_v26 = vor.u32 %v15703_v44, %v12683_v63  ;;  %v12416_v2 = vor.u32 %v15629_v37, %v12413_v53  ;;  %v12861_v63 = vld [vmem:[#allocation10 + $0x1068] sm:$0xf0]  ;;  %v12323_v59 = vld [vmem:[#allocation10 + $0xc18] sm:$0xf]  ;;  %v12555_v53 = vld [vmem:[#allocation10 + $0xe00] sm:$0xf] }
 0x35b   :  { %5495 = vmatpush.bf16.msrb.mxu3 %v12584_v39  ;;  %v12960_v39 = vor.u32 %v15764_v35, %v12957_v36  ;;  %v12317_v36 = vld [vmem:[#allocation10 + $0xc30] sm:$0xf0] }
 0x35c   :  { %4905 = vmatmul.bf16.vlgmr.msrb.gmra.mxu1 %v17564_v21  ;;  %4918 = vmatmul.bf16.vlgmr.msrb.gmra.mxu2 %v17564_v21  ;;  %v3919_v54 = vpop.f32.mrf.mxu0 }
 0x35d   :  { %4949 = vmatpush.bf16.msra.mxu1 %v12544_v17  ;;  %4962 = vmatpush.bf16.msra.mxu2 %v12548_v22  ;;  %v17627_v1 = vadd.f32 %v3919_v54, %v17591_v60  ;;  %v12419_v17 = vld [vmem:[#allocation10 + $0xcd8] sm:$0xf] }
 0x35e   :  { %5397 = vmatpush.bf16.msrb.mxu0 %v12780_v11  ;;  %5496 = vmatmul.bf16.vlgmr.msrb.gmra.mxu3 %v17601_v20  ;;  %v15634_v22 = vld [vmem:[#allocation10 + $0xcf4] sm:$0xf0]  ;;  %v15756_v11 = vld [vmem:[#allocation10 + $0x10cc] sm:$0xf] }
 0x35f   :  { %5981 = vmatpush.bf16.msra.mxu3 %v13056_v5  ;;  %4944 = vmatmul.bf16.vlgmr.msra.gmra.mxu0 %v17564_v21  ;;  %v12925_v5 = vld [vmem:[#allocation10 + $0x10e8] sm:$0xf0]  ;;  %v12420_v62 = vor.u32 %v15634_v22, %v12419_v17  ;;  %v3893_v60 = vpop.f32.mrf.mxu2  ;;  %v15610_v54 = vld [vmem:[#allocation10 + $0xc34] sm:$0xf0] }
 0x360   :  { %v12928_v15 = vor.u32 %v15756_v11, %v12925_v5  ;;  %v17630_v6 = vadd.f32 %v3893_v60, %v17594_v19  ;;  %v12829_v22 = vld [vmem:[#allocation10 + $0x1028] sm:$0xf0]  ;;  %v12787_v11 = vld [vmem:[#allocation10 + $0xfc8] sm:$0xf]  ;;  %v12324_v55 = vor.u32 %v15610_v54, %v12323_v59  ;;  %v13005_v59 = vld [vmem:[#allocation10 + $0x1178] sm:$0xf0] }
 0x361   :  { %4950 = vmatpush.bf16.msra.mxu1 %v12512_v38  ;;  %4963 = vmatpush.bf16.msra.mxu2 %v12516_v3  ;;  %v15626_v38 = vld [vmem:[#allocation10 + $0xcb4] sm:$0xf0]  ;;  %v12619_v3 = vld [vmem:[#allocation10 + $0xe80] sm:$0xf]  ;;  %v4471_v57 = vpop.f32.mrf.mxu3  ;;  %v3882_v10 = vpop.f32.mrf.mxu1  ;;  %v15728_v5 = vld [vmem:[#allocation10 + $0xfe4] sm:$0xf0] }
 0x362   :  { %5398 = vmatpush.bf16.msrb.mxu0 %v12748_v23  ;;  %v15687_v23 = vld [vmem:[#allocation10 + $0xe9c] sm:$0xf0]  ;;  %v17633_v46 = vadd.f32 %v4471_v57, %v17597_v52  ;;  %v12388_v33 = vor.u32 %v15626_v38, %v12387_v14  ;;  %v15605_v52 = vld [vmem:[#allocation10 + $0xc14] sm:$0xf]  ;;  %v12784_v38 = vor.u32 %v15723_v16, %v12781_v7  ;;  %v15715_v57 = vld [vmem:[#allocation10 + $0xf84] sm:$0xf] }
 0x363   :  { %5982 = vmatpush.bf16.msra.mxu3 %v13024_v24  ;;  %v15748_v24 = vld [vmem:[#allocation10 + $0x108c] sm:$0xf]  ;;  %v12620_v12 = vor.u32 %v15687_v23, %v12619_v3  ;;  %v12788_v3 = vor.u32 %v15728_v5, %v12787_v11  ;;  %v12749_v23 = vld [vmem:[#allocation10 + $0xfa0] sm:$0xf0]  ;;  %v12755_v10 = vld [vmem:[#allocation10 + $0xf88] sm:$0xf] }
 0x364   :  { %v3921_v13 = vpop.f32.mrf.mxu0  ;;  %v12896_v19 = vor.u32 %v15748_v24, %v12893_v29  ;;  %v12973_v16 = vld [vmem:[#allocation10 + $0x1138] sm:$0xf0] }
 0x365   :  { %4951 = vmatpush.bf16.msra.mxu1 %v12480_v4  ;;  %4964 = vmatpush.bf16.msra.mxu2 %v12484_v47  ;;  %v15613_v4 = vld [vmem:[#allocation10 + $0xc54] sm:$0xf]  ;;  %v15720_v13 = vld [vmem:[#allocation10 + $0xfa4] sm:$0xf0] }
 0x366   :  { %5399 = vmatpush.bf16.msrb.mxu0 %v12716_v58  ;;  %v12349_v47 = vld [vmem:[#allocation10 + $0xc70] sm:$0xf0]  ;;  %v15618_v58 = vld [vmem:[#allocation10 + $0xc74] sm:$0xf0] }
 0x367   :  { %5983 = vmatpush.bf16.msra.mxu3 %v12992_v48  ;;  %v12587_v48 = vld [vmem:[#allocation10 + $0xe40] sm:$0xf]  ;;  %v12352_v44 = vor.u32 %v15613_v4, %v12349_v47  ;;  %v12356_v35 = vor.u32 %v15618_v58, %v12355_v9  ;;  %v3895_v37 = vpop.f32.mrf.mxu2  ;;  %v15782_v4 = vld [vmem:[#allocation10 + $0x119c] sm:$0xf]  ;;  %v15707_v9 = vld [vmem:[#allocation10 + $0xf44] sm:$0xf] }
 0x368   :  { %v13037_v47 = vld [vmem:[#allocation10 + $0x11b8] sm:$0xf0]  ;;  %v12717_v58 = vld [vmem:[#allocation10 + $0xf60] sm:$0xf0] }
 0x369   :  { %4952 = vmatpush.bf16.msra.mxu1 %v12448_v0  ;;  %4965 = vmatpush.bf16.msra.mxu2 %v12452_v56  ;;  %v12588_v0 = vor.u32 %v15679_v51, %v12587_v48  ;;  %v12864_v56 = vor.u32 %v15740_v30, %v12861_v63  ;;  %v4473_v17 = vpop.f32.mrf.mxu3  ;;  %v17637_v48 = vpack.c.b16 %v17410_v40, %v17410_v40  ;;  %v12723_v63 = vld [vmem:[#allocation10 + $0xf48] sm:$0xf] }
 0x36a   :  { %5400 = vmatpush.bf16.msrb.mxu0 %v12684_v26  ;;  %v15671_v26 = vld [vmem:[#allocation10 + $0xe1c] sm:$0xf0]  ;;  %v13040_v30 = vor.u32 %v15782_v4, %v13037_v47  ;;  %v12720_v40 = vor.u32 %v15707_v9, %v12717_v58  ;;  %v15705_v17 = vld [vmem:[#allocation10 + $0xf2c] sm:$0xf0]  ;;  %v12627_v4 = vld [vmem:[#allocation10 + $0xe88] sm:$0xf] }
 0x36b   :  { %5984 = vmatpush.bf16.msra.mxu3 %v12960_v39  ;;  %v15732_v39 = vld [vmem:[#allocation10 + $0x100c] sm:$0xf]  ;;  %v12556_v60 = vor.u32 %v15671_v26, %v12555_v53  ;;  %v12691_v26 = vld [vmem:[#allocation10 + $0xf08] sm:$0xf]  ;;  %v15689_v58 = vld [vmem:[#allocation10 + $0xeac] sm:$0xf0] }
 0x36c   :  { %v12832_v14 = vor.u32 %v15732_v39, %v12829_v22  ;;  %v15704_v39 = vld [vmem:[#allocation10 + $0xf24] sm:$0xf0]  ;;  %v15766_v22 = vld [vmem:[#allocation10 + $0x111c] sm:$0xf] }
 0x36d   :  { %4953 = vmatpush.bf16.msra.mxu1 %v12416_v2  ;;  %4966 = vmatpush.bf16.msra.mxu2 %v12420_v62  ;;  %v12795_v2 = vld [vmem:[#allocation10 + $0xfd0] sm:$0xf]  ;;  %v12320_v62 = vor.u32 %v15605_v52, %v12317_v36  ;;  %v15712_v52 = vld [vmem:[#allocation10 + $0xf64] sm:$0xf0]  ;;  %v15774_v36 = vld [vmem:[#allocation10 + $0x115c] sm:$0xf] }
 0x36e   :  { %5401 = vmatpush.bf16.msrb.mxu0 %v12652_v42  ;;  %v15790_v42 = vld [vmem:[#allocation10 + $0x11dc] sm:$0xf]  ;;  %v12796_v24 = vor.u32 %v15729_v8, %v12795_v2  ;;  %v12724_v54 = vor.u32 %v15712_v52, %v12723_v63  ;;  %v13008_v53 = vor.u32 %v15774_v36, %v13005_v59  ;;  %v12653_v8 = vld [vmem:[#allocation10 + $0xee0] sm:$0xf0]  ;;  %v15688_v47 = vld [vmem:[#allocation10 + $0xea4] sm:$0xf0] }
 0x36f   :  { %5985 = vmatpush.bf16.msra.mxu3 %v12928_v15  ;;  %v13069_v15 = vld [vmem:[#allocation10 + $0x11f8] sm:$0xf0]  ;;  %v12628_v36 = vor.u32 %v15688_v47, %v12627_v4  ;;  %v15675_v59 = vld [vmem:[#allocation10 + $0xe44] sm:$0xf] }
 0x370   :  { %v13072_v29 = vor.u32 %v15790_v42, %v13069_v15 }
 0x371   :  { %4954 = vmatpush.bf16.msra.mxu1 %v12384_v45  ;;  %4967 = vmatpush.bf16.msra.mxu2 %v12388_v33  ;;  %v12763_v45 = vld [vmem:[#allocation10 + $0xf90] sm:$0xf] }
 0x372   :  { %5402 = vmatpush.bf16.msrb.mxu0 %v12620_v12  ;;  %v15721_v33 = vld [vmem:[#allocation10 + $0xfac] sm:$0xf0]  ;;  %v12752_v12 = vor.u32 %v15715_v57, %v12749_v23  ;;  %v15758_v23 = vld [vmem:[#allocation10 + $0x10dc] sm:$0xf] }
 0x373   :  { %5986 = vmatpush.bf16.msra.mxu3 %v12896_v19  ;;  %v12756_v19 = vor.u32 %v15720_v13, %v12755_v10  ;;  %v12764_v51 = vor.u32 %v15721_v33, %v12763_v45  ;;  %v15697_v57 = vld [vmem:[#allocation10 + $0xeec] sm:$0xf0]  ;;  %v15683_v10 = vld [vmem:[#allocation10 + $0xe84] sm:$0xf] }
 0x374   :  { %v12621_v13 = vld [vmem:[#allocation10 + $0xea0] sm:$0xf0] }
 0x375   :  { %4955 = vmatpush.bf16.msra.mxu1 %v12352_v44  ;;  %4968 = vmatpush.bf16.msra.mxu2 %v12356_v35  ;;  %v12731_v44 = vld [vmem:[#allocation10 + $0xf50] sm:$0xf] }
 0x376   :  { %5403 = vmatpush.bf16.msrb.mxu0 %v12588_v0  ;;  %v15713_v35 = vld [vmem:[#allocation10 + $0xf6c] sm:$0xf0]  ;;  %v15699_v0 = vld [vmem:[#allocation10 + $0xf04] sm:$0xf] }
 0x377   :  { %5987 = vmatpush.bf16.msra.mxu3 %v12864_v56  ;;  %v12685_v56 = vld [vmem:[#allocation10 + $0xf20] sm:$0xf0]  ;;  %v12732_v37 = vor.u32 %v15713_v35, %v12731_v44  ;;  %v12624_v35 = vor.u32 %v15683_v10, %v12621_v13  ;;  %v15791_v10 = vld [vmem:[#allocation10 + $0x11dc] sm:$0xf0]  ;;  %v15852_v13 = vld [vmem:[#allocation10 + $0x13cc] sm:$0xf] }
 0x378   :  { %v12688_v2 = vor.u32 %v15699_v0, %v12685_v56  ;;  %v12595_v0 = vld [vmem:[#allocation10 + $0xe48] sm:$0xf] }
 0x379   :  { %4956 = vmatpush.bf16.msra.mxu1 %v12320_v62  ;;  %4969 = vmatpush.bf16.msra.mxu2 %v12324_v55  ;;  %v3932_v7 = vpop.f32.mrf.mxu1  ;;  %v12692_v62 = vor.u32 %v15704_v39, %v12691_v26  ;;  %v15691_v55 = vld [vmem:[#allocation10 + $0xec4] sm:$0xf]  ;;  %v15680_v56 = vld [vmem:[#allocation10 + $0xe64] sm:$0xf0]  ;;  %v15742_v26 = vld [vmem:[#allocation10 + $0x105c] sm:$0xf] }
 0x37a   :  { %5404 = vmatpush.bf16.msrb.mxu0 %v12556_v60  ;;  %v17644_v11 = vadd.f32 %v3932_v7, %v17608_v25  ;;  %v12976_v60 = vor.u32 %v15766_v22, %v12973_v16  ;;  %v12656_v25 = vor.u32 %v15691_v55, %v12653_v8  ;;  %v12877_v39 = vld [vmem:[#allocation10 + $0x1078] sm:$0xf0]  ;;  %v12557_v22 = vld [vmem:[#allocation10 + $0xe20] sm:$0xf0]  ;;  %v12563_v16 = vld [vmem:[#allocation10 + $0xe08] sm:$0xf] }
 0x37b   :  { %5988 = vmatpush.bf16.msra.mxu3 %v12832_v14  ;;  %v12659_v14 = vld [vmem:[#allocation10 + $0xec8] sm:$0xf]  ;;  %v12571_v55 = vld [vmem:[#allocation10 + $0xe10] sm:$0xf] }
 0x37c   :  { %4957 = vmatmul.bf16.vlgmr.msra.gmra.mxu1 %v17564_v21  ;;  %4970 = vmatmul.bf16.vlgmr.msra.gmra.mxu2 %v17564_v21  ;;  %v12699_v21 = vld [vmem:[#allocation10 + $0xf10] sm:$0xf]  ;;  %v4380_v5 = vpop.f32.mrf.mxu0  ;;  %v15672_v7 = vld [vmem:[#allocation10 + $0xe24] sm:$0xf0] }
 0x37d   :  { %5410 = vmatpush.bf16.msrb.mxu1 %v12784_v38  ;;  %5423 = vmatpush.bf16.msrb.mxu2 %v12788_v3  ;;  %v17647_v42 = vadd.f32 %v4380_v5, %v17611_v28  ;;  %v12700_v15 = vor.u32 %v15705_v17, %v12699_v21  ;;  %v15696_v38 = vld [vmem:[#allocation10 + $0xee4] sm:$0xf0]  ;;  %v12667_v3 = vld [vmem:[#allocation10 + $0xed0] sm:$0xf]  ;;  %v12596_v17 = vor.u32 %v15680_v56, %v12595_v0  ;;  %v12733_v0 = vld [vmem:[#allocation10 + $0xf70] sm:$0xf0] }
 0x37e   :  { %5449 = vmatpush.bf16.msra.mxu0 %v12796_v24  ;;  %5989 = vmatmul.bf16.vlgmr.msra.gmra.mxu3 %v17637_v48  ;;  %v12941_v24 = vld [vmem:[#allocation10 + $0x10f8] sm:$0xf0]  ;;  %v12668_v45 = vor.u32 %v15697_v57, %v12667_v3  ;;  %v15673_v8 = vld [vmem:[#allocation10 + $0xe2c] sm:$0xf0]  ;;  %v12797_v3 = vld [vmem:[#allocation10 + $0xff0] sm:$0xf0] }
 0x37f   :  { %6033 = vmatpush.bf16.msrb.mxu3 %v13072_v29  ;;  %5405 = vmatmul.bf16.vlgmr.msrb.gmra.mxu0 %v17601_v20  ;;  %v12660_v29 = vor.u32 %v15696_v38, %v12659_v14  ;;  %v12944_v33 = vor.u32 %v15758_v23, %v12941_v24  ;;  %v3945_v28 = vpop.f32.mrf.mxu2  ;;  %v12845_v14 = vld [vmem:[#allocation10 + $0x1038] sm:$0xf0]  ;;  %v15725_v38 = vld [vmem:[#allocation10 + $0xfd4] sm:$0xf]  ;;  %v12803_v57 = vld [vmem:[#allocation10 + $0xfd8] sm:$0xf] }
 0x380   :  { %v15730_v23 = vld [vmem:[#allocation10 + $0xff4] sm:$0xf0]  ;;  %v13043_v24 = vld [vmem:[#allocation10 + $0x11c0] sm:$0xf]  ;;  %v12800_v4 = vor.u32 %v15725_v38, %v12797_v3  ;;  %v13213_v38 = vld [vmem:[#allocation10 + $0x1328] sm:$0xf0] }
 0x381   :  { %5411 = vmatpush.bf16.msrb.mxu1 %v12752_v12  ;;  %5424 = vmatpush.bf16.msrb.mxu2 %v12756_v19  ;;  %v12635_v12 = vld [vmem:[#allocation10 + $0xe90] sm:$0xf]  ;;  %v17650_v19 = vadd.f32 %v3945_v28, %v17614_v41  ;;  %v4932_v9 = vpop.f32.mrf.mxu3  ;;  %v3934_v52 = vpop.f32.mrf.mxu1  ;;  %v12804_v47 = vor.u32 %v15730_v23, %v12803_v57 }
 0x382   :  { %5450 = vmatpush.bf16.msra.mxu0 %v12764_v51  ;;  %v15750_v51 = vld [vmem:[#allocation10 + $0x109c] sm:$0xf]  ;;  %v17653_v63 = vadd.f32 %v4932_v9, %v17617_v31  ;;  %v15667_v31 = vld [vmem:[#allocation10 + $0xe04] sm:$0xf]  ;;  %v12765_v9 = vld [vmem:[#allocation10 + $0xfb0] sm:$0xf0] }
 0x383   :  { %6034 = vmatpush.bf16.msrb.mxu3 %v13040_v30  ;;  %v12909_v30 = vld [vmem:[#allocation10 + $0x10b8] sm:$0xf0]  ;;  %v15722_v52 = vld [vmem:[#allocation10 + $0xfb4] sm:$0xf0] }
 0x384   :  { %v4382_v44 = vpop.f32.mrf.mxu0  ;;  %v12912_v41 = vor.u32 %v15750_v51, %v12909_v30  ;;  %v12771_v30 = vld [vmem:[#allocation10 + $0xf98] sm:$0xf] }
 0x385   :  { %5412 = vmatpush.bf16.msrb.mxu1 %v12720_v40  ;;  %5425 = vmatpush.bf16.msrb.mxu2 %v12724_v54  ;;  %v12589_v40 = vld [vmem:[#allocation10 + $0xe60] sm:$0xf0]  ;;  %v12636_v54 = vor.u32 %v15689_v58, %v12635_v12  ;;  %v15717_v12 = vld [vmem:[#allocation10 + $0xf94] sm:$0xf]  ;;  %v13044_v58 = vor.u32 %v15791_v10, %v13043_v24  ;;  %v13011_v44 = vld [vmem:[#allocation10 + $0x1180] sm:$0xf] }
 0x386   :  { %5451 = vmatpush.bf16.msra.mxu0 %v12732_v37  ;;  %v12603_v37 = vld [vmem:[#allocation10 + $0xe50] sm:$0xf]  ;;  %v12592_v21 = vor.u32 %v15675_v59, %v12589_v40  ;;  %v13277_v59 = vld [vmem:[#allocation10 + $0x13a8] sm:$0xf0]  ;;  %v12768_v40 = vor.u32 %v15717_v12, %v12765_v9  ;;  %v12669_v10 = vld [vmem:[#allocation10 + $0xef0] sm:$0xf0] }
 0x387   :  { %6035 = vmatpush.bf16.msrb.mxu3 %v13008_v53  ;;  %v15681_v53 = vld [vmem:[#allocation10 + $0xe6c] sm:$0xf0]  ;;  %v15759_v12 = vld [vmem:[#allocation10 + $0x10dc] sm:$0xf0]  ;;  %v15820_v9 = vld [vmem:[#allocation10 + $0x12cc] sm:$0xf] }
 0x388   :  { %v12604_v5 = vor.u32 %v15681_v53, %v12603_v37  ;;  %v12739_v53 = vld [vmem:[#allocation10 + $0xf58] sm:$0xf] }
 0x389   :  { %5413 = vmatpush.bf16.msrb.mxu1 %v12688_v2  ;;  %5426 = vmatpush.bf16.msrb.mxu2 %v12692_v62  ;;  %v12880_v2 = vor.u32 %v15742_v26, %v12877_v39  ;;  %v3947_v62 = vpop.f32.mrf.mxu2  ;;  %v15714_v26 = vld [vmem:[#allocation10 + $0xf74] sm:$0xf0]  ;;  %v12979_v39 = vld [vmem:[#allocation10 + $0x1140] sm:$0xf] }
 0x38a   :  { %5452 = vmatpush.bf16.msra.mxu0 %v12700_v15  ;;  %v15734_v15 = vld [vmem:[#allocation10 + $0x101c] sm:$0xf] }
 0x38b   :  { %6036 = vmatpush.bf16.msrb.mxu3 %v12976_v60  ;;  %v4934_v60 = vpop.f32.mrf.mxu3  ;;  %v12848_v28 = vor.u32 %v15734_v15, %v12845_v14  ;;  %v12947_v15 = vld [vmem:[#allocation10 + $0x1100] sm:$0xf]  ;;  %v15828_v14 = vld [vmem:[#allocation10 + $0x130c] sm:$0xf] }
 0x38c   :  { %v15767_v60 = vld [vmem:[#allocation10 + $0x111c] sm:$0xf0] }
 0x38d   :  { %5414 = vmatpush.bf16.msrb.mxu1 %v12656_v25  ;;  %5427 = vmatpush.bf16.msrb.mxu2 %v12660_v29  ;;  %v12560_v25 = vor.u32 %v15667_v31, %v12557_v22  ;;  %v12564_v29 = vor.u32 %v15672_v7, %v12563_v16  ;;  %v15775_v31 = vld [vmem:[#allocation10 + $0x115c] sm:$0xf0]  ;;  %v12740_v16 = vor.u32 %v15714_v26, %v12739_v53  ;;  %v15701_v7 = vld [vmem:[#allocation10 + $0xf14] sm:$0xf] }
 0x38e   :  { %5453 = vmatpush.bf16.msra.mxu0 %v12668_v45  ;;  %v13309_v45 = vld [vmem:[#allocation10 + $0x13e8] sm:$0xf0] }
 0x38f   :  { %6037 = vmatpush.bf16.msrb.mxu3 %v12944_v33  ;;  %v12572_v33 = vor.u32 %v15673_v8, %v12571_v55  ;;  %v13312_v51 = vor.u32 %v15852_v13, %v13309_v45  ;;  %v12707_v55 = vld [vmem:[#allocation10 + $0xf18] sm:$0xf]  ;;  %v12948_v45 = vor.u32 %v15767_v60, %v12947_v15 }
 0x390   :  { %v15706_v8 = vld [vmem:[#allocation10 + $0xf34] sm:$0xf0] }
 0x391   :  { %5415 = vmatpush.bf16.msrb.mxu1 %v12624_v35  ;;  %5428 = vmatpush.bf16.msrb.mxu2 %v12628_v36  ;;  %v15783_v35 = vld [vmem:[#allocation10 + $0x119c] sm:$0xf0]  ;;  %v15844_v36 = vld [vmem:[#allocation10 + $0x138c] sm:$0xf] }
 0x392   :  { %5454 = vmatpush.bf16.msra.mxu0 %v12636_v54  ;;  %v12772_v54 = vor.u32 %v15722_v52, %v12771_v30  ;;  %v13012_v56 = vor.u32 %v15783_v35, %v13011_v44  ;;  %v13280_v37 = vor.u32 %v15844_v36, %v13277_v59  ;;  %v15685_v30 = vld [vmem:[#allocation10 + $0xe94] sm:$0xf]  ;;  %v12643_v36 = vld [vmem:[#allocation10 + $0xe98] sm:$0xf] }
 0x393   :  { %6038 = vmatpush.bf16.msrb.mxu3 %v12912_v41  ;;  %v15709_v41 = vld [vmem:[#allocation10 + $0xf54] sm:$0xf]  ;;  %v15690_v59 = vld [vmem:[#allocation10 + $0xeb4] sm:$0xf0] }
 0x394   :  { %v12736_v22 = vor.u32 %v15709_v41, %v12733_v0  ;;  %v12637_v52 = vld [vmem:[#allocation10 + $0xeb0] sm:$0xf0]  ;;  %v15751_v0 = vld [vmem:[#allocation10 + $0x109c] sm:$0xf0] }
 0x395   :  { %5416 = vmatpush.bf16.msrb.mxu1 %v12592_v21  ;;  %5429 = vmatpush.bf16.msrb.mxu2 %v12596_v17  ;;  %v15836_v21 = vld [vmem:[#allocation10 + $0x134c] sm:$0xf] }
 0x396   :  { %5455 = vmatpush.bf16.msra.mxu0 %v12604_v5  ;;  %v13245_v17 = vld [vmem:[#allocation10 + $0x1368] sm:$0xf0]  ;;  %v12701_v5 = vld [vmem:[#allocation10 + $0xf30] sm:$0xf0] }
 0x397   :  { %6039 = vmatpush.bf16.msrb.mxu3 %v12880_v2  ;;  %v12980_v2 = vor.u32 %v15775_v31, %v12979_v39  ;;  %v13248_v62 = vor.u32 %v15836_v21, %v13245_v17  ;;  %v12704_v24 = vor.u32 %v15701_v7, %v12701_v5  ;;  %v12640_v31 = vor.u32 %v15685_v30, %v12637_v52  ;;  %v15677_v17 = vld [vmem:[#allocation10 + $0xe54] sm:$0xf]  ;;  %v12611_v7 = vld [vmem:[#allocation10 + $0xe58] sm:$0xf]  ;;  %v15793_v30 = vld [vmem:[#allocation10 + $0x11ec] sm:$0xf0] }
 0x398   :  { %v12644_v21 = vor.u32 %v15690_v59, %v12643_v36  ;;  %v15682_v5 = vld [vmem:[#allocation10 + $0xe74] sm:$0xf0]  ;;  %v15854_v52 = vld [vmem:[#allocation10 + $0x13dc] sm:$0xf] }
 0x399   :  { %5417 = vmatpush.bf16.msrb.mxu1 %v12560_v25  ;;  %5430 = vmatpush.bf16.msrb.mxu2 %v12564_v29  ;;  %v4393_v3 = vpop.f32.mrf.mxu1  ;;  %v12708_v25 = vor.u32 %v15706_v8, %v12707_v55  ;;  %v15693_v29 = vld [vmem:[#allocation10 + $0xed4] sm:$0xf]  ;;  %v15804_v55 = vld [vmem:[#allocation10 + $0x124c] sm:$0xf]  ;;  %v12612_v60 = vor.u32 %v15682_v5, %v12611_v7  ;;  %v12981_v7 = vld [vmem:[#allocation10 + $0x1160] sm:$0xf0]  ;;  %v17673_v5 = vpack.c.b16 %v17414_v27, %v17414_v27 }
 0x39a   :  { %5456 = vmatpush.bf16.msra.mxu0 %v12572_v33  ;;  %v17660_v57 = vadd.f32 %v4393_v3, %v17624_v61  ;;  %v13216_v33 = vor.u32 %v15828_v14, %v13213_v38  ;;  %v12672_v61 = vor.u32 %v15693_v29, %v12669_v10  ;;  %v13117_v8 = vld [vmem:[#allocation10 + $0x1268] sm:$0xf0]  ;;  %v12573_v14 = vld [vmem:[#allocation10 + $0xe30] sm:$0xf0]  ;;  %v12579_v38 = vld [vmem:[#allocation10 + $0xe18] sm:$0xf] }
 0x39b   :  { %6040 = vmatpush.bf16.msrb.mxu3 %v12848_v28  ;;  %v12675_v28 = vld [vmem:[#allocation10 + $0xed8] sm:$0xf]  ;;  %v12819_v29 = vld [vmem:[#allocation10 + $0x1000] sm:$0xf] }
 0x39c   :  { %5418 = vmatmul.bf16.vlgmr.msrb.gmra.mxu1 %v17601_v20  ;;  %5431 = vmatmul.bf16.vlgmr.msrb.gmra.mxu2 %v17601_v20  ;;  %v4432_v23 = vpop.f32.mrf.mxu0  ;;  %v15674_v3 = vld [vmem:[#allocation10 + $0xe34] sm:$0xf0]  ;;  %v15735_v10 = vld [vmem:[#allocation10 + $0x101c] sm:$0xf0] }
 0x39d   :  { %5462 = vmatpush.bf16.msra.mxu1 %v12800_v4  ;;  %5475 = vmatpush.bf16.msra.mxu2 %v12804_v47  ;;  %v17663_v13 = vadd.f32 %v4432_v23, %v17627_v1  ;;  %v15698_v4 = vld [vmem:[#allocation10 + $0xef4] sm:$0xf0]  ;;  %v12915_v47 = vld [vmem:[#allocation10 + $0x10c0] sm:$0xf] }
 0x39e   :  { %5942 = vmatpush.bf16.msrb.mxu0 %v13044_v58  ;;  %6041 = vmatmul.bf16.vlgmr.msrb.gmra.mxu3 %v17637_v48  ;;  %v13181_v58 = vld [vmem:[#allocation10 + $0x12e8] sm:$0xf0]  ;;  %v12916_v44 = vor.u32 %v15759_v12, %v12915_v47  ;;  %v13045_v47 = vld [vmem:[#allocation10 + $0x11e0] sm:$0xf0]  ;;  %v13051_v12 = vld [vmem:[#allocation10 + $0x11c8] sm:$0xf] }
 0x39f   :  { %6494 = vmatpush.bf16.msra.mxu3 %v13312_v51  ;;  %5457 = vmatmul.bf16.vlgmr.msra.gmra.mxu0 %v17601_v20  ;;  %v12676_v51 = vor.u32 %v15698_v4, %v12675_v28  ;;  %v13184_v35 = vor.u32 %v15820_v9, %v13181_v58  ;;  %v4406_v1 = vpop.f32.mrf.mxu2  ;;  %v13085_v28 = vld [vmem:[#allocation10 + $0x1228] sm:$0xf0]  ;;  %v15787_v4 = vld [vmem:[#allocation10 + $0x11c4] sm:$0xf]  ;;  %v15792_v9 = vld [vmem:[#allocation10 + $0x11e4] sm:$0xf0] }
 0x3a0   :  { %v13059_v58 = vld [vmem:[#allocation10 + $0x11d0] sm:$0xf]  ;;  %v13048_v36 = vor.u32 %v15787_v4, %v13045_v47  ;;  %v13052_v59 = vor.u32 %v15792_v9, %v13051_v12 }
 0x3a1   :  { %5463 = vmatpush.bf16.msra.mxu1 %v12768_v40  ;;  %5476 = vmatpush.bf16.msra.mxu2 %v12772_v54  ;;  %v12883_v40 = vld [vmem:[#allocation10 + $0x1080] sm:$0xf]  ;;  %v17666_v54 = vadd.f32 %v4406_v1, %v17630_v6  ;;  %v4984_v41 = vpop.f32.mrf.mxu3  ;;  %v4395_v26 = vpop.f32.mrf.mxu1 }
 0x3a2   :  { %5943 = vmatpush.bf16.msrb.mxu0 %v13012_v56  ;;  %v15812_v56 = vld [vmem:[#allocation10 + $0x128c] sm:$0xf]  ;;  %v17669_v53 = vadd.f32 %v4984_v41, %v17633_v46  ;;  %v15669_v46 = vld [vmem:[#allocation10 + $0xe14] sm:$0xf]  ;;  %v13013_v41 = vld [vmem:[#allocation10 + $0x11a0] sm:$0xf0] }
 0x3a3   :  { %6495 = vmatpush.bf16.msra.mxu3 %v13280_v37  ;;  %v13149_v37 = vld [vmem:[#allocation10 + $0x12a8] sm:$0xf0]  ;;  %v15784_v26 = vld [vmem:[#allocation10 + $0x11a4] sm:$0xf0] }
 0x3a4   :  { %v4434_v39 = vpop.f32.mrf.mxu0  ;;  %v13152_v6 = vor.u32 %v15812_v56, %v13149_v37  ;;  %v13019_v37 = vld [vmem:[#allocation10 + $0x1188] sm:$0xf] }
 0x3a5   :  { %5464 = vmatpush.bf16.msra.mxu1 %v12736_v22  ;;  %5477 = vmatpush.bf16.msra.mxu2 %v12740_v16  ;;  %v12605_v22 = vld [vmem:[#allocation10 + $0xe70] sm:$0xf0]  ;;  %v12884_v16 = vor.u32 %v15751_v0, %v12883_v40  ;;  %v15779_v40 = vld [vmem:[#allocation10 + $0x1184] sm:$0xf]  ;;  %v13060_v0 = vor.u32 %v15793_v30, %v13059_v58  ;;  %v13027_v39 = vld [vmem:[#allocation10 + $0x1190] sm:$0xf] }
 0x3a6   :  { %5944 = vmatpush.bf16.msrb.mxu0 %v12980_v2  ;;  %v12851_v2 = vld [vmem:[#allocation10 + $0x1040] sm:$0xf]  ;;  %v12608_v15 = vor.u32 %v15677_v17, %v12605_v22  ;;  %v13293_v17 = vld [vmem:[#allocation10 + $0x13b8] sm:$0xf0]  ;;  %v13016_v22 = vor.u32 %v15779_v40, %v13013_v41 }
 0x3a7   :  { %6496 = vmatpush.bf16.msra.mxu3 %v13248_v62  ;;  %v15743_v62 = vld [vmem:[#allocation10 + $0x105c] sm:$0xf0]  ;;  %v15822_v40 = vld [vmem:[#allocation10 + $0x12dc] sm:$0xf] }
 0x3a8   :  { %v12852_v23 = vor.u32 %v15743_v62, %v12851_v2  ;;  %v13197_v41 = vld [vmem:[#allocation10 + $0x12f8] sm:$0xf0] }
 0x3a9   :  { %5465 = vmatpush.bf16.msra.mxu1 %v12704_v24  ;;  %5478 = vmatpush.bf16.msra.mxu2 %v12708_v25  ;;  %v13120_v24 = vor.u32 %v15804_v55, %v13117_v8  ;;  %v4408_v25 = vpop.f32.mrf.mxu2  ;;  %v12987_v55 = vld [vmem:[#allocation10 + $0x1148] sm:$0xf] }
 0x3aa   :  { %5945 = vmatpush.bf16.msrb.mxu0 %v12948_v45  ;;  %v15796_v45 = vld [vmem:[#allocation10 + $0x120c] sm:$0xf]  ;;  %v15776_v8 = vld [vmem:[#allocation10 + $0x1164] sm:$0xf0] }
 0x3ab   :  { %6497 = vmatpush.bf16.msra.mxu3 %v13216_v33  ;;  %v4986_v33 = vpop.f32.mrf.mxu3  ;;  %v13088_v1 = vor.u32 %v15796_v45, %v13085_v28  ;;  %v15769_v45 = vld [vmem:[#allocation10 + $0x112c] sm:$0xf0]  ;;  %v13229_v28 = vld [vmem:[#allocation10 + $0x1338] sm:$0xf0] }
 0x3ac   :  { %v15830_v33 = vld [vmem:[#allocation10 + $0x131c] sm:$0xf] }
 0x3ad   :  { %5466 = vmatpush.bf16.msra.mxu1 %v12672_v61  ;;  %5479 = vmatpush.bf16.msra.mxu2 %v12676_v51  ;;  %v12576_v61 = vor.u32 %v15669_v46, %v12573_v14  ;;  %v12580_v51 = vor.u32 %v15674_v3, %v12579_v38  ;;  %v12995_v46 = vld [vmem:[#allocation10 + $0x1150] sm:$0xf]  ;;  %v13261_v14 = vld [vmem:[#allocation10 + $0x1378] sm:$0xf0]  ;;  %v12988_v38 = vor.u32 %v15776_v8, %v12987_v55  ;;  %v15763_v3 = vld [vmem:[#allocation10 + $0x1104] sm:$0xf] }
 0x3ae   :  { %5946 = vmatpush.bf16.msrb.mxu0 %v12916_v44  ;;  %v13325_v44 = vld [vmem:[#allocation10 + $0x13f8] sm:$0xf0] }
 0x3af   :  { %6498 = vmatpush.bf16.msra.mxu3 %v13184_v35  ;;  %v12820_v35 = vor.u32 %v15735_v10, %v12819_v29  ;;  %v13328_v56 = vor.u32 %v15854_v52, %v13325_v44  ;;  %v12955_v29 = vld [vmem:[#allocation10 + $0x1108] sm:$0xf]  ;;  %v13232_v44 = vor.u32 %v15830_v33, %v13229_v28 }
 0x3b0   :  { %v15768_v10 = vld [vmem:[#allocation10 + $0x1124] sm:$0xf0] }
 0x3b1   :  { %5467 = vmatpush.bf16.msra.mxu1 %v12640_v31  ;;  %5480 = vmatpush.bf16.msra.mxu2 %v12644_v21  ;;  %v15785_v31 = vld [vmem:[#allocation10 + $0x11ac] sm:$0xf0]  ;;  %v15846_v21 = vld [vmem:[#allocation10 + $0x139c] sm:$0xf]  ;;  %v12956_v58 = vor.u32 %v15768_v10, %v12955_v29  ;;  %v12827_v33 = vld [vmem:[#allocation10 + $0x1008] sm:$0xf] }
 0x3b2   :  { %5947 = vmatpush.bf16.msrb.mxu0 %v12884_v16  ;;  %v13020_v16 = vor.u32 %v15784_v26, %v13019_v37  ;;  %v13028_v2 = vor.u32 %v15785_v31, %v13027_v39  ;;  %v13296_v62 = vor.u32 %v15846_v21, %v13293_v17  ;;  %v12885_v37 = vld [vmem:[#allocation10 + $0x10a0] sm:$0xf0]  ;;  %v13200_v39 = vor.u32 %v15822_v40, %v13197_v41  ;;  %v12891_v31 = vld [vmem:[#allocation10 + $0x1088] sm:$0xf]  ;;  %v12899_v17 = vld [vmem:[#allocation10 + $0x1090] sm:$0xf] }
 0x3b3   :  { %6499 = vmatpush.bf16.msra.mxu3 %v13152_v6  ;;  %v15771_v6 = vld [vmem:[#allocation10 + $0x1144] sm:$0xf]  ;;  %v15752_v21 = vld [vmem:[#allocation10 + $0x10a4] sm:$0xf0]  ;;  %v13133_v29 = vld [vmem:[#allocation10 + $0x1278] sm:$0xf0] }
 0x3b4   :  { %v12984_v27 = vor.u32 %v15771_v6, %v12981_v7  ;;  %v15753_v6 = vld [vmem:[#allocation10 + $0x10ac] sm:$0xf0]  ;;  %v15814_v7 = vld [vmem:[#allocation10 + $0x129c] sm:$0xf]  ;;  %v15736_v28 = vld [vmem:[#allocation10 + $0x1024] sm:$0xf0] }
 0x3b5   :  { %5468 = vmatpush.bf16.msra.mxu1 %v12608_v15  ;;  %5481 = vmatpush.bf16.msra.mxu2 %v12612_v60  ;;  %v15777_v15 = vld [vmem:[#allocation10 + $0x116c] sm:$0xf0]  ;;  %v15838_v60 = vld [vmem:[#allocation10 + $0x135c] sm:$0xf]  ;;  %v13299_v40 = vld [vmem:[#allocation10 + $0x13c0] sm:$0xf] }
 0x3b6   :  { %5948 = vmatpush.bf16.msrb.mxu0 %v12852_v23  ;;  %v12949_v23 = vld [vmem:[#allocation10 + $0x1120] sm:$0xf0]  ;;  %v13264_v25 = vor.u32 %v15838_v60, %v13261_v14 }
 0x3b7   :  { %6500 = vmatpush.bf16.msra.mxu3 %v13120_v24  ;;  %v12996_v24 = vor.u32 %v15777_v15, %v12995_v46  ;;  %v12952_v9 = vor.u32 %v15763_v3, %v12949_v23  ;;  %v12892_v15 = vor.u32 %v15752_v21, %v12891_v31  ;;  %v15739_v60 = vld [vmem:[#allocation10 + $0x1044] sm:$0xf]  ;;  %v15744_v3 = vld [vmem:[#allocation10 + $0x1064] sm:$0xf0]  ;;  %v12867_v23 = vld [vmem:[#allocation10 + $0x1050] sm:$0xf] }
 0x3b8   :  { %v12853_v14 = vld [vmem:[#allocation10 + $0x1060] sm:$0xf0]  ;;  %v15781_v21 = vld [vmem:[#allocation10 + $0x1194] sm:$0xf] }
 0x3b9   :  { %5469 = vmatpush.bf16.msra.mxu1 %v12576_v61  ;;  %5482 = vmatpush.bf16.msra.mxu2 %v12580_v51  ;;  %v4445_v4 = vpop.f32.mrf.mxu1  ;;  %v15755_v61 = vld [vmem:[#allocation10 + $0x10c4] sm:$0xf]  ;;  %v12856_v10 = vor.u32 %v15739_v60, %v12853_v14 }
 0x3ba   :  { %5949 = vmatpush.bf16.msrb.mxu0 %v12820_v35  ;;  %v17680_v47 = vadd.f32 %v4445_v4, %v17644_v11  ;;  %v12917_v51 = vld [vmem:[#allocation10 + $0x10e0] sm:$0xf0]  ;;  %v12923_v35 = vld [vmem:[#allocation10 + $0x10c8] sm:$0xf] }
 0x3bb   :  { %6501 = vmatpush.bf16.msra.mxu3 %v13088_v1  ;;  %v15760_v1 = vld [vmem:[#allocation10 + $0x10e4] sm:$0xf0]  ;;  %v12920_v11 = vor.u32 %v15755_v61, %v12917_v51  ;;  %v15737_v61 = vld [vmem:[#allocation10 + $0x102c] sm:$0xf0]  ;;  %v15798_v51 = vld [vmem:[#allocation10 + $0x121c] sm:$0xf] }
 0x3bc   :  { %5470 = vmatmul.bf16.vlgmr.msra.gmra.mxu1 %v17601_v20  ;;  %5483 = vmatmul.bf16.vlgmr.msra.gmra.mxu2 %v17601_v20  ;;  %v12963_v20 = vld [vmem:[#allocation10 + $0x1110] sm:$0xf]  ;;  %v4893_v12 = vpop.f32.mrf.mxu0 }
 0x3bd   :  { %5955 = vmatpush.bf16.msrb.mxu1 %v13048_v36  ;;  %5968 = vmatpush.bf16.msrb.mxu2 %v13052_v59  ;;  %v17683_v30 = vadd.f32 %v4893_v12, %v17647_v42  ;;  %v12964_v52 = vor.u32 %v15769_v45, %v12963_v20  ;;  %v12931_v36 = vld [vmem:[#allocation10 + $0x10d0] sm:$0xf]  ;;  %v12821_v45 = vld [vmem:[#allocation10 + $0x1020] sm:$0xf0] }
 0x3be   :  { %5994 = vmatpush.bf16.msra.mxu0 %v13060_v0  ;;  %6502 = vmatmul.bf16.vlgmr.msra.gmra.mxu3 %v17673_v5  ;;  %v15761_v59 = vld [vmem:[#allocation10 + $0x10ec] sm:$0xf0]  ;;  %v12924_v0 = vor.u32 %v15760_v1, %v12923_v35  ;;  %v15789_v35 = vld [vmem:[#allocation10 + $0x11d4] sm:$0xf] }
 0x3bf   :  { %6546 = vmatpush.bf16.msrb.mxu3 %v13328_v56  ;;  %5950 = vmatmul.bf16.vlgmr.msrb.gmra.mxu0 %v17637_v48  ;;  %v15747_v56 = vld [vmem:[#allocation10 + $0x1084] sm:$0xf]  ;;  %v12932_v26 = vor.u32 %v15761_v59, %v12931_v36  ;;  %v4458_v42 = vpop.f32.mrf.mxu2  ;;  %v13061_v1 = vld [vmem:[#allocation10 + $0x11f0] sm:$0xf0]  ;;  %v13067_v36 = vld [vmem:[#allocation10 + $0x11d8] sm:$0xf] }
 0x3c0   :  { %v12888_v46 = vor.u32 %v15747_v56, %v12885_v37  ;;  %v15794_v59 = vld [vmem:[#allocation10 + $0x11f4] sm:$0xf0]  ;;  %v15916_v56 = vld [vmem:[#allocation10 + $0x15cc] sm:$0xf] }
 0x3c1   :  { %5956 = vmatpush.bf16.msrb.mxu1 %v13016_v22  ;;  %5969 = vmatpush.bf16.msrb.mxu2 %v13020_v16  ;;  %v17686_v22 = vadd.f32 %v4458_v42, %v17650_v19  ;;  %v5445_v16 = vpop.f32.mrf.mxu3  ;;  %v4447_v55 = vpop.f32.mrf.mxu1  ;;  %v13565_v37 = vld [vmem:[#allocation10 + $0x15e8] sm:$0xf0]  ;;  %v13064_v42 = vor.u32 %v15789_v35, %v13061_v1  ;;  %v13068_v31 = vor.u32 %v15794_v59, %v13067_v36 }
 0x3c2   :  { %5995 = vmatpush.bf16.msra.mxu0 %v13028_v2  ;;  %v13165_v2 = vld [vmem:[#allocation10 + $0x12b8] sm:$0xf0]  ;;  %v13267_v55 = vld [vmem:[#allocation10 + $0x1380] sm:$0xf] }
 0x3c3   :  { %6547 = vmatpush.bf16.msrb.mxu3 %v13296_v62  ;;  %v17689_v62 = vadd.f32 %v5445_v16, %v17653_v63  ;;  %v13168_v19 = vor.u32 %v15814_v7, %v13165_v2  ;;  %v15731_v63 = vld [vmem:[#allocation10 + $0x1004] sm:$0xf]  ;;  %v13035_v7 = vld [vmem:[#allocation10 + $0x1198] sm:$0xf] }
 0x3c4   :  { %v4895_v8 = vpop.f32.mrf.mxu0  ;;  %v12824_v41 = vor.u32 %v15731_v63, %v12821_v45  ;;  %v15786_v2 = vld [vmem:[#allocation10 + $0x11b4] sm:$0xf0]  ;;  %v15900_v63 = vld [vmem:[#allocation10 + $0x154c] sm:$0xf] }
 0x3c5   :  { %5957 = vmatpush.bf16.msrb.mxu1 %v12984_v27  ;;  %5970 = vmatpush.bf16.msrb.mxu2 %v12988_v38  ;;  %v12900_v27 = vor.u32 %v15753_v6, %v12899_v17  ;;  %v12859_v38 = vld [vmem:[#allocation10 + $0x1048] sm:$0xf]  ;;  %v13029_v17 = vld [vmem:[#allocation10 + $0x11b0] sm:$0xf0]  ;;  %v13568_v6 = vor.u32 %v15916_v56, %v13565_v37  ;;  %v15847_v8 = vld [vmem:[#allocation10 + $0x139c] sm:$0xf0]  ;;  %v13036_v14 = vor.u32 %v15786_v2, %v13035_v7 }
 0x3c6   :  { %5996 = vmatpush.bf16.msra.mxu0 %v12996_v24  ;;  %v15745_v24 = vld [vmem:[#allocation10 + $0x106c] sm:$0xf0]  ;;  %v12860_v20 = vor.u32 %v15744_v3, %v12859_v38  ;;  %v13032_v60 = vor.u32 %v15781_v21, %v13029_v17  ;;  %v13268_v38 = vor.u32 %v15847_v8, %v13267_v55  ;;  %v15884_v21 = vld [vmem:[#allocation10 + $0x14cc] sm:$0xf]  ;;  %v12901_v7 = vld [vmem:[#allocation10 + $0x10b0] sm:$0xf0] }
 0x3c7   :  { %6548 = vmatpush.bf16.msrb.mxu3 %v13264_v25  ;;  %v15806_v25 = vld [vmem:[#allocation10 + $0x125c] sm:$0xf]  ;;  %v12868_v4 = vor.u32 %v15745_v24, %v12867_v23  ;;  %v13003_v23 = vld [vmem:[#allocation10 + $0x1158] sm:$0xf]  ;;  %v13437_v17 = vld [vmem:[#allocation10 + $0x14e8] sm:$0xf0] }
 0x3c8   :  { %v13136_v12 = vor.u32 %v15806_v25, %v13133_v29  ;;  %v15778_v24 = vld [vmem:[#allocation10 + $0x1174] sm:$0xf0]  ;;  %v13235_v25 = vld [vmem:[#allocation10 + $0x1340] sm:$0xf]  ;;  %v13440_v55 = vor.u32 %v15884_v21, %v13437_v17  ;;  %v13315_v21 = vld [vmem:[#allocation10 + $0x13d0] sm:$0xf] }
 0x3c9   :  { %5958 = vmatpush.bf16.msrb.mxu1 %v12952_v9  ;;  %5971 = vmatpush.bf16.msrb.mxu2 %v12956_v58  ;;  %v4460_v9 = vpop.f32.mrf.mxu2  ;;  %v12835_v58 = vld [vmem:[#allocation10 + $0x1010] sm:$0xf]  ;;  %v15839_v29 = vld [vmem:[#allocation10 + $0x135c] sm:$0xf0]  ;;  %v13004_v45 = vor.u32 %v15778_v24, %v13003_v23  ;;  %v12907_v8 = vld [vmem:[#allocation10 + $0x1098] sm:$0xf] }
 0x3ca   :  { %5997 = vmatpush.bf16.msra.mxu0 %v12964_v52  ;;  %v5447_v52 = vpop.f32.mrf.mxu3  ;;  %v12971_v9 = vld [vmem:[#allocation10 + $0x1118] sm:$0xf] }
 0x3cb   :  { %6549 = vmatpush.bf16.msrb.mxu3 %v13232_v44  ;;  %v13101_v44 = vld [vmem:[#allocation10 + $0x1238] sm:$0xf0]  ;;  %v15892_v52 = vld [vmem:[#allocation10 + $0x150c] sm:$0xf] }
 0x3cd   :  { %5959 = vmatpush.bf16.msrb.mxu1 %v12920_v11  ;;  %5972 = vmatpush.bf16.msrb.mxu2 %v12924_v0  ;;  %v12828_v11 = vor.u32 %v15736_v28, %v12827_v33  ;;  %v15855_v0 = vld [vmem:[#allocation10 + $0x13dc] sm:$0xf0]  ;;  %v15765_v33 = vld [vmem:[#allocation10 + $0x1114] sm:$0xf] }
 0x3ce   :  { %5998 = vmatpush.bf16.msra.mxu0 %v12932_v26  ;;  %v12836_v26 = vor.u32 %v15737_v61, %v12835_v58  ;;  %v13300_v16 = vor.u32 %v15855_v0, %v13299_v40  ;;  %v12965_v28 = vld [vmem:[#allocation10 + $0x1130] sm:$0xf0]  ;;  %v15770_v58 = vld [vmem:[#allocation10 + $0x1134] sm:$0xf0]  ;;  %v13203_v61 = vld [vmem:[#allocation10 + $0x1300] sm:$0xf] }
 0x3cf   :  { %6550 = vmatpush.bf16.msrb.mxu3 %v13200_v39  ;;  %v13104_v39 = vor.u32 %v15798_v51, %v13101_v44  ;;  %v15831_v51 = vld [vmem:[#allocation10 + $0x131c] sm:$0xf0]  ;;  %v13469_v44 = vld [vmem:[#allocation10 + $0x1528] sm:$0xf0]  ;;  %v12968_v59 = vor.u32 %v15765_v33, %v12965_v28  ;;  %v12972_v40 = vor.u32 %v15770_v58, %v12971_v9  ;;  %v15746_v33 = vld [vmem:[#allocation10 + $0x1074] sm:$0xf0] }
 0x3d0   :  { %v13204_v56 = vor.u32 %v15831_v51, %v13203_v61  ;;  %v13472_v37 = vor.u32 %v15892_v52, %v13469_v44  ;;  %v13107_v28 = vld [vmem:[#allocation10 + $0x1240] sm:$0xf]  ;;  %v13373_v9 = vld [vmem:[#allocation10 + $0x1468] sm:$0xf0]  ;;  %v12837_v51 = vld [vmem:[#allocation10 + $0x1030] sm:$0xf0] }
 0x3d1   :  { %5960 = vmatpush.bf16.msrb.mxu1 %v12888_v46  ;;  %5973 = vmatpush.bf16.msrb.mxu2 %v12892_v15  ;;  %v15908_v46 = vld [vmem:[#allocation10 + $0x158c] sm:$0xf]  ;;  %v12843_v52 = vld [vmem:[#allocation10 + $0x1018] sm:$0xf] }
 0x3d2   :  { %5999 = vmatpush.bf16.msra.mxu0 %v12900_v27  ;;  %v13533_v15 = vld [vmem:[#allocation10 + $0x15a8] sm:$0xf0]  ;;  %v15773_v27 = vld [vmem:[#allocation10 + $0x1154] sm:$0xf]  ;;  %v15738_v44 = vld [vmem:[#allocation10 + $0x1034] sm:$0xf0] }
 0x3d3   :  { %6551 = vmatpush.bf16.msrb.mxu3 %v13168_v19  ;;  %v12997_v19 = vld [vmem:[#allocation10 + $0x1170] sm:$0xf0]  ;;  %v13536_v3 = vor.u32 %v15908_v46, %v13533_v15  ;;  %v15754_v46 = vld [vmem:[#allocation10 + $0x10b4] sm:$0xf0]  ;;  %v13139_v15 = vld [vmem:[#allocation10 + $0x1280] sm:$0xf] }
 0x3d5   :  { %5961 = vmatpush.bf16.msrb.mxu1 %v12856_v10  ;;  %5974 = vmatpush.bf16.msrb.mxu2 %v12860_v20  ;;  %v13501_v10 = vld [vmem:[#allocation10 + $0x1568] sm:$0xf0]  ;;  %v13000_v20 = vor.u32 %v15773_v27, %v12997_v19  ;;  %v15815_v27 = vld [vmem:[#allocation10 + $0x129c] sm:$0xf0] }
 0x3d6   :  { %6000 = vmatpush.bf16.msra.mxu0 %v12868_v4  ;;  %v13236_v4 = vor.u32 %v15839_v29, %v13235_v25  ;;  %v15876_v19 = vld [vmem:[#allocation10 + $0x148c] sm:$0xf]  ;;  %v12908_v29 = vor.u32 %v15754_v46, %v12907_v8  ;;  %v15843_v46 = vld [vmem:[#allocation10 + $0x1384] sm:$0xf] }
 0x3d7   :  { %6552 = vmatpush.bf16.msrb.mxu3 %v13136_v12  ;;  %v13504_v12 = vor.u32 %v15900_v63, %v13501_v10  ;;  %v15741_v63 = vld [vmem:[#allocation10 + $0x1054] sm:$0xf] }
 0x3d8   :  { %v12869_v10 = vld [vmem:[#allocation10 + $0x1070] sm:$0xf0] }
 0x3d9   :  { %5962 = vmatpush.bf16.msrb.mxu1 %v12824_v41  ;;  %5975 = vmatpush.bf16.msrb.mxu2 %v12828_v11  ;;  %v4906_v35 = vpop.f32.mrf.mxu1  ;;  %v15757_v41 = vld [vmem:[#allocation10 + $0x10d4] sm:$0xf]  ;;  %v12872_v58 = vor.u32 %v15741_v63, %v12869_v10 }
 0x3da   :  { %6001 = vmatpush.bf16.msra.mxu0 %v12836_v26  ;;  %v17696_v1 = vadd.f32 %v4906_v35, %v17660_v57  ;;  %v12933_v11 = vld [vmem:[#allocation10 + $0x10f0] sm:$0xf0]  ;;  %v12939_v26 = vld [vmem:[#allocation10 + $0x10d8] sm:$0xf] }
 0x3db   :  { %6553 = vmatpush.bf16.msrb.mxu3 %v13104_v39  ;;  %v15762_v39 = vld [vmem:[#allocation10 + $0x10f4] sm:$0xf0]  ;;  %v12936_v57 = vor.u32 %v15757_v41, %v12933_v11  ;;  %v15799_v41 = vld [vmem:[#allocation10 + $0x121c] sm:$0xf0]  ;;  %v15860_v11 = vld [vmem:[#allocation10 + $0x140c] sm:$0xf] }
 0x3dc   :  { %5963 = vmatmul.bf16.vlgmr.msrb.gmra.mxu1 %v17637_v48  ;;  %5976 = vmatmul.bf16.vlgmr.msrb.gmra.mxu2 %v17637_v48  ;;  %v4945_v36 = vpop.f32.mrf.mxu0 }
 0x3dd   :  { %6007 = vmatpush.bf16.msra.mxu1 %v13064_v42  ;;  %6020 = vmatpush.bf16.msra.mxu2 %v13068_v31  ;;  %v17699_v0 = vadd.f32 %v4945_v36, %v17663_v13  ;;  %v13171_v42 = vld [vmem:[#allocation10 + $0x12c0] sm:$0xf] }
 0x3de   :  { %6455 = vmatpush.bf16.msrb.mxu0 %v13300_v16  ;;  %6554 = vmatmul.bf16.vlgmr.msrb.gmra.mxu3 %v17673_v5  ;;  %v15823_v31 = vld [vmem:[#allocation10 + $0x12dc] sm:$0xf0]  ;;  %v12940_v16 = vor.u32 %v15762_v39, %v12939_v26  ;;  %v15851_v26 = vld [vmem:[#allocation10 + $0x13c4] sm:$0xf] }
 0x3df   :  { %7007 = vmatpush.bf16.msra.mxu3 %v13568_v6  ;;  %6002 = vmatmul.bf16.vlgmr.msra.gmra.mxu0 %v17637_v48  ;;  %v15749_v6 = vld [vmem:[#allocation10 + $0x1094] sm:$0xf]  ;;  %v13172_v2 = vor.u32 %v15823_v31, %v13171_v42  ;;  %v4919_v13 = vpop.f32.mrf.mxu2  ;;  %v13301_v39 = vld [vmem:[#allocation10 + $0x13e0] sm:$0xf0]  ;;  %v13307_v42 = vld [vmem:[#allocation10 + $0x13c8] sm:$0xf] }
 0x3e0   :  { %v12904_v25 = vor.u32 %v15749_v6, %v12901_v7  ;;  %v15856_v31 = vld [vmem:[#allocation10 + $0x13e4] sm:$0xf0]  ;;  %v15918_v6 = vld [vmem:[#allocation10 + $0x15dc] sm:$0xf] }
 0x3e1   :  { %6008 = vmatpush.bf16.msra.mxu1 %v13032_v60  ;;  %6021 = vmatpush.bf16.msra.mxu2 %v13036_v14  ;;  %v17702_v60 = vadd.f32 %v4919_v13, %v17666_v54  ;;  %v5497_v14 = vpop.f32.mrf.mxu3  ;;  %v4908_v23 = vpop.f32.mrf.mxu1  ;;  %v13581_v7 = vld [vmem:[#allocation10 + $0x15f8] sm:$0xf0]  ;;  %v13304_v13 = vor.u32 %v15851_v26, %v13301_v39  ;;  %v13308_v8 = vor.u32 %v15856_v31, %v13307_v42 }
 0x3e2   :  { %6456 = vmatpush.bf16.msrb.mxu0 %v13268_v38  ;;  %v13405_v38 = vld [vmem:[#allocation10 + $0x14a8] sm:$0xf0]  ;;  %v13283_v23 = vld [vmem:[#allocation10 + $0x1390] sm:$0xf] }
 0x3e3   :  { %7008 = vmatpush.bf16.msra.mxu3 %v13536_v3  ;;  %v17705_v3 = vadd.f32 %v5497_v14, %v17669_v53  ;;  %v13408_v54 = vor.u32 %v15876_v19, %v13405_v38  ;;  %v15733_v53 = vld [vmem:[#allocation10 + $0x1014] sm:$0xf]  ;;  %v13275_v19 = vld [vmem:[#allocation10 + $0x1388] sm:$0xf] }
 0x3e4   :  { %v4947_v24 = vpop.f32.mrf.mxu0  ;;  %v12840_v17 = vor.u32 %v15733_v53, %v12837_v51  ;;  %v15848_v38 = vld [vmem:[#allocation10 + $0x13a4] sm:$0xf0]  ;;  %v15841_v53 = vld [vmem:[#allocation10 + $0x136c] sm:$0xf0] }
 0x3e5   :  { %6009 = vmatpush.bf16.msra.mxu1 %v13000_v20  ;;  %6022 = vmatpush.bf16.msra.mxu2 %v13004_v45  ;;  %v13140_v20 = vor.u32 %v15815_v27, %v13139_v15  ;;  %v12875_v45 = vld [vmem:[#allocation10 + $0x1058] sm:$0xf]  ;;  %v13269_v15 = vld [vmem:[#allocation10 + $0x13a0] sm:$0xf0]  ;;  %v13584_v27 = vor.u32 %v15918_v6, %v13581_v7  ;;  %v15849_v24 = vld [vmem:[#allocation10 + $0x13ac] sm:$0xf0]  ;;  %v13276_v10 = vor.u32 %v15848_v38, %v13275_v19 }
 0x3e6   :  { %6457 = vmatpush.bf16.msrb.mxu0 %v13236_v4  ;;  %v15807_v4 = vld [vmem:[#allocation10 + $0x125c] sm:$0xf0]  ;;  %v12876_v61 = vor.u32 %v15746_v33, %v12875_v45  ;;  %v13272_v63 = vor.u32 %v15843_v46, %v13269_v15  ;;  %v17709_v45 = vpack.c.b16 %v17418_v43, %v17418_v43  ;;  %v13284_v33 = vor.u32 %v15849_v24, %v13283_v23  ;;  %v13179_v7 = vld [vmem:[#allocation10 + $0x12c8] sm:$0xf]  ;;  %v13453_v46 = vld [vmem:[#allocation10 + $0x14f8] sm:$0xf0] }
 0x3e7   :  { %7009 = vmatpush.bf16.msra.mxu3 %v13504_v12  ;;  %v15868_v12 = vld [vmem:[#allocation10 + $0x144c] sm:$0xf]  ;;  %v13108_v35 = vor.u32 %v15807_v4, %v13107_v28  ;;  %v13243_v4 = vld [vmem:[#allocation10 + $0x1348] sm:$0xf] }
 0x3e8   :  { %v13376_v36 = vor.u32 %v15868_v12, %v13373_v9  ;;  %v15840_v12 = vld [vmem:[#allocation10 + $0x1364] sm:$0xf0]  ;;  %v13251_v9 = vld [vmem:[#allocation10 + $0x1350] sm:$0xf] }
 0x3e9   :  { %6010 = vmatpush.bf16.msra.mxu1 %v12968_v59  ;;  %6023 = vmatpush.bf16.msra.mxu2 %v12972_v40  ;;  %v4921_v59 = vpop.f32.mrf.mxu2  ;;  %v13075_v40 = vld [vmem:[#allocation10 + $0x1200] sm:$0xf]  ;;  %v13244_v51 = vor.u32 %v15840_v12, %v13243_v4  ;;  %v13147_v23 = vld [vmem:[#allocation10 + $0x1288] sm:$0xf] }
 0x3ea   :  { %6458 = vmatpush.bf16.msrb.mxu0 %v13204_v56  ;;  %v5499_v56 = vpop.f32.mrf.mxu3  ;;  %v13211_v59 = vld [vmem:[#allocation10 + $0x1308] sm:$0xf] }
 0x3eb   :  { %7010 = vmatpush.bf16.msra.mxu3 %v13472_v37  ;;  %v13341_v37 = vld [vmem:[#allocation10 + $0x1428] sm:$0xf0]  ;;  %v13485_v56 = vld [vmem:[#allocation10 + $0x1538] sm:$0xf0]  ;;  %v15816_v24 = vld [vmem:[#allocation10 + $0x12a4] sm:$0xf0] }
 0x3ed   :  { %6011 = vmatpush.bf16.msra.mxu1 %v12936_v57  ;;  %6024 = vmatpush.bf16.msra.mxu2 %v12940_v16  ;;  %v12844_v57 = vor.u32 %v15738_v44, %v12843_v52  ;;  %v15857_v16 = vld [vmem:[#allocation10 + $0x13ec] sm:$0xf0]  ;;  %v15827_v52 = vld [vmem:[#allocation10 + $0x1304] sm:$0xf] }
 0x3ee   :  { %6459 = vmatpush.bf16.msrb.mxu0 %v13172_v2  ;;  %v13076_v2 = vor.u32 %v15799_v41, %v13075_v40  ;;  %v13316_v14 = vor.u32 %v15857_v16, %v13315_v21  ;;  %v13205_v44 = vld [vmem:[#allocation10 + $0x1320] sm:$0xf0]  ;;  %v15832_v40 = vld [vmem:[#allocation10 + $0x1324] sm:$0xf0]  ;;  %v15833_v41 = vld [vmem:[#allocation10 + $0x132c] sm:$0xf0] }
 0x3ef   :  { %7011 = vmatpush.bf16.msra.mxu3 %v13440_v55  ;;  %v13344_v55 = vor.u32 %v15860_v11, %v13341_v37  ;;  %v15894_v11 = vld [vmem:[#allocation10 + $0x151c] sm:$0xf]  ;;  %v13208_v42 = vor.u32 %v15827_v52, %v13205_v44  ;;  %v13212_v31 = vor.u32 %v15832_v40, %v13211_v59  ;;  %v15819_v21 = vld [vmem:[#allocation10 + $0x12c4] sm:$0xf]  ;;  %v13123_v52 = vld [vmem:[#allocation10 + $0x1250] sm:$0xf] }
 0x3f0   :  { %v13488_v6 = vor.u32 %v15894_v11, %v13485_v56  ;;  %v15809_v44 = vld [vmem:[#allocation10 + $0x126c] sm:$0xf0]  ;;  %v15800_v11 = vld [vmem:[#allocation10 + $0x1224] sm:$0xf0] }
 0x3f1   :  { %6012 = vmatpush.bf16.msra.mxu1 %v12904_v25  ;;  %6025 = vmatpush.bf16.msra.mxu2 %v12908_v29  ;;  %v15910_v25 = vld [vmem:[#allocation10 + $0x159c] sm:$0xf]  ;;  %v13124_v56 = vor.u32 %v15809_v44, %v13123_v52  ;;  %v15842_v52 = vld [vmem:[#allocation10 + $0x1374] sm:$0xf0]  ;;  %v13491_v44 = vld [vmem:[#allocation10 + $0x1540] sm:$0xf] }
 0x3f2   :  { %6460 = vmatpush.bf16.msrb.mxu0 %v13140_v20  ;;  %v13549_v29 = vld [vmem:[#allocation10 + $0x15b8] sm:$0xf0]  ;;  %v15835_v20 = vld [vmem:[#allocation10 + $0x1344] sm:$0xf] }
 0x3f3   :  { %7012 = vmatpush.bf16.msra.mxu3 %v13408_v54  ;;  %v13237_v54 = vld [vmem:[#allocation10 + $0x1360] sm:$0xf0]  ;;  %v13552_v28 = vor.u32 %v15910_v25, %v13549_v29  ;;  %v13155_v25 = vld [vmem:[#allocation10 + $0x1290] sm:$0xf] }
 0x3f4   :  { %v13240_v43 = vor.u32 %v15835_v20, %v13237_v54  ;;  %v15878_v20 = vld [vmem:[#allocation10 + $0x149c] sm:$0xf] }
 0x3f5   :  { %6013 = vmatpush.bf16.msra.mxu1 %v12872_v58  ;;  %6026 = vmatpush.bf16.msra.mxu2 %v12876_v61  ;;  %v15902_v58 = vld [vmem:[#allocation10 + $0x155c] sm:$0xf] }
 0x3f6   :  { %6461 = vmatpush.bf16.msrb.mxu0 %v13108_v35  ;;  %v13517_v61 = vld [vmem:[#allocation10 + $0x1578] sm:$0xf0]  ;;  %v13252_v35 = vor.u32 %v15841_v53, %v13251_v9  ;;  %v13148_v9 = vor.u32 %v15816_v24, %v13147_v23  ;;  %v15803_v53 = vld [vmem:[#allocation10 + $0x1244] sm:$0xf]  ;;  %v15845_v23 = vld [vmem:[#allocation10 + $0x1394] sm:$0xf] }
 0x3f7   :  { %7013 = vmatpush.bf16.msra.mxu3 %v13376_v36  ;;  %v13520_v36 = vor.u32 %v15902_v58, %v13517_v61  ;;  %v13421_v54 = vld [vmem:[#allocation10 + $0x14b8] sm:$0xf0]  ;;  %v13109_v58 = vld [vmem:[#allocation10 + $0x1260] sm:$0xf0]  ;;  %v13285_v24 = vld [vmem:[#allocation10 + $0x13b0] sm:$0xf0] }
 0x3f8   :  { %v13112_v59 = vor.u32 %v15803_v53, %v13109_v58  ;;  %v15837_v58 = vld [vmem:[#allocation10 + $0x1354] sm:$0xf] }
 0x3f9   :  { %6014 = vmatpush.bf16.msra.mxu1 %v12840_v17  ;;  %6027 = vmatpush.bf16.msra.mxu2 %v12844_v57  ;;  %v4958_v37 = vpop.f32.mrf.mxu1  ;;  %v13173_v17 = vld [vmem:[#allocation10 + $0x12e0] sm:$0xf0] }
 0x3fa   :  { %6462 = vmatpush.bf16.msrb.mxu0 %v13076_v2  ;;  %v17716_v26 = vadd.f32 %v4958_v37, %v17680_v47  ;;  %v15824_v2 = vld [vmem:[#allocation10 + $0x12e4] sm:$0xf0]  ;;  %v13176_v47 = vor.u32 %v15819_v21, %v13173_v17  ;;  %v15862_v21 = vld [vmem:[#allocation10 + $0x141c] sm:$0xf] }
 0x3fb   :  { %7014 = vmatpush.bf16.msra.mxu3 %v13344_v55  ;;  %v13187_v55 = vld [vmem:[#allocation10 + $0x12d0] sm:$0xf]  ;;  %v13180_v15 = vor.u32 %v15824_v2, %v13179_v7  ;;  %v13317_v7 = vld [vmem:[#allocation10 + $0x13f0] sm:$0xf0]  ;;  %v13323_v2 = vld [vmem:[#allocation10 + $0x13d8] sm:$0xf] }
 0x3fc   :  { %6015 = vmatmul.bf16.vlgmr.msra.gmra.mxu1 %v17637_v48  ;;  %6028 = vmatmul.bf16.vlgmr.msra.gmra.mxu2 %v17637_v48  ;;  %v13219_v48 = vld [vmem:[#allocation10 + $0x1310] sm:$0xf]  ;;  %v5406_v39 = vpop.f32.mrf.mxu0 }
 0x3fd   :  { %6468 = vmatpush.bf16.msrb.mxu1 %v13304_v13  ;;  %6481 = vmatpush.bf16.msrb.mxu2 %v13308_v8  ;;  %v17719_v57 = vadd.f32 %v5406_v39, %v17683_v30  ;;  %v13220_v16 = vor.u32 %v15833_v41, %v13219_v48  ;;  %v15825_v13 = vld [vmem:[#allocation10 + $0x12ec] sm:$0xf0]  ;;  %v15886_v8 = vld [vmem:[#allocation10 + $0x14dc] sm:$0xf]  ;;  %v13077_v48 = vld [vmem:[#allocation10 + $0x1220] sm:$0xf0] }
 0x3fe   :  { %6507 = vmatpush.bf16.msra.mxu0 %v13316_v14  ;;  %7015 = vmatmul.bf16.vlgmr.msra.gmra.mxu3 %v17709_v45  ;;  %v15811_v14 = vld [vmem:[#allocation10 + $0x1284] sm:$0xf]  ;;  %v13188_v19 = vor.u32 %v15825_v13, %v13187_v55  ;;  %v13456_v38 = vor.u32 %v15886_v8, %v13453_v46  ;;  %v13083_v41 = vld [vmem:[#allocation10 + $0x1208] sm:$0xf]  ;;  %v15858_v55 = vld [vmem:[#allocation10 + $0x13f4] sm:$0xf0] }
 0x3ff   :  { %7059 = vmatpush.bf16.msrb.mxu3 %v13584_v27  ;;  %6463 = vmatmul.bf16.vlgmr.msrb.gmra.mxu0 %v17673_v5  ;;  %v13141_v27 = vld [vmem:[#allocation10 + $0x12a0] sm:$0xf0]  ;;  %v4971_v30 = vpop.f32.mrf.mxu2  ;;  %v13555_v13 = vld [vmem:[#allocation10 + $0x15c0] sm:$0xf]  ;;  %v13084_v46 = vor.u32 %v15800_v11, %v13083_v41  ;;  %v13221_v41 = vld [vmem:[#allocation10 + $0x1330] sm:$0xf0] }
 0x400   :  { %v17722_v29 = vadd.f32 %v4971_v30, %v17686_v22  ;;  %v13144_v12 = vor.u32 %v15811_v14, %v13141_v27  ;;  %v13424_v22 = vor.u32 %v15878_v20, %v13421_v54  ;;  %v13821_v14 = vld [vmem:[#allocation10 + $0x17e8] sm:$0xf0]  ;;  %v13324_v30 = vor.u32 %v15858_v55, %v13323_v2  ;;  %v15850_v20 = vld [vmem:[#allocation10 + $0x13b4] sm:$0xf0]  ;;  %v13523_v54 = vld [vmem:[#allocation10 + $0x1580] sm:$0xf] }
 0x401   :  { %6469 = vmatpush.bf16.msrb.mxu1 %v13272_v63  ;;  %6482 = vmatpush.bf16.msrb.mxu2 %v13276_v10  ;;  %v5990_v63 = vpop.f32.mrf.mxu3  ;;  %v15817_v10 = vld [vmem:[#allocation10 + $0x12ac] sm:$0xf0] }
 0x402   :  { %6508 = vmatpush.bf16.msra.mxu0 %v13284_v33  ;;  %v17725_v33 = vadd.f32 %v5990_v63, %v17689_v62  ;;  %v13156_v61 = vor.u32 %v15817_v10, %v13155_v25  ;;  %v15795_v62 = vld [vmem:[#allocation10 + $0x1204] sm:$0xf]  ;;  %v13291_v10 = vld [vmem:[#allocation10 + $0x1398] sm:$0xf] }
 0x403   :  { %7060 = vmatpush.bf16.msrb.mxu3 %v13552_v28  ;;  %v4960_v28 = vpop.f32.mrf.mxu1  ;;  %v13080_v8 = vor.u32 %v15795_v62, %v13077_v48  ;;  %v13292_v53 = vor.u32 %v15850_v20, %v13291_v10  ;;  %v13757_v62 = vld [vmem:[#allocation10 + $0x1768] sm:$0xf0]  ;;  %v15829_v48 = vld [vmem:[#allocation10 + $0x1314] sm:$0xf] }
 0x404   :  { %v5408_v4 = vpop.f32.mrf.mxu0  ;;  %v15911_v28 = vld [vmem:[#allocation10 + $0x159c] sm:$0xf0]  ;;  %v13224_v2 = vor.u32 %v15829_v48, %v13221_v41 }
 0x405   :  { %6470 = vmatpush.bf16.msrb.mxu1 %v13240_v43  ;;  %6483 = vmatpush.bf16.msrb.mxu2 %v13244_v51  ;;  %v13115_v43 = vld [vmem:[#allocation10 + $0x1248] sm:$0xf]  ;;  %v15972_v4 = vld [vmem:[#allocation10 + $0x178c] sm:$0xf]  ;;  %v13363_v48 = vld [vmem:[#allocation10 + $0x1440] sm:$0xf] }
 0x406   :  { %6509 = vmatpush.bf16.msra.mxu0 %v13252_v35  ;;  %v15808_v51 = vld [vmem:[#allocation10 + $0x1264] sm:$0xf0]  ;;  %v15870_v35 = vld [vmem:[#allocation10 + $0x145c] sm:$0xf]  ;;  %v15871_v41 = vld [vmem:[#allocation10 + $0x145c] sm:$0xf0] }
 0x407   :  { %7061 = vmatpush.bf16.msrb.mxu3 %v13520_v36  ;;  %v13389_v36 = vld [vmem:[#allocation10 + $0x1478] sm:$0xf0]  ;;  %v13116_v40 = vor.u32 %v15808_v51, %v13115_v43  ;;  %v4973_v39 = vpop.f32.mrf.mxu2  ;;  %v13259_v51 = vld [vmem:[#allocation10 + $0x1358] sm:$0xf] }
 0x408   :  { %v13392_v37 = vor.u32 %v15870_v35, %v13389_v36  ;;  %v15903_v35 = vld [vmem:[#allocation10 + $0x155c] sm:$0xf0]  ;;  %v15964_v36 = vld [vmem:[#allocation10 + $0x174c] sm:$0xf]  ;;  %v15834_v39 = vld [vmem:[#allocation10 + $0x1334] sm:$0xf0] }
 0x409   :  { %6471 = vmatpush.bf16.msrb.mxu1 %v13208_v42  ;;  %6484 = vmatpush.bf16.msrb.mxu2 %v13212_v31  ;;  %v13091_v42 = vld [vmem:[#allocation10 + $0x1210] sm:$0xf]  ;;  %v5992_v17 = vpop.f32.mrf.mxu3  ;;  %v13492_v11 = vor.u32 %v15903_v35, %v13491_v44  ;;  %v15805_v35 = vld [vmem:[#allocation10 + $0x1254] sm:$0xf] }
 0x40a   :  { %6510 = vmatpush.bf16.msra.mxu0 %v13220_v16  ;;  %v15801_v31 = vld [vmem:[#allocation10 + $0x122c] sm:$0xf0]  ;;  %v13357_v16 = vld [vmem:[#allocation10 + $0x1438] sm:$0xf0]  ;;  %v13725_v17 = vld [vmem:[#allocation10 + $0x1728] sm:$0xf0] }
 0x40b   :  { %7062 = vmatpush.bf16.msrb.mxu3 %v13488_v6  ;;  %v15853_v6 = vld [vmem:[#allocation10 + $0x13d4] sm:$0xf]  ;;  %v13092_v27 = vor.u32 %v15801_v31, %v13091_v42  ;;  %v13459_v42 = vld [vmem:[#allocation10 + $0x1500] sm:$0xf] }
 0x40c   :  { %v15895_v31 = vld [vmem:[#allocation10 + $0x151c] sm:$0xf0] }
 0x40d   :  { %6472 = vmatpush.bf16.msrb.mxu1 %v13176_v47  ;;  %6485 = vmatpush.bf16.msrb.mxu2 %v13180_v15  ;;  %v15919_v47 = vld [vmem:[#allocation10 + $0x15dc] sm:$0xf0]  ;;  %v15980_v15 = vld [vmem:[#allocation10 + $0x17cc] sm:$0xf] }
 0x40e   :  { %6511 = vmatpush.bf16.msra.mxu0 %v13188_v19  ;;  %v13360_v19 = vor.u32 %v15862_v21, %v13357_v16  ;;  %v13556_v25 = vor.u32 %v15919_v47, %v13555_v13  ;;  %v13824_v63 = vor.u32 %v15980_v15, %v13821_v14  ;;  %v15956_v21 = vld [vmem:[#allocation10 + $0x170c] sm:$0xf]  ;;  %v15821_v13 = vld [vmem:[#allocation10 + $0x12d4] sm:$0xf]  ;;  %v13460_v47 = vor.u32 %v15895_v31, %v13459_v42  ;;  %v13195_v14 = vld [vmem:[#allocation10 + $0x12d8] sm:$0xf] }
 0x40f   :  { %7063 = vmatpush.bf16.msrb.mxu3 %v13456_v38  ;;  %v13320_v38 = vor.u32 %v15853_v6, %v13317_v7  ;;  %v13728_v15 = vor.u32 %v15956_v21, %v13725_v17  ;;  %v13093_v42 = vld [vmem:[#allocation10 + $0x1230] sm:$0xf0]  ;;  %v13099_v31 = vld [vmem:[#allocation10 + $0x1218] sm:$0xf]  ;;  %v13364_v17 = vor.u32 %v15871_v41, %v13363_v48  ;;  %v13499_v48 = vld [vmem:[#allocation10 + $0x1548] sm:$0xf] }
 0x410   :  { %v15802_v21 = vld [vmem:[#allocation10 + $0x1234] sm:$0xf0]  ;;  %v15904_v41 = vld [vmem:[#allocation10 + $0x1564] sm:$0xf0] }
 0x411   :  { %6473 = vmatpush.bf16.msrb.mxu1 %v13144_v12  ;;  %6486 = vmatpush.bf16.msrb.mxu2 %v13148_v9  ;;  %v13789_v12 = vld [vmem:[#allocation10 + $0x17a8] sm:$0xf0]  ;;  %v13288_v9 = vor.u32 %v15845_v23, %v13285_v24 }
 0x412   :  { %6512 = vmatpush.bf16.msra.mxu0 %v13156_v61  ;;  %v13253_v61 = vld [vmem:[#allocation10 + $0x1370] sm:$0xf0]  ;;  %v13792_v43 = vor.u32 %v15972_v4, %v13789_v12  ;;  %v13693_v23 = vld [vmem:[#allocation10 + $0x16e8] sm:$0xf0]  ;;  %v13395_v4 = vld [vmem:[#allocation10 + $0x1480] sm:$0xf] }
 0x413   :  { %7064 = vmatpush.bf16.msrb.mxu3 %v13424_v22  ;;  %v13524_v22 = vor.u32 %v15911_v28, %v13523_v54  ;;  %v13163_v54 = vld [vmem:[#allocation10 + $0x1298] sm:$0xf] }
 0x414   :  { %v15818_v28 = vld [vmem:[#allocation10 + $0x12b4] sm:$0xf0] }
 0x415   :  { %6474 = vmatpush.bf16.msrb.mxu1 %v13112_v59  ;;  %6487 = vmatpush.bf16.msrb.mxu2 %v13116_v40  ;;  %v13256_v59 = vor.u32 %v15837_v58, %v13253_v61  ;;  %v13260_v40 = vor.u32 %v15842_v52, %v13259_v51  ;;  %v15940_v58 = vld [vmem:[#allocation10 + $0x168c] sm:$0xf]  ;;  %v13164_v44 = vor.u32 %v15818_v28, %v13163_v54  ;;  %v15907_v54 = vld [vmem:[#allocation10 + $0x1584] sm:$0xf] }
 0x416   :  { %6513 = vmatpush.bf16.msra.mxu0 %v13124_v56  ;;  %v13760_v56 = vor.u32 %v15964_v36, %v13757_v62  ;;  %v13661_v61 = vld [vmem:[#allocation10 + $0x16a8] sm:$0xf0]  ;;  %v13125_v36 = vld [vmem:[#allocation10 + $0x1270] sm:$0xf0]  ;;  %v13525_v28 = vld [vmem:[#allocation10 + $0x15a0] sm:$0xf0] }
 0x417   :  { %7065 = vmatpush.bf16.msrb.mxu3 %v13392_v37  ;;  %v13227_v37 = vld [vmem:[#allocation10 + $0x1318] sm:$0xf] }
 0x418   :  { %v13228_v55 = vor.u32 %v15834_v39, %v13227_v37  ;;  %v13128_v37 = vor.u32 %v15805_v35, %v13125_v36  ;;  %v15899_v36 = vld [vmem:[#allocation10 + $0x1544] sm:$0xf] }
 0x419   :  { %6475 = vmatpush.bf16.msrb.mxu1 %v13080_v8  ;;  %6488 = vmatpush.bf16.msrb.mxu2 %v13084_v46  ;;  %v5419_v16 = vpop.f32.mrf.mxu1  ;;  %v13189_v8 = vld [vmem:[#allocation10 + $0x12f0] sm:$0xf0] }
 0x41a   :  { %6514 = vmatpush.bf16.msra.mxu0 %v13092_v27  ;;  %v17732_v6 = vadd.f32 %v5419_v16, %v17696_v1  ;;  %v15826_v27 = vld [vmem:[#allocation10 + $0x12f4] sm:$0xf0]  ;;  %v13192_v1 = vor.u32 %v15821_v13, %v13189_v8  ;;  %v15924_v13 = vld [vmem:[#allocation10 + $0x160c] sm:$0xf] }
 0x41b   :  { %7066 = vmatpush.bf16.msrb.mxu3 %v13360_v19  ;;  %v13427_v19 = vld [vmem:[#allocation10 + $0x14c0] sm:$0xf]  ;;  %v13196_v24 = vor.u32 %v15826_v27, %v13195_v14  ;;  %v13557_v14 = vld [vmem:[#allocation10 + $0x15e0] sm:$0xf0]  ;;  %v13563_v27 = vld [vmem:[#allocation10 + $0x15c8] sm:$0xf] }
 0x41c   :  { %6476 = vmatmul.bf16.vlgmr.msrb.gmra.mxu1 %v17673_v5  ;;  %6489 = vmatmul.bf16.vlgmr.msrb.gmra.mxu2 %v17673_v5  ;;  %v5458_v7 = vpop.f32.mrf.mxu0 }
 0x41d   :  { %6520 = vmatpush.bf16.msra.mxu1 %v13320_v38  ;;  %6533 = vmatpush.bf16.msra.mxu2 %v13324_v30  ;;  %v17735_v46 = vadd.f32 %v5458_v7, %v17699_v0  ;;  %v15887_v38 = vld [vmem:[#allocation10 + $0x14dc] sm:$0xf0]  ;;  %v15948_v30 = vld [vmem:[#allocation10 + $0x16cc] sm:$0xf] }
 0x41e   :  { %6968 = vmatpush.bf16.msrb.mxu0 %v13556_v25  ;;  %7067 = vmatmul.bf16.vlgmr.msrb.gmra.mxu3 %v17709_v45  ;;  %v15813_v25 = vld [vmem:[#allocation10 + $0x1294] sm:$0xf]  ;;  %v13428_v10 = vor.u32 %v15887_v38, %v13427_v19  ;;  %v13696_v20 = vor.u32 %v15948_v30, %v13693_v23  ;;  %v15920_v19 = vld [vmem:[#allocation10 + $0x15e4] sm:$0xf0]  ;;  %v13571_v38 = vld [vmem:[#allocation10 + $0x15d0] sm:$0xf]  ;;  %v13100_v23 = vor.u32 %v15802_v21, %v13099_v31 }
 0x41f   :  { %7520 = vmatpush.bf16.msra.mxu3 %v13824_v63  ;;  %6515 = vmatmul.bf16.vlgmr.msra.gmra.mxu0 %v17673_v5  ;;  %v13157_v63 = vld [vmem:[#allocation10 + $0x12b0] sm:$0xf0]  ;;  %v5432_v0 = vpop.f32.mrf.mxu2  ;;  %v13461_v31 = vld [vmem:[#allocation10 + $0x1520] sm:$0xf0] }
 0x420   :  { %v17738_v12 = vadd.f32 %v5432_v0, %v17702_v60  ;;  %v13160_v52 = vor.u32 %v15813_v25, %v13157_v63  ;;  %v13664_v60 = vor.u32 %v15940_v58, %v13661_v61  ;;  %v13837_v25 = vld [vmem:[#allocation10 + $0x17f8] sm:$0xf0]  ;;  %v13564_v0 = vor.u32 %v15920_v19, %v13563_v27  ;;  %v15912_v58 = vld [vmem:[#allocation10 + $0x15a4] sm:$0xf0]  ;;  %v13539_v61 = vld [vmem:[#allocation10 + $0x1590] sm:$0xf] }
 0x421   :  { %6521 = vmatpush.bf16.msra.mxu1 %v13288_v9  ;;  %6534 = vmatpush.bf16.msra.mxu2 %v13292_v53  ;;  %v6042_v9 = vpop.f32.mrf.mxu3  ;;  %v15879_v53 = vld [vmem:[#allocation10 + $0x149c] sm:$0xf0]  ;;  %v15883_v19 = vld [vmem:[#allocation10 + $0x14c4] sm:$0xf] }
 0x422   :  { %6969 = vmatpush.bf16.msrb.mxu0 %v13524_v22  ;;  %v17741_v22 = vadd.f32 %v6042_v9, %v17705_v3  ;;  %v13396_v62 = vor.u32 %v15879_v53, %v13395_v4  ;;  %v15797_v3 = vld [vmem:[#allocation10 + $0x1214] sm:$0xf]  ;;  %v13531_v53 = vld [vmem:[#allocation10 + $0x1588] sm:$0xf] }
 0x423   :  { %7521 = vmatpush.bf16.msra.mxu3 %v13792_v43  ;;  %v5421_v43 = vpop.f32.mrf.mxu1  ;;  %v13096_v30 = vor.u32 %v15797_v3, %v13093_v42  ;;  %v13532_v35 = vor.u32 %v15912_v58, %v13531_v53  ;;  %v15966_v3 = vld [vmem:[#allocation10 + $0x175c] sm:$0xf]  ;;  %v15891_v42 = vld [vmem:[#allocation10 + $0x1504] sm:$0xf]  ;;  %v13403_v58 = vld [vmem:[#allocation10 + $0x1488] sm:$0xf] }
 0x424   :  { %v5460_v51 = vpop.f32.mrf.mxu0  ;;  %v15913_v43 = vld [vmem:[#allocation10 + $0x15ac] sm:$0xf0] }
 0x425   :  { %6522 = vmatpush.bf16.msra.mxu1 %v13256_v59  ;;  %6535 = vmatpush.bf16.msra.mxu2 %v13260_v40  ;;  %v13131_v59 = vld [vmem:[#allocation10 + $0x1258] sm:$0xf]  ;;  %v15974_v51 = vld [vmem:[#allocation10 + $0x179c] sm:$0xf] }
 0x426   :  { %6970 = vmatpush.bf16.msrb.mxu0 %v13492_v11  ;;  %v15810_v40 = vld [vmem:[#allocation10 + $0x1274] sm:$0xf0]  ;;  %v15932_v11 = vld [vmem:[#allocation10 + $0x164c] sm:$0xf] }
 0x427   :  { %7522 = vmatpush.bf16.msra.mxu3 %v13760_v56  ;;  %v13629_v56 = vld [vmem:[#allocation10 + $0x1668] sm:$0xf0]  ;;  %v13132_v39 = vor.u32 %v15810_v40, %v13131_v59  ;;  %v5434_v7 = vpop.f32.mrf.mxu2  ;;  %v13540_v59 = vor.u32 %v15913_v43, %v13539_v61  ;;  %v15880_v61 = vld [vmem:[#allocation10 + $0x14a4] sm:$0xf0]  ;;  %v13411_v43 = vld [vmem:[#allocation10 + $0x1490] sm:$0xf] }
 0x428   :  { %v13632_v16 = vor.u32 %v15932_v11, %v13629_v56  ;;  %v13507_v11 = vld [vmem:[#allocation10 + $0x1550] sm:$0xf]  ;;  %v15896_v7 = vld [vmem:[#allocation10 + $0x1524] sm:$0xf0] }
 0x429   :  { %6523 = vmatpush.bf16.msra.mxu1 %v13224_v2  ;;  %6536 = vmatpush.bf16.msra.mxu2 %v13228_v55  ;;  %v13331_v2 = vld [vmem:[#allocation10 + $0x1400] sm:$0xf]  ;;  %v6044_v8 = vpop.f32.mrf.mxu3  ;;  %v15905_v56 = vld [vmem:[#allocation10 + $0x156c] sm:$0xf0] }
 0x42a   :  { %6971 = vmatpush.bf16.msrb.mxu0 %v13460_v47  ;;  %v15863_v55 = vld [vmem:[#allocation10 + $0x141c] sm:$0xf0]  ;;  %v13597_v47 = vld [vmem:[#allocation10 + $0x1628] sm:$0xf0]  ;;  %v13508_v21 = vor.u32 %v15905_v56, %v13507_v11  ;;  %v15867_v11 = vld [vmem:[#allocation10 + $0x1444] sm:$0xf] }
 0x42b   :  { %7523 = vmatpush.bf16.msra.mxu3 %v13728_v15  ;;  %v15915_v15 = vld [vmem:[#allocation10 + $0x15c4] sm:$0xf]  ;;  %v13332_v63 = vor.u32 %v15863_v55, %v13331_v2  ;;  %v15897_v2 = vld [vmem:[#allocation10 + $0x152c] sm:$0xf0]  ;;  %v15958_v55 = vld [vmem:[#allocation10 + $0x171c] sm:$0xf] }
 0x42c   :  { %v13365_v56 = vld [vmem:[#allocation10 + $0x1460] sm:$0xf0] }
 0x42d   :  { %6524 = vmatpush.bf16.msra.mxu1 %v13192_v1  ;;  %6537 = vmatpush.bf16.msra.mxu2 %v13196_v24  ;;  %v15921_v1 = vld [vmem:[#allocation10 + $0x15ec] sm:$0xf0]  ;;  %v15982_v24 = vld [vmem:[#allocation10 + $0x17dc] sm:$0xf] }
 0x42e   :  { %6972 = vmatpush.bf16.msrb.mxu0 %v13428_v10  ;;  %v13600_v10 = vor.u32 %v15924_v13, %v13597_v47  ;;  %v13572_v4 = vor.u32 %v15921_v1, %v13571_v38  ;;  %v13840_v9 = vor.u32 %v15982_v24, %v13837_v25  ;;  %v13741_v13 = vld [vmem:[#allocation10 + $0x1738] sm:$0xf0]  ;;  %v13429_v38 = vld [vmem:[#allocation10 + $0x14e0] sm:$0xf0]  ;;  %v13435_v24 = vld [vmem:[#allocation10 + $0x14c8] sm:$0xf] }
 0x42f   :  { %7524 = vmatpush.bf16.msra.mxu3 %v13696_v20  ;;  %v13560_v20 = vor.u32 %v15915_v15, %v13557_v14  ;;  %v13464_v14 = vor.u32 %v15891_v42, %v13461_v31  ;;  %v13744_v1 = vor.u32 %v15958_v55, %v13741_v13  ;;  %v15888_v25 = vld [vmem:[#allocation10 + $0x14e4] sm:$0xf0]  ;;  %v15873_v42 = vld [vmem:[#allocation10 + $0x146c] sm:$0xf0]  ;;  %v15934_v31 = vld [vmem:[#allocation10 + $0x165c] sm:$0xf] }
 0x431   :  { %6525 = vmatpush.bf16.msra.mxu1 %v13160_v52  ;;  %6538 = vmatpush.bf16.msra.mxu2 %v13164_v44  ;;  %v13805_v52 = vld [vmem:[#allocation10 + $0x17b8] sm:$0xf0]  ;;  %v13528_v44 = vor.u32 %v15907_v54, %v13525_v28  ;;  %v13436_v54 = vor.u32 %v15888_v25, %v13435_v24  ;;  %v15875_v28 = vld [vmem:[#allocation10 + $0x1484] sm:$0xf]  ;;  %v13579_v24 = vld [vmem:[#allocation10 + $0x15d8] sm:$0xf] }
 0x432   :  { %6973 = vmatpush.bf16.msrb.mxu0 %v13396_v62  ;;  %v13493_v62 = vld [vmem:[#allocation10 + $0x1560] sm:$0xf0]  ;;  %v13808_v40 = vor.u32 %v15974_v51, %v13805_v52  ;;  %v15922_v25 = vld [vmem:[#allocation10 + $0x15f4] sm:$0xf0] }
 0x433   :  { %7525 = vmatpush.bf16.msra.mxu3 %v13664_v60  ;;  %v17745_v60 = vpack.c.b16 %v17422_v49, %v17422_v49  ;;  %v13496_v49 = vor.u32 %v15899_v36, %v13493_v62  ;;  %v13677_v36 = vld [vmem:[#allocation10 + $0x16b8] sm:$0xf0] }
 0x435   :  { %6526 = vmatpush.bf16.msra.mxu1 %v13128_v37  ;;  %6539 = vmatpush.bf16.msra.mxu2 %v13132_v39  ;;  %v13773_v37 = vld [vmem:[#allocation10 + $0x1778] sm:$0xf0]  ;;  %v13500_v39 = vor.u32 %v15904_v41, %v13499_v48  ;;  %v13404_v41 = vor.u32 %v15880_v61, %v13403_v58  ;;  %v13541_v58 = vld [vmem:[#allocation10 + $0x15b0] sm:$0xf0] }
 0x436   :  { %6974 = vmatpush.bf16.msrb.mxu0 %v13364_v17  ;;  %v13776_v17 = vor.u32 %v15966_v3, %v13773_v37  ;;  %v13371_v37 = vld [vmem:[#allocation10 + $0x1448] sm:$0xf] }
 0x437   :  { %7526 = vmatpush.bf16.msra.mxu3 %v13632_v16  ;;  %v13467_v16 = vld [vmem:[#allocation10 + $0x1508] sm:$0xf] }
 0x438   :  { %v13468_v27 = vor.u32 %v15896_v7, %v13467_v16  ;;  %v13333_v7 = vld [vmem:[#allocation10 + $0x1420] sm:$0xf0] }
 0x439   :  { %6527 = vmatpush.bf16.msra.mxu1 %v13096_v30  ;;  %6540 = vmatpush.bf16.msra.mxu2 %v13100_v23  ;;  %v5471_v8 = vpop.f32.mrf.mxu1 }
 0x43a   :  { %6975 = vmatpush.bf16.msrb.mxu0 %v13332_v63  ;;  %v17752_v47 = vadd.f32 %v5471_v8, %v17716_v26  ;;  %v13443_v63 = vld [vmem:[#allocation10 + $0x14d0] sm:$0xf]  ;;  %v13432_v26 = vor.u32 %v15883_v19, %v13429_v38  ;;  %v13613_v38 = vld [vmem:[#allocation10 + $0x1638] sm:$0xf0] }
 0x43b   :  { %7527 = vmatpush.bf16.msra.mxu3 %v13600_v10  ;;  %v15889_v10 = vld [vmem:[#allocation10 + $0x14ec] sm:$0xf0] }
 0x43c   :  { %6528 = vmatmul.bf16.vlgmr.msra.gmra.mxu1 %v17673_v5  ;;  %6541 = vmatmul.bf16.vlgmr.msra.gmra.mxu2 %v17673_v5  ;;  %v13475_v5 = vld [vmem:[#allocation10 + $0x1510] sm:$0xf]  ;;  %v5951_v15 = vpop.f32.mrf.mxu0 }
 0x43d   :  { %6981 = vmatpush.bf16.msrb.mxu1 %v13560_v20  ;;  %6994 = vmatpush.bf16.msrb.mxu2 %v13564_v0  ;;  %v17755_v30 = vadd.f32 %v5951_v15, %v17719_v57  ;;  %v13476_v23 = vor.u32 %v15897_v2, %v13475_v5  ;;  %v15950_v20 = vld [vmem:[#allocation10 + $0x16dc] sm:$0xf]  ;;  %v13339_v5 = vld [vmem:[#allocation10 + $0x1408] sm:$0xf]  ;;  %v13347_v15 = vld [vmem:[#allocation10 + $0x1410] sm:$0xf] }
 0x43e   :  { %7020 = vmatpush.bf16.msra.mxu0 %v13572_v4  ;;  %7528 = vmatmul.bf16.vlgmr.msra.gmra.mxu3 %v17745_v60  ;;  %v13709_v0 = vld [vmem:[#allocation10 + $0x16f8] sm:$0xf0]  ;;  %v13397_v4 = vld [vmem:[#allocation10 + $0x14a0] sm:$0xf0]  ;;  %v15864_v2 = vld [vmem:[#allocation10 + $0x1424] sm:$0xf0] }
 0x43f   :  { %7572 = vmatpush.bf16.msrb.mxu3 %v13840_v9  ;;  %6976 = vmatmul.bf16.vlgmr.msrb.gmra.mxu0 %v17709_v45  ;;  %v13444_v9 = vor.u32 %v15889_v10, %v13443_v63  ;;  %v13712_v53 = vor.u32 %v15950_v20, %v13709_v0  ;;  %v5484_v57 = vpop.f32.mrf.mxu2  ;;  %v13400_v48 = vor.u32 %v15875_v28, %v13397_v4  ;;  %v13811_v63 = vld [vmem:[#allocation10 + $0x17c0] sm:$0xf] }
 0x440   :  { %v17758_v51 = vadd.f32 %v5484_v57, %v17722_v29  ;;  %v13340_v20 = vor.u32 %v15864_v2, %v13339_v5  ;;  %v15983_v0 = vld [vmem:[#allocation10 + $0x17dc] sm:$0xf0]  ;;  %v15909_v57 = vld [vmem:[#allocation10 + $0x1594] sm:$0xf] }
 0x441   :  { %6982 = vmatpush.bf16.msrb.mxu1 %v13528_v44  ;;  %6995 = vmatpush.bf16.msrb.mxu2 %v13532_v35  ;;  %v6503_v52 = vpop.f32.mrf.mxu3  ;;  %v15881_v44 = vld [vmem:[#allocation10 + $0x14ac] sm:$0xf0]  ;;  %v15942_v35 = vld [vmem:[#allocation10 + $0x169c] sm:$0xf]  ;;  %v13812_v61 = vor.u32 %v15983_v0, %v13811_v63  ;;  %v13445_v63 = vld [vmem:[#allocation10 + $0x14f0] sm:$0xf0] }
 0x442   :  { %7021 = vmatpush.bf16.msra.mxu0 %v13540_v59  ;;  %v17761_v62 = vadd.f32 %v6503_v52, %v17725_v33  ;;  %v5473_v59 = vpop.f32.mrf.mxu1  ;;  %v13412_v3 = vor.u32 %v15881_v44, %v13411_v43  ;;  %v13680_v29 = vor.u32 %v15942_v35, %v13677_v36  ;;  %v15859_v33 = vld [vmem:[#allocation10 + $0x1404] sm:$0xf]  ;;  %v13547_v52 = vld [vmem:[#allocation10 + $0x1598] sm:$0xf]  ;;  %v13779_v35 = vld [vmem:[#allocation10 + $0x1780] sm:$0xf] }
 0x443   :  { %7573 = vmatpush.bf16.msrb.mxu3 %v13808_v40  ;;  %v13336_v10 = vor.u32 %v15859_v33, %v13333_v7  ;;  %v15914_v44 = vld [vmem:[#allocation10 + $0x15b4] sm:$0xf0]  ;;  %v15975_v36 = vld [vmem:[#allocation10 + $0x179c] sm:$0xf0]  ;;  %v16036_v59 = vld [vmem:[#allocation10 + $0x198c] sm:$0xf] }
 0x444   :  { %v5953_v40 = vpop.f32.mrf.mxu0  ;;  %v13477_v7 = vld [vmem:[#allocation10 + $0x1530] sm:$0xf0] }
 0x445   :  { %6983 = vmatpush.bf16.msrb.mxu1 %v13496_v49  ;;  %6996 = vmatpush.bf16.msrb.mxu2 %v13500_v39  ;;  %v15872_v49 = vld [vmem:[#allocation10 + $0x1464] sm:$0xf0]  ;;  %v13379_v39 = vld [vmem:[#allocation10 + $0x1450] sm:$0xf]  ;;  %v14045_v40 = vld [vmem:[#allocation10 + $0x19a8] sm:$0xf0] }
 0x446   :  { %7022 = vmatpush.bf16.msra.mxu0 %v13508_v21  ;;  %v13645_v21 = vld [vmem:[#allocation10 + $0x1678] sm:$0xf0]  ;;  %v13372_v16 = vor.u32 %v15872_v49, %v13371_v37  ;;  %v13380_v55 = vor.u32 %v15873_v42, %v13379_v39  ;;  %v13515_v37 = vld [vmem:[#allocation10 + $0x1558] sm:$0xf]  ;;  %v13747_v39 = vld [vmem:[#allocation10 + $0x1740] sm:$0xf] }
 0x447   :  { %7574 = vmatpush.bf16.msrb.mxu3 %v13776_v17  ;;  %v13368_v17 = vor.u32 %v15867_v11, %v13365_v56  ;;  %v13648_v13 = vor.u32 %v15934_v31, %v13645_v21  ;;  %v5486_v8 = vpop.f32.mrf.mxu2  ;;  %v15901_v11 = vld [vmem:[#allocation10 + $0x1554] sm:$0xf]  ;;  %v15906_v49 = vld [vmem:[#allocation10 + $0x1574] sm:$0xf0]  ;;  %v15967_v42 = vld [vmem:[#allocation10 + $0x175c] sm:$0xf0] }
 0x448   :  { %v13509_v56 = vld [vmem:[#allocation10 + $0x1570] sm:$0xf0]  ;;  %v16028_v31 = vld [vmem:[#allocation10 + $0x194c] sm:$0xf]  ;;  %v13748_v5 = vor.u32 %v15967_v42, %v13747_v39  ;;  %v13715_v8 = vld [vmem:[#allocation10 + $0x1700] sm:$0xf] }
 0x449   :  { %6984 = vmatpush.bf16.msrb.mxu1 %v13464_v14  ;;  %6997 = vmatpush.bf16.msrb.mxu2 %v13468_v27  ;;  %v15865_v14 = vld [vmem:[#allocation10 + $0x142c] sm:$0xf0]  ;;  %v15926_v27 = vld [vmem:[#allocation10 + $0x161c] sm:$0xf]  ;;  %v6505_v19 = vpop.f32.mrf.mxu3  ;;  %v14013_v21 = vld [vmem:[#allocation10 + $0x1968] sm:$0xf0]  ;;  %v13512_v33 = vor.u32 %v15901_v11, %v13509_v56 }
 0x44a   :  { %7023 = vmatpush.bf16.msra.mxu0 %v13476_v23  ;;  %v15917_v23 = vld [vmem:[#allocation10 + $0x15d4] sm:$0xf]  ;;  %v13348_v28 = vor.u32 %v15865_v14, %v13347_v15  ;;  %v13616_v4 = vor.u32 %v15926_v27, %v13613_v38  ;;  %v14016_v2 = vor.u32 %v16028_v31, %v14013_v21  ;;  %v15959_v15 = vld [vmem:[#allocation10 + $0x171c] sm:$0xf0]  ;;  %v16020_v14 = vld [vmem:[#allocation10 + $0x190c] sm:$0xf] }
 0x44b   :  { %7575 = vmatpush.bf16.msrb.mxu3 %v13744_v1  ;;  %v13573_v1 = vld [vmem:[#allocation10 + $0x15f0] sm:$0xf0]  ;;  %v13981_v27 = vld [vmem:[#allocation10 + $0x1928] sm:$0xf0]  ;;  %v13387_v21 = vld [vmem:[#allocation10 + $0x1458] sm:$0xf] }
 0x44c   :  { %v13984_v0 = vor.u32 %v16020_v14, %v13981_v27  ;;  %v13917_v11 = vld [vmem:[#allocation10 + $0x18a8] sm:$0xf0]  ;;  %v15869_v39 = vld [vmem:[#allocation10 + $0x1454] sm:$0xf] }
 0x44d   :  { %6985 = vmatpush.bf16.msrb.mxu1 %v13432_v26  ;;  %6998 = vmatpush.bf16.msrb.mxu2 %v13436_v54  ;;  %v16044_v26 = vld [vmem:[#allocation10 + $0x19cc] sm:$0xf]  ;;  %v13381_v42 = vld [vmem:[#allocation10 + $0x1470] sm:$0xf0] }
 0x44e   :  { %7024 = vmatpush.bf16.msra.mxu0 %v13444_v9  ;;  %v14077_v54 = vld [vmem:[#allocation10 + $0x19e8] sm:$0xf0]  ;;  %v13576_v9 = vor.u32 %v15917_v23, %v13573_v1 }
 0x44f   :  { %7576 = vmatpush.bf16.msrb.mxu3 %v13712_v53  ;;  %v13580_v53 = vor.u32 %v15922_v25, %v13579_v24  ;;  %v14080_v43 = vor.u32 %v16044_v26, %v14077_v54  ;;  %v15885_v25 = vld [vmem:[#allocation10 + $0x14d4] sm:$0xf]  ;;  %v13451_v26 = vld [vmem:[#allocation10 + $0x14d8] sm:$0xf] }
 0x450   :  { %v15890_v54 = vld [vmem:[#allocation10 + $0x14f4] sm:$0xf0] }
 0x451   :  { %6986 = vmatpush.bf16.msrb.mxu1 %v13400_v48  ;;  %6999 = vmatpush.bf16.msrb.mxu2 %v13404_v41  ;;  %v13544_v48 = vor.u32 %v15909_v57, %v13541_v58  ;;  %v13548_v41 = vor.u32 %v15914_v44, %v13547_v52  ;;  %v13452_v57 = vor.u32 %v15890_v54, %v13451_v26  ;;  %v15877_v58 = vld [vmem:[#allocation10 + $0x1494] sm:$0xf]  ;;  %v13419_v44 = vld [vmem:[#allocation10 + $0x1498] sm:$0xf]  ;;  %v13819_v26 = vld [vmem:[#allocation10 + $0x17c8] sm:$0xf] }
 0x452   :  { %7025 = vmatpush.bf16.msra.mxu0 %v13412_v3  ;;  %v13780_v3 = vor.u32 %v15975_v36, %v13779_v35  ;;  %v15882_v35 = vld [vmem:[#allocation10 + $0x14b4] sm:$0xf0]  ;;  %v13651_v36 = vld [vmem:[#allocation10 + $0x1680] sm:$0xf]  ;;  %v15984_v54 = vld [vmem:[#allocation10 + $0x17e4] sm:$0xf0] }
 0x453   :  { %7577 = vmatpush.bf16.msrb.mxu3 %v13680_v29  ;;  %v14048_v29 = vor.u32 %v16036_v59, %v14045_v40 }
 0x455   :  { %6987 = vmatpush.bf16.msrb.mxu1 %v13368_v17  ;;  %7000 = vmatpush.bf16.msrb.mxu2 %v13372_v16  ;;  %v13516_v17 = vor.u32 %v15906_v49, %v13515_v37  ;;  %v15893_v16 = vld [vmem:[#allocation10 + $0x1514] sm:$0xf]  ;;  %v13420_v49 = vor.u32 %v15882_v35, %v13419_v44  ;;  %v13781_v44 = vld [vmem:[#allocation10 + $0x17a0] sm:$0xf0] }
 0x456   :  { %7026 = vmatpush.bf16.msra.mxu0 %v13380_v55  ;;  %v13483_v55 = vld [vmem:[#allocation10 + $0x1518] sm:$0xf]  ;;  %v13480_v1 = vor.u32 %v15893_v16, %v13477_v7  ;;  %v15935_v16 = vld [vmem:[#allocation10 + $0x165c] sm:$0xf0]  ;;  %v15996_v7 = vld [vmem:[#allocation10 + $0x184c] sm:$0xf] }
 0x457   :  { %7578 = vmatpush.bf16.msrb.mxu3 %v13648_v13  ;;  %v15898_v13 = vld [vmem:[#allocation10 + $0x1534] sm:$0xf0] }
 0x458   :  { %v13484_v24 = vor.u32 %v15898_v13, %v13483_v55  ;;  %v13349_v13 = vld [vmem:[#allocation10 + $0x1430] sm:$0xf0] }
 0x459   :  { %6988 = vmatpush.bf16.msrb.mxu1 %v13336_v10  ;;  %7001 = vmatpush.bf16.msrb.mxu2 %v13340_v20  ;;  %v5964_v19 = vpop.f32.mrf.mxu1  ;;  %v13716_v20 = vor.u32 %v15959_v15, %v13715_v8  ;;  %v13355_v8 = vld [vmem:[#allocation10 + $0x1418] sm:$0xf] }
 0x45a   :  { %7027 = vmatpush.bf16.msra.mxu0 %v13348_v28  ;;  %v17768_v38 = vadd.f32 %v5964_v19, %v17732_v6  ;;  %v13683_v28 = vld [vmem:[#allocation10 + $0x16c0] sm:$0xf]  ;;  %v13448_v6 = vor.u32 %v15885_v25, %v13445_v63  ;;  %v15866_v15 = vld [vmem:[#allocation10 + $0x1434] sm:$0xf0]  ;;  %v13853_v63 = vld [vmem:[#allocation10 + $0x1828] sm:$0xf0] }
 0x45b   :  { %7579 = vmatpush.bf16.msrb.mxu3 %v13616_v4  ;;  %v15951_v4 = vld [vmem:[#allocation10 + $0x16dc] sm:$0xf0] }
 0x45c   :  { %6989 = vmatmul.bf16.vlgmr.msrb.gmra.mxu1 %v17709_v45  ;;  %7002 = vmatmul.bf16.vlgmr.msrb.gmra.mxu2 %v17709_v45  ;;  %v6003_v23 = vpop.f32.mrf.mxu0 }
 0x45d   :  { %7033 = vmatpush.bf16.msra.mxu1 %v13576_v9  ;;  %7046 = vmatpush.bf16.msra.mxu2 %v13580_v53  ;;  %v17771_v10 = vadd.f32 %v6003_v23, %v17735_v46  ;;  %v16012_v9 = vld [vmem:[#allocation10 + $0x18cc] sm:$0xf]  ;;  %v13587_v23 = vld [vmem:[#allocation10 + $0x1600] sm:$0xf] }
 0x45e   :  { %7481 = vmatpush.bf16.msrb.mxu0 %v13812_v61  ;;  %7580 = vmatmul.bf16.vlgmr.msrb.gmra.mxu3 %v17745_v60  ;;  %v13949_v53 = vld [vmem:[#allocation10 + $0x18e8] sm:$0xf0]  ;;  %v13413_v61 = vld [vmem:[#allocation10 + $0x14b0] sm:$0xf0] }
 0x45f   :  { %8033 = vmatpush.bf16.msra.mxu3 %v14080_v43  ;;  %7028 = vmatmul.bf16.vlgmr.msra.gmra.mxu0 %v17709_v45  ;;  %v13684_v43 = vor.u32 %v15951_v4, %v13683_v28  ;;  %v13952_v52 = vor.u32 %v16012_v9, %v13949_v53  ;;  %v5977_v46 = vpop.f32.mrf.mxu2  ;;  %v13416_v37 = vor.u32 %v15877_v58, %v13413_v61  ;;  %v13827_v28 = vld [vmem:[#allocation10 + $0x17d0] sm:$0xf] }
 0x460   :  { %v17774_v59 = vadd.f32 %v5977_v46, %v17738_v12  ;;  %v13356_v9 = vor.u32 %v15866_v15, %v13355_v8  ;;  %v15985_v53 = vld [vmem:[#allocation10 + $0x17ec] sm:$0xf0]  ;;  %v15971_v46 = vld [vmem:[#allocation10 + $0x1784] sm:$0xf] }
 0x461   :  { %7034 = vmatpush.bf16.msra.mxu1 %v13544_v48  ;;  %7047 = vmatpush.bf16.msra.mxu2 %v13548_v41  ;;  %v6555_v40 = vpop.f32.mrf.mxu3  ;;  %v15943_v48 = vld [vmem:[#allocation10 + $0x169c] sm:$0xf0]  ;;  %v16004_v41 = vld [vmem:[#allocation10 + $0x188c] sm:$0xf]  ;;  %v13828_v35 = vor.u32 %v15985_v53, %v13827_v28  ;;  %v13691_v53 = vld [vmem:[#allocation10 + $0x16c8] sm:$0xf] }
 0x462   :  { %7482 = vmatpush.bf16.msrb.mxu0 %v13780_v3  ;;  %v17777_v56 = vadd.f32 %v6555_v40, %v17741_v22  ;;  %v5966_v3 = vpop.f32.mrf.mxu1  ;;  %v13652_v31 = vor.u32 %v15943_v48, %v13651_v36  ;;  %v13920_v12 = vor.u32 %v16004_v41, %v13917_v11  ;;  %v15861_v22 = vld [vmem:[#allocation10 + $0x1414] sm:$0xf]  ;;  %v13787_v40 = vld [vmem:[#allocation10 + $0x1788] sm:$0xf]  ;;  %v13795_v41 = vld [vmem:[#allocation10 + $0x1790] sm:$0xf] }
 0x463   :  { %8034 = vmatpush.bf16.msra.mxu3 %v14048_v29  ;;  %v13352_v4 = vor.u32 %v15861_v22, %v13349_v13  ;;  %v15976_v48 = vld [vmem:[#allocation10 + $0x17a4] sm:$0xf0]  ;;  %v15977_v11 = vld [vmem:[#allocation10 + $0x17ac] sm:$0xf0]  ;;  %v16038_v3 = vld [vmem:[#allocation10 + $0x199c] sm:$0xf] }
 0x464   :  { %v6005_v29 = vpop.f32.mrf.mxu0  ;;  %v14029_v22 = vld [vmem:[#allocation10 + $0x1978] sm:$0xf0]  ;;  %v13717_v13 = vld [vmem:[#allocation10 + $0x1720] sm:$0xf0] }
 0x465   :  { %7035 = vmatpush.bf16.msra.mxu1 %v13512_v33  ;;  %7048 = vmatpush.bf16.msra.mxu2 %v13516_v17  ;;  %v15874_v33 = vld [vmem:[#allocation10 + $0x1474] sm:$0xf0]  ;;  %v13619_v17 = vld [vmem:[#allocation10 + $0x1640] sm:$0xf]  ;;  %v14061_v29 = vld [vmem:[#allocation10 + $0x19b8] sm:$0xf0] }
 0x466   :  { %7483 = vmatpush.bf16.msrb.mxu0 %v13748_v5  ;;  %v13885_v5 = vld [vmem:[#allocation10 + $0x1868] sm:$0xf0]  ;;  %v13388_v55 = vor.u32 %v15874_v33, %v13387_v21  ;;  %v13620_v14 = vor.u32 %v15935_v16, %v13619_v17  ;;  %v14064_v21 = vor.u32 %v16038_v3, %v14061_v29  ;;  %v13755_v33 = vld [vmem:[#allocation10 + $0x1748] sm:$0xf]  ;;  %v13763_v16 = vld [vmem:[#allocation10 + $0x1750] sm:$0xf] }
 0x467   :  { %8035 = vmatpush.bf16.msra.mxu3 %v14016_v2  ;;  %v13384_v2 = vor.u32 %v15869_v39, %v13381_v42  ;;  %v13888_v27 = vor.u32 %v15996_v7, %v13885_v5  ;;  %v5979_v19 = vpop.f32.mrf.mxu2  ;;  %v15963_v39 = vld [vmem:[#allocation10 + $0x1744] sm:$0xf]  ;;  %v15968_v17 = vld [vmem:[#allocation10 + $0x1764] sm:$0xf0]  ;;  %v15969_v7 = vld [vmem:[#allocation10 + $0x176c] sm:$0xf0] }
 0x468   :  { %v13749_v42 = vld [vmem:[#allocation10 + $0x1760] sm:$0xf0]  ;;  %v16030_v5 = vld [vmem:[#allocation10 + $0x195c] sm:$0xf]  ;;  %v13764_v8 = vor.u32 %v15969_v7, %v13763_v16  ;;  %v15961_v19 = vld [vmem:[#allocation10 + $0x172c] sm:$0xf0] }
 0x469   :  { %7036 = vmatpush.bf16.msra.mxu1 %v13480_v1  ;;  %7049 = vmatpush.bf16.msra.mxu2 %v13484_v24  ;;  %v15927_v1 = vld [vmem:[#allocation10 + $0x161c] sm:$0xf0]  ;;  %v15988_v24 = vld [vmem:[#allocation10 + $0x180c] sm:$0xf]  ;;  %v6557_v25 = vpop.f32.mrf.mxu3  ;;  %v14032_v15 = vor.u32 %v16030_v5, %v14029_v22  ;;  %v15945_v29 = vld [vmem:[#allocation10 + $0x16ac] sm:$0xf0] }
 0x46a   :  { %7484 = vmatpush.bf16.msrb.mxu0 %v13716_v20  ;;  %v15979_v20 = vld [vmem:[#allocation10 + $0x17c4] sm:$0xf]  ;;  %v13588_v58 = vor.u32 %v15927_v1, %v13587_v23  ;;  %v13856_v61 = vor.u32 %v15988_v24, %v13853_v63  ;;  %v16022_v23 = vld [vmem:[#allocation10 + $0x191c] sm:$0xf]  ;;  %v13627_v5 = vld [vmem:[#allocation10 + $0x1648] sm:$0xf] }
 0x46b   :  { %8036 = vmatpush.bf16.msra.mxu3 %v13984_v0  ;;  %v13813_v0 = vld [vmem:[#allocation10 + $0x17e0] sm:$0xf0]  ;;  %v13997_v1 = vld [vmem:[#allocation10 + $0x1938] sm:$0xf0]  ;;  %v15936_v22 = vld [vmem:[#allocation10 + $0x1664] sm:$0xf0] }
 0x46c   :  { %v13621_v16 = vld [vmem:[#allocation10 + $0x1660] sm:$0xf0] }
 0x46d   :  { %7037 = vmatpush.bf16.msra.mxu1 %v13448_v6  ;;  %7050 = vmatpush.bf16.msra.mxu2 %v13452_v57  ;;  %v16046_v6 = vld [vmem:[#allocation10 + $0x19dc] sm:$0xf] }
 0x46e   :  { %7485 = vmatpush.bf16.msrb.mxu0 %v13684_v43  ;;  %v14093_v57 = vld [vmem:[#allocation10 + $0x19f8] sm:$0xf0]  ;;  %v13816_v43 = vor.u32 %v15979_v20, %v13813_v0 }
 0x46f   :  { %8037 = vmatpush.bf16.msra.mxu3 %v13952_v52  ;;  %v13820_v52 = vor.u32 %v15984_v54, %v13819_v26  ;;  %v14096_v36 = vor.u32 %v16046_v6, %v14093_v57  ;;  %v15947_v26 = vld [vmem:[#allocation10 + $0x16c4] sm:$0xf]  ;;  %v15952_v6 = vld [vmem:[#allocation10 + $0x16e4] sm:$0xf0]  ;;  %v13699_v57 = vld [vmem:[#allocation10 + $0x16d0] sm:$0xf] }
 0x470   :  { %v13685_v54 = vld [vmem:[#allocation10 + $0x16e0] sm:$0xf0] }
 0x471   :  { %7038 = vmatpush.bf16.msra.mxu1 %v13416_v37  ;;  %7051 = vmatpush.bf16.msra.mxu2 %v13420_v49  ;;  %v13784_v37 = vor.u32 %v15971_v46, %v13781_v44  ;;  %v13788_v49 = vor.u32 %v15976_v48, %v13787_v40  ;;  %v15939_v46 = vld [vmem:[#allocation10 + $0x1684] sm:$0xf]  ;;  %v13659_v40 = vld [vmem:[#allocation10 + $0x1688] sm:$0xf] }
 0x472   :  { %7486 = vmatpush.bf16.msrb.mxu0 %v13652_v31  ;;  %v17781_v31 = vpack.c.b16 %v17426_v34, %v17426_v34  ;;  %v13752_v34 = vor.u32 %v15963_v39, %v13749_v42  ;;  %v13653_v44 = vld [vmem:[#allocation10 + $0x16a0] sm:$0xf0]  ;;  %v15944_v48 = vld [vmem:[#allocation10 + $0x16a4] sm:$0xf0] }
 0x473   :  { %8038 = vmatpush.bf16.msra.mxu3 %v13920_v12  ;;  %v13796_v12 = vor.u32 %v15977_v11, %v13795_v41  ;;  %v13667_v41 = vld [vmem:[#allocation10 + $0x1690] sm:$0xf] }
 0x474   :  { %v13668_v7 = vor.u32 %v15945_v29, %v13667_v41  ;;  %v13803_v41 = vld [vmem:[#allocation10 + $0x1798] sm:$0xf]  ;;  %v14035_v29 = vld [vmem:[#allocation10 + $0x1980] sm:$0xf] }
 0x475   :  { %7039 = vmatpush.bf16.msra.mxu1 %v13384_v2  ;;  %7052 = vmatpush.bf16.msra.mxu2 %v13388_v55  ;;  %v13756_v2 = vor.u32 %v15968_v17, %v13755_v33  ;;  %v15955_v55 = vld [vmem:[#allocation10 + $0x1704] sm:$0xf]  ;;  %v13660_v33 = vor.u32 %v15944_v48, %v13659_v40 }
 0x476   :  { %7487 = vmatpush.bf16.msrb.mxu0 %v13620_v14  ;;  %v13723_v14 = vld [vmem:[#allocation10 + $0x1708] sm:$0xf]  ;;  %v13720_v20 = vor.u32 %v15955_v55, %v13717_v13  ;;  %v15931_v17 = vld [vmem:[#allocation10 + $0x1644] sm:$0xf]  ;;  %v15998_v55 = vld [vmem:[#allocation10 + $0x185c] sm:$0xf] }
 0x477   :  { %8039 = vmatpush.bf16.msra.mxu3 %v13888_v27  ;;  %v15960_v27 = vld [vmem:[#allocation10 + $0x1724] sm:$0xf0]  ;;  %v13901_v13 = vld [vmem:[#allocation10 + $0x1878] sm:$0xf0] }
 0x478   :  { %v13724_v0 = vor.u32 %v15960_v27, %v13723_v14  ;;  %v13589_v14 = vld [vmem:[#allocation10 + $0x1620] sm:$0xf0]  ;;  %v13595_v27 = vld [vmem:[#allocation10 + $0x1608] sm:$0xf] }
 0x479   :  { %7040 = vmatpush.bf16.msra.mxu1 %v13352_v4  ;;  %7053 = vmatpush.bf16.msra.mxu2 %v13356_v9  ;;  %v6016_v24 = vpop.f32.mrf.mxu1  ;;  %v14000_v9 = vor.u32 %v16022_v23, %v13997_v1  ;;  %v13904_v23 = vor.u32 %v15998_v55, %v13901_v13  ;;  %v14269_v55 = vld [vmem:[#allocation10 + $0x1b68] sm:$0xf0] }
 0x47a   :  { %7488 = vmatpush.bf16.msrb.mxu0 %v13588_v58  ;;  %v17788_v25 = vadd.f32 %v6016_v24, %v17752_v47  ;;  %v15953_v58 = vld [vmem:[#allocation10 + $0x16ec] sm:$0xf0]  ;;  %v13688_v47 = vor.u32 %v15947_v26, %v13685_v54  ;;  %v13869_v26 = vld [vmem:[#allocation10 + $0x1838] sm:$0xf0]  ;;  %v15981_v54 = vld [vmem:[#allocation10 + $0x17d4] sm:$0xf] }
 0x47b   :  { %8040 = vmatpush.bf16.msra.mxu3 %v13856_v61  ;;  %v16014_v61 = vld [vmem:[#allocation10 + $0x18dc] sm:$0xf]  ;;  %v13603_v24 = vld [vmem:[#allocation10 + $0x1610] sm:$0xf] }
 0x47c   :  { %7041 = vmatmul.bf16.vlgmr.msra.gmra.mxu1 %v17709_v45  ;;  %7054 = vmatmul.bf16.vlgmr.msra.gmra.mxu2 %v17709_v45  ;;  %v13731_v45 = vld [vmem:[#allocation10 + $0x1710] sm:$0xf]  ;;  %v6464_v63 = vpop.f32.mrf.mxu0 }
 0x47d   :  { %7494 = vmatpush.bf16.msrb.mxu1 %v13816_v43  ;;  %7507 = vmatpush.bf16.msrb.mxu2 %v13820_v52  ;;  %v17791_v28 = vadd.f32 %v6464_v63, %v17755_v30  ;;  %v13732_v4 = vor.u32 %v15961_v19, %v13731_v45  ;;  %v13965_v43 = vld [vmem:[#allocation10 + $0x18f8] sm:$0xf0]  ;;  %v13692_v52 = vor.u32 %v15952_v6, %v13691_v53  ;;  %v15928_v45 = vld [vmem:[#allocation10 + $0x1624] sm:$0xf0]  ;;  %v15929_v63 = vld [vmem:[#allocation10 + $0x162c] sm:$0xf0] }
 0x47e   :  { %7533 = vmatpush.bf16.msra.mxu0 %v13828_v35  ;;  %8041 = vmatmul.bf16.vlgmr.msra.gmra.mxu3 %v17781_v31  ;;  %v13700_v35 = vor.u32 %v15953_v58, %v13699_v57  ;;  %v15986_v53 = vld [vmem:[#allocation10 + $0x17f4] sm:$0xf0]  ;;  %v14067_v6 = vld [vmem:[#allocation10 + $0x19c0] sm:$0xf]  ;;  %v13596_v58 = vor.u32 %v15928_v45, %v13595_v27 }
 0x47f   :  { %8085 = vmatpush.bf16.msrb.mxu3 %v14096_v36  ;;  %7489 = vmatmul.bf16.vlgmr.msrb.gmra.mxu0 %v17745_v60  ;;  %v13968_v36 = vor.u32 %v16014_v61, %v13965_v43  ;;  %v6029_v30 = vpop.f32.mrf.mxu2  ;;  %v16047_v61 = vld [vmem:[#allocation10 + $0x19dc] sm:$0xf0]  ;;  %v16108_v43 = vld [vmem:[#allocation10 + $0x1bcc] sm:$0xf]  ;;  %v13739_v45 = vld [vmem:[#allocation10 + $0x1718] sm:$0xf] }
 0x480   :  { %v17794_v11 = vadd.f32 %v6029_v30, %v17758_v51  ;;  %v13797_v30 = vld [vmem:[#allocation10 + $0x17b0] sm:$0xf0]  ;;  %v14068_v40 = vor.u32 %v16047_v61, %v14067_v6  ;;  %v13707_v61 = vld [vmem:[#allocation10 + $0x16d8] sm:$0xf] }
 0x481   :  { %7495 = vmatpush.bf16.msrb.mxu1 %v13784_v37  ;;  %7508 = vmatpush.bf16.msrb.mxu2 %v13788_v49  ;;  %v7016_v3 = vpop.f32.mrf.mxu3  ;;  %v16006_v37 = vld [vmem:[#allocation10 + $0x189c] sm:$0xf]  ;;  %v6018_v42 = vpop.f32.mrf.mxu1 }
 0x482   :  { %7534 = vmatpush.bf16.msra.mxu0 %v13796_v12  ;;  %v13933_v49 = vld [vmem:[#allocation10 + $0x18b8] sm:$0xf0]  ;;  %v17797_v39 = vadd.f32 %v7016_v3, %v17761_v62  ;;  %v15923_v62 = vld [vmem:[#allocation10 + $0x1604] sm:$0xf]  ;;  %v15978_v3 = vld [vmem:[#allocation10 + $0x17b4] sm:$0xf0] }
 0x483   :  { %8086 = vmatpush.bf16.msrb.mxu3 %v14064_v21  ;;  %v13656_v21 = vor.u32 %v15939_v46, %v13653_v44  ;;  %v13936_v51 = vor.u32 %v16006_v37, %v13933_v49  ;;  %v13592_v57 = vor.u32 %v15923_v62, %v13589_v14  ;;  %v16039_v37 = vld [vmem:[#allocation10 + $0x199c] sm:$0xf0]  ;;  %v16100_v49 = vld [vmem:[#allocation10 + $0x1b8c] sm:$0xf] }
 0x484   :  { %v6466_v12 = vpop.f32.mrf.mxu0  ;;  %v14301_v42 = vld [vmem:[#allocation10 + $0x1ba8] sm:$0xf0] }
 0x485   :  { %7496 = vmatpush.bf16.msrb.mxu1 %v13752_v34  ;;  %7509 = vmatpush.bf16.msrb.mxu2 %v13756_v2  ;;  %v13635_v34 = vld [vmem:[#allocation10 + $0x1650] sm:$0xf] }
 0x486   :  { %7535 = vmatpush.bf16.msra.mxu0 %v13764_v8  ;;  %v15937_v2 = vld [vmem:[#allocation10 + $0x166c] sm:$0xf0]  ;;  %v13624_v8 = vor.u32 %v15931_v17, %v13621_v16  ;;  %v13765_v17 = vld [vmem:[#allocation10 + $0x1770] sm:$0xf0]  ;;  %v14036_v16 = vor.u32 %v16039_v37, %v14035_v29  ;;  %v13907_v29 = vld [vmem:[#allocation10 + $0x1880] sm:$0xf] }
 0x487   :  { %8087 = vmatpush.bf16.msrb.mxu3 %v14032_v15  ;;  %v13628_v15 = vor.u32 %v15936_v22, %v13627_v5  ;;  %v13636_v19 = vor.u32 %v15937_v2, %v13635_v34  ;;  %v6031_v1 = vpop.f32.mrf.mxu2  ;;  %v15970_v5 = vld [vmem:[#allocation10 + $0x1774] sm:$0xf0]  ;;  %v14003_v22 = vld [vmem:[#allocation10 + $0x1940] sm:$0xf]  ;;  %v16092_v2 = vld [vmem:[#allocation10 + $0x1b4c] sm:$0xf] }
 0x488   :  { %v16031_v34 = vld [vmem:[#allocation10 + $0x195c] sm:$0xf0]  ;;  %v14272_v27 = vor.u32 %v16092_v2, %v14269_v55  ;;  %v13643_v2 = vld [vmem:[#allocation10 + $0x1658] sm:$0xf] }
 0x489   :  { %7497 = vmatpush.bf16.msrb.mxu1 %v13720_v20  ;;  %7510 = vmatpush.bf16.msrb.mxu2 %v13724_v0  ;;  %v15990_v20 = vld [vmem:[#allocation10 + $0x181c] sm:$0xf]  ;;  %v7018_v0 = vpop.f32.mrf.mxu3  ;;  %v14004_v14 = vor.u32 %v16031_v34, %v14003_v22  ;;  %v16023_v1 = vld [vmem:[#allocation10 + $0x191c] sm:$0xf0]  ;;  %v13637_v22 = vld [vmem:[#allocation10 + $0x1670] sm:$0xf0] }
 0x48a   :  { %7536 = vmatpush.bf16.msra.mxu0 %v13732_v4  ;;  %v13829_v4 = vld [vmem:[#allocation10 + $0x17f0] sm:$0xf0]  ;;  %v13872_v46 = vor.u32 %v15990_v20, %v13869_v26  ;;  %v15938_v55 = vld [vmem:[#allocation10 + $0x1674] sm:$0xf0] }
 0x48b   :  { %8088 = vmatpush.bf16.msrb.mxu3 %v14000_v9  ;;  %v13835_v9 = vld [vmem:[#allocation10 + $0x17d8] sm:$0xf]  ;;  %v13832_v44 = vor.u32 %v15981_v54, %v13829_v4 }
 0x48d   :  { %7498 = vmatpush.bf16.msrb.mxu1 %v13688_v47  ;;  %7511 = vmatpush.bf16.msrb.mxu2 %v13692_v52  ;;  %v14333_v47 = vld [vmem:[#allocation10 + $0x1be8] sm:$0xf0]  ;;  %v13604_v52 = vor.u32 %v15929_v63, %v13603_v24 }
 0x48e   :  { %7537 = vmatpush.bf16.msra.mxu0 %v13700_v35  ;;  %v13836_v35 = vor.u32 %v15986_v53, %v13835_v9  ;;  %v14336_v48 = vor.u32 %v16108_v43, %v14333_v47  ;;  %v16084_v24 = vld [vmem:[#allocation10 + $0x1b0c] sm:$0xf]  ;;  %v15949_v9 = vld [vmem:[#allocation10 + $0x16d4] sm:$0xf]  ;;  %v15954_v43 = vld [vmem:[#allocation10 + $0x16f4] sm:$0xf0] }
 0x48f   :  { %8089 = vmatpush.bf16.msrb.mxu3 %v13968_v36  ;;  %v15973_v36 = vld [vmem:[#allocation10 + $0x1794] sm:$0xf]  ;;  %v14237_v63 = vld [vmem:[#allocation10 + $0x1b28] sm:$0xf0]  ;;  %v13939_v47 = vld [vmem:[#allocation10 + $0x18c0] sm:$0xf] }
 0x490   :  { %v13800_v12 = vor.u32 %v15973_v36, %v13797_v30  ;;  %v13701_v53 = vld [vmem:[#allocation10 + $0x16f0] sm:$0xf0] }
 0x491   :  { %7499 = vmatpush.bf16.msrb.mxu1 %v13656_v21  ;;  %7512 = vmatpush.bf16.msrb.mxu2 %v13660_v33  ;;  %v13804_v21 = vor.u32 %v15978_v3, %v13803_v41  ;;  %v15965_v33 = vld [vmem:[#allocation10 + $0x1754] sm:$0xf]  ;;  %v13675_v41 = vld [vmem:[#allocation10 + $0x1698] sm:$0xf] }
 0x492   :  { %7538 = vmatpush.bf16.msra.mxu0 %v13668_v7  ;;  %v14304_v7 = vor.u32 %v16100_v49, %v14301_v42  ;;  %v13768_v13 = vor.u32 %v15965_v33, %v13765_v17  ;;  %v15941_v36 = vld [vmem:[#allocation10 + $0x1694] sm:$0xf]  ;;  %v15946_v3 = vld [vmem:[#allocation10 + $0x16b4] sm:$0xf0]  ;;  %v16007_v42 = vld [vmem:[#allocation10 + $0x189c] sm:$0xf0] }
 0x493   :  { %8090 = vmatpush.bf16.msrb.mxu3 %v13936_v51  ;;  %v13771_v51 = vld [vmem:[#allocation10 + $0x1758] sm:$0xf]  ;;  %v13669_v30 = vld [vmem:[#allocation10 + $0x16b0] sm:$0xf0]  ;;  %v13908_v34 = vor.u32 %v16007_v42, %v13907_v29  ;;  %v14043_v29 = vld [vmem:[#allocation10 + $0x1988] sm:$0xf] }
 0x494   :  { %v13772_v62 = vor.u32 %v15970_v5, %v13771_v51  ;;  %v13676_v51 = vor.u32 %v15946_v3, %v13675_v41  ;;  %v15933_v5 = vld [vmem:[#allocation10 + $0x1654] sm:$0xf]  ;;  %v14051_v42 = vld [vmem:[#allocation10 + $0x1990] sm:$0xf] }
 0x495   :  { %7500 = vmatpush.bf16.msrb.mxu1 %v13624_v8  ;;  %7513 = vmatpush.bf16.msrb.mxu2 %v13628_v15  ;;  %v15957_v8 = vld [vmem:[#allocation10 + $0x1714] sm:$0xf] }
 0x496   :  { %7539 = vmatpush.bf16.msra.mxu0 %v13636_v19  ;;  %v13733_v15 = vld [vmem:[#allocation10 + $0x1730] sm:$0xf0]  ;;  %v15962_v19 = vld [vmem:[#allocation10 + $0x1734] sm:$0xf0] }
 0x497   :  { %8091 = vmatpush.bf16.msrb.mxu3 %v13904_v23  ;;  %v13971_v23 = vld [vmem:[#allocation10 + $0x1900] sm:$0xf]  ;;  %v13736_v54 = vor.u32 %v15957_v8, %v13733_v15  ;;  %v13740_v4 = vor.u32 %v15962_v19, %v13739_v45  ;;  %v16060_v8 = vld [vmem:[#allocation10 + $0x1a4c] sm:$0xf]  ;;  %v13605_v45 = vld [vmem:[#allocation10 + $0x1630] sm:$0xf0] }
 0x498   :  { %v14141_v15 = vld [vmem:[#allocation10 + $0x1a68] sm:$0xf0]  ;;  %v13611_v19 = vld [vmem:[#allocation10 + $0x1618] sm:$0xf] }
 0x499   :  { %7501 = vmatpush.bf16.msrb.mxu1 %v13592_v57  ;;  %7514 = vmatpush.bf16.msrb.mxu2 %v13596_v58  ;;  %v6477_v20 = vpop.f32.mrf.mxu1  ;;  %v13972_v57 = vor.u32 %v16023_v1, %v13971_v23  ;;  %v14240_v58 = vor.u32 %v16084_v24, %v14237_v63  ;;  %v15930_v23 = vld [vmem:[#allocation10 + $0x1634] sm:$0xf0]  ;;  %v14144_v24 = vor.u32 %v16060_v8, %v14141_v15  ;;  %v16094_v8 = vld [vmem:[#allocation10 + $0x1b5c] sm:$0xf] }
 0x49a   :  { %7540 = vmatpush.bf16.msra.mxu0 %v13604_v52  ;;  %v17804_v0 = vadd.f32 %v6477_v20, %v17768_v38  ;;  %v16015_v52 = vld [vmem:[#allocation10 + $0x18dc] sm:$0xf0]  ;;  %v13704_v38 = vor.u32 %v15949_v9, %v13701_v53  ;;  %v14109_v9 = vld [vmem:[#allocation10 + $0x1a28] sm:$0xf0]  ;;  %v16043_v53 = vld [vmem:[#allocation10 + $0x19c4] sm:$0xf] }
 0x49b   :  { %8092 = vmatpush.bf16.msrb.mxu3 %v13872_v46  ;;  %v16076_v46 = vld [vmem:[#allocation10 + $0x1acc] sm:$0xf]  ;;  %v13843_v20 = vld [vmem:[#allocation10 + $0x1800] sm:$0xf]  ;;  %v14285_v15 = vld [vmem:[#allocation10 + $0x1b78] sm:$0xf0] }
 0x49c   :  { %7502 = vmatmul.bf16.vlgmr.msrb.gmra.mxu1 %v17745_v60  ;;  %7515 = vmatmul.bf16.vlgmr.msrb.gmra.mxu2 %v17745_v60  ;;  %v6516_v26 = vpop.f32.mrf.mxu0 }
 0x49d   :  { %7546 = vmatpush.bf16.msra.mxu1 %v13832_v44  ;;  %7559 = vmatpush.bf16.msra.mxu2 %v13836_v35  ;;  %v17807_v6 = vadd.f32 %v6516_v26, %v17771_v10  ;;  %v14205_v44 = vld [vmem:[#allocation10 + $0x1ae8] sm:$0xf0]  ;;  %v13708_v35 = vor.u32 %v15954_v43, %v13707_v61  ;;  %v15991_v26 = vld [vmem:[#allocation10 + $0x181c] sm:$0xf0]  ;;  %v16048_v61 = vld [vmem:[#allocation10 + $0x19e4] sm:$0xf0] }
 0x49e   :  { %7994 = vmatpush.bf16.msrb.mxu0 %v14068_v40  ;;  %8093 = vmatmul.bf16.vlgmr.msrb.gmra.mxu3 %v17781_v31  ;;  %v13940_v40 = vor.u32 %v16015_v52, %v13939_v47  ;;  %v14083_v43 = vld [vmem:[#allocation10 + $0x19d0] sm:$0xf]  ;;  %v13612_v52 = vor.u32 %v15930_v23, %v13611_v19  ;;  %v14288_v19 = vor.u32 %v16094_v8, %v14285_v15  ;;  %v13979_v23 = vld [vmem:[#allocation10 + $0x1908] sm:$0xf] }
 0x49f   :  { %8546 = vmatpush.bf16.msra.mxu3 %v14336_v48  ;;  %7541 = vmatmul.bf16.vlgmr.msra.gmra.mxu0 %v17745_v60  ;;  %v14208_v48 = vor.u32 %v16076_v46, %v14205_v44  ;;  %v6490_v10 = vpop.f32.mrf.mxu2  ;;  %v16049_v46 = vld [vmem:[#allocation10 + $0x19ec] sm:$0xf0]  ;;  %v16110_v44 = vld [vmem:[#allocation10 + $0x1bdc] sm:$0xf]  ;;  %v16000_v8 = vld [vmem:[#allocation10 + $0x1864] sm:$0xf0] }
 0x4a0   :  { %v17810_v37 = vadd.f32 %v6490_v10, %v17774_v59  ;;  %v14037_v10 = vld [vmem:[#allocation10 + $0x19a0] sm:$0xf0]  ;;  %v14084_v41 = vor.u32 %v16049_v46, %v14083_v43  ;;  %v16016_v46 = vld [vmem:[#allocation10 + $0x18e4] sm:$0xf0]  ;;  %v13891_v15 = vld [vmem:[#allocation10 + $0x1850] sm:$0xf] }
 0x4a1   :  { %7547 = vmatpush.bf16.msra.mxu1 %v13800_v12  ;;  %7560 = vmatpush.bf16.msra.mxu2 %v13804_v21  ;;  %v7068_v49 = vpop.f32.mrf.mxu3  ;;  %v16068_v12 = vld [vmem:[#allocation10 + $0x1a8c] sm:$0xf]  ;;  %v6479_v17 = vpop.f32.mrf.mxu1 }
 0x4a2   :  { %7995 = vmatpush.bf16.msrb.mxu0 %v14036_v16  ;;  %v14173_v21 = vld [vmem:[#allocation10 + $0x1aa8] sm:$0xf0]  ;;  %v17813_v33 = vadd.f32 %v7068_v49, %v17777_v56  ;;  %v15925_v56 = vld [vmem:[#allocation10 + $0x1614] sm:$0xf]  ;;  %v16040_v49 = vld [vmem:[#allocation10 + $0x19a4] sm:$0xf0] }
 0x4a3   :  { %8547 = vmatpush.bf16.msra.mxu3 %v14304_v7  ;;  %v13672_v7 = vor.u32 %v15941_v36, %v13669_v30  ;;  %v14176_v59 = vor.u32 %v16068_v12, %v14173_v21  ;;  %v13608_v47 = vor.u32 %v15925_v56, %v13605_v45  ;;  %v16041_v12 = vld [vmem:[#allocation10 + $0x19ac] sm:$0xf0]  ;;  %v16102_v21 = vld [vmem:[#allocation10 + $0x1b9c] sm:$0xf] }
 0x4a4   :  { %v6518_v16 = vpop.f32.mrf.mxu0  ;;  %v14317_v17 = vld [vmem:[#allocation10 + $0x1bb8] sm:$0xf0] }
 0x4a5   :  { %7548 = vmatpush.bf16.msra.mxu1 %v13768_v13  ;;  %7561 = vmatpush.bf16.msra.mxu2 %v13772_v62  ;;  %v13875_v13 = vld [vmem:[#allocation10 + $0x1840] sm:$0xf] }
 0x4a6   :  { %7996 = vmatpush.bf16.msrb.mxu0 %v14004_v14  ;;  %v15999_v62 = vld [vmem:[#allocation10 + $0x185c] sm:$0xf0]  ;;  %v13640_v14 = vor.u32 %v15933_v5, %v13637_v22  ;;  %v14005_v5 = vld [vmem:[#allocation10 + $0x1960] sm:$0xf0]  ;;  %v17817_v22 = vpack.c.b16 %v17430_v50, %v17430_v50 }
 0x4a7   :  { %8548 = vmatpush.bf16.msra.mxu3 %v14272_v27  ;;  %v13644_v27 = vor.u32 %v15938_v55, %v13643_v2  ;;  %v13876_v1 = vor.u32 %v15999_v62, %v13875_v13  ;;  %v6492_v63 = vpop.f32.mrf.mxu2  ;;  %v14011_v2 = vld [vmem:[#allocation10 + $0x1948] sm:$0xf]  ;;  %v14019_v13 = vld [vmem:[#allocation10 + $0x1950] sm:$0xf] }
 0x4a8   :  { %v16032_v55 = vld [vmem:[#allocation10 + $0x1964] sm:$0xf0]  ;;  %v16033_v62 = vld [vmem:[#allocation10 + $0x196c] sm:$0xf0]  ;;  %v16086_v63 = vld [vmem:[#allocation10 + $0x1b1c] sm:$0xf] }
 0x4a9   :  { %7549 = vmatpush.bf16.msra.mxu1 %v13736_v54  ;;  %7562 = vmatpush.bf16.msra.mxu2 %v13740_v4  ;;  %v16052_v54 = vld [vmem:[#allocation10 + $0x1a0c] sm:$0xf]  ;;  %v7070_v4 = vpop.f32.mrf.mxu3  ;;  %v14012_v56 = vor.u32 %v16032_v55, %v14011_v2  ;;  %v14020_v45 = vor.u32 %v16033_v62, %v14019_v13  ;;  %v15995_v2 = vld [vmem:[#allocation10 + $0x1844] sm:$0xf]  ;;  %v13883_v62 = vld [vmem:[#allocation10 + $0x1848] sm:$0xf] }
 0x4aa   :  { %7997 = vmatpush.bf16.msrb.mxu0 %v13972_v57  ;;  %v14069_v57 = vld [vmem:[#allocation10 + $0x19e0] sm:$0xf0]  ;;  %v14112_v36 = vor.u32 %v16052_v54, %v14109_v9 }
 0x4ab   :  { %8549 = vmatpush.bf16.msra.mxu3 %v14240_v58  ;;  %v14075_v58 = vld [vmem:[#allocation10 + $0x19c8] sm:$0xf]  ;;  %v14072_v30 = vor.u32 %v16043_v53, %v14069_v57  ;;  %v16011_v57 = vld [vmem:[#allocation10 + $0x18c4] sm:$0xf] }
 0x4ac   :  { %v13877_v55 = vld [vmem:[#allocation10 + $0x1860] sm:$0xf0] }
 0x4ad   :  { %7550 = vmatpush.bf16.msra.mxu1 %v13704_v38  ;;  %7563 = vmatpush.bf16.msra.mxu2 %v13708_v35  ;;  %v14349_v38 = vld [vmem:[#allocation10 + $0x1bf8] sm:$0xf0]  ;;  %v13844_v35 = vor.u32 %v15991_v26, %v13843_v20 }
 0x4ae   :  { %7998 = vmatpush.bf16.msrb.mxu0 %v13940_v40  ;;  %v14076_v40 = vor.u32 %v16048_v61, %v14075_v58  ;;  %v14352_v3 = vor.u32 %v16110_v44, %v14349_v38  ;;  %v14253_v20 = vld [vmem:[#allocation10 + $0x1b38] sm:$0xf0]  ;;  %v13941_v58 = vld [vmem:[#allocation10 + $0x18e0] sm:$0xf0]  ;;  %v13955_v44 = vld [vmem:[#allocation10 + $0x18d0] sm:$0xf] }
 0x4af   :  { %8550 = vmatpush.bf16.msra.mxu3 %v14208_v48  ;;  %v16035_v48 = vld [vmem:[#allocation10 + $0x1984] sm:$0xf]  ;;  %v16017_v38 = vld [vmem:[#allocation10 + $0x18ec] sm:$0xf0] }
 0x4b0   :  { %v14040_v16 = vor.u32 %v16035_v48, %v14037_v10  ;;  %v13909_v48 = vld [vmem:[#allocation10 + $0x18a0] sm:$0xf0]  ;;  %v13956_v10 = vor.u32 %v16017_v38, %v13955_v44  ;;  %v16111_v38 = vld [vmem:[#allocation10 + $0x1bdc] sm:$0xf0] }
 0x4b1   :  { %7551 = vmatpush.bf16.msra.mxu1 %v13672_v7  ;;  %7564 = vmatpush.bf16.msra.mxu2 %v13676_v51  ;;  %v14044_v7 = vor.u32 %v16040_v49, %v14043_v29  ;;  %v16027_v51 = vld [vmem:[#allocation10 + $0x1944] sm:$0xf]  ;;  %v16008_v29 = vld [vmem:[#allocation10 + $0x18a4] sm:$0xf0]  ;;  %v13923_v49 = vld [vmem:[#allocation10 + $0x1890] sm:$0xf] }
 0x4b2   :  { %7999 = vmatpush.bf16.msrb.mxu0 %v13908_v34  ;;  %v14052_v34 = vor.u32 %v16041_v12, %v14051_v42  ;;  %v14008_v50 = vor.u32 %v16027_v51, %v14005_v5 }
 0x4b3   :  { %8551 = vmatpush.bf16.msra.mxu3 %v14176_v59  ;;  %v14320_v59 = vor.u32 %v16102_v21, %v14317_v17  ;;  %v16009_v21 = vld [vmem:[#allocation10 + $0x18ac] sm:$0xf0]  ;;  %v16070_v17 = vld [vmem:[#allocation10 + $0x1a9c] sm:$0xf] }
 0x4b4   :  { %v13924_v13 = vor.u32 %v16009_v21, %v13923_v49  ;;  %v16042_v49 = vld [vmem:[#allocation10 + $0x19b4] sm:$0xf0]  ;;  %v16103_v21 = vld [vmem:[#allocation10 + $0x1b9c] sm:$0xf0] }
 0x4b5   :  { %7552 = vmatpush.bf16.msra.mxu1 %v13640_v14  ;;  %7565 = vmatpush.bf16.msra.mxu2 %v13644_v27  ;;  %v16019_v14 = vld [vmem:[#allocation10 + $0x1904] sm:$0xf] }
 0x4b6   :  { %8000 = vmatpush.bf16.msrb.mxu0 %v13876_v1  ;;  %v13973_v27 = vld [vmem:[#allocation10 + $0x1920] sm:$0xf0]  ;;  %v16024_v1 = vld [vmem:[#allocation10 + $0x1924] sm:$0xf0] }
 0x4b7   :  { %8552 = vmatpush.bf16.msra.mxu3 %v14144_v24  ;;  %v16025_v24 = vld [vmem:[#allocation10 + $0x192c] sm:$0xf0]  ;;  %v13976_v9 = vor.u32 %v16019_v14, %v13973_v27  ;;  %v13980_v53 = vor.u32 %v16024_v1, %v13979_v23  ;;  %v14157_v14 = vld [vmem:[#allocation10 + $0x1a78] sm:$0xf0]  ;;  %v13880_v27 = vor.u32 %v15995_v2, %v13877_v55  ;;  %v13851_v23 = vld [vmem:[#allocation10 + $0x1808] sm:$0xf] }
 0x4b8   :  { %v15992_v1 = vld [vmem:[#allocation10 + $0x1824] sm:$0xf0] }
 0x4b9   :  { %7553 = vmatpush.bf16.msra.mxu1 %v13608_v47  ;;  %7566 = vmatpush.bf16.msra.mxu2 %v13612_v52  ;;  %v6529_v26 = vpop.f32.mrf.mxu1  ;;  %v14256_v47 = vor.u32 %v16086_v63, %v14253_v20  ;;  %v13947_v52 = vld [vmem:[#allocation10 + $0x18c8] sm:$0xf]  ;;  %v13859_v20 = vld [vmem:[#allocation10 + $0x1810] sm:$0xf]  ;;  %v13852_v44 = vor.u32 %v15992_v1, %v13851_v23  ;;  %v13995_v23 = vld [vmem:[#allocation10 + $0x1918] sm:$0xf] }
 0x4ba   :  { %8001 = vmatpush.bf16.msrb.mxu0 %v13844_v35  ;;  %v17824_v54 = vadd.f32 %v6529_v26, %v17788_v25  ;;  %v16078_v35 = vld [vmem:[#allocation10 + $0x1adc] sm:$0xf]  ;;  %v13944_v25 = vor.u32 %v16011_v57, %v13941_v58  ;;  %v15993_v26 = vld [vmem:[#allocation10 + $0x182c] sm:$0xf0]  ;;  %v16045_v57 = vld [vmem:[#allocation10 + $0x19d4] sm:$0xf] }
 0x4bb   :  { %8553 = vmatpush.bf16.msra.mxu3 %v14112_v36  ;;  %v14221_v36 = vld [vmem:[#allocation10 + $0x1af8] sm:$0xf0]  ;;  %v14085_v58 = vld [vmem:[#allocation10 + $0x19f0] sm:$0xf0]  ;;  %v16026_v1 = vld [vmem:[#allocation10 + $0x1934] sm:$0xf0] }
 0x4bc   :  { %7554 = vmatmul.bf16.vlgmr.msra.gmra.mxu1 %v17745_v60  ;;  %7567 = vmatmul.bf16.vlgmr.msra.gmra.mxu2 %v17745_v60  ;;  %v13987_v60 = vld [vmem:[#allocation10 + $0x1910] sm:$0xf]  ;;  %v6977_v4 = vpop.f32.mrf.mxu0 }
 0x4bd   :  { %8007 = vmatpush.bf16.msrb.mxu1 %v14072_v30  ;;  %8020 = vmatpush.bf16.msrb.mxu2 %v14076_v40  ;;  %v17827_v61 = vadd.f32 %v6977_v4, %v17791_v28  ;;  %v13988_v43 = vor.u32 %v16025_v24, %v13987_v60  ;;  %v13948_v30 = vor.u32 %v16016_v46, %v13947_v52  ;;  %v16003_v40 = vld [vmem:[#allocation10 + $0x1884] sm:$0xf]  ;;  %v16054_v4 = vld [vmem:[#allocation10 + $0x1a1c] sm:$0xf]  ;;  %v14323_v52 = vld [vmem:[#allocation10 + $0x1bc0] sm:$0xf] }
 0x4be   :  { %8046 = vmatpush.bf16.msra.mxu0 %v14084_v41  ;;  %8554 = vmatmul.bf16.vlgmr.msra.gmra.mxu3 %v17817_v22  ;;  %v14224_v41 = vor.u32 %v16078_v35, %v14221_v36  ;;  %v16172_v35 = vld [vmem:[#allocation10 + $0x1dcc] sm:$0xf] }
 0x4bf   :  { %8598 = vmatpush.bf16.msrb.mxu3 %v14352_v3  ;;  %8002 = vmatmul.bf16.vlgmr.msrb.gmra.mxu0 %v17781_v31  ;;  %v6542_v28 = vpop.f32.mrf.mxu2  ;;  %v13915_v3 = vld [vmem:[#allocation10 + $0x1888] sm:$0xf]  ;;  %v14589_v36 = vld [vmem:[#allocation10 + $0x1de8] sm:$0xf0] }
 0x4c0   :  { %v17830_v42 = vadd.f32 %v6542_v28, %v17794_v11  ;;  %v14324_v28 = vor.u32 %v16111_v38, %v14323_v52  ;;  %v16018_v38 = vld [vmem:[#allocation10 + $0x18f4] sm:$0xf0] }
 0x4c1   :  { %8008 = vmatpush.bf16.msrb.mxu1 %v14040_v16  ;;  %8021 = vmatpush.bf16.msrb.mxu2 %v14044_v7  ;;  %v7529_v12 = vpop.f32.mrf.mxu3  ;;  %v14189_v16 = vld [vmem:[#allocation10 + $0x1ab8] sm:$0xf0]  ;;  %v6531_v51 = vpop.f32.mrf.mxu1 }
 0x4c2   :  { %8047 = vmatpush.bf16.msra.mxu0 %v14052_v34  ;;  %v17833_v7 = vadd.f32 %v7529_v12, %v17797_v39  ;;  %v13912_v34 = vor.u32 %v16003_v40, %v13909_v48  ;;  %v14192_v11 = vor.u32 %v16070_v17, %v14189_v16  ;;  %v15987_v39 = vld [vmem:[#allocation10 + $0x1804] sm:$0xf]  ;;  %v14088_v40 = vor.u32 %v16045_v57, %v14085_v58  ;;  %v14291_v12 = vld [vmem:[#allocation10 + $0x1b80] sm:$0xf]  ;;  %v16164_v17 = vld [vmem:[#allocation10 + $0x1d8c] sm:$0xf] }
 0x4c3   :  { %8599 = vmatpush.bf16.msrb.mxu3 %v14320_v59  ;;  %v13916_v59 = vor.u32 %v16008_v29, %v13915_v3  ;;  %v14592_v3 = vor.u32 %v16172_v35, %v14589_v36  ;;  %v14059_v29 = vld [vmem:[#allocation10 + $0x1998] sm:$0xf]  ;;  %v14557_v16 = vld [vmem:[#allocation10 + $0x1da8] sm:$0xf0]  ;;  %v14292_v2 = vor.u32 %v16103_v21, %v14291_v12  ;;  %v13996_v57 = vor.u32 %v16026_v1, %v13995_v23  ;;  %v16013_v58 = vld [vmem:[#allocation10 + $0x18d4] sm:$0xf] }
 0x4c4   :  { %v6979_v5 = vpop.f32.mrf.mxu0  ;;  %v14560_v55 = vor.u32 %v16164_v17, %v14557_v16  ;;  %v14195_v35 = vld [vmem:[#allocation10 + $0x1ac0] sm:$0xf]  ;;  %v16132_v16 = vld [vmem:[#allocation10 + $0x1c8c] sm:$0xf]  ;;  %v13867_v23 = vld [vmem:[#allocation10 + $0x1818] sm:$0xf] }
 0x4c5   :  { %8009 = vmatpush.bf16.msrb.mxu1 %v14008_v50  ;;  %8022 = vmatpush.bf16.msrb.mxu2 %v14012_v56  ;;  %v16001_v50 = vld [vmem:[#allocation10 + $0x186c] sm:$0xf0]  ;;  %v16062_v56 = vld [vmem:[#allocation10 + $0x1a5c] sm:$0xf]  ;;  %v14060_v5 = vor.u32 %v16042_v49, %v14059_v29  ;;  %v16079_v36 = vld [vmem:[#allocation10 + $0x1adc] sm:$0xf0] }
 0x4c6   :  { %8048 = vmatpush.bf16.msra.mxu0 %v14020_v45  ;;  %v13884_v45 = vor.u32 %v16000_v8, %v13883_v62  ;;  %v13892_v60 = vor.u32 %v16001_v50, %v13891_v15  ;;  %v14160_v24 = vor.u32 %v16062_v56, %v14157_v14  ;;  %v14259_v62 = vld [vmem:[#allocation10 + $0x1b40] sm:$0xf]  ;;  %v16156_v15 = vld [vmem:[#allocation10 + $0x1d4c] sm:$0xf]  ;;  %v16010_v29 = vld [vmem:[#allocation10 + $0x18b4] sm:$0xf0] }
 0x4c7   :  { %8600 = vmatpush.bf16.msrb.mxu3 %v14288_v19  ;;  %v13845_v19 = vld [vmem:[#allocation10 + $0x1820] sm:$0xf0]  ;;  %v6544_v63 = vpop.f32.mrf.mxu2  ;;  %v16095_v8 = vld [vmem:[#allocation10 + $0x1b5c] sm:$0xf0]  ;;  %v14525_v50 = vld [vmem:[#allocation10 + $0x1d68] sm:$0xf0] }
 0x4c8   :  { %v13848_v46 = vor.u32 %v15987_v39, %v13845_v19  ;;  %v16021_v39 = vld [vmem:[#allocation10 + $0x1914] sm:$0xf]  ;;  %v14528_v19 = vor.u32 %v16156_v15, %v14525_v50  ;;  %v16148_v63 = vld [vmem:[#allocation10 + $0x1d0c] sm:$0xf]  ;;  %v14163_v49 = vld [vmem:[#allocation10 + $0x1a80] sm:$0xf] }
 0x4c9   :  { %8010 = vmatpush.bf16.msrb.mxu1 %v13976_v9  ;;  %8023 = vmatpush.bf16.msrb.mxu2 %v13980_v53  ;;  %v7531_v9 = vpop.f32.mrf.mxu3  ;;  %v14125_v53 = vld [vmem:[#allocation10 + $0x1a38] sm:$0xf0]  ;;  %v16071_v17 = vld [vmem:[#allocation10 + $0x1a9c] sm:$0xf0]  ;;  %v16002_v15 = vld [vmem:[#allocation10 + $0x1874] sm:$0xf0] }
 0x4ca   :  { %8049 = vmatpush.bf16.msra.mxu0 %v13988_v43  ;;  %v14091_v43 = vld [vmem:[#allocation10 + $0x19d8] sm:$0xf]  ;;  %v14131_v50 = vld [vmem:[#allocation10 + $0x1a40] sm:$0xf] }
 0x4cb   :  { %8601 = vmatpush.bf16.msrb.mxu3 %v14256_v47  ;;  %v16050_v47 = vld [vmem:[#allocation10 + $0x19f4] sm:$0xf0] }
 0x4cc   :  { %v14092_v48 = vor.u32 %v16050_v47, %v14091_v43  ;;  %v13957_v43 = vld [vmem:[#allocation10 + $0x18f0] sm:$0xf0]  ;;  %v15994_v1 = vld [vmem:[#allocation10 + $0x1834] sm:$0xf0] }
 0x4cd   :  { %8011 = vmatpush.bf16.msrb.mxu1 %v13944_v25  ;;  %8024 = vmatpush.bf16.msrb.mxu2 %v13948_v30  ;;  %v13860_v25 = vor.u32 %v15993_v26, %v13859_v20  ;;  %v14128_v30 = vor.u32 %v16054_v4, %v14125_v53  ;;  %v14493_v20 = vld [vmem:[#allocation10 + $0x1d28] sm:$0xf0] }
 0x4ce   :  { %8050 = vmatpush.bf16.msra.mxu0 %v13956_v10  ;;  %v16037_v10 = vld [vmem:[#allocation10 + $0x1994] sm:$0xf] }
 0x4cf   :  { %8602 = vmatpush.bf16.msrb.mxu3 %v14224_v41  ;;  %v14053_v41 = vld [vmem:[#allocation10 + $0x19b0] sm:$0xf0] }
 0x4d0   :  { %v14056_v51 = vor.u32 %v16037_v10, %v14053_v41  ;;  %v13925_v10 = vld [vmem:[#allocation10 + $0x18b0] sm:$0xf0]  ;;  %v14196_v41 = vor.u32 %v16079_v36, %v14195_v35  ;;  %v13868_v35 = vor.u32 %v15994_v1, %v13867_v23  ;;  %v16113_v36 = vld [vmem:[#allocation10 + $0x1bec] sm:$0xf0]  ;;  %v14235_v23 = vld [vmem:[#allocation10 + $0x1b08] sm:$0xf] }
 0x4d1   :  { %8012 = vmatpush.bf16.msrb.mxu1 %v13912_v34  ;;  %8025 = vmatpush.bf16.msrb.mxu2 %v13916_v59  ;;  %v16029_v34 = vld [vmem:[#allocation10 + $0x1954] sm:$0xf]  ;;  %v16088_v1 = vld [vmem:[#allocation10 + $0x1b24] sm:$0xf0] }
 0x4d2   :  { %8051 = vmatpush.bf16.msra.mxu0 %v13924_v13  ;;  %v14021_v59 = vld [vmem:[#allocation10 + $0x1970] sm:$0xf0]  ;;  %v14027_v13 = vld [vmem:[#allocation10 + $0x1958] sm:$0xf] }
 0x4d3   :  { %8603 = vmatpush.bf16.msrb.mxu3 %v14192_v11  ;;  %v16034_v11 = vld [vmem:[#allocation10 + $0x1974] sm:$0xf0]  ;;  %v14024_v56 = vor.u32 %v16029_v34, %v14021_v59 }
 0x4d4   :  { %v14028_v14 = vor.u32 %v16034_v11, %v14027_v13  ;;  %v15997_v13 = vld [vmem:[#allocation10 + $0x1854] sm:$0xf] }
 0x4d5   :  { %8013 = vmatpush.bf16.msrb.mxu1 %v13880_v27  ;;  %8026 = vmatpush.bf16.msrb.mxu2 %v13884_v45  ;;  %v13989_v27 = vld [vmem:[#allocation10 + $0x1930] sm:$0xf0]  ;;  %v14260_v45 = vor.u32 %v16095_v8, %v14259_v62  ;;  %v14164_v62 = vor.u32 %v16071_v17, %v14163_v49  ;;  %v13899_v8 = vld [vmem:[#allocation10 + $0x1858] sm:$0xf]  ;;  %v16104_v49 = vld [vmem:[#allocation10 + $0x1ba4] sm:$0xf0] }
 0x4d6   :  { %8052 = vmatpush.bf16.msra.mxu0 %v13892_v60  ;;  %v14227_v60 = vld [vmem:[#allocation10 + $0x1b00] sm:$0xf]  ;;  %v13992_v53 = vor.u32 %v16021_v39, %v13989_v27  ;;  %v13893_v11 = vld [vmem:[#allocation10 + $0x1870] sm:$0xf0]  ;;  %v14397_v39 = vld [vmem:[#allocation10 + $0x1c68] sm:$0xf0] }
 0x4d7   :  { %8604 = vmatpush.bf16.msrb.mxu3 %v14160_v24  ;;  %v16087_v24 = vld [vmem:[#allocation10 + $0x1b1c] sm:$0xf0]  ;;  %v13896_v27 = vor.u32 %v15997_v13, %v13893_v11  ;;  %v16105_v17 = vld [vmem:[#allocation10 + $0x1bac] sm:$0xf0]  ;;  %v17853_v13 = vpack.c.b16 %v17434_v18, %v17434_v18 }
 0x4d8   :  { %v14228_v52 = vor.u32 %v16087_v24, %v14227_v60 }
 0x4d9   :  { %8014 = vmatpush.bf16.msrb.mxu1 %v13848_v46  ;;  %8027 = vmatpush.bf16.msrb.mxu2 %v13852_v44  ;;  %v6990_v26 = vpop.f32.mrf.mxu1  ;;  %v14496_v46 = vor.u32 %v16148_v63, %v14493_v20  ;;  %v13963_v44 = vld [vmem:[#allocation10 + $0x18d8] sm:$0xf]  ;;  %v14099_v20 = vld [vmem:[#allocation10 + $0x1a00] sm:$0xf] }
 0x4da   :  { %8053 = vmatpush.bf16.msra.mxu0 %v13860_v25  ;;  %v17840_v4 = vadd.f32 %v6990_v26, %v17804_v0  ;;  %v16140_v25 = vld [vmem:[#allocation10 + $0x1ccc] sm:$0xf]  ;;  %v13960_v0 = vor.u32 %v16013_v58, %v13957_v43  ;;  %v16055_v26 = vld [vmem:[#allocation10 + $0x1a1c] sm:$0xf0]  ;;  %v16107_v58 = vld [vmem:[#allocation10 + $0x1bc4] sm:$0xf] }
 0x4db   :  { %8605 = vmatpush.bf16.msrb.mxu3 %v14128_v30  ;;  %v14461_v30 = vld [vmem:[#allocation10 + $0x1ce8] sm:$0xf0]  ;;  %v14325_v43 = vld [vmem:[#allocation10 + $0x1be0] sm:$0xf0] }
 0x4dc   :  { %8015 = vmatmul.bf16.vlgmr.msrb.gmra.mxu1 %v17781_v31  ;;  %8028 = vmatmul.bf16.vlgmr.msrb.gmra.mxu2 %v17781_v31  ;;  %v7029_v9 = vpop.f32.mrf.mxu0 }
 0x4dd   :  { %8059 = vmatpush.bf16.msra.mxu1 %v14088_v40  ;;  %8072 = vmatpush.bf16.msra.mxu2 %v14092_v48  ;;  %v17843_v47 = vadd.f32 %v7029_v9, %v17807_v6  ;;  %v13964_v40 = vor.u32 %v16018_v38, %v13963_v44  ;;  %v16005_v48 = vld [vmem:[#allocation10 + $0x1894] sm:$0xf]  ;;  %v16116_v9 = vld [vmem:[#allocation10 + $0x1c0c] sm:$0xf]  ;;  %v14339_v44 = vld [vmem:[#allocation10 + $0x1bd0] sm:$0xf] }
 0x4de   :  { %8507 = vmatpush.bf16.msrb.mxu0 %v14324_v28  ;;  %8606 = vmatmul.bf16.vlgmr.msrb.gmra.mxu3 %v17817_v22  ;;  %v14464_v28 = vor.u32 %v16140_v25, %v14461_v30  ;;  %v16174_v25 = vld [vmem:[#allocation10 + $0x1ddc] sm:$0xf] }
 0x4df   :  { %9059 = vmatpush.bf16.msra.mxu3 %v14592_v3  ;;  %8054 = vmatmul.bf16.vlgmr.msra.gmra.mxu0 %v17781_v31  ;;  %v7003_v6 = vpop.f32.mrf.mxu2  ;;  %v13931_v3 = vld [vmem:[#allocation10 + $0x1898] sm:$0xf]  ;;  %v14605_v30 = vld [vmem:[#allocation10 + $0x1df8] sm:$0xf0] }
 0x4e0   :  { %v17846_v12 = vadd.f32 %v7003_v6, %v17810_v37  ;;  %v14340_v6 = vor.u32 %v16113_v36, %v14339_v44  ;;  %v14211_v36 = vld [vmem:[#allocation10 + $0x1ad0] sm:$0xf] }
 0x4e1   :  { %8060 = vmatpush.bf16.msra.mxu1 %v14056_v51  ;;  %8073 = vmatpush.bf16.msra.mxu2 %v14060_v5  ;;  %v7581_v21 = vpop.f32.mrf.mxu3  ;;  %v14429_v51 = vld [vmem:[#allocation10 + $0x1ca8] sm:$0xf0]  ;;  %v6992_v34 = vpop.f32.mrf.mxu1 }
 0x4e2   :  { %8508 = vmatpush.bf16.msrb.mxu0 %v14292_v2  ;;  %v17849_v5 = vadd.f32 %v7581_v21, %v17813_v33  ;;  %v13928_v2 = vor.u32 %v16005_v48, %v13925_v10  ;;  %v14432_v37 = vor.u32 %v16132_v16, %v14429_v51  ;;  %v15989_v33 = vld [vmem:[#allocation10 + $0x1814] sm:$0xf]  ;;  %v14328_v48 = vor.u32 %v16107_v58, %v14325_v43  ;;  %v14307_v21 = vld [vmem:[#allocation10 + $0x1b90] sm:$0xf]  ;;  %v16166_v16 = vld [vmem:[#allocation10 + $0x1d9c] sm:$0xf] }
 0x4e3   :  { %9060 = vmatpush.bf16.msra.mxu3 %v14560_v55  ;;  %v13932_v55 = vor.u32 %v16010_v29, %v13931_v3  ;;  %v14608_v3 = vor.u32 %v16174_v25, %v14605_v30  ;;  %v14299_v29 = vld [vmem:[#allocation10 + $0x1b88] sm:$0xf]  ;;  %v14573_v51 = vld [vmem:[#allocation10 + $0x1db8] sm:$0xf0]  ;;  %v14308_v11 = vor.u32 %v16105_v17, %v14307_v21  ;;  %v16075_v58 = vld [vmem:[#allocation10 + $0x1ac4] sm:$0xf] }
 0x4e4   :  { %v7031_v59 = vpop.f32.mrf.mxu0  ;;  %v14197_v43 = vld [vmem:[#allocation10 + $0x1ae0] sm:$0xf0]  ;;  %v16081_v25 = vld [vmem:[#allocation10 + $0x1aec] sm:$0xf0]  ;;  %v16142_v30 = vld [vmem:[#allocation10 + $0x1cdc] sm:$0xf] }
 0x4e5   :  { %8061 = vmatpush.bf16.msra.mxu1 %v14024_v56  ;;  %8074 = vmatpush.bf16.msra.mxu2 %v14028_v14  ;;  %v16063_v56 = vld [vmem:[#allocation10 + $0x1a5c] sm:$0xf0]  ;;  %v16124_v14 = vld [vmem:[#allocation10 + $0x1c4c] sm:$0xf]  ;;  %v14300_v59 = vor.u32 %v16104_v49, %v14299_v29  ;;  %v14179_v29 = vld [vmem:[#allocation10 + $0x1a90] sm:$0xf] }
 0x4e6   :  { %8509 = vmatpush.bf16.msrb.mxu0 %v14260_v45  ;;  %v13900_v45 = vor.u32 %v16002_v15, %v13899_v8  ;;  %v14132_v60 = vor.u32 %v16063_v56, %v14131_v50  ;;  %v14400_v24 = vor.u32 %v16124_v14, %v14397_v39  ;;  %v16096_v8 = vld [vmem:[#allocation10 + $0x1b64] sm:$0xf0]  ;;  %v14275_v15 = vld [vmem:[#allocation10 + $0x1b50] sm:$0xf]  ;;  %v16158_v56 = vld [vmem:[#allocation10 + $0x1d5c] sm:$0xf] }
 0x4e7   :  { %9061 = vmatpush.bf16.msra.mxu3 %v14528_v19  ;;  %v13861_v19 = vld [vmem:[#allocation10 + $0x1830] sm:$0xf0]  ;;  %v7005_v63 = vpop.f32.mrf.mxu2  ;;  %v16097_v50 = vld [vmem:[#allocation10 + $0x1b6c] sm:$0xf0]  ;;  %v14541_v14 = vld [vmem:[#allocation10 + $0x1d78] sm:$0xf0] }
 0x4e8   :  { %v13864_v38 = vor.u32 %v15989_v33, %v13861_v19  ;;  %v16083_v33 = vld [vmem:[#allocation10 + $0x1b04] sm:$0xf]  ;;  %v14544_v19 = vor.u32 %v16158_v56, %v14541_v14  ;;  %v14509_v63 = vld [vmem:[#allocation10 + $0x1d38] sm:$0xf0]  ;;  %v16073_v17 = vld [vmem:[#allocation10 + $0x1aac] sm:$0xf0] }
 0x4e9   :  { %8062 = vmatpush.bf16.msra.mxu1 %v13992_v53  ;;  %8075 = vmatpush.bf16.msra.mxu2 %v13996_v57  ;;  %v7583_v53 = vpop.f32.mrf.mxu3  ;;  %v14365_v57 = vld [vmem:[#allocation10 + $0x1c28] sm:$0xf0]  ;;  %v14147_v56 = vld [vmem:[#allocation10 + $0x1a50] sm:$0xf] }
 0x4ea   :  { %8510 = vmatpush.bf16.msrb.mxu0 %v14228_v52  ;;  %v14331_v52 = vld [vmem:[#allocation10 + $0x1bc8] sm:$0xf]  ;;  %v16065_v14 = vld [vmem:[#allocation10 + $0x1a6c] sm:$0xf0] }
 0x4eb   :  { %9062 = vmatpush.bf16.msra.mxu3 %v14496_v46  ;;  %v16112_v46 = vld [vmem:[#allocation10 + $0x1be4] sm:$0xf0] }
 0x4ec   :  { %v14332_v10 = vor.u32 %v16112_v46, %v14331_v52 }
 0x4ed   :  { %8063 = vmatpush.bf16.msra.mxu1 %v13960_v0  ;;  %8076 = vmatpush.bf16.msra.mxu2 %v13964_v40  ;;  %v14100_v0 = vor.u32 %v16055_v26, %v14099_v20  ;;  %v14368_v40 = vor.u32 %v16116_v9, %v14365_v57  ;;  %v14236_v57 = vor.u32 %v16088_v1, %v14235_v23  ;;  %v16056_v23 = vld [vmem:[#allocation10 + $0x1a24] sm:$0xf0] }
 0x4ee   :  { %8511 = vmatpush.bf16.msrb.mxu0 %v14196_v41  ;;  %v16099_v41 = vld [vmem:[#allocation10 + $0x1b84] sm:$0xf]  ;;  %v14148_v1 = vor.u32 %v16065_v14, %v14147_v56  ;;  %v14781_v56 = vld [vmem:[#allocation10 + $0x1f68] sm:$0xf0] }
 0x4ef   :  { %9063 = vmatpush.bf16.msra.mxu3 %v14464_v28  ;;  %v14293_v28 = vld [vmem:[#allocation10 + $0x1ba0] sm:$0xf0] }
 0x4f0   :  { %v14296_v34 = vor.u32 %v16099_v41, %v14293_v28  ;;  %v14212_v41 = vor.u32 %v16081_v25, %v14211_v36  ;;  %v16175_v36 = vld [vmem:[#allocation10 + $0x1ddc] sm:$0xf0]  ;;  %v16236_v25 = vld [vmem:[#allocation10 + $0x1fcc] sm:$0xf] }
 0x4f1   :  { %8064 = vmatpush.bf16.msra.mxu1 %v13928_v2  ;;  %8077 = vmatpush.bf16.msra.mxu2 %v13932_v55  ;;  %v16091_v2 = vld [vmem:[#allocation10 + $0x1b44] sm:$0xf] }
 0x4f2   :  { %8512 = vmatpush.bf16.msrb.mxu0 %v14164_v62  ;;  %v14261_v55 = vld [vmem:[#allocation10 + $0x1b60] sm:$0xf0]  ;;  %v14576_v62 = vor.u32 %v16166_v16, %v14573_v51  ;;  %v16134_v16 = vld [vmem:[#allocation10 + $0x1c9c] sm:$0xf] }
 0x4f3   :  { %9064 = vmatpush.bf16.msra.mxu3 %v14432_v37  ;;  %v14267_v37 = vld [vmem:[#allocation10 + $0x1b48] sm:$0xf]  ;;  %v14264_v18 = vor.u32 %v16091_v2, %v14261_v55  ;;  %v14445_v51 = vld [vmem:[#allocation10 + $0x1cb8] sm:$0xf0] }
 0x4f4   :  { %v14268_v39 = vor.u32 %v16096_v8, %v14267_v37  ;;  %v14133_v37 = vld [vmem:[#allocation10 + $0x1a60] sm:$0xf0]  ;;  %v14180_v8 = vor.u32 %v16073_v17, %v14179_v29  ;;  %v14547_v29 = vld [vmem:[#allocation10 + $0x1d80] sm:$0xf]  ;;  %v16228_v17 = vld [vmem:[#allocation10 + $0x1f8c] sm:$0xf] }
 0x4f5   :  { %8065 = vmatpush.bf16.msra.mxu1 %v13896_v27  ;;  %8078 = vmatpush.bf16.msra.mxu2 %v13900_v45  ;;  %v14229_v27 = vld [vmem:[#allocation10 + $0x1b20] sm:$0xf0]  ;;  %v14276_v45 = vor.u32 %v16097_v50, %v14275_v15  ;;  %v14139_v15 = vld [vmem:[#allocation10 + $0x1a48] sm:$0xf] }
 0x4f6   :  { %8513 = vmatpush.bf16.msrb.mxu0 %v14132_v60  ;;  %v16089_v60 = vld [vmem:[#allocation10 + $0x1b2c] sm:$0xf0]  ;;  %v14232_v53 = vor.u32 %v16083_v33, %v14229_v27  ;;  %v16064_v50 = vld [vmem:[#allocation10 + $0x1a64] sm:$0xf0] }
 0x4f7   :  { %9065 = vmatpush.bf16.msra.mxu3 %v14400_v24  ;;  %v16150_v24 = vld [vmem:[#allocation10 + $0x1d1c] sm:$0xf]  ;;  %v14140_v27 = vor.u32 %v16064_v50, %v14139_v15  ;;  %v16159_v15 = vld [vmem:[#allocation10 + $0x1d5c] sm:$0xf0]  ;;  %v16220_v50 = vld [vmem:[#allocation10 + $0x1f4c] sm:$0xf] }
 0x4f8   :  { %v14512_v44 = vor.u32 %v16150_v24, %v14509_v63  ;;  %v14115_v24 = vld [vmem:[#allocation10 + $0x1a10] sm:$0xf] }
 0x4f9   :  { %8066 = vmatpush.bf16.msra.mxu1 %v13864_v38  ;;  %8079 = vmatpush.bf16.msra.mxu2 %v13868_v35  ;;  %v7042_v20 = vpop.f32.mrf.mxu1  ;;  %v14203_v38 = vld [vmem:[#allocation10 + $0x1ac8] sm:$0xf]  ;;  %v16057_v63 = vld [vmem:[#allocation10 + $0x1a2c] sm:$0xf0] }
 0x4fa   :  { %8514 = vmatpush.bf16.msrb.mxu0 %v14100_v0  ;;  %v17860_v26 = vadd.f32 %v7042_v20, %v17824_v54  ;;  %v16080_v35 = vld [vmem:[#allocation10 + $0x1ae4] sm:$0xf0]  ;;  %v14477_v0 = vld [vmem:[#allocation10 + $0x1cf8] sm:$0xf0]  ;;  %v14200_v54 = vor.u32 %v16075_v58, %v14197_v43  ;;  %v14341_v58 = vld [vmem:[#allocation10 + $0x1bf0] sm:$0xf0] }
 0x4fb   :  { %9066 = vmatpush.bf16.msra.mxu3 %v14368_v40  ;;  %v14204_v40 = vor.u32 %v16080_v35, %v14203_v38  ;;  %v14480_v28 = vor.u32 %v16142_v30, %v14477_v0  ;;  %v16118_v20 = vld [vmem:[#allocation10 + $0x1c1c] sm:$0xf]  ;;  %v14347_v43 = vld [vmem:[#allocation10 + $0x1bd8] sm:$0xf]  ;;  %v14845_v30 = vld [vmem:[#allocation10 + $0x1fe8] sm:$0xf0]  ;;  %v14116_v0 = vor.u32 %v16057_v63, %v14115_v24 }
 0x4fc   :  { %8067 = vmatmul.bf16.vlgmr.msra.gmra.mxu1 %v17781_v31  ;;  %8080 = vmatmul.bf16.vlgmr.msra.gmra.mxu2 %v17781_v31  ;;  %v14243_v31 = vld [vmem:[#allocation10 + $0x1b10] sm:$0xf]  ;;  %v7490_v9 = vpop.f32.mrf.mxu0 }
 0x4fd   :  { %8520 = vmatpush.bf16.msrb.mxu1 %v14328_v48  ;;  %8533 = vmatpush.bf16.msrb.mxu2 %v14332_v10  ;;  %v17863_v52 = vadd.f32 %v7490_v9, %v17827_v61  ;;  %v14244_v46 = vor.u32 %v16089_v60, %v14243_v31  ;;  %v16067_v48 = vld [vmem:[#allocation10 + $0x1a84] sm:$0xf] }
 0x4fe   :  { %8559 = vmatpush.bf16.msra.mxu0 %v14340_v6  ;;  %9067 = vmatmul.bf16.vlgmr.msra.gmra.mxu3 %v17853_v13  ;;  %v14165_v10 = vld [vmem:[#allocation10 + $0x1aa0] sm:$0xf0]  ;;  %v14171_v6 = vld [vmem:[#allocation10 + $0x1a88] sm:$0xf] }
 0x4ff   :  { %9111 = vmatpush.bf16.msrb.mxu3 %v14608_v3  ;;  %8515 = vmatmul.bf16.vlgmr.msrb.gmra.mxu0 %v17817_v22  ;;  %v7055_v61 = vpop.f32.mrf.mxu2  ;;  %v16072_v3 = vld [vmem:[#allocation10 + $0x1aa4] sm:$0xf0]  ;;  %v14168_v55 = vor.u32 %v16067_v48, %v14165_v10  ;;  %v16101_v10 = vld [vmem:[#allocation10 + $0x1b94] sm:$0xf] }
 0x500   :  { %v17866_v49 = vadd.f32 %v7055_v61, %v17830_v42  ;;  %v14448_v42 = vor.u32 %v16134_v16, %v14445_v51  ;;  %v14848_v61 = vor.u32 %v16236_v25, %v14845_v30  ;;  %v14813_v16 = vld [vmem:[#allocation10 + $0x1fa8] sm:$0xf0]  ;;  %v16143_v25 = vld [vmem:[#allocation10 + $0x1cdc] sm:$0xf0] }
 0x501   :  { %8521 = vmatpush.bf16.msrb.mxu1 %v14296_v34  ;;  %8534 = vmatpush.bf16.msrb.mxu2 %v14300_v59  ;;  %v8042_v21 = vpop.f32.mrf.mxu3  ;;  %v7044_v59 = vpop.f32.mrf.mxu1  ;;  %v16204_v30 = vld [vmem:[#allocation10 + $0x1ecc] sm:$0xf] }
 0x502   :  { %8560 = vmatpush.bf16.msra.mxu0 %v14308_v11  ;;  %v17869_v34 = vadd.f32 %v8042_v21, %v17833_v7  ;;  %v14172_v11 = vor.u32 %v16072_v3, %v14171_v6  ;;  %v16051_v7 = vld [vmem:[#allocation10 + $0x1a04] sm:$0xf]  ;;  %v14315_v6 = vld [vmem:[#allocation10 + $0x1b98] sm:$0xf]  ;;  %v16167_v21 = vld [vmem:[#allocation10 + $0x1d9c] sm:$0xf0] }
 0x503   :  { %9112 = vmatpush.bf16.msrb.mxu3 %v14576_v62  ;;  %v16059_v62 = vld [vmem:[#allocation10 + $0x1a44] sm:$0xf]  ;;  %v16106_v3 = vld [vmem:[#allocation10 + $0x1bb4] sm:$0xf0] }
 0x504   :  { %v7492_v2 = vpop.f32.mrf.mxu0  ;;  %v14136_v33 = vor.u32 %v16059_v62, %v14133_v37  ;;  %v14316_v59 = vor.u32 %v16106_v3, %v14315_v6  ;;  %v14816_v62 = vor.u32 %v16228_v17, %v14813_v16  ;;  %v14283_v37 = vld [vmem:[#allocation10 + $0x1b58] sm:$0xf]  ;;  %v14419_v6 = vld [vmem:[#allocation10 + $0x1c80] sm:$0xf]  ;;  %v16196_v17 = vld [vmem:[#allocation10 + $0x1e8c] sm:$0xf] }
 0x505   :  { %8522 = vmatpush.bf16.msrb.mxu1 %v14264_v18  ;;  %8535 = vmatpush.bf16.msrb.mxu2 %v14268_v39  ;;  %v16126_v18 = vld [vmem:[#allocation10 + $0x1c5c] sm:$0xf]  ;;  %v16093_v2 = vld [vmem:[#allocation10 + $0x1b54] sm:$0xf]  ;;  %v14685_v16 = vld [vmem:[#allocation10 + $0x1ea8] sm:$0xf0] }
 0x506   :  { %8561 = vmatpush.bf16.msra.mxu0 %v14276_v45  ;;  %v14413_v39 = vld [vmem:[#allocation10 + $0x1c78] sm:$0xf0]  ;;  %v14101_v45 = vld [vmem:[#allocation10 + $0x1a20] sm:$0xf0] }
 0x507   :  { %9113 = vmatpush.bf16.msrb.mxu3 %v14544_v19  ;;  %v14107_v19 = vld [vmem:[#allocation10 + $0x1a08] sm:$0xf]  ;;  %v14416_v31 = vor.u32 %v16126_v18, %v14413_v39  ;;  %v7057_v60 = vpop.f32.mrf.mxu2  ;;  %v14104_v38 = vor.u32 %v16051_v7, %v14101_v45  ;;  %v16085_v39 = vld [vmem:[#allocation10 + $0x1b14] sm:$0xf]  ;;  %v14251_v45 = vld [vmem:[#allocation10 + $0x1b18] sm:$0xf] }
 0x508   :  { %v14108_v35 = vor.u32 %v16056_v23, %v14107_v19  ;;  %v14245_v7 = vld [vmem:[#allocation10 + $0x1b30] sm:$0xf0]  ;;  %v16090_v19 = vld [vmem:[#allocation10 + $0x1b34] sm:$0xf0]  ;;  %v14483_v23 = vld [vmem:[#allocation10 + $0x1d00] sm:$0xf] }
 0x509   :  { %8523 = vmatpush.bf16.msrb.mxu1 %v14232_v53  ;;  %8536 = vmatpush.bf16.msrb.mxu2 %v14236_v57  ;;  %v8044_v9 = vpop.f32.mrf.mxu3  ;;  %v14381_v53 = vld [vmem:[#allocation10 + $0x1c38] sm:$0xf0]  ;;  %v16109_v57 = vld [vmem:[#allocation10 + $0x1bd4] sm:$0xf]  ;;  %v14749_v60 = vld [vmem:[#allocation10 + $0x1f28] sm:$0xf0] }
 0x50a   :  { %8562 = vmatpush.bf16.msra.mxu0 %v14244_v46  ;;  %v16114_v46 = vld [vmem:[#allocation10 + $0x1bf4] sm:$0xf0]  ;;  %v14248_v9 = vor.u32 %v16085_v39, %v14245_v7 }
 0x50b   :  { %9114 = vmatpush.bf16.msrb.mxu3 %v14512_v44  ;;  %v14579_v44 = vld [vmem:[#allocation10 + $0x1dc0] sm:$0xf]  ;;  %v14348_v48 = vor.u32 %v16114_v46, %v14347_v43 }
 0x50d   :  { %8524 = vmatpush.bf16.msrb.mxu1 %v14200_v54  ;;  %8537 = vmatpush.bf16.msrb.mxu2 %v14204_v40  ;;  %v14384_v54 = vor.u32 %v16118_v20, %v14381_v53  ;;  %v14344_v40 = vor.u32 %v16109_v57, %v14341_v58  ;;  %v14252_v53 = vor.u32 %v16090_v19, %v14251_v45  ;;  %v16077_v57 = vld [vmem:[#allocation10 + $0x1ad4] sm:$0xf]  ;;  %v16058_v45 = vld [vmem:[#allocation10 + $0x1a34] sm:$0xf0] }
 0x50e   :  { %8563 = vmatpush.bf16.msra.mxu0 %v14212_v41  ;;  %v14309_v41 = vld [vmem:[#allocation10 + $0x1bb0] sm:$0xf0] }
 0x50f   :  { %9115 = vmatpush.bf16.msrb.mxu3 %v14480_v28  ;;  %v14580_v28 = vor.u32 %v16175_v36, %v14579_v44  ;;  %v14312_v51 = vor.u32 %v16101_v10, %v14309_v41  ;;  %v14213_v58 = vld [vmem:[#allocation10 + $0x1af0] sm:$0xf0]  ;;  %v14451_v36 = vld [vmem:[#allocation10 + $0x1cc0] sm:$0xf] }
 0x510   :  { %v14452_v10 = vor.u32 %v16143_v25, %v14451_v36  ;;  %v16177_v36 = vld [vmem:[#allocation10 + $0x1dec] sm:$0xf0]  ;;  %v16238_v25 = vld [vmem:[#allocation10 + $0x1fdc] sm:$0xf] }
 0x511   :  { %8525 = vmatpush.bf16.msrb.mxu1 %v14168_v55  ;;  %8538 = vmatpush.bf16.msrb.mxu2 %v14172_v11  ;;  %v14277_v55 = vld [vmem:[#allocation10 + $0x1b70] sm:$0xf0]  ;;  %v14548_v11 = vor.u32 %v16167_v21, %v14547_v29  ;;  %v16135_v21 = vld [vmem:[#allocation10 + $0x1c9c] sm:$0xf0] }
 0x512   :  { %8564 = vmatpush.bf16.msra.mxu0 %v14180_v8  ;;  %v16098_v8 = vld [vmem:[#allocation10 + $0x1b74] sm:$0xf0]  ;;  %v14280_v14 = vor.u32 %v16093_v2, %v14277_v55 }
 0x513   :  { %9116 = vmatpush.bf16.msrb.mxu3 %v14448_v42  ;;  %v14515_v42 = vld [vmem:[#allocation10 + $0x1d40] sm:$0xf]  ;;  %v14284_v18 = vor.u32 %v16098_v8, %v14283_v37  ;;  %v14149_v37 = vld [vmem:[#allocation10 + $0x1a70] sm:$0xf0]  ;;  %v14420_v8 = vor.u32 %v16135_v21, %v14419_v6  ;;  %v14563_v6 = vld [vmem:[#allocation10 + $0x1d90] sm:$0xf] }
 0x514   :  { %v16230_v21 = vld [vmem:[#allocation10 + $0x1f9c] sm:$0xf] }
 0x515   :  { %8526 = vmatpush.bf16.msrb.mxu1 %v14136_v33  ;;  %8539 = vmatpush.bf16.msrb.mxu2 %v14140_v27  ;;  %v14516_v33 = vor.u32 %v16159_v15, %v14515_v42  ;;  %v14784_v27 = vor.u32 %v16220_v50, %v14781_v56  ;;  %v14155_v42 = vld [vmem:[#allocation10 + $0x1a58] sm:$0xf]  ;;  %v14387_v50 = vld [vmem:[#allocation10 + $0x1c40] sm:$0xf] }
 0x516   :  { %8565 = vmatpush.bf16.msra.mxu0 %v14148_v1  ;;  %v16151_v1 = vld [vmem:[#allocation10 + $0x1d1c] sm:$0xf0]  ;;  %v16066_v15 = vld [vmem:[#allocation10 + $0x1a74] sm:$0xf0] }
 0x517   :  { %9117 = vmatpush.bf16.msrb.mxu3 %v14416_v31  ;;  %v16212_v31 = vld [vmem:[#allocation10 + $0x1f0c] sm:$0xf]  ;;  %v14484_v46 = vor.u32 %v16151_v1, %v14483_v23  ;;  %v16127_v56 = vld [vmem:[#allocation10 + $0x1c5c] sm:$0xf0]  ;;  %v14156_v7 = vor.u32 %v16066_v15, %v14155_v42  ;;  %v14531_v42 = vld [vmem:[#allocation10 + $0x1d50] sm:$0xf] }
 0x518   :  { %v14752_v44 = vor.u32 %v16212_v31, %v14749_v60  ;;  %v14388_v19 = vor.u32 %v16127_v56, %v14387_v50  ;;  %v14355_v31 = vld [vmem:[#allocation10 + $0x1c00] sm:$0xf]  ;;  %v16161_v15 = vld [vmem:[#allocation10 + $0x1d6c] sm:$0xf0]  ;;  %v16222_v50 = vld [vmem:[#allocation10 + $0x1f5c] sm:$0xf] }
 0x519   :  { %8527 = vmatpush.bf16.msrb.mxu1 %v14104_v38  ;;  %8540 = vmatpush.bf16.msrb.mxu2 %v14108_v35  ;;  %v7503_v24 = vpop.f32.mrf.mxu1  ;;  %v14219_v38 = vld [vmem:[#allocation10 + $0x1ad8] sm:$0xf]  ;;  %v16119_v60 = vld [vmem:[#allocation10 + $0x1c1c] sm:$0xf0]  ;;  %v14797_v56 = vld [vmem:[#allocation10 + $0x1f78] sm:$0xf0] }
 0x51a   :  { %8566 = vmatpush.bf16.msra.mxu0 %v14116_v0  ;;  %v17876_v63 = vadd.f32 %v7503_v24, %v17840_v4  ;;  %v16082_v35 = vld [vmem:[#allocation10 + $0x1af4] sm:$0xf0]  ;;  %v14717_v0 = vld [vmem:[#allocation10 + $0x1ee8] sm:$0xf0]  ;;  %v14216_v4 = vor.u32 %v16077_v57, %v14213_v58  ;;  %v14581_v57 = vld [vmem:[#allocation10 + $0x1de0] sm:$0xf0] }
 0x51b   :  { %9118 = vmatpush.bf16.msrb.mxu3 %v14384_v54  ;;  %v14220_v54 = vor.u32 %v16082_v35, %v14219_v38  ;;  %v14720_v41 = vor.u32 %v16204_v30, %v14717_v0  ;;  %v16180_v24 = vld [vmem:[#allocation10 + $0x1e0c] sm:$0xf]  ;;  %v14587_v58 = vld [vmem:[#allocation10 + $0x1dc8] sm:$0xf]  ;;  %v14861_v30 = vld [vmem:[#allocation10 + $0x1ff8] sm:$0xf0]  ;;  %v14356_v0 = vor.u32 %v16119_v60, %v14355_v31 }
 0x51c   :  { %8528 = vmatmul.bf16.vlgmr.msrb.gmra.mxu1 %v17817_v22  ;;  %8541 = vmatmul.bf16.vlgmr.msrb.gmra.mxu2 %v17817_v22  ;;  %v7542_v20 = vpop.f32.mrf.mxu0 }
 0x51d   :  { %8572 = vmatpush.bf16.msra.mxu1 %v14344_v40  ;;  %8585 = vmatpush.bf16.msra.mxu2 %v14348_v48  ;;  %v17879_v43 = vadd.f32 %v7542_v20, %v17843_v47  ;;  %v16069_v40 = vld [vmem:[#allocation10 + $0x1a94] sm:$0xf] }
 0x51e   :  { %9020 = vmatpush.bf16.msrb.mxu0 %v14580_v28  ;;  %9119 = vmatmul.bf16.vlgmr.msrb.gmra.mxu3 %v17853_v13  ;;  %v14181_v48 = vld [vmem:[#allocation10 + $0x1ab0] sm:$0xf0]  ;;  %v14187_v28 = vld [vmem:[#allocation10 + $0x1a98] sm:$0xf] }
 0x51f   :  { %9572 = vmatpush.bf16.msra.mxu3 %v14848_v61  ;;  %8567 = vmatmul.bf16.vlgmr.msra.gmra.mxu0 %v17817_v22  ;;  %v7516_v47 = vpop.f32.mrf.mxu2  ;;  %v16074_v61 = vld [vmem:[#allocation10 + $0x1ab4] sm:$0xf0]  ;;  %v14184_v55 = vor.u32 %v16069_v40, %v14181_v48  ;;  %v16163_v48 = vld [vmem:[#allocation10 + $0x1d84] sm:$0xf] }
 0x520   :  { %v17882_v3 = vadd.f32 %v7516_v47, %v17846_v12  ;;  %v14688_v12 = vor.u32 %v16196_v17, %v14685_v16  ;;  %v14864_v47 = vor.u32 %v16238_v25, %v14861_v30  ;;  %v14829_v17 = vld [vmem:[#allocation10 + $0x1fb8] sm:$0xf0] }
 0x521   :  { %8573 = vmatpush.bf16.msra.mxu1 %v14312_v51  ;;  %8586 = vmatpush.bf16.msra.mxu2 %v14316_v59  ;;  %v8094_v29 = vpop.f32.mrf.mxu3  ;;  %v7505_v59 = vpop.f32.mrf.mxu1  ;;  %v16206_v25 = vld [vmem:[#allocation10 + $0x1edc] sm:$0xf] }
 0x522   :  { %9021 = vmatpush.bf16.msrb.mxu0 %v14548_v11  ;;  %v17885_v51 = vadd.f32 %v8094_v29, %v17849_v5  ;;  %v14188_v11 = vor.u32 %v16074_v61, %v14187_v28  ;;  %v16053_v5 = vld [vmem:[#allocation10 + $0x1a14] sm:$0xf]  ;;  %v14555_v28 = vld [vmem:[#allocation10 + $0x1d88] sm:$0xf]  ;;  %v16169_v29 = vld [vmem:[#allocation10 + $0x1dac] sm:$0xf0] }
 0x523   :  { %9573 = vmatpush.bf16.msra.mxu3 %v14816_v62  ;;  %v16061_v62 = vld [vmem:[#allocation10 + $0x1a54] sm:$0xf]  ;;  %v16168_v61 = vld [vmem:[#allocation10 + $0x1da4] sm:$0xf0]  ;;  %v14733_v30 = vld [vmem:[#allocation10 + $0x1ef8] sm:$0xf0] }
 0x524   :  { %v7544_v2 = vpop.f32.mrf.mxu0  ;;  %v14152_v39 = vor.u32 %v16061_v62, %v14149_v37  ;;  %v14556_v59 = vor.u32 %v16168_v61, %v14555_v28  ;;  %v14564_v62 = vor.u32 %v16169_v29, %v14563_v6  ;;  %v14832_v37 = vor.u32 %v16230_v21, %v14829_v17  ;;  %v16137_v6 = vld [vmem:[#allocation10 + $0x1cac] sm:$0xf0]  ;;  %v16198_v29 = vld [vmem:[#allocation10 + $0x1e9c] sm:$0xf] }
 0x525   :  { %8574 = vmatpush.bf16.msra.mxu1 %v14280_v14  ;;  %8587 = vmatpush.bf16.msra.mxu2 %v14284_v18  ;;  %v16188_v14 = vld [vmem:[#allocation10 + $0x1e4c] sm:$0xf]  ;;  %v16155_v2 = vld [vmem:[#allocation10 + $0x1d44] sm:$0xf]  ;;  %v14701_v21 = vld [vmem:[#allocation10 + $0x1eb8] sm:$0xf0] }
 0x526   :  { %9022 = vmatpush.bf16.msrb.mxu0 %v14516_v33  ;;  %v14653_v18 = vld [vmem:[#allocation10 + $0x1e68] sm:$0xf0]  ;;  %v14117_v33 = vld [vmem:[#allocation10 + $0x1a30] sm:$0xf0] }
 0x527   :  { %9574 = vmatpush.bf16.msra.mxu3 %v14784_v27  ;;  %v14123_v27 = vld [vmem:[#allocation10 + $0x1a18] sm:$0xf]  ;;  %v14656_v23 = vor.u32 %v16188_v14, %v14653_v18  ;;  %v7518_v1 = vpop.f32.mrf.mxu2  ;;  %v14120_v38 = vor.u32 %v16053_v5, %v14117_v33  ;;  %v16147_v18 = vld [vmem:[#allocation10 + $0x1d04] sm:$0xf]  ;;  %v14491_v33 = vld [vmem:[#allocation10 + $0x1d08] sm:$0xf] }
 0x528   :  { %v14124_v35 = vor.u32 %v16058_v45, %v14123_v27  ;;  %v14485_v5 = vld [vmem:[#allocation10 + $0x1d20] sm:$0xf0]  ;;  %v16152_v27 = vld [vmem:[#allocation10 + $0x1d24] sm:$0xf0]  ;;  %v16153_v45 = vld [vmem:[#allocation10 + $0x1d2c] sm:$0xf0] }
 0x529   :  { %8575 = vmatpush.bf16.msra.mxu1 %v14248_v9  ;;  %8588 = vmatpush.bf16.msra.mxu2 %v14252_v53  ;;  %v8096_v20 = vpop.f32.mrf.mxu3  ;;  %v14621_v9 = vld [vmem:[#allocation10 + $0x1e28] sm:$0xf0]  ;;  %v16171_v53 = vld [vmem:[#allocation10 + $0x1dc4] sm:$0xf] }
 0x52a   :  { %9023 = vmatpush.bf16.msrb.mxu0 %v14484_v46  ;;  %v16176_v46 = vld [vmem:[#allocation10 + $0x1de4] sm:$0xf0]  ;;  %v14492_v20 = vor.u32 %v16152_v27, %v14491_v33 }
 0x52b   :  { %9575 = vmatpush.bf16.msra.mxu3 %v14752_v44  ;;  %v14595_v44 = vld [vmem:[#allocation10 + $0x1dd0] sm:$0xf]  ;;  %v14588_v40 = vor.u32 %v16176_v46, %v14587_v58 }
 0x52d   :  { %8576 = vmatpush.bf16.msra.mxu1 %v14216_v4  ;;  %8589 = vmatpush.bf16.msra.mxu2 %v14220_v54  ;;  %v14624_v4 = vor.u32 %v16180_v24, %v14621_v9  ;;  %v14584_v54 = vor.u32 %v16171_v53, %v14581_v57  ;;  %v14488_v24 = vor.u32 %v16147_v18, %v14485_v5  ;;  %v16139_v9 = vld [vmem:[#allocation10 + $0x1cc4] sm:$0xf] }
 0x52e   :  { %9024 = vmatpush.bf16.msrb.mxu0 %v14452_v10  ;;  %v14549_v10 = vld [vmem:[#allocation10 + $0x1da0] sm:$0xf0] }
 0x52f   :  { %9576 = vmatpush.bf16.msra.mxu3 %v14720_v41  ;;  %v14596_v41 = vor.u32 %v16177_v36, %v14595_v44  ;;  %v14552_v16 = vor.u32 %v16163_v48, %v14549_v10  ;;  %v14453_v53 = vld [vmem:[#allocation10 + $0x1ce0] sm:$0xf0]  ;;  %v14459_v44 = vld [vmem:[#allocation10 + $0x1cc8] sm:$0xf]  ;;  %v16145_v36 = vld [vmem:[#allocation10 + $0x1cec] sm:$0xf0]  ;;  %v14736_v48 = vor.u32 %v16206_v25, %v14733_v30 }
 0x530   :  { %v14427_v10 = vld [vmem:[#allocation10 + $0x1c88] sm:$0xf]  ;;  %v16115_v18 = vld [vmem:[#allocation10 + $0x1c04] sm:$0xf] }
 0x531   :  { %8577 = vmatpush.bf16.msra.mxu1 %v14184_v55  ;;  %8590 = vmatpush.bf16.msra.mxu2 %v14188_v11  ;;  %v14517_v55 = vld [vmem:[#allocation10 + $0x1d60] sm:$0xf0]  ;;  %v17889_v11 = vpack.c.b16 %v17439_v32, %v17439_v32 }
 0x532   :  { %9025 = vmatpush.bf16.msrb.mxu0 %v14420_v8  ;;  %v14523_v8 = vld [vmem:[#allocation10 + $0x1d48] sm:$0xf]  ;;  %v14520_v32 = vor.u32 %v16155_v2, %v14517_v55  ;;  %v14357_v5 = vld [vmem:[#allocation10 + $0x1c20] sm:$0xf0] }
 0x533   :  { %9577 = vmatpush.bf16.msra.mxu3 %v14688_v12  ;;  %v16160_v12 = vld [vmem:[#allocation10 + $0x1d64] sm:$0xf0] }
 0x534   :  { %v14524_v14 = vor.u32 %v16160_v12, %v14523_v8  ;;  %v14395_v12 = vld [vmem:[#allocation10 + $0x1c48] sm:$0xf] }
 0x535   :  { %8578 = vmatpush.bf16.msra.mxu1 %v14152_v39  ;;  %8591 = vmatpush.bf16.msra.mxu2 %v14156_v7  ;;  %v14532_v39 = vor.u32 %v16161_v15, %v14531_v42  ;;  %v14800_v7 = vor.u32 %v16222_v50, %v14797_v56  ;;  %v16128_v42 = vld [vmem:[#allocation10 + $0x1c64] sm:$0xf0]  ;;  %v14403_v15 = vld [vmem:[#allocation10 + $0x1c50] sm:$0xf]  ;;  %v16190_v56 = vld [vmem:[#allocation10 + $0x1e5c] sm:$0xf] }
 0x536   :  { %9026 = vmatpush.bf16.msrb.mxu0 %v14388_v19  ;;  %v16214_v19 = vld [vmem:[#allocation10 + $0x1f1c] sm:$0xf]  ;;  %v16129_v50 = vld [vmem:[#allocation10 + $0x1c6c] sm:$0xf0] }
 0x537   :  { %9578 = vmatpush.bf16.msra.mxu3 %v14656_v23  ;;  %v14765_v23 = vld [vmem:[#allocation10 + $0x1f38] sm:$0xf0] }
 0x538   :  { %v14768_v46 = vor.u32 %v16214_v19, %v14765_v23  ;;  %v16121_v19 = vld [vmem:[#allocation10 + $0x1c2c] sm:$0xf0] }
 0x539   :  { %8579 = vmatpush.bf16.msra.mxu1 %v14120_v38  ;;  %8592 = vmatpush.bf16.msra.mxu2 %v14124_v35  ;;  %v7555_v1 = vpop.f32.mrf.mxu1  ;;  %v16144_v38 = vld [vmem:[#allocation10 + $0x1ce4] sm:$0xf0]  ;;  %v14467_v35 = vld [vmem:[#allocation10 + $0x1cd0] sm:$0xf] }
 0x53a   :  { %9027 = vmatpush.bf16.msrb.mxu0 %v14356_v0  ;;  %v17896_v31 = vadd.f32 %v7555_v1, %v17860_v26  ;;  %v14456_v26 = vor.u32 %v16139_v9, %v14453_v53  ;;  %v14460_v0 = vor.u32 %v16144_v38, %v14459_v44  ;;  %v16182_v1 = vld [vmem:[#allocation10 + $0x1e1c] sm:$0xf]  ;;  %v14603_v9 = vld [vmem:[#allocation10 + $0x1dd8] sm:$0xf]  ;;  %v14835_v44 = vld [vmem:[#allocation10 + $0x1fc0] sm:$0xf] }
 0x53b   :  { %9579 = vmatpush.bf16.msra.mxu3 %v14624_v4  ;;  %v16131_v4 = vld [vmem:[#allocation10 + $0x1c84] sm:$0xf]  ;;  %v16178_v53 = vld [vmem:[#allocation10 + $0x1df4] sm:$0xf0]  ;;  %v16239_v38 = vld [vmem:[#allocation10 + $0x1fdc] sm:$0xf0] }
 0x53c   :  { %8580 = vmatmul.bf16.vlgmr.msra.gmra.mxu1 %v17817_v22  ;;  %8593 = vmatmul.bf16.vlgmr.msra.gmra.mxu2 %v17817_v22  ;;  %v14499_v22 = vld [vmem:[#allocation10 + $0x1d10] sm:$0xf]  ;;  %v8003_v60 = vpop.f32.mrf.mxu0  ;;  %v14604_v30 = vor.u32 %v16178_v53, %v14603_v9  ;;  %v16138_v9 = vld [vmem:[#allocation10 + $0x1cb4] sm:$0xf0] }
 0x53d   :  { %9033 = vmatpush.bf16.msrb.mxu1 %v14584_v54  ;;  %9046 = vmatpush.bf16.msrb.mxu2 %v14588_v40  ;;  %v17899_v57 = vadd.f32 %v8003_v60, %v17863_v52  ;;  %v14500_v58 = vor.u32 %v16153_v45, %v14499_v22  ;;  %v14421_v54 = vld [vmem:[#allocation10 + $0x1ca0] sm:$0xf0]  ;;  %v14468_v40 = vor.u32 %v16145_v36, %v14467_v35  ;;  %v16120_v22 = vld [vmem:[#allocation10 + $0x1c24] sm:$0xf0]  ;;  %v14371_v45 = vld [vmem:[#allocation10 + $0x1c10] sm:$0xf] }
 0x53e   :  { %9072 = vmatpush.bf16.msra.mxu0 %v14596_v41  ;;  %9580 = vmatmul.bf16.vlgmr.msra.gmra.mxu3 %v17889_v11  ;;  %v16136_v41 = vld [vmem:[#allocation10 + $0x1ca4] sm:$0xf0]  ;;  %v14424_v2 = vor.u32 %v16131_v4, %v14421_v54  ;;  %v14637_v60 = vld [vmem:[#allocation10 + $0x1e38] sm:$0xf0]  ;;  %v14372_v35 = vor.u32 %v16121_v19, %v14371_v45  ;;  %v14565_v4 = vld [vmem:[#allocation10 + $0x1db0] sm:$0xf0] }
 0x53f   :  { %9624 = vmatpush.bf16.msrb.mxu3 %v14864_v47  ;;  %9028 = vmatmul.bf16.vlgmr.msrb.gmra.mxu0 %v17853_v13  ;;  %v7568_v52 = vpop.f32.mrf.mxu2  ;;  %v14435_v47 = vld [vmem:[#allocation10 + $0x1c90] sm:$0xf]  ;;  %v14428_v55 = vor.u32 %v16136_v41, %v14427_v10  ;;  %v14640_v36 = vor.u32 %v16182_v1, %v14637_v60  ;;  %v14571_v54 = vld [vmem:[#allocation10 + $0x1d98] sm:$0xf]  ;;  %v16207_v45 = vld [vmem:[#allocation10 + $0x1edc] sm:$0xf0] }
 0x540   :  { %v17902_v28 = vadd.f32 %v7568_v52, %v17866_v49  ;;  %v14436_v8 = vor.u32 %v16137_v6, %v14435_v47  ;;  %v14704_v49 = vor.u32 %v16198_v29, %v14701_v21  ;;  %v16231_v52 = vld [vmem:[#allocation10 + $0x1f9c] sm:$0xf0]  ;;  %v16157_v47 = vld [vmem:[#allocation10 + $0x1d54] sm:$0xf]  ;;  %v14539_v29 = vld [vmem:[#allocation10 + $0x1d58] sm:$0xf] }
 0x541   :  { %9034 = vmatpush.bf16.msrb.mxu1 %v14552_v16  ;;  %9047 = vmatpush.bf16.msrb.mxu2 %v14556_v59  ;;  %v8555_v61 = vpop.f32.mrf.mxu3  ;;  %v7557_v16 = vpop.f32.mrf.mxu1  ;;  %v14533_v6 = vld [vmem:[#allocation10 + $0x1d70] sm:$0xf0]  ;;  %v16162_v21 = vld [vmem:[#allocation10 + $0x1d74] sm:$0xf0] }
 0x542   :  { %9073 = vmatpush.bf16.msra.mxu0 %v14564_v62  ;;  %v17905_v17 = vadd.f32 %v8555_v61, %v17869_v34  ;;  %v16123_v62 = vld [vmem:[#allocation10 + $0x1c44] sm:$0xf]  ;;  %v14771_v16 = vld [vmem:[#allocation10 + $0x1f40] sm:$0xf] }
 0x543   :  { %9625 = vmatpush.bf16.msrb.mxu3 %v14832_v37  ;;  %v14389_v37 = vld [vmem:[#allocation10 + $0x1c60] sm:$0xf0] }
 0x544   :  { %v8005_v59 = vpop.f32.mrf.mxu0  ;;  %v14392_v34 = vor.u32 %v16123_v62, %v14389_v37  ;;  %v16149_v62 = vld [vmem:[#allocation10 + $0x1d14] sm:$0xf] }
 0x545   :  { %9035 = vmatpush.bf16.msrb.mxu1 %v14520_v32  ;;  %9048 = vmatpush.bf16.msrb.mxu2 %v14524_v14  ;;  %v14669_v32 = vld [vmem:[#allocation10 + $0x1e78] sm:$0xf0]  ;;  %v14396_v14 = vor.u32 %v16128_v42, %v14395_v12  ;;  %v16223_v59 = vld [vmem:[#allocation10 + $0x1f5c] sm:$0xf0]  ;;  %v16154_v12 = vld [vmem:[#allocation10 + $0x1d34] sm:$0xf0] }
 0x546   :  { %9074 = vmatpush.bf16.msra.mxu0 %v14532_v39  ;;  %v14363_v39 = vld [vmem:[#allocation10 + $0x1c08] sm:$0xf]  ;;  %v14672_v33 = vor.u32 %v16190_v56, %v14669_v32  ;;  %v14772_v37 = vor.u32 %v16223_v59, %v14771_v16  ;;  %v14739_v42 = vld [vmem:[#allocation10 + $0x1f00] sm:$0xf]  ;;  %v16235_v59 = vld [vmem:[#allocation10 + $0x1fc4] sm:$0xf] }
 0x547   :  { %9626 = vmatpush.bf16.msrb.mxu3 %v14800_v7  ;;  %v14404_v7 = vor.u32 %v16129_v50, %v14403_v15  ;;  %v7570_v27 = vpop.f32.mrf.mxu2  ;;  %v16215_v15 = vld [vmem:[#allocation10 + $0x1f1c] sm:$0xf0] }
 0x548   :  { %v16146_v27 = vld [vmem:[#allocation10 + $0x1cf4] sm:$0xf0] }
 0x549   :  { %9036 = vmatpush.bf16.msrb.mxu1 %v14488_v24  ;;  %9049 = vmatpush.bf16.msrb.mxu2 %v14492_v20  ;;  %v8557_v23 = vpop.f32.mrf.mxu3  ;;  %v16173_v24 = vld [vmem:[#allocation10 + $0x1dd4] sm:$0xf] }
 0x54a   :  { %9075 = vmatpush.bf16.msra.mxu0 %v14500_v58  ;;  %v14597_v20 = vld [vmem:[#allocation10 + $0x1df0] sm:$0xf0]  ;;  %v14360_v58 = vor.u32 %v16115_v18, %v14357_v5 }
 0x54b   :  { %9627 = vmatpush.bf16.msrb.mxu3 %v14768_v46  ;;  %v14364_v46 = vor.u32 %v16120_v22, %v14363_v39  ;;  %v14600_v25 = vor.u32 %v16173_v24, %v14597_v20  ;;  %v16141_v18 = vld [vmem:[#allocation10 + $0x1cd4] sm:$0xf]  ;;  %v14740_v39 = vor.u32 %v16215_v15, %v14739_v42  ;;  %v14707_v22 = vld [vmem:[#allocation10 + $0x1ec0] sm:$0xf]  ;;  %v14443_v20 = vld [vmem:[#allocation10 + $0x1c98] sm:$0xf] }
 0x54c   :  { %v14708_v1 = vor.u32 %v16207_v45, %v14707_v22  ;;  %v14437_v24 = vld [vmem:[#allocation10 + $0x1cb0] sm:$0xf0] }
 0x54d   :  { %9037 = vmatpush.bf16.msrb.mxu1 %v14456_v26  ;;  %9050 = vmatpush.bf16.msrb.mxu2 %v14460_v0  ;;  %v16165_v26 = vld [vmem:[#allocation10 + $0x1d94] sm:$0xf]  ;;  %v14836_v0 = vor.u32 %v16239_v38, %v14835_v44 }
 0x54e   :  { %9076 = vmatpush.bf16.msra.mxu0 %v14468_v40  ;;  %v16170_v40 = vld [vmem:[#allocation10 + $0x1db4] sm:$0xf0]  ;;  %v14568_v10 = vor.u32 %v16165_v26, %v14565_v4 }
 0x54f   :  { %9628 = vmatpush.bf16.msrb.mxu3 %v14736_v48  ;;  %v14803_v48 = vld [vmem:[#allocation10 + $0x1f80] sm:$0xf]  ;;  %v14572_v41 = vor.u32 %v16170_v40, %v14571_v54  ;;  %v14411_v4 = vld [vmem:[#allocation10 + $0x1c58] sm:$0xf] }
 0x550   :  { %v14804_v61 = vor.u32 %v16231_v52, %v14803_v48  ;;  %v16130_v54 = vld [vmem:[#allocation10 + $0x1c74] sm:$0xf0]  ;;  %v16191_v40 = vld [vmem:[#allocation10 + $0x1e5c] sm:$0xf0] }
 0x551   :  { %9038 = vmatpush.bf16.msrb.mxu1 %v14424_v2  ;;  %9051 = vmatpush.bf16.msrb.mxu2 %v14428_v55  ;;  %v14536_v2 = vor.u32 %v16157_v47, %v14533_v6  ;;  %v14540_v55 = vor.u32 %v16162_v21, %v14539_v29  ;;  %v14412_v52 = vor.u32 %v16130_v54, %v14411_v4  ;;  %v16122_v6 = vld [vmem:[#allocation10 + $0x1c34] sm:$0xf0]  ;;  %v14611_v29 = vld [vmem:[#allocation10 + $0x1e00] sm:$0xf] }
 0x552   :  { %9077 = vmatpush.bf16.msra.mxu0 %v14436_v8  ;;  %v14501_v8 = vld [vmem:[#allocation10 + $0x1d30] sm:$0xf0]  ;;  %v16183_v21 = vld [vmem:[#allocation10 + $0x1e1c] sm:$0xf0] }
 0x553   :  { %9629 = vmatpush.bf16.msrb.mxu3 %v14704_v49  ;;  %v14507_v49 = vld [vmem:[#allocation10 + $0x1d18] sm:$0xf]  ;;  %v14612_v42 = vor.u32 %v16183_v21, %v14611_v29  ;;  %v14677_v29 = vld [vmem:[#allocation10 + $0x1ea0] sm:$0xf0]  ;;  %v14683_v21 = vld [vmem:[#allocation10 + $0x1e88] sm:$0xf] }
 0x555   :  { %9039 = vmatpush.bf16.msrb.mxu1 %v14392_v34  ;;  %9052 = vmatpush.bf16.msrb.mxu2 %v14396_v14  ;;  %v14504_v34 = vor.u32 %v16149_v62, %v14501_v8  ;;  %v14508_v14 = vor.u32 %v16154_v12, %v14507_v49  ;;  %v16240_v62 = vld [vmem:[#allocation10 + $0x1fe4] sm:$0xf0]  ;;  %v16241_v8 = vld [vmem:[#allocation10 + $0x1fec] sm:$0xf0] }
 0x556   :  { %9078 = vmatpush.bf16.msra.mxu0 %v14404_v7  ;;  %v14469_v7 = vld [vmem:[#allocation10 + $0x1cf0] sm:$0xf0] }
 0x557   :  { %9630 = vmatpush.bf16.msrb.mxu3 %v14672_v33  ;;  %v14475_v33 = vld [vmem:[#allocation10 + $0x1cd8] sm:$0xf]  ;;  %v14472_v19 = vor.u32 %v16141_v18, %v14469_v7  ;;  %v14811_v18 = vld [vmem:[#allocation10 + $0x1f88] sm:$0xf]  ;;  %v14819_v7 = vld [vmem:[#allocation10 + $0x1f90] sm:$0xf] }
 0x558   :  { %v14476_v23 = vor.u32 %v16146_v27, %v14475_v33  ;;  %v16233_v33 = vld [vmem:[#allocation10 + $0x1fac] sm:$0xf0] }
 0x559   :  { %9040 = vmatpush.bf16.msrb.mxu1 %v14360_v58  ;;  %9053 = vmatpush.bf16.msrb.mxu2 %v14364_v46  ;;  %v8016_v50 = vpop.f32.mrf.mxu1  ;;  %v14675_v58 = vld [vmem:[#allocation10 + $0x1e80] sm:$0xf]  ;;  %v14820_v45 = vor.u32 %v16233_v33, %v14819_v7  ;;  %v14613_v7 = vld [vmem:[#allocation10 + $0x1e20] sm:$0xf0] }
 0x55a   :  { %9079 = vmatpush.bf16.msra.mxu0 %v14372_v35  ;;  %v17912_v56 = vadd.f32 %v8016_v50, %v17876_v63  ;;  %v16133_v63 = vld [vmem:[#allocation10 + $0x1c94] sm:$0xf]  ;;  %v16199_v46 = vld [vmem:[#allocation10 + $0x1e9c] sm:$0xf0] }
 0x55b   :  { %9631 = vmatpush.bf16.msrb.mxu3 %v14640_v36  ;;  %v14440_v36 = vor.u32 %v16133_v63, %v14437_v24  ;;  %v14676_v26 = vor.u32 %v16199_v46, %v14675_v58  ;;  %v14779_v63 = vld [vmem:[#allocation10 + $0x1f48] sm:$0xf]  ;;  %v16225_v24 = vld [vmem:[#allocation10 + $0x1f6c] sm:$0xf0]  ;;  %v16211_v58 = vld [vmem:[#allocation10 + $0x1f04] sm:$0xf] }
 0x55c   :  { %9041 = vmatmul.bf16.vlgmr.msrb.gmra.mxu1 %v17853_v13  ;;  %9054 = vmatmul.bf16.vlgmr.msrb.gmra.mxu2 %v17853_v13  ;;  %v8055_v32 = vpop.f32.mrf.mxu0  ;;  %v14741_v46 = vld [vmem:[#allocation10 + $0x1f20] sm:$0xf0] }
 0x55d   :  { %9085 = vmatpush.bf16.msra.mxu1 %v14600_v25  ;;  %9098 = vmatpush.bf16.msra.mxu2 %v14604_v30  ;;  %v17915_v5 = vadd.f32 %v8055_v32, %v17879_v43  ;;  %v14444_v25 = vor.u32 %v16138_v9, %v14443_v20  ;;  %v16125_v30 = vld [vmem:[#allocation10 + $0x1c54] sm:$0xf] }
 0x55e   :  { %9533 = vmatpush.bf16.msrb.mxu0 %v14836_v0  ;;  %9632 = vmatmul.bf16.vlgmr.msrb.gmra.mxu3 %v17889_v11  ;;  %v14405_v0 = vld [vmem:[#allocation10 + $0x1c70] sm:$0xf0] }
 0x55f   :  { %9080 = vmatmul.bf16.vlgmr.msra.gmra.mxu0 %v17853_v13  ;;  %v8029_v60 = vpop.f32.mrf.mxu2  ;;  %v14408_v48 = vor.u32 %v16125_v30, %v14405_v0 }
 0x560   :  { %v17918_v43 = vadd.f32 %v8029_v60, %v17882_v3  ;;  %v14643_v3 = vld [vmem:[#allocation10 + $0x1e40] sm:$0xf]  ;;  %v14787_v60 = vld [vmem:[#allocation10 + $0x1f50] sm:$0xf] }
 0x561   :  { %9086 = vmatpush.bf16.msra.mxu1 %v14568_v10  ;;  %9099 = vmatpush.bf16.msra.mxu2 %v14572_v41  ;;  %v8607_v53 = vpop.f32.mrf.mxu3  ;;  %v8018_v38 = vpop.f32.mrf.mxu1  ;;  %v14373_v10 = vld [vmem:[#allocation10 + $0x1c30] sm:$0xf0]  ;;  %v14379_v41 = vld [vmem:[#allocation10 + $0x1c18] sm:$0xf]  ;;  %v14644_v47 = vor.u32 %v16191_v40, %v14643_v3  ;;  %v16203_v3 = vld [vmem:[#allocation10 + $0x1ec4] sm:$0xf] }
 0x562   :  { %9534 = vmatpush.bf16.msrb.mxu0 %v14804_v61  ;;  %v17921_v44 = vadd.f32 %v8607_v53, %v17885_v51  ;;  %v16117_v51 = vld [vmem:[#allocation10 + $0x1c14] sm:$0xf]  ;;  %v14380_v12 = vor.u32 %v16122_v6, %v14379_v41  ;;  %v14788_v53 = vor.u32 %v16225_v24, %v14787_v60  ;;  %v14747_v38 = vld [vmem:[#allocation10 + $0x1f08] sm:$0xf]  ;;  %v14709_v40 = vld [vmem:[#allocation10 + $0x1ee0] sm:$0xf0] }
 0x563   :  { %v14376_v49 = vor.u32 %v16117_v51, %v14373_v10  ;;  %v16208_v51 = vld [vmem:[#allocation10 + $0x1ee4] sm:$0xf0]  ;;  %v14723_v10 = vld [vmem:[#allocation10 + $0x1ed0] sm:$0xf]  ;;  %v16274_v60 = vld [vmem:[#allocation13 + $0xf8] sm:$0xff] }
 0x564   :  { %v8057_v35 = vpop.f32.mrf.mxu0  ;;  %v16209_v41 = vld [vmem:[#allocation10 + $0x1eec] sm:$0xf0]  ;;  %10258 = vmatpush.bf16.msra.mxu3 %v16274_v60  ;;  %v14661_v60 = vld [vmem:[#allocation10 + $0x1e70] sm:$0xf0] }
 0x565   :  { %9087 = vmatpush.bf16.msra.mxu1 %v14536_v2  ;;  %9100 = vmatpush.bf16.msra.mxu2 %v14540_v55  ;;  %v14837_v2 = vld [vmem:[#allocation10 + $0x1fe0] sm:$0xf0]  ;;  %v14843_v55 = vld [vmem:[#allocation10 + $0x1fc8] sm:$0xf]  ;;  %v14724_v6 = vor.u32 %v16209_v41, %v14723_v10  ;;  %v14795_v10 = vld [vmem:[#allocation10 + $0x1f58] sm:$0xf] }
 0x566   :  { %9535 = vmatpush.bf16.msrb.mxu0 %v14772_v37  ;;  %v14851_v37 = vld [vmem:[#allocation10 + $0x1fd0] sm:$0xf]  ;;  %v14840_v15 = vor.u32 %v16235_v59, %v14837_v2  ;;  %v14844_v50 = vor.u32 %v16240_v62, %v14843_v55  ;;  %v16216_v35 = vld [vmem:[#allocation10 + $0x1f24] sm:$0xf0]  ;;  %v16226_v41 = vld [vmem:[#allocation10 + $0x1f74] sm:$0xf0] }
 0x567   :  { %v8031_v61 = vpop.f32.mrf.mxu2  ;;  %v14852_v32 = vor.u32 %v16241_v8, %v14851_v37  ;;  %v14748_v4 = vor.u32 %v16216_v35, %v14747_v38  ;;  %v16200_v59 = vld [vmem:[#allocation10 + $0x1ea4] sm:$0xf0]  ;;  %v14691_v2 = vld [vmem:[#allocation10 + $0x1e90] sm:$0xf] }
 0x568   :  { %v16201_v55 = vld [vmem:[#allocation10 + $0x1eac] sm:$0xf0] }
 0x569   :  { %9088 = vmatpush.bf16.msra.mxu1 %v14504_v34  ;;  %9101 = vmatpush.bf16.msra.mxu2 %v14508_v14  ;;  %v8609_v16 = vpop.f32.mrf.mxu3  ;;  %v16227_v34 = vld [vmem:[#allocation10 + $0x1f84] sm:$0xf] }
 0x56a   :  { %9536 = vmatpush.bf16.msrb.mxu0 %v14740_v39  ;;  %v14805_v14 = vld [vmem:[#allocation10 + $0x1fa0] sm:$0xf0]  ;;  %v16232_v39 = vld [vmem:[#allocation10 + $0x1fa4] sm:$0xf0] }
 0x56b   :  { %v14808_v27 = vor.u32 %v16227_v34, %v14805_v14  ;;  %v14812_v22 = vor.u32 %v16232_v39, %v14811_v18  ;;  %v16192_v34 = vld [vmem:[#allocation10 + $0x1e64] sm:$0xf0]  ;;  %v14659_v14 = vld [vmem:[#allocation10 + $0x1e50] sm:$0xf] }
 0x56c   :  { %v16193_v18 = vld [vmem:[#allocation10 + $0x1e6c] sm:$0xf0] }
 0x56d   :  { %9089 = vmatpush.bf16.msra.mxu1 %v14472_v19  ;;  %9102 = vmatpush.bf16.msra.mxu2 %v14476_v23  ;;  %v16219_v19 = vld [vmem:[#allocation10 + $0x1f44] sm:$0xf] }
 0x56e   :  { %9537 = vmatpush.bf16.msrb.mxu0 %v14708_v1  ;;  %v14773_v23 = vld [vmem:[#allocation10 + $0x1f60] sm:$0xf0]  ;;  %v16224_v1 = vld [vmem:[#allocation10 + $0x1f64] sm:$0xf0] }
 0x56f   :  { %v14776_v20 = vor.u32 %v16219_v19, %v14773_v23  ;;  %v14780_v9 = vor.u32 %v16224_v1, %v14779_v63  ;;  %v14627_v19 = vld [vmem:[#allocation10 + $0x1e10] sm:$0xf]  ;;  %v16237_v1 = vld [vmem:[#allocation10 + $0x1fd4] sm:$0xf] }
 0x570   :  { %v16185_v63 = vld [vmem:[#allocation10 + $0x1e2c] sm:$0xf0] }
 0x571   :  { %9090 = vmatpush.bf16.msra.mxu1 %v14440_v36  ;;  %9103 = vmatpush.bf16.msra.mxu2 %v14444_v25  ;;  %v14755_v36 = vld [vmem:[#allocation10 + $0x1f10] sm:$0xf]  ;;  %v14628_v38 = vor.u32 %v16185_v63, %v14627_v19 }
 0x572   :  { %9538 = vmatpush.bf16.msrb.mxu0 %v14676_v26  ;;  %v16217_v25 = vld [vmem:[#allocation10 + $0x1f2c] sm:$0xf0] }
 0x573   :  { %v14756_v54 = vor.u32 %v16217_v25, %v14755_v36  ;;  %v16229_v25 = vld [vmem:[#allocation10 + $0x1f94] sm:$0xf] }
 0x574   :  { %v16268_v63 = vld [vmem:[#allocation13 + $0xc8] sm:$0xff] }
 0x575   :  { %9091 = vmatpush.bf16.msra.mxu1 %v14408_v48  ;;  %9104 = vmatpush.bf16.msra.mxu2 %v14412_v52  ;;  %v14715_v48 = vld [vmem:[#allocation10 + $0x1ec8] sm:$0xf] }
 0x576   :  { %9539 = vmatpush.bf16.msrb.mxu0 %v14644_v47  ;;  %v14712_v47 = vor.u32 %v16203_v3, %v14709_v40  ;;  %v14716_v61 = vor.u32 %v16208_v51, %v14715_v48  ;;  %v16221_v48 = vld [vmem:[#allocation10 + $0x1f54] sm:$0xf] }
 0x577   :  { %v14789_v51 = vld [vmem:[#allocation10 + $0x1f70] sm:$0xf0] }
 0x579   :  { %9092 = vmatpush.bf16.msra.mxu1 %v14376_v49  ;;  %9105 = vmatpush.bf16.msra.mxu2 %v14380_v12  ;;  %v8068_v30 = vpop.f32.mrf.mxu1  ;;  %v14684_v12 = vor.u32 %v16200_v59, %v14683_v21  ;;  %v14763_v21 = vld [vmem:[#allocation10 + $0x1f18] sm:$0xf] }
 0x57a   :  { %9540 = vmatpush.bf16.msrb.mxu0 %v14612_v42  ;;  %v17927_v26 = vadd.f32 %v8068_v30, %v17896_v31  ;;  %v16195_v31 = vld [vmem:[#allocation10 + $0x1e84] sm:$0xf]  ;;  %v14692_v42 = vor.u32 %v16201_v55, %v14691_v2  ;;  %v16273_v30 = vld [vmem:[#allocation13 + $0xf0] sm:$0xff] }
 0x57b   :  { %v14680_v8 = vor.u32 %v16195_v31, %v14677_v29  ;;  %10259 = vmatpush.bf16.msra.mxu3 %v16273_v30  ;;  %v16213_v31 = vld [vmem:[#allocation10 + $0x1f14] sm:$0xf] }
 0x57c   :  { %9093 = vmatmul.bf16.vlgmr.msra.gmra.mxu1 %v17853_v13  ;;  %9106 = vmatmul.bf16.vlgmr.msra.gmra.mxu2 %v17853_v13  ;;  %v14744_v13 = vor.u32 %v16211_v58, %v14741_v46  ;;  %v8516_v0 = vpop.f32.mrf.mxu0  ;;  %v14757_v29 = vld [vmem:[#allocation10 + $0x1f30] sm:$0xf0] }
 0x57d   :  { %9546 = vmatpush.bf16.msrb.mxu1 %v14840_v15  ;;  %9559 = vmatpush.bf16.msrb.mxu2 %v14844_v50  ;;  %v17930_v52 = vadd.f32 %v8516_v0, %v17899_v57  ;;  %v16187_v15 = vld [vmem:[#allocation10 + $0x1e44] sm:$0xf]  ;;  %v14827_v0 = vld [vmem:[#allocation10 + $0x1f98] sm:$0xf]  ;;  %v14760_v2 = vor.u32 %v16213_v31, %v14757_v29 }
 0x57e   :  { %9585 = vmatpush.bf16.msra.mxu0 %v14852_v32  ;;  %v14645_v50 = vld [vmem:[#allocation10 + $0x1e60] sm:$0xf0]  ;;  %v14651_v32 = vld [vmem:[#allocation10 + $0x1e48] sm:$0xf] }
 0x57f   :  { %9541 = vmatmul.bf16.vlgmr.msrb.gmra.mxu0 %v17889_v11  ;;  %v8081_v16 = vpop.f32.mrf.mxu2  ;;  %v14648_v39 = vor.u32 %v16187_v15, %v14645_v50  ;;  %v14652_v33 = vor.u32 %v16192_v34, %v14651_v32  ;;  %v14731_v15 = vld [vmem:[#allocation10 + $0x1ed8] sm:$0xf]  ;;  %v16250_v31 = vld [vmem:[#allocation13 + $0x38] sm:$0xff] }
 0x580   :  { %v17933_v62 = vadd.f32 %v8081_v16, %v17902_v28  ;;  %v16179_v28 = vld [vmem:[#allocation10 + $0x1e04] sm:$0xf]  ;;  %v16218_v16 = vld [vmem:[#allocation10 + $0x1f34] sm:$0xf0] }
 0x581   :  { %9547 = vmatpush.bf16.msrb.mxu1 %v14808_v27  ;;  %9560 = vmatpush.bf16.msrb.mxu2 %v14812_v22  ;;  %v17935_v57 = vpop.f32.mrf.mxu3  ;;  %v8070_v37 = vpop.f32.mrf.mxu1  ;;  %v14660_v27 = vor.u32 %v16193_v18, %v14659_v14  ;;  %v14619_v22 = vld [vmem:[#allocation10 + $0x1e08] sm:$0xf]  ;;  %v14616_v58 = vor.u32 %v16179_v28, %v14613_v7  ;;  %v14764_v55 = vor.u32 %v16218_v16, %v14763_v21  ;;  %v16210_v50 = vld [vmem:[#allocation10 + $0x1ef4] sm:$0xf0]  ;;  %v16197_v18 = vld [vmem:[#allocation10 + $0x1e94] sm:$0xf] }
 0x582   :  { %9586 = vmatpush.bf16.msra.mxu0 %v14820_v45  ;;  %v16184_v45 = vld [vmem:[#allocation10 + $0x1e24] sm:$0xf0]  ;;  %v16205_v37 = vld [vmem:[#allocation10 + $0x1ed4] sm:$0xf]  ;;  %v14732_v14 = vor.u32 %v16210_v50, %v14731_v15  ;;  %v14699_v7 = vld [vmem:[#allocation10 + $0x1e98] sm:$0xf] }
 0x583   :  { %v14620_v46 = vor.u32 %v16184_v45, %v14619_v22  ;;  %v14693_v28 = vld [vmem:[#allocation10 + $0x1eb0] sm:$0xf0] }
 0x584   :  { %v8518_v49 = vpop.f32.mrf.mxu0  ;;  %v14696_v45 = vor.u32 %v16197_v18, %v14693_v28  ;;  %v16248_v15 = vld [vmem:[#allocation13 + $0x28] sm:$0xff]  ;;  %v16245_v18 = vld [vmem:[#allocation13 + $0x10] sm:$0xff] }
 0x585   :  { %9548 = vmatpush.bf16.msrb.mxu1 %v14776_v20  ;;  %9561 = vmatpush.bf16.msrb.mxu2 %v14780_v9  ;;  %v14853_v20 = vld [vmem:[#allocation10 + $0x1ff0] sm:$0xf0]  ;;  %v14859_v9 = vld [vmem:[#allocation10 + $0x1fd8] sm:$0xf] }
 0x586   :  { %9587 = vmatpush.bf16.msra.mxu0 %v14788_v53  ;;  %v16242_v53 = vld [vmem:[#allocation10 + $0x1ff4] sm:$0xf0]  ;;  %v14856_v35 = vor.u32 %v16237_v1, %v14853_v20 }
 0x587   :  { %v8083_v23 = vpop.f32.mrf.mxu2  ;;  %v14860_v36 = vor.u32 %v16242_v53, %v14859_v9  ;;  %v16194_v20 = vld [vmem:[#allocation10 + $0x1e74] sm:$0xf0]  ;;  %v16181_v53 = vld [vmem:[#allocation10 + $0x1e14] sm:$0xf] }
 0x588   :  { %v16189_v23 = vld [vmem:[#allocation10 + $0x1e54] sm:$0xf] }
 0x589   :  { %9549 = vmatpush.bf16.msrb.mxu1 %v14744_v13  ;;  %9562 = vmatpush.bf16.msrb.mxu2 %v14748_v4  ;;  %v9070_v24 = vpop.f32.mrf.mxu3  ;;  %v14821_v13 = vld [vmem:[#allocation10 + $0x1fb0] sm:$0xf0]  ;;  %v16234_v4 = vld [vmem:[#allocation10 + $0x1fb4] sm:$0xf0]  ;;  %v14664_v9 = vor.u32 %v16189_v23, %v14661_v60 }
 0x58a   :  { %9588 = vmatpush.bf16.msra.mxu0 %v14756_v54  ;;  %v16272_v54 = vld [vmem:[#allocation13 + $0xe8] sm:$0xff]  ;;  %v14824_v3 = vor.u32 %v16229_v25, %v14821_v13  ;;  %v14828_v40 = vor.u32 %v16234_v4, %v14827_v0  ;;  %v14667_v24 = vld [vmem:[#allocation10 + $0x1e58] sm:$0xf] }
 0x58b   :  { %10260 = vmatpush.bf16.msra.mxu3 %v16272_v54  ;;  %v16305_v4 = vld [vmem:[#allocation13 + $0x1f0] sm:$0xff]  ;;  %v16304_v54 = vld [vmem:[#allocation13 + $0x1e8] sm:$0xff] }
 0x58d   :  { %9550 = vmatpush.bf16.msrb.mxu1 %v14712_v47  ;;  %9563 = vmatpush.bf16.msrb.mxu2 %v14716_v61  ;;  %v16271_v47 = vld [vmem:[#allocation13 + $0xe0] sm:$0xff]  ;;  %v14792_v61 = vor.u32 %v16221_v48, %v14789_v51 }
 0x58e   :  { %9589 = vmatpush.bf16.msra.mxu0 %v14724_v6  ;;  %v14796_v6 = vor.u32 %v16226_v41, %v14795_v10  ;;  %v17958_v41 = vld [vmem:[#allocation11] sm:$0xff] }
 0x58f   :  { %10261 = vmatpush.bf16.msra.mxu3 %v16271_v47  ;;  %v16301_v47 = vld [vmem:[#allocation13 + $0x1d0] sm:$0xff]  ;;  %v9654_v23 = vperm.slane %v17958_v41, 7 }
 0x591   :  { %9551 = vmatpush.bf16.msrb.mxu1 %v14680_v8  ;;  %9564 = vmatpush.bf16.msrb.mxu2 %v14684_v12  ;;  %v16270_v8 = vld [vmem:[#allocation13 + $0xd8] sm:$0xff] }
 0x592   :  { %9590 = vmatpush.bf16.msra.mxu0 %v14692_v42  ;;  %v14725_v42 = vld [vmem:[#allocation10 + $0x1ef0] sm:$0xf0] }
 0x593   :  { %10262 = vmatpush.bf16.msra.mxu3 %v16270_v8  ;;  %v14728_v34 = vor.u32 %v16205_v37, %v14725_v42  ;;  %v16249_v37 = vld [vmem:[#allocation13 + $0x30] sm:$0xff]  ;;  %v9682_v8 = vld [vmem:[#allocation2 + $0x18] sm:$0xff] }
 0x595   :  { %9552 = vmatpush.bf16.msrb.mxu1 %v14648_v39  ;;  %9565 = vmatpush.bf16.msrb.mxu2 %v14652_v33  ;;  %v16269_v39 = vld [vmem:[#allocation13 + $0xd0] sm:$0xff] }
 0x596   :  { %9591 = vmatpush.bf16.msra.mxu0 %v14660_v27  ;;  %v16202_v33 = vld [vmem:[#allocation10 + $0x1eb4] sm:$0xf0] }
 0x597   :  { %10263 = vmatpush.bf16.msra.mxu3 %v16269_v39  ;;  %v14700_v19 = vor.u32 %v16202_v33, %v14699_v7  ;;  %v16244_v7 = vld [vmem:[#allocation13 + $0x8] sm:$0xff]  ;;  %v16243_v33 = vld [vmem:[#allocation13] sm:$0xff] }
 0x599   :  { %9553 = vmatpush.bf16.msrb.mxu1 %v14616_v58  ;;  %9566 = vmatpush.bf16.msrb.mxu2 %v14620_v46  ;;  %v8529_v59 = vpop.f32.mrf.mxu1  ;;  %v14629_v58 = vld [vmem:[#allocation10 + $0x1e30] sm:$0xf0]  ;;  %v16267_v46 = vld [vmem:[#allocation13 + $0xc0] sm:$0xff] }
 0x59a   :  { %9592 = vmatpush.bf16.msra.mxu0 %v14628_v38  ;;  %v17941_v49 = vadd.f32 %v8529_v59, %v17912_v56  ;;  %v14635_v38 = vld [vmem:[#allocation10 + $0x1e18] sm:$0xf]  ;;  %v14632_v13 = vor.u32 %v16181_v53, %v14629_v58  ;;  %v9686_v53 = vld [vmem:[#allocation2 + $0x38] sm:$0xff] }
 0x59b   :  { %10264 = vmatpush.bf16.msra.mxu3 %v16268_v63  ;;  %v16266_v58 = vld [vmem:[#allocation13 + $0xb8] sm:$0xff] }
 0x59c   :  { %9554 = vmatmul.bf16.vlgmr.msrb.gmra.mxu1 %v17889_v11  ;;  %9567 = vmatmul.bf16.vlgmr.msrb.gmra.mxu2 %v17889_v11  ;;  %v8568_v12 = vpop.f32.mrf.mxu0 }
 0x59d   :  { %9598 = vmatpush.bf16.msra.mxu1 %v14856_v35  ;;  %9611 = vmatpush.bf16.msra.mxu2 %v14860_v36  ;;  %v17944_v32 = vadd.f32 %v8568_v12, %v17915_v5  ;;  %v16186_v35 = vld [vmem:[#allocation10 + $0x1e34] sm:$0xf0]  ;;  %v16306_v36 = vld [vmem:[#allocation13 + $0x1f8] sm:$0xff]  ;;  %v16299_v12 = vld [vmem:[#allocation13 + $0x1c0] sm:$0xff] }
 0x59e   :  { %9593 = vmatmul.bf16.vlgmr.msra.gmra.mxu0 %v17889_v11  ;;  %v14636_v0 = vor.u32 %v16186_v35, %v14635_v38  ;;  %v16265_v38 = vld [vmem:[#allocation13 + $0xb0] sm:$0xff] }
 0x59f   :  { %v8542_v27 = vpop.f32.mrf.mxu2  ;;  %10265 = vmatpush.bf16.msra.mxu3 %v16267_v46  ;;  %10219 = vmatpush.bf16.msrb.mxu0 %v16250_v31  ;;  %v16256_v46 = vld [vmem:[#allocation13 + $0x68] sm:$0xff]  ;;  %v9647_v31 = vperm.slane %v17958_v41, 0 }
 0x5a0   :  { %v17947_v56 = vadd.f32 %v8542_v27, %v17918_v43  ;;  %v14668_v43 = vor.u32 %v16194_v20, %v14667_v24  ;;  %v16258_v27 = vld [vmem:[#allocation13 + $0x78] sm:$0xff]  ;;  %v16257_v20 = vld [vmem:[#allocation13 + $0x70] sm:$0xff] }
 0x5a1   :  { %9599 = vmatpush.bf16.msra.mxu1 %v14824_v3  ;;  %9612 = vmatpush.bf16.msra.mxu2 %v14828_v40  ;;  %v17949_v22 = vpop.f32.mrf.mxu3  ;;  %v8531_v5 = vpop.f32.mrf.mxu1  ;;  %v16303_v3 = vld [vmem:[#allocation13 + $0x1e0] sm:$0xff]  ;;  %v16302_v40 = vld [vmem:[#allocation13 + $0x1d8] sm:$0xff] }
 0x5a2   :  { %v16282_v5 = vld [vmem:[#allocation13 + $0x138] sm:$0xff] }
 0x5a3   :  { %10310 = vmatpush.bf16.msrb.mxu3 %v16306_v36  ;;  %10220 = vmatpush.bf16.msrb.mxu0 %v16249_v37  ;;  %v16251_v37 = vld [vmem:[#allocation13 + $0x40] sm:$0xff] }
 0x5a4   :  { %v8570_v1 = vpop.f32.mrf.mxu0 }
 0x5a5   :  { %9600 = vmatpush.bf16.msra.mxu1 %v14792_v61  ;;  %9613 = vmatpush.bf16.msra.mxu2 %v14796_v6  ;;  %v9127_v61 = vadd.f32 %v17935_v57, %v17905_v17 }
 0x5a7   :  { %v8544_v25 = vpop.f32.mrf.mxu2  ;;  %10311 = vmatpush.bf16.msrb.mxu3 %v16305_v4  ;;  %10221 = vmatpush.bf16.msrb.mxu0 %v16248_v15  ;;  %v16264_v4 = vld [vmem:[#allocation13 + $0xa8] sm:$0xff] }
 0x5a9   :  { %9601 = vmatpush.bf16.msra.mxu1 %v14760_v2  ;;  %9614 = vmatpush.bf16.msra.mxu2 %v14764_v55  ;;  %v9122_v30 = vpop.f32.mrf.mxu3 }
 0x5aa   :  { %v16255_v30 = vld [vmem:[#allocation13 + $0x60] sm:$0xff] }
 0x5ab   :  { %10312 = vmatpush.bf16.msrb.mxu3 %v16304_v54  ;;  %v16254_v54 = vld [vmem:[#allocation13 + $0x58] sm:$0xff] }
 0x5ad   :  { %9602 = vmatpush.bf16.msra.mxu1 %v14728_v34  ;;  %9615 = vmatpush.bf16.msra.mxu2 %v14732_v14  ;;  %v16247_v34 = vld [vmem:[#allocation13 + $0x20] sm:$0xff]  ;;  %v16246_v14 = vld [vmem:[#allocation13 + $0x18] sm:$0xff] }
 0x5ae   :  { %10222 = vmatpush.bf16.msrb.mxu0 %v16247_v34 }
 0x5af   :  { %10313 = vmatpush.bf16.msrb.mxu3 %v16303_v3  ;;  %v16278_v3 = vld [vmem:[#allocation13 + $0x118] sm:$0xff] }
 0x5b1   :  { %9603 = vmatpush.bf16.msra.mxu1 %v14696_v45  ;;  %9616 = vmatpush.bf16.msra.mxu2 %v14700_v19  ;;  %v9131_v45 = vadd.f32 %v17949_v22, %v17921_v44  ;;  %v16280_v44 = vld [vmem:[#allocation13 + $0x128] sm:$0xff] }
 0x5b2   :  { %10223 = vmatpush.bf16.msrb.mxu0 %v16246_v14  ;;  %v16259_v14 = vld [vmem:[#allocation13 + $0x80] sm:$0xff] }
 0x5b3   :  { %10314 = vmatpush.bf16.msrb.mxu3 %v16302_v40  ;;  %v16263_v40 = vld [vmem:[#allocation13 + $0xa0] sm:$0xff] }
 0x5b5   :  { %9604 = vmatpush.bf16.msra.mxu1 %v14664_v9  ;;  %9617 = vmatpush.bf16.msra.mxu2 %v14668_v43  ;;  %v16281_v9 = vld [vmem:[#allocation13 + $0x130] sm:$0xff] }
 0x5b6   :  { %10224 = vmatpush.bf16.msrb.mxu0 %v16245_v18  ;;  %v16298_v18 = vld [vmem:[#allocation13 + $0x1b8] sm:$0xff] }
 0x5b7   :  { %10315 = vmatpush.bf16.msrb.mxu3 %v16301_v47  ;;  %v16277_v47 = vld [vmem:[#allocation13 + $0x110] sm:$0xff] }
 0x5b9   :  { %9605 = vmatpush.bf16.msra.mxu1 %v14632_v13  ;;  %9618 = vmatpush.bf16.msra.mxu2 %v14636_v0  ;;  %v8581_v48 = vpop.f32.mrf.mxu1  ;;  %v16279_v13 = vld [vmem:[#allocation13 + $0x120] sm:$0xff] }
 0x5ba   :  { %v17954_v51 = vadd.f32 %v8581_v48, %v17927_v26  ;;  %v16300_v26 = vld [vmem:[#allocation13 + $0x1c8] sm:$0xff]  ;;  %10225 = vmatpush.bf16.msrb.mxu0 %v16244_v7  ;;  %v16253_v48 = vld [vmem:[#allocation13 + $0x50] sm:$0xff] }
 0x5bb   :  { %10316 = vmatpush.bf16.msrb.mxu3 %v16300_v26  ;;  %v16276_v26 = vld [vmem:[#allocation13 + $0x108] sm:$0xff] }
 0x5bc   :  { %9606 = vmatmul.bf16.vlgmr.msra.gmra.mxu1 %v17889_v11  ;;  %9619 = vmatmul.bf16.vlgmr.msra.gmra.mxu2 %v17889_v11  ;;  %v17956_v10 = vpop.f32.mrf.mxu0  ;;  %v9650_v11 = vperm.slane %v17958_v41, 3  ;;  %v16288_v7 = vld [vmem:[#allocation13 + $0x168] sm:$0xff] }
 0x5bd   :  { %10232 = vmatpush.bf16.msrb.mxu1 %v16258_v27  ;;  %10245 = vmatpush.bf16.msrb.mxu2 %v16266_v58  ;;  %v16297_v27 = vld [vmem:[#allocation13 + $0x1b0] sm:$0xff]  ;;  %v16284_v58 = vld [vmem:[#allocation13 + $0x148] sm:$0xff] }
 0x5be   :  { %10226 = vmatpush.bf16.msrb.mxu0 %v16243_v33 }
 0x5bf   :  { %v8594_v6 = vpop.f32.mrf.mxu2  ;;  %10317 = vmatpush.bf16.msrb.mxu3 %v16299_v12  ;;  %v9679_v12 = vld [vmem:[#allocation2] sm:$0xff] }
 0x5c0   :  { %v17964_v29 = vadd.f32 %v8594_v6, %v17933_v62  ;;  %v9124_v6 = vadd.f32 %v17956_v10, %v17930_v52  ;;  %v16260_v10 = vld [vmem:[#allocation13 + $0x88] sm:$0xff] }
 0x5c1   :  { %v9581_v21 = vpop.f32.mrf.mxu3  ;;  %v8583_v59 = vpop.f32.mrf.mxu1  ;;  %10233 = vmatpush.bf16.msrb.mxu1 %v16257_v20  ;;  %10246 = vmatpush.bf16.msrb.mxu2 %v16265_v38  ;;  %v9648_v20 = vperm.slane %v17958_v41, 1  ;;  %v16293_v38 = vld [vmem:[#allocation13 + $0x190] sm:$0xff] }
 0x5c2   :  { %v9640_v16 = vadd.f32 %v9581_v21, %v9127_v61  ;;  %10271 = vmatpush.bf16.msra.mxu0 %v16282_v5  ;;  %v16262_v61 = vld [vmem:[#allocation13 + $0x98] sm:$0xff]  ;;  %v16252_v21 = vld [vmem:[#allocation13 + $0x48] sm:$0xff]  ;;  %v16287_v5 = vld [vmem:[#allocation13 + $0x160] sm:$0xff] }
 0x5c4   :  { %v9031_v2 = vpop.f32.mrf.mxu0  ;;  %v9666_v55 = vadd.f32 %v9650_v11, %v9640_v16 }
 0x5c5   :  { %10234 = vmatpush.bf16.msrb.mxu1 %v16256_v46  ;;  %10247 = vmatpush.bf16.msrb.mxu2 %v16264_v4  ;;  %v16261_v2 = vld [vmem:[#allocation13 + $0x90] sm:$0xff] }
 0x5c6   :  { %v9674_v17 = vmax.f32 %v9666_v55, 0.0  ;;  %10272 = vmatpush.bf16.msra.mxu0 %v16281_v9 }
 0x5c7   :  { %v8596_v42 = vpop.f32.mrf.mxu2 }
 0x5c8   :  { %v9690_v57 = vmul.f32 %v9682_v8, %v9674_v17  ;;  %v16275_v8 = vld [vmem:[#allocation13 + $0x100] sm:$0xff]  ;;  %v16290_v17 = vld [vmem:[#allocation13 + $0x178] sm:$0xff] }
 0x5c9   :  { %v9583_v50 = vpop.f32.mrf.mxu3  ;;  %10235 = vmatpush.bf16.msrb.mxu1 %v16255_v30  ;;  %10248 = vmatpush.bf16.msrb.mxu2 %v16263_v40  ;;  %v9683_v30 = vld [vmem:[#allocation2 + $0x20] sm:$0xff] }
 0x5ca   :  { %v9698_v62 = vpack.c.bf16 %v9690_v57, %v9690_v57  ;;  %10273 = vmatpush.bf16.msra.mxu0 %v16280_v44 }
 0x5cc   :  { %10266 = vmatmul.bf16.vlgmr.msra.gmra.mxu3 %v9698_v62  ;;  %v16289_v62 = vld [vmem:[#allocation13 + $0x170] sm:$0xff] }
 0x5cd   :  { %10236 = vmatpush.bf16.msrb.mxu1 %v16254_v54  ;;  %10249 = vmatpush.bf16.msrb.mxu2 %v16262_v61 }
 0x5ce   :  { %10274 = vmatpush.bf16.msra.mxu0 %v16279_v13  ;;  %v9649_v13 = vperm.slane %v17958_v41, 2 }
 0x5d1   :  { %10237 = vmatpush.bf16.msrb.mxu1 %v16253_v48  ;;  %10250 = vmatpush.bf16.msrb.mxu2 %v16261_v2 }
 0x5d2   :  { %10275 = vmatpush.bf16.msra.mxu0 %v16278_v3 }
 0x5d5   :  { %10238 = vmatpush.bf16.msrb.mxu1 %v16252_v21  ;;  %10251 = vmatpush.bf16.msrb.mxu2 %v16260_v10  ;;  %v16291_v21 = vld [vmem:[#allocation13 + $0x180] sm:$0xff] }
 0x5d6   :  { %10276 = vmatpush.bf16.msra.mxu0 %v16277_v47 }
 0x5d9   :  { %v17966_v39 = vpop.f32.mrf.mxu1  ;;  %10239 = vmatpush.bf16.msrb.mxu1 %v16251_v37  ;;  %10252 = vmatpush.bf16.msrb.mxu2 %v16259_v14 }
 0x5da   :  { %10277 = vmatpush.bf16.msra.mxu0 %v16276_v26  ;;  %v9681_v26 = vld [vmem:[#allocation2 + $0x10] sm:$0xff] }
 0x5dc   :  { %v17968_v28 = vpop.f32.mrf.mxu0 }
 0x5dd   :  { %10284 = vmatpush.bf16.msra.mxu1 %v16290_v17  ;;  %10297 = vmatpush.bf16.msra.mxu2 %v16298_v18  ;;  %v9128_v9 = vadd.f32 %v17968_v28, %v17944_v32  ;;  %v9684_v17 = vld [vmem:[#allocation2 + $0x28] sm:$0xff] }
 0x5de   :  { %10278 = vmatpush.bf16.msra.mxu0 %v16275_v8 }
 0x5df   :  { %v17972_v19 = vpop.f32.mrf.mxu2 }
 0x5e0   :  { %v9126_v32 = vadd.f32 %v17972_v19, %v17947_v56 }
 0x5e1   :  { %v9633_v63 = vpop.f32.mrf.mxu3  ;;  %v9044_v1 = vpop.f32.mrf.mxu1  ;;  %10285 = vmatpush.bf16.msra.mxu1 %v16289_v62  ;;  %10298 = vmatpush.bf16.msra.mxu2 %v16297_v27 }
 0x5e2   :  { %v9644_v60 = vadd.f32 %v9633_v63, %v9131_v45  ;;  %v16296_v45 = vld [vmem:[#allocation13 + $0x1a8] sm:$0xff]  ;;  %v16295_v63 = vld [vmem:[#allocation13 + $0x1a0] sm:$0xff]  ;;  %v16285_v1 = vld [vmem:[#allocation13 + $0x150] sm:$0xff] }
 0x5e4   :  { %v9083_v24 = vpop.f32.mrf.mxu0  ;;  %v9670_v43 = vadd.f32 %v9654_v23, %v9644_v60  ;;  %v16286_v23 = vld [vmem:[#allocation13 + $0x158] sm:$0xff] }
 0x5e5   :  { %10286 = vmatpush.bf16.msra.mxu1 %v16288_v7  ;;  %10299 = vmatpush.bf16.msra.mxu2 %v16296_v45  ;;  %v16294_v60 = vld [vmem:[#allocation13 + $0x198] sm:$0xff]  ;;  %v9125_v24 = vadd.f32 %v17966_v39, %v17941_v49  ;;  %v16283_v49 = vld [vmem:[#allocation13 + $0x140] sm:$0xff] }
 0x5e6   :  { %v9678_v22 = vmax.f32 %v9670_v43, 0.0  ;;  %v9685_v7 = vld [vmem:[#allocation2 + $0x30] sm:$0xff] }
 0x5e7   :  { %v9057_v36 = vpop.f32.mrf.mxu2 }
 0x5e8   :  { %v9694_v35 = vmul.f32 %v9686_v53, %v9678_v22  ;;  %v9651_v53 = vperm.slane %v17958_v41, 4  ;;  %v9680_v36 = vld [vmem:[#allocation2 + $0x8] sm:$0xff] }
 0x5e9   :  { %v9635_v25 = vpop.f32.mrf.mxu3  ;;  %10287 = vmatpush.bf16.msra.mxu1 %v16287_v5  ;;  %10300 = vmatpush.bf16.msra.mxu2 %v16295_v63 }
 0x5ea   :  { %v9702_v0 = vpack.c.bf16 %v9694_v35, %v9694_v35 }
 0x5ec   :  { %10318 = vmatmul.bf16.vlgmr.msrb.gmra.mxu3 %v9702_v0  ;;  %v16292_v0 = vld [vmem:[#allocation13 + $0x188] sm:$0xff] }
 0x5ed   :  { %10288 = vmatpush.bf16.msra.mxu1 %v16286_v23  ;;  %10301 = vmatpush.bf16.msra.mxu2 %v16294_v60 }
 0x5f1   :  { %10289 = vmatpush.bf16.msra.mxu1 %v16285_v1  ;;  %10302 = vmatpush.bf16.msra.mxu2 %v16293_v38 }
 0x5f5   :  { %10290 = vmatpush.bf16.msra.mxu1 %v16284_v58  ;;  %10303 = vmatpush.bf16.msra.mxu2 %v16292_v0 }
 0x5f9   :  { %v17977_v11 = vpop.f32.mrf.mxu1  ;;  %10291 = vmatpush.bf16.msra.mxu1 %v16283_v49  ;;  %10304 = vmatpush.bf16.msra.mxu2 %v16291_v21 }
 0x5fa   :  { %v9129_v2 = vadd.f32 %v17977_v11, %v17954_v51 }
 0x5fc   :  { %v9542_v16 = vpop.f32.mrf.mxu0 }
 0x5fd   :  { %v9637_v59 = vadd.f32 %v9542_v16, %v9124_v6 }
 0x5ff   :  { %v9663_v55 = vadd.f32 %v9647_v31, %v9637_v59  ;;  %v17980_v52 = vpop.f32.mrf.mxu2 }
 0x601   :  { %v9671_v57 = vmax.f32 %v9663_v55, 0.0  ;;  %v9096_v15 = vpop.f32.mrf.mxu1  ;;  %v9652_v55 = vperm.slane %v17958_v41, 5 }
 0x603   :  { %v9687_v42 = vmul.f32 %v9679_v12, %v9671_v57  ;;  %v9130_v57 = vadd.f32 %v17980_v52, %v17964_v29 }
 0x604   :  { %v9544_v50 = vpop.f32.mrf.mxu0 }
 0x605   :  { %v9695_v34 = vpack.c.bf16 %v9687_v42, %v9687_v42  ;;  %v9653_v42 = vperm.slane %v17958_v41, 6 }
 0x607   :  { %10227 = vmatmul.bf16.vlgmr.msrb.gmra.mxu0 %v9695_v34  ;;  %v9109_v33 = vpop.f32.mrf.mxu2 }
 0x619   :  { %v9555_v43 = vpop.f32.mrf.mxu1 }
 0x61a   :  { %v9638_v46 = vadd.f32 %v9555_v43, %v9125_v24  ;;  %v16323_v43 = vld [vmem:[#allocation14] ss:$0 sm:$0xff] }
 0x61b   :  { %v9594_v44 = vpop.f32.mrf.mxu0 }
 0x61c   :  { %v9641_v22 = vadd.f32 %v9594_v44, %v9128_v9  ;;  %v9664_v35 = vadd.f32 %v9648_v20, %v9638_v46 }
 0x61e   :  { %v9667_v25 = vadd.f32 %v9651_v53, %v9641_v22  ;;  %v9672_v39 = vmax.f32 %v9664_v35, 0.0 }
 0x61f   :  { %v9568_v54 = vpop.f32.mrf.mxu2 }
 0x620   :  { %v9675_v28 = vmax.f32 %v9667_v25, 0.0  ;;  %v9688_v4 = vmul.f32 %v9680_v36, %v9672_v39  ;;  %v9639_v40 = vadd.f32 %v9568_v54, %v9126_v32 }
 0x621   :  { %v9557_v48 = vpop.f32.mrf.mxu1 }
 0x622   :  { %v9691_v3 = vmul.f32 %v9683_v30, %v9675_v28  ;;  %v9696_v47 = vpack.c.bf16 %v9688_v4, %v9688_v4  ;;  %v9665_v31 = vadd.f32 %v9649_v13, %v9639_v40 }
 0x623   :  { %v9596_v61 = vpop.f32.mrf.mxu0 }
 0x624   :  { %v9699_v6 = vpack.c.bf16 %v9691_v3, %v9691_v3  ;;  %10240 = vmatmul.bf16.vlgmr.msrb.gmra.mxu1 %v9696_v47  ;;  %v9673_v16 = vmax.f32 %v9665_v31, 0.0 }
 0x626   :  { %10279 = vmatmul.bf16.vlgmr.msra.gmra.mxu0 %v9699_v6  ;;  %v9689_v56 = vmul.f32 %v9681_v26, %v9673_v16 }
 0x627   :  { %v9570_v19 = vpop.f32.mrf.mxu2 }
 0x628   :  { %v9697_v59 = vpack.c.bf16 %v9689_v56, %v9689_v56 }
 0x62a   :  { %10253 = vmatmul.bf16.vlgmr.msrb.gmra.mxu2 %v9697_v59 }
 0x639   :  { %v9607_v37 = vpop.f32.mrf.mxu1 }
 0x63a   :  { %v9642_v8 = vadd.f32 %v9607_v37, %v9129_v2 }
 0x63c   :  { %v9668_v12 = vadd.f32 %v9652_v55, %v9642_v8 }
 0x63e   :  { %v9676_v10 = vmax.f32 %v9668_v12, 0.0 }
 0x63f   :  { %v9620_v15 = vpop.f32.mrf.mxu2 }
 0x640   :  { %v9692_v50 = vmul.f32 %v9684_v17, %v9676_v10  ;;  %v9643_v62 = vadd.f32 %v9620_v15, %v9130_v57 }
 0x641   :  { %v9609_v34 = vpop.f32.mrf.mxu1 }
 0x642   :  { %v9700_v14 = vpack.c.bf16 %v9692_v50, %v9692_v50  ;;  %v9669_v18 = vadd.f32 %v9653_v42, %v9643_v62 }
 0x644   :  { %v9677_v51 = vmax.f32 %v9669_v18, 0.0  ;;  %10292 = vmatmul.bf16.vlgmr.msra.gmra.mxu1 %v9700_v14 }
 0x646   :  { %v9693_v11 = vmul.f32 %v9685_v7, %v9677_v51 }
 0x647   :  { %v9622_v33 = vpop.f32.mrf.mxu2 }
 0x648   :  { %v9701_v27 = vpack.c.bf16 %v9693_v11, %v9693_v11 }
 0x64a   :  { %10305 = vmatmul.bf16.vlgmr.msra.gmra.mxu2 %v9701_v27 }
 0x64f   :  { %v10267_v5 = vpop.f32.mrf.mxu3 }
 0x657   :  { %v10269_v45 = vpop.f32.mrf.mxu3 }
 0x66f   :  { %v10319_v23 = vpop.f32.mrf.mxu3 }
 0x677   :  { %v10321_v29 = vpop.f32.mrf.mxu3 }
 0x684   :  { %v10228_v52 = vpop.f32.mrf.mxu0 }
 0x685   :  { %v10229_v53 = vadd.f32 %v16323_v43, %v10228_v52 }
 0x68c   :  { %v10230_v63 = vpop.f32.mrf.mxu0 }
 0x6a1   :  { %v10241_v41 = vpop.f32.mrf.mxu1 }
 0x6a2   :  { %v10242_v58 = vadd.f32 %v10241_v41, %v10229_v53 }
 0x6a3   :  { %v10280_v1 = vpop.f32.mrf.mxu0 }
 0x6a9   :  { %v10243_v60 = vpop.f32.mrf.mxu1 }
 0x6ab   :  { %v10282_v24 = vpop.f32.mrf.mxu0 }
 0x6ad   :  { %v10254_v20 = vpop.f32.mrf.mxu2 }
 0x6ae   :  { %v10255_v44 = vadd.f32 %v10254_v20, %v10242_v58 }
 0x6b0   :  { %v10268_v22 = vadd.f32 %v10267_v5, %v10255_v44 }
 0x6b2   :  { %v10281_v35 = vadd.f32 %v10280_v1, %v10268_v22 }
 0x6b5   :  { %v10256_v9 = vpop.f32.mrf.mxu2 }
 0x6c1   :  { %v10293_v46 = vpop.f32.mrf.mxu1 }
 0x6c2   :  { %v10294_v36 = vadd.f32 %v10293_v46, %v10281_v35 }
 0x6c9   :  { %v10295_v38 = vpop.f32.mrf.mxu1 }
 0x6cd   :  { %v10306_v25 = vpop.f32.mrf.mxu2 }
 0x6ce   :  { %v10307_v49 = vadd.f32 %v10306_v25, %v10294_v36 }
 0x6d0   :  { %v10320_v39 = vadd.f32 %v10319_v23, %v10307_v49 }
 0x6d2   :  { %10323 = vst [vmem:[#allocation16] sm:$0xff] %v10320_v39 }
 0x6d3   :  { %10334 = dma.vmem_to_hbm [thread:$0]  %s10330_s29, 128, %s10332_s6, [#allocation4]  }
 0x6d5   :  { %v10308_v30 = vpop.f32.mrf.mxu2 }
 0x6d6   :  { %16551 = dma.done.wait [#allocation4], 128  }
 0x6d7   :  { %16552 = vsyncadd [#allocation4], 4294967168 }
 0x6d8   :  { %10339 = vsyncpa [#allocation3], 1 }
 0x6d9   :  { %10340 = vsyncpa [#allocation6], 1 }
 0x6da   :  { %10341 = vsyncpa [#allocation9], 1 }
 0x6db   :  { %10342 = vsyncpa [#allocation12], 1 }
 0x6dc   :  { %10343 = vsyncpa [#allocation15], 1 }
 0x6dd   :  { %10344 = vsyncpa [#allocation4], 1 }

</bundles_post_ra>
